<compile_context>
chip_gen: v7x
topology: tpu7x:2x2x1
jax: 0.10.0
libtpu: 0.0.40
codegen_flags: <defaults>
</compile_context>

<pallas_src>
import functools

import jax
import jax.numpy as jnp
from jax.experimental import pallas as pl
from jax.experimental.pallas import tpu as pltpu

EPS = 1e-5
# <= v7x's 64 MiB physical VMEM; above the 16/32 MiB scoped defaults so larger
# per-step image blocks fit on v5e/v6e (usage here is only a few MiB anyway).
VMEM_LIMIT = 48 * 1024 * 1024


def _round_up(x, m):
    return ((x + m - 1) // m) * m


def _cdiv(a, b):
    return -(-a // b)


# ---------------------------------------------------------------------------
# Pallas kernels
# ---------------------------------------------------------------------------
def fc_fused_kernel(noise_ref, w1_ref, b1_ref, embed_ref, w2_ref, b2_ref, out_ref):
    """relu(noise @ W1 + b1) + relu(embed @ W2 + b2) -> (B, 4096), NHWC column order."""
    nf = jnp.dot(noise_ref[...].astype(jnp.bfloat16), w1_ref[...],
                 preferred_element_type=jnp.float32) + b1_ref[...]
    ef = jnp.dot(embed_ref[...].astype(jnp.bfloat16), w2_ref[...],
                 preferred_element_type=jnp.float32) + b2_ref[...]
    out_ref[...] = jnp.maximum(nf, 0.0) + jnp.maximum(ef, 0.0)


def convt_fused_kernel(x_ref, mask_ref, scale_ref, shift_ref, w_ref, b_ref,
                       out_ref, a_ref, *, W, Ci, M, apply_tanh, split_k):
    """Fused BN-affine + ReLU + ConvTranspose2d(k=4, s=2, p=1), sub-pixel form.

    One grid step processes NB images whose zero-padded planes are stacked along the
    row axis (M = NB * P_pad rows), so a single matmul fills the MXU M dimension.

    x_ref    : (M, Ci)  f32 flattened padded NHWC rows (pad ring / filler rows are 0).
    mask_ref : (M, 1)   f32, 1.0 on interior pixels, 0.0 on the pad ring / filler rows.
    scale_ref, shift_ref : (1, Ci) f32 folded BN scale/shift (batch stats, from XLA).
    w_ref    : (4*Ci, 4*Co_pad) bf16 sub-pixel weight, rows (dy,dx,ci), cols (ey,ex,co).
    b_ref    : (1, 4*Co_pad) f32 bias tiled over the 4 output phases.
    out_ref  : (M, 4*Co_pad) f32 per-anchor phase outputs.
    a_ref    : (M + EXTRA, Ci) bf16 scratch of normalized activations; the EXTRA tail
               is only read by discarded (out-of-range) anchor rows.
    """
    # BN affine + ReLU in f32 on the VPU; the mask re-zeroes the conv-transpose pad
    # ring (it must stay exactly zero after the affine shift).
    a = jnp.maximum(x_ref[...] * scale_ref[...] + shift_ref[...], 0.0) * mask_ref[...]
    a_ref[0:M, :] = a.astype(jnp.bfloat16)
    tail = a_ref.shape[0] - M
    a_ref[M:, :] = jnp.zeros((tail, Ci), jnp.bfloat16)

    # In-scratch 2x2 sub-pixel im2col: the four (dy, dx) taps of every anchor live at
    # flattened-row offsets {0, 1, W+2, W+3}.
    offs = (0, 1, W + 2, W + 3)
    if split_k:
        # Ci not a multiple of 128 (stage 3): a lane-axis concat would pack mid-vreg,
        # so use four accumulating K=Ci dots instead (f32 accumulation).
        y = jnp.zeros(out_ref.shape, jnp.float32)
        for t, off in enumerate(offs):
            y = y + jnp.dot(a_ref[off:off + M, :],
                            w_ref[t * Ci:(t + 1) * Ci, :],
                            preferred_element_type=jnp.float32)
    else:
        # Ci multiple of 128: concat lands on 128-lane boundaries (free placement).
        patch = jnp.concatenate([a_ref[off:off + M, :] for off in offs], axis=-1)
        y = jnp.dot(patch, w_ref[...], preferred_element_type=jnp.float32)

    y = y + b_ref[...]
    if apply_tanh:
        y = jnp.tanh(y)
    out_ref[...] = y


# ---------------------------------------------------------------------------
# Wrappers / glue
# ---------------------------------------------------------------------------
def _zero_map(ndim):
    return lambda i: (0,) * ndim


def _single_block_call(kernel, out_shape, *args):
    return pl.pallas_call(
        kernel,
        grid=(1,),
        in_specs=[pl.BlockSpec(a.shape, _zero_map(a.ndim)) for a in args],
        out_specs=pl.BlockSpec(out_shape.shape, _zero_map(len(out_shape.shape))),
        out_shape=out_shape,
        compiler_params=pltpu.CompilerParams(vmem_limit_bytes=VMEM_LIMIT),
    )(*args)


def _interior_mask(H, W, P_pad):
    ys = (jnp.arange(H + 2) >= 1) & (jnp.arange(H + 2) <= H)
    xs = (jnp.arange(W + 2) >= 1) & (jnp.arange(W + 2) <= W)
    m = (ys[:, None] & xs[None, :]).astype(jnp.float32).reshape(-1, 1)
    return jnp.pad(m, ((0, P_pad - (H + 2) * (W + 2)), (0, 0)))


def _prep_convt_params(wt, b):
    """PyTorch ConvTranspose2d weight (Ci, Co, 4, 4) -> sub-pixel matmul form.

    w_sub[(dy,dx,ci), (ey,ex,co)] = wt[ci, co, 3-2*dy-ey, 3-2*dx-ex].
    Co is zero-padded to a multiple of 32 so the kernel's 4*Co_pad lane dim is a
    multiple of 128 (lane-dense stores / full MXU output columns).
    """
    Ci, Co = wt.shape[0], wt.shape[1]
    Co_pad = _round_up(Co, 32)
    wf = wt[:, :, ::-1, ::-1].reshape(Ci, Co, 2, 2, 2, 2)     # (ci, co, dy, ey, dx, ex)
    w_sub = wf.transpose(2, 4, 0, 3, 5, 1)                    # (dy, dx, ci, ey, ex, co)
    w_sub = jnp.pad(w_sub, ((0, 0),) * 5 + ((0, Co_pad - Co),))
    w_sub = w_sub.reshape(4 * Ci, 4 * Co_pad).astype(jnp.bfloat16)
    b_sub = jnp.tile(jnp.pad(b, (0, Co_pad - Co)), 4).reshape(1, 4 * Co_pad)
    return w_sub, b_sub.astype(jnp.float32), Co_pad


def conv_transpose_stage(x_nhwc, gamma, beta, w_sub, b_sub, apply_tanh):
    """One fused train-mode BN + ReLU + ConvTranspose2d(4,2,1) stage.

    x_nhwc: (N, H, W, Ci) f32.  Returns ((N_pad*P_pad, 4*Co_pad) phase rows, P_pad).
    """
    N, H, W, Ci = x_nhwc.shape
    C4 = w_sub.shape[1]
    P = (H + 2) * (W + 2)
    P_pad = _round_up(P, 8)
    # NB images per grid step so the matmul M dim (NB*P_pad) fills 256-row MXU tiles.
    NB = min(N, max(1, _cdiv(256, P_pad)))
    G = _cdiv(N, NB)
    N_pad = G * NB
    M = NB * P_pad
    EXTRA = _round_up(W + 3, 8)

    # BatchNorm2d batch statistics (training mode) hoisted to tiny XLA reductions so
    # the kernel's batch grid axis can be "parallel" and VMEM is O(NB), not O(N).
    # TODO(synk): running_mean/running_var buffer updates (training side effect) not modeled.
    mean = jnp.mean(x_nhwc, axis=(0, 1, 2))
    var = jnp.var(x_nhwc, axis=(0, 1, 2))                     # biased, as PyTorch fwd uses
    scale = gamma * jax.lax.rsqrt(var + EPS)
    shift = beta - mean * scale

    # Zero-pad spatially, flatten spatial rows, pad rows / batch up to the block grid.
    xp = jnp.pad(x_nhwc, ((0, 0), (1, 1), (1, 1), (0, 0))).reshape(N, P, Ci)
    xp = jnp.pad(xp, ((0, N_pad - N), (0, P_pad - P), (0, 0)))
    x_flat = xp.reshape(N_pad * P_pad, Ci)
    mask = jnp.tile(_interior_mask(H, W, P_pad), (N_pad, 1))

    kernel = functools.partial(convt_fused_kernel, W=W, Ci=Ci, M=M,
                               apply_tanh=apply_tanh, split_k=(Ci % 128 != 0))
    y = pl.pallas_call(
        kernel,
        grid=(G,),
        in_specs=[
            pl.BlockSpec((M, Ci), lambda g: (g, 0)),          # NB images of activation
            pl.BlockSpec((M, 1), lambda g: (g, 0)),           # pad-ring mask
            pl.BlockSpec((1, Ci), lambda g: (0, 0)),          # folded BN scale
            pl.BlockSpec((1, Ci), lambda g: (0, 0)),          # folded BN shift
            pl.BlockSpec(w_sub.shape, lambda g: (0, 0)),      # bf16 weight, VMEM resident
            pl.BlockSpec(b_sub.shape, lambda g: (0, 0)),      # bias
        ],
        out_specs=pl.BlockSpec((M, C4), lambda g: (g, 0)),
        out_shape=jax.ShapeDtypeStruct((N_pad * P_pad, C4), jnp.float32),
        scratch_shapes=[pltpu.VMEM((M + EXTRA, Ci), jnp.bfloat16)],
        compiler_params=pltpu.CompilerParams(
            dimension_semantics=("parallel",),   # no cross-step dependency -> megacore OK
            vmem_limit_bytes=VMEM_LIMIT,
        ),
    )(x_flat, mask, scale.reshape(1, Ci), shift.reshape(1, Ci), w_sub, b_sub)
    # TODO(synk): constant inputs (weight/bias/scale/shift/mask) could take
    # pipeline_mode=pl.Buffered(1) to halve their VMEM footprint on v7x.
    return y, P_pad


def _assemble(y_flat, N, H, W, Co, Co_pad, P_pad):
    """(N_pad*P_pad, 4*Co_pad) anchor/phase rows -> (N, 2H, 2W, Co) NHWC image.

    out[n, 2i+ey, 2j+ex, c] = y[n, anchor=(i+ey, j+ex), phase=(ey, ex), c]; expressed
    as 4 slices + stack + reshape (no stride-2 scatters).
    TODO(synk): could be fused entirely into the next stage's in-kernel im2col.
    """
    C4 = 4 * Co_pad
    y = y_flat.reshape(-1, P_pad, C4)[:N, :(H + 1) * (W + 2), :]
    y = y.reshape(N, H + 1, W + 2, 4, Co_pad)
    rows = []
    for ey in (0, 1):
        cols = [y[:, ey:ey + H, ex:ex + W, 2 * ey + ex, :Co] for ex in (0, 1)]
        rows.append(jnp.stack(cols, axis=3))                  # (N, H, W, 2, Co)
    z = jnp.stack(rows, axis=2)                               # (N, H, 2, W, 2, Co)
    return z.reshape(N, 2 * H, 2 * W, Co)


# ---------------------------------------------------------------------------
# Full Generator forward
# ---------------------------------------------------------------------------
def generator_forward(params, noise, embed):
    B = noise.shape[0]

    # --- Stage 0: fused noise/embed FC + ReLU + add --------------------------
    # FC weight columns are pre-permuted from PyTorch's (c, h, w) .view order to
    # NHWC (h, w, c), so the feature map needs no activation transpose; weights bf16.
    def nhwc_cols(w):
        return (w.reshape(w.shape[0], 256, 4, 4).transpose(0, 2, 3, 1)
                .reshape(w.shape[0], 4096).astype(jnp.bfloat16))

    def nhwc_bias(b):
        return b.reshape(256, 4, 4).transpose(1, 2, 0).reshape(1, 4096)

    feat = _single_block_call(
        fc_fused_kernel,
        jax.ShapeDtypeStruct((B, 256 * 4 * 4), jnp.float32),
        noise, nhwc_cols(params["w_noise"]), nhwc_bias(params["b_noise"]),
        embed, nhwc_cols(params["w_embed"]), nhwc_bias(params["b_embed"]),
    )
    x = feat.reshape(B, 4, 4, 256)

    # --- Stage 1: BN(256) + ReLU + ConvT(256 -> 128), 4x4 -> 8x8 -------------
    w1, b1, cp1 = _prep_convt_params(params["ct1_w"], params["ct1_b"])
    y, pp = conv_transpose_stage(x, params["bn1_g"], params["bn1_b"], w1, b1, False)
    x = _assemble(y, B, 4, 4, 128, cp1, pp)

    # --- Stage 2: BN(128) + ReLU + ConvT(128 -> 64), 8x8 -> 16x16 ------------
    w2, b2, cp2 = _prep_convt_params(params["ct2_w"], params["ct2_b"])
    y, pp = conv_transpose_stage(x, params["bn2_g"], params["bn2_b"], w2, b2, False)
    x = _assemble(y, B, 8, 8, 64, cp2, pp)

    # --- Stage 3: BN(64) + ReLU + ConvT(64 -> 3) + tanh, 16x16 -> 32x32 ------
    w3, b3, cp3 = _prep_convt_params(params["ct3_w"], params["ct3_b"])
    y, pp = conv_transpose_stage(x, params["bn3_g"], params["bn3_b"], w3, b3, True)
    img = _assemble(y, B, 16, 16, 3, cp3, pp)                 # (B, 32, 32, 3)

    return img.transpose(0, 3, 1, 2)                          # NCHW (B, 3, 32, 32)


# ---------------------------------------------------------------------------
# Deterministic parameter init (same shapes as the PyTorch module's __init__)
# ---------------------------------------------------------------------------
def init_params(key, noise_dim, embedding_dim, image_channels=3):
    k = jax.random.split(key, 5)

    def linear(kk, fan_in, fan_out):
        bound = 1.0 / jnp.sqrt(fan_in)
        kw, kb = jax.random.split(kk)
        w = jax.random.uniform(kw, (fan_in, fan_out), jnp.float32, -bound, bound)
        b = jax.random.uniform(kb, (1, fan_out), jnp.float32, -bound, bound)
        return w, b

    def convt(kk, ci, co):
        bound = 1.0 / jnp.sqrt(ci * 16)
        kw, kb = jax.random.split(kk)
        w = jax.random.uniform(kw, (ci, co, 4, 4), jnp.float32, -bound, bound)
        b = jax.random.uniform(kb, (co,), jnp.float32, -bound, bound)
        return w, b

    wn, bn = linear(k[0], noise_dim, 256 * 4 * 4)
    we, be = linear(k[1], embedding_dim, 256 * 4 * 4)
    c1w, c1b = convt(k[2], 256, 128)
    c2w, c2b = convt(k[3], 128, 64)
    c3w, c3b = convt(k[4], 64, image_channels)

    # BatchNorm2d default init: weight=1, bias=0.
    return {
        "w_noise": wn, "b_noise": bn,
        "w_embed": we, "b_embed": be,
        "bn1_g": jnp.ones((256,), jnp.float32), "bn1_b": jnp.zeros((256,), jnp.float32),
        "ct1_w": c1w, "ct1_b": c1b,
        "bn2_g": jnp.ones((128,), jnp.float32), "bn2_b": jnp.zeros((128,), jnp.float32),
        "ct2_w": c2w, "ct2_b": c2b,
        "bn3_g": jnp.ones((64,), jnp.float32), "bn3_b": jnp.zeros((64,), jnp.float32),
        "ct3_w": c3w, "ct3_b": c3b,
    }


if __name__ == "__main__":
    key = jax.random.PRNGKey(0)
    B, noise_dim, embedding_dim, image_channels = 2, 32, 16, 3

    kp, kn, ke = jax.random.split(key, 3)
    params = init_params(kp, noise_dim, embedding_dim, image_channels)
    noise = jax.random.normal(kn, (B, noise_dim), jnp.float32)
    embed = jax.random.normal(ke, (B, embedding_dim), jnp.float32)

    out = jax.jit(generator_forward)(params, noise, embed)
    jax.block_until_ready(out)

    assert out.shape == (B, image_channels, 32, 32), out.shape
    assert out.dtype == jnp.float32
    assert bool(jnp.all(jnp.isfinite(out)))
    print("KERNEL_OK")
</pallas_src>

<mosaic_0001>
module attributes {stable_mosaic.version = 11 : i64} {
  func.func @fc_fused_kernel(%arg0: i32, %arg1: memref<2x32xf32, #tpu.memory_space<vmem>>, %arg2: memref<32x4096xbf16, #tpu.memory_space<vmem>>, %arg3: memref<1x4096xf32, #tpu.memory_space<vmem>>, %arg4: memref<2x16xf32, #tpu.memory_space<vmem>>, %arg5: memref<16x4096xbf16, #tpu.memory_space<vmem>>, %arg6: memref<1x4096xf32, #tpu.memory_space<vmem>>, %arg7: memref<2x4096xf32, #tpu.memory_space<vmem>>) attributes {dimension_semantics = [#tpu.dimension_semantics<arbitrary>], iteration_bounds = array<i64: 1>, scalar_prefetch = 0 : i64, scratch_operands = 0 : i64, tpu.core_type = #tpu.core_type<tc>, window_params = [{pipeline_mode = #tpu.pipeline_mode<synchronous>, transform_indices = @transform_0, window_bounds = array<i64: 2, 32>}, {pipeline_mode = #tpu.pipeline_mode<synchronous>, transform_indices = @transform_1, window_bounds = array<i64: 32, 4096>}, {pipeline_mode = #tpu.pipeline_mode<synchronous>, transform_indices = @transform_2, window_bounds = array<i64: 1, 4096>}, {pipeline_mode = #tpu.pipeline_mode<synchronous>, transform_indices = @transform_3, window_bounds = array<i64: 2, 16>}, {pipeline_mode = #tpu.pipeline_mode<synchronous>, transform_indices = @transform_4, window_bounds = array<i64: 16, 4096>}, {pipeline_mode = #tpu.pipeline_mode<synchronous>, transform_indices = @transform_5, window_bounds = array<i64: 1, 4096>}, {pipeline_mode = #tpu.pipeline_mode<synchronous>, transform_indices = @transform_6, window_bounds = array<i64: 2, 4096>}]} {
    %c0 = arith.constant 0 : index
    %c0_0 = arith.constant 0 : index
    %0 = vector.load %arg1[%c0, %c0_0] : memref<2x32xf32, #tpu.memory_space<vmem>>, vector<2x32xf32>
    %1 = arith.truncf %0 : vector<2x32xf32> to vector<2x32xbf16>
    %c0_1 = arith.constant 0 : index
    %c0_2 = arith.constant 0 : index
    %2 = vector.load %arg2[%c0_1, %c0_2] : memref<32x4096xbf16, #tpu.memory_space<vmem>>, vector<32x4096xbf16>
    %cst = arith.constant dense<0.000000e+00> : vector<2x4096xf32>
    %3 = tpu.matmul %1, %2, %cst {dimension_numbers = #tpu.dot_dimension_numbers<[1], [0], [0], [1], [0, 0, 1, 1], [], []>} : vector<2x32xbf16>, vector<32x4096xbf16>, vector<2x4096xf32> -> vector<2x4096xf32>
    %c0_3 = arith.constant 0 : index
    %c0_4 = arith.constant 0 : index
    %4 = vector.load %arg3[%c0_3, %c0_4] : memref<1x4096xf32, #tpu.memory_space<vmem>>, vector<1x4096xf32>
    %5 = vector.broadcast %4 : vector<1x4096xf32> to vector<2x4096xf32>
    %6 = arith.addf %3, %5 : vector<2x4096xf32>
    %c0_5 = arith.constant 0 : index
    %c0_6 = arith.constant 0 : index
    %7 = vector.load %arg4[%c0_5, %c0_6] : memref<2x16xf32, #tpu.memory_space<vmem>>, vector<2x16xf32>
    %8 = arith.truncf %7 : vector<2x16xf32> to vector<2x16xbf16>
    %c0_7 = arith.constant 0 : index
    %c0_8 = arith.constant 0 : index
    %9 = vector.load %arg5[%c0_7, %c0_8] : memref<16x4096xbf16, #tpu.memory_space<vmem>>, vector<16x4096xbf16>
    %cst_9 = arith.constant dense<0.000000e+00> : vector<2x4096xf32>
    %10 = tpu.matmul %8, %9, %cst_9 {dimension_numbers = #tpu.dot_dimension_numbers<[1], [0], [0], [1], [0, 0, 1, 1], [], []>} : vector<2x16xbf16>, vector<16x4096xbf16>, vector<2x4096xf32> -> vector<2x4096xf32>
    %c0_10 = arith.constant 0 : index
    %c0_11 = arith.constant 0 : index
    %11 = vector.load %arg6[%c0_10, %c0_11] : memref<1x4096xf32, #tpu.memory_space<vmem>>, vector<1x4096xf32>
    %12 = vector.broadcast %11 : vector<1x4096xf32> to vector<2x4096xf32>
    %13 = arith.addf %10, %12 : vector<2x4096xf32>
    %cst_12 = arith.constant 0.000000e+00 : f32
    %14 = vector.broadcast %cst_12 : f32 to vector<2x4096xf32>
    %15 = arith.maximumf %6, %14 : vector<2x4096xf32>
    %cst_13 = arith.constant 0.000000e+00 : f32
    %16 = vector.broadcast %cst_13 : f32 to vector<2x4096xf32>
    %17 = arith.maximumf %13, %16 : vector<2x4096xf32>
    %18 = arith.addf %15, %17 : vector<2x4096xf32>
    %c0_14 = arith.constant 0 : index
    %c0_15 = arith.constant 0 : index
    %19 = vector.load %arg7[%c0_14, %c0_15] : memref<2x4096xf32, #tpu.memory_space<vmem>>, vector<2x4096xf32>
    tpu.vector_store %arg7[%c0_14, %c0_15], %18 {strides = array<i32>} : memref<2x4096xf32, #tpu.memory_space<vmem>>, vector<2x4096xf32>,
    return
  }
  func.func @transform_0(%arg0: i32) -> (i32, i32) {
    %c0_i32 = arith.constant 0 : i32
    %c0_i32_0 = arith.constant 0 : i32
    %c0_i32_1 = arith.constant 0 : i32
    return %c0_i32, %c0_i32_0 : i32, i32
  }
  func.func @transform_1(%arg0: i32) -> (i32, i32) {
    %c0_i32 = arith.constant 0 : i32
    %c0_i32_0 = arith.constant 0 : i32
    %c0_i32_1 = arith.constant 0 : i32
    return %c0_i32, %c0_i32_0 : i32, i32
  }
  func.func @transform_2(%arg0: i32) -> (i32, i32) {
    %c0_i32 = arith.constant 0 : i32
    %c0_i32_0 = arith.constant 0 : i32
    %c0_i32_1 = arith.constant 0 : i32
    return %c0_i32, %c0_i32_0 : i32, i32
  }
  func.func @transform_3(%arg0: i32) -> (i32, i32) {
    %c0_i32 = arith.constant 0 : i32
    %c0_i32_0 = arith.constant 0 : i32
    %c0_i32_1 = arith.constant 0 : i32
    return %c0_i32, %c0_i32_0 : i32, i32
  }
  func.func @transform_4(%arg0: i32) -> (i32, i32) {
    %c0_i32 = arith.constant 0 : i32
    %c0_i32_0 = arith.constant 0 : i32
    %c0_i32_1 = arith.constant 0 : i32
    return %c0_i32, %c0_i32_0 : i32, i32
  }
  func.func @transform_5(%arg0: i32) -> (i32, i32) {
    %c0_i32 = arith.constant 0 : i32
    %c0_i32_0 = arith.constant 0 : i32
    %c0_i32_1 = arith.constant 0 : i32
    return %c0_i32, %c0_i32_0 : i32, i32
  }
  func.func @transform_6(%arg0: i32) -> (i32, i32) {
    %c0_i32 = arith.constant 0 : i32
    %c0_i32_0 = arith.constant 0 : i32
    %c0_i32_1 = arith.constant 0 : i32
    return %c0_i32, %c0_i32_0 : i32, i32
  }
}

module attributes {stable_mosaic.version = 11 : i64} {
  func.func @convt_fused_kernel(%arg0: i32, %arg1: memref<80x256xf32, #tpu.memory_space<vmem>>, %arg2: memref<80x1xf32, #tpu.memory_space<vmem>>, %arg3: memref<1x256xf32, #tpu.memory_space<vmem>>, %arg4: memref<1x256xf32, #tpu.memory_space<vmem>>, %arg5: memref<1024x512xbf16, #tpu.memory_space<vmem>>, %arg6: memref<1x512xf32, #tpu.memory_space<vmem>>, %arg7: memref<80x512xf32, #tpu.memory_space<vmem>>, %arg8: memref<88x256xbf16, #tpu.memory_space<vmem>>) attributes {dimension_semantics = [#tpu.dimension_semantics<parallel>], iteration_bounds = array<i64: 1>, scalar_prefetch = 0 : i64, scratch_operands = 1 : i64, tpu.core_type = #tpu.core_type<tc>, window_params = [{transform_indices = @transform_0, window_bounds = array<i64: 80, 256>}, {transform_indices = @transform_1, window_bounds = array<i64: 80, 1>}, {pipeline_mode = #tpu.pipeline_mode<synchronous>, transform_indices = @transform_2, window_bounds = array<i64: 1, 256>}, {pipeline_mode = #tpu.pipeline_mode<synchronous>, transform_indices = @transform_3, window_bounds = array<i64: 1, 256>}, {pipeline_mode = #tpu.pipeline_mode<synchronous>, transform_indices = @transform_4, window_bounds = array<i64: 1024, 512>}, {pipeline_mode = #tpu.pipeline_mode<synchronous>, transform_indices = @transform_5, window_bounds = array<i64: 1, 512>}, {transform_indices = @transform_6, window_bounds = array<i64: 80, 512>}]} {
    %c0 = arith.constant 0 : index
    %c0_0 = arith.constant 0 : index
    %0 = vector.load %arg1[%c0, %c0_0] : memref<80x256xf32, #tpu.memory_space<vmem>>, vector<80x256xf32>
    %c0_1 = arith.constant 0 : index
    %c0_2 = arith.constant 0 : index
    %1 = vector.load %arg3[%c0_1, %c0_2] : memref<1x256xf32, #tpu.memory_space<vmem>>, vector<1x256xf32>
    %2 = vector.broadcast %1 : vector<1x256xf32> to vector<80x256xf32>
    %3 = arith.mulf %0, %2 : vector<80x256xf32>
    %c0_3 = arith.constant 0 : index
    %c0_4 = arith.constant 0 : index
    %4 = vector.load %arg4[%c0_3, %c0_4] : memref<1x256xf32, #tpu.memory_space<vmem>>, vector<1x256xf32>
    %5 = vector.broadcast %4 : vector<1x256xf32> to vector<80x256xf32>
    %6 = arith.addf %3, %5 : vector<80x256xf32>
    %cst = arith.constant 0.000000e+00 : f32
    %7 = vector.broadcast %cst : f32 to vector<80x256xf32>
    %8 = arith.maximumf %6, %7 : vector<80x256xf32>
    %c0_5 = arith.constant 0 : index
    %c0_6 = arith.constant 0 : index
    %9 = vector.load %arg2[%c0_5, %c0_6] : memref<80x1xf32, #tpu.memory_space<vmem>>, vector<80x1xf32>
    %10 = vector.broadcast %9 : vector<80x1xf32> to vector<80x256xf32>
    %11 = arith.mulf %8, %10 : vector<80x256xf32>
    %12 = arith.truncf %11 : vector<80x256xf32> to vector<80x256xbf16>
    %c0_7 = arith.constant 0 : index
    %c0_8 = arith.constant 0 : index
    %13 = vector.load %arg8[%c0_7, %c0_8] : memref<88x256xbf16, #tpu.memory_space<vmem>>, vector<80x256xbf16>
    tpu.vector_store %arg8[%c0_7, %c0_8], %12 {strides = array<i32>} : memref<88x256xbf16, #tpu.memory_space<vmem>>, vector<80x256xbf16>,
    %cst_9 = arith.constant 0.000000e+00 : bf16
    %14 = vector.broadcast %cst_9 : bf16 to vector<8x256xbf16>
    %c80 = arith.constant 80 : index
    %c0_10 = arith.constant 0 : index
    %15 = vector.load %arg8[%c80, %c0_10] : memref<88x256xbf16, #tpu.memory_space<vmem>>, vector<8x256xbf16>
    tpu.vector_store %arg8[%c80, %c0_10], %14 {strides = array<i32>} : memref<88x256xbf16, #tpu.memory_space<vmem>>, vector<8x256xbf16>,
    %c0_11 = arith.constant 0 : index
    %c0_12 = arith.constant 0 : index
    %16 = vector.load %arg8[%c0_11, %c0_12] : memref<88x256xbf16, #tpu.memory_space<vmem>>, vector<80x256xbf16>
    %c1 = arith.constant 1 : index
    %c0_13 = arith.constant 0 : index
    %17 = vector.load %arg8[%c1, %c0_13] : memref<88x256xbf16, #tpu.memory_space<vmem>>, vector<80x256xbf16>
    %c6 = arith.constant 6 : index
    %c0_14 = arith.constant 0 : index
    %18 = vector.load %arg8[%c6, %c0_14] : memref<88x256xbf16, #tpu.memory_space<vmem>>, vector<80x256xbf16>
    %c7 = arith.constant 7 : index
    %c0_15 = arith.constant 0 : index
    %19 = vector.load %arg8[%c7, %c0_15] : memref<88x256xbf16, #tpu.memory_space<vmem>>, vector<80x256xbf16>
    %20 = tpu.concatenate %16, %17, %18, %19 in 1 : vector<80x256xbf16>, vector<80x256xbf16>, vector<80x256xbf16>, vector<80x256xbf16> -> vector<80x1024xbf16>
    %c0_16 = arith.constant 0 : index
    %c0_17 = arith.constant 0 : index
    %21 = vector.load %arg5[%c0_16, %c0_17] : memref<1024x512xbf16, #tpu.memory_space<vmem>>, vector<1024x512xbf16>
    %cst_18 = arith.constant dense<0.000000e+00> : vector<80x512xf32>
    %22 = tpu.matmul %20, %21, %cst_18 {dimension_numbers = #tpu.dot_dimension_numbers<[1], [0], [0], [1], [0, 0, 1, 1], [], []>} : vector<80x1024xbf16>, vector<1024x512xbf16>, vector<80x512xf32> -> vector<80x512xf32>
    %c0_19 = arith.constant 0 : index
    %c0_20 = arith.constant 0 : index
    %23 = vector.load %arg6[%c0_19, %c0_20] : memref<1x512xf32, #tpu.memory_space<vmem>>, vector<1x512xf32>
    %24 = vector.broadcast %23 : vector<1x512xf32> to vector<80x512xf32>
    %25 = arith.addf %22, %24 : vector<80x512xf32>
    %c0_21 = arith.constant 0 : index
    %c0_22 = arith.constant 0 : index
    %26 = vector.load %arg7[%c0_21, %c0_22] : memref<80x512xf32, #tpu.memory_space<vmem>>, vector<80x512xf32>
    tpu.vector_store %arg7[%c0_21, %c0_22], %25 {strides = array<i32>} : memref<80x512xf32, #tpu.memory_space<vmem>>, vector<80x512xf32>,
    return
  }
  func.func @transform_0(%arg0: i32) -> (i32, i32) {
    %c0_i32 = arith.constant 0 : i32
    %c0_i32_0 = arith.constant 0 : i32
    return %arg0, %c0_i32 : i32, i32
  }
  func.func @transform_1(%arg0: i32) -> (i32, i32) {
    %c0_i32 = arith.constant 0 : i32
    %c0_i32_0 = arith.constant 0 : i32
    return %arg0, %c0_i32 : i32, i32
  }
  func.func @transform_2(%arg0: i32) -> (i32, i32) {
    %c0_i32 = arith.constant 0 : i32
    %c0_i32_0 = arith.constant 0 : i32
    %c0_i32_1 = arith.constant 0 : i32
    return %c0_i32, %c0_i32_0 : i32, i32
  }
  func.func @transform_3(%arg0: i32) -> (i32, i32) {
    %c0_i32 = arith.constant 0 : i32
    %c0_i32_0 = arith.constant 0 : i32
    %c0_i32_1 = arith.constant 0 : i32
    return %c0_i32, %c0_i32_0 : i32, i32
  }
  func.func @transform_4(%arg0: i32) -> (i32, i32) {
    %c0_i32 = arith.constant 0 : i32
    %c0_i32_0 = arith.constant 0 : i32
    %c0_i32_1 = arith.constant 0 : i32
    return %c0_i32, %c0_i32_0 : i32, i32
  }
  func.func @transform_5(%arg0: i32) -> (i32, i32) {
    %c0_i32 = arith.constant 0 : i32
    %c0_i32_0 = arith.constant 0 : i32
    %c0_i32_1 = arith.constant 0 : i32
    return %c0_i32, %c0_i32_0 : i32, i32
  }
  func.func @transform_6(%arg0: i32) -> (i32, i32) {
    %c0_i32 = arith.constant 0 : i32
    %c0_i32_0 = arith.constant 0 : i32
    return %arg0, %c0_i32 : i32, i32
  }
}

module attributes {stable_mosaic.version = 11 : i64} {
  func.func @convt_fused_kernel(%arg0: i32, %arg1: memref<208x128xf32, #tpu.memory_space<vmem>>, %arg2: memref<208x1xf32, #tpu.memory_space<vmem>>, %arg3: memref<1x128xf32, #tpu.memory_space<vmem>>, %arg4: memref<1x128xf32, #tpu.memory_space<vmem>>, %arg5: memref<512x256xbf16, #tpu.memory_space<vmem>>, %arg6: memref<1x256xf32, #tpu.memory_space<vmem>>, %arg7: memref<208x256xf32, #tpu.memory_space<vmem>>, %arg8: memref<224x128xbf16, #tpu.memory_space<vmem>>) attributes {dimension_semantics = [#tpu.dimension_semantics<parallel>], iteration_bounds = array<i64: 1>, scalar_prefetch = 0 : i64, scratch_operands = 1 : i64, tpu.core_type = #tpu.core_type<tc>, window_params = [{transform_indices = @transform_0, window_bounds = array<i64: 208, 128>}, {transform_indices = @transform_1, window_bounds = array<i64: 208, 1>}, {pipeline_mode = #tpu.pipeline_mode<synchronous>, transform_indices = @transform_2, window_bounds = array<i64: 1, 128>}, {pipeline_mode = #tpu.pipeline_mode<synchronous>, transform_indices = @transform_3, window_bounds = array<i64: 1, 128>}, {pipeline_mode = #tpu.pipeline_mode<synchronous>, transform_indices = @transform_4, window_bounds = array<i64: 512, 256>}, {pipeline_mode = #tpu.pipeline_mode<synchronous>, transform_indices = @transform_5, window_bounds = array<i64: 1, 256>}, {transform_indices = @transform_6, window_bounds = array<i64: 208, 256>}]} {
    %c0 = arith.constant 0 : index
    %c0_0 = arith.constant 0 : index
    %0 = vector.load %arg1[%c0, %c0_0] : memref<208x128xf32, #tpu.memory_space<vmem>>, vector<208x128xf32>
    %c0_1 = arith.constant 0 : index
    %c0_2 = arith.constant 0 : index
    %1 = vector.load %arg3[%c0_1, %c0_2] : memref<1x128xf32, #tpu.memory_space<vmem>>, vector<1x128xf32>
    %2 = vector.broadcast %1 : vector<1x128xf32> to vector<208x128xf32>
    %3 = arith.mulf %0, %2 : vector<208x128xf32>
    %c0_3 = arith.constant 0 : index
    %c0_4 = arith.constant 0 : index
    %4 = vector.load %arg4[%c0_3, %c0_4] : memref<1x128xf32, #tpu.memory_space<vmem>>, vector<1x128xf32>
    %5 = vector.broadcast %4 : vector<1x128xf32> to vector<208x128xf32>
    %6 = arith.addf %3, %5 : vector<208x128xf32>
    %cst = arith.constant 0.000000e+00 : f32
    %7 = vector.broadcast %cst : f32 to vector<208x128xf32>
    %8 = arith.maximumf %6, %7 : vector<208x128xf32>
    %c0_5 = arith.constant 0 : index
    %c0_6 = arith.constant 0 : index
    %9 = vector.load %arg2[%c0_5, %c0_6] : memref<208x1xf32, #tpu.memory_space<vmem>>, vector<208x1xf32>
    %10 = vector.broadcast %9 : vector<208x1xf32> to vector<208x128xf32>
    %11 = arith.mulf %8, %10 : vector<208x128xf32>
    %12 = arith.truncf %11 : vector<208x128xf32> to vector<208x128xbf16>
    %c0_7 = arith.constant 0 : index
    %c0_8 = arith.constant 0 : index
    %13 = vector.load %arg8[%c0_7, %c0_8] : memref<224x128xbf16, #tpu.memory_space<vmem>>, vector<208x128xbf16>
    tpu.vector_store %arg8[%c0_7, %c0_8], %12 {strides = array<i32>} : memref<224x128xbf16, #tpu.memory_space<vmem>>, vector<208x128xbf16>,
    %cst_9 = arith.constant 0.000000e+00 : bf16
    %14 = vector.broadcast %cst_9 : bf16 to vector<16x128xbf16>
    %c208 = arith.constant 208 : index
    %c0_10 = arith.constant 0 : index
    %15 = vector.load %arg8[%c208, %c0_10] : memref<224x128xbf16, #tpu.memory_space<vmem>>, vector<16x128xbf16>
    tpu.vector_store %arg8[%c208, %c0_10], %14 {strides = array<i32>} : memref<224x128xbf16, #tpu.memory_space<vmem>>, vector<16x128xbf16>,
    %c0_11 = arith.constant 0 : index
    %c0_12 = arith.constant 0 : index
    %16 = vector.load %arg8[%c0_11, %c0_12] : memref<224x128xbf16, #tpu.memory_space<vmem>>, vector<208x128xbf16>
    %c1 = arith.constant 1 : index
    %c0_13 = arith.constant 0 : index
    %17 = vector.load %arg8[%c1, %c0_13] : memref<224x128xbf16, #tpu.memory_space<vmem>>, vector<208x128xbf16>
    %c10 = arith.constant 10 : index
    %c0_14 = arith.constant 0 : index
    %18 = vector.load %arg8[%c10, %c0_14] : memref<224x128xbf16, #tpu.memory_space<vmem>>, vector<208x128xbf16>
    %c11 = arith.constant 11 : index
    %c0_15 = arith.constant 0 : index
    %19 = vector.load %arg8[%c11, %c0_15] : memref<224x128xbf16, #tpu.memory_space<vmem>>, vector<208x128xbf16>
    %20 = tpu.concatenate %16, %17, %18, %19 in 1 : vector<208x128xbf16>, vector<208x128xbf16>, vector<208x128xbf16>, vector<208x128xbf16> -> vector<208x512xbf16>
    %c0_16 = arith.constant 0 : index
    %c0_17 = arith.constant 0 : index
    %21 = vector.load %arg5[%c0_16, %c0_17] : memref<512x256xbf16, #tpu.memory_space<vmem>>, vector<512x256xbf16>
    %cst_18 = arith.constant dense<0.000000e+00> : vector<208x256xf32>
    %22 = tpu.matmul %20, %21, %cst_18 {dimension_numbers = #tpu.dot_dimension_numbers<[1], [0], [0], [1], [0, 0, 1, 1], [], []>} : vector<208x512xbf16>, vector<512x256xbf16>, vector<208x256xf32> -> vector<208x256xf32>
    %c0_19 = arith.constant 0 : index
    %c0_20 = arith.constant 0 : index
    %23 = vector.load %arg6[%c0_19, %c0_20] : memref<1x256xf32, #tpu.memory_space<vmem>>, vector<1x256xf32>
    %24 = vector.broadcast %23 : vector<1x256xf32> to vector<208x256xf32>
    %25 = arith.addf %22, %24 : vector<208x256xf32>
    %c0_21 = arith.constant 0 : index
    %c0_22 = arith.constant 0 : index
    %26 = vector.load %arg7[%c0_21, %c0_22] : memref<208x256xf32, #tpu.memory_space<vmem>>, vector<208x256xf32>
    tpu.vector_store %arg7[%c0_21, %c0_22], %25 {strides = array<i32>} : memref<208x256xf32, #tpu.memory_space<vmem>>, vector<208x256xf32>,
    return
  }
  func.func @transform_0(%arg0: i32) -> (i32, i32) {
    %c0_i32 = arith.constant 0 : i32
    %c0_i32_0 = arith.constant 0 : i32
    return %arg0, %c0_i32 : i32, i32
  }
  func.func @transform_1(%arg0: i32) -> (i32, i32) {
    %c0_i32 = arith.constant 0 : i32
    %c0_i32_0 = arith.constant 0 : i32
    return %arg0, %c0_i32 : i32, i32
  }
  func.func @transform_2(%arg0: i32) -> (i32, i32) {
    %c0_i32 = arith.constant 0 : i32
    %c0_i32_0 = arith.constant 0 : i32
    %c0_i32_1 = arith.constant 0 : i32
    return %c0_i32, %c0_i32_0 : i32, i32
  }
  func.func @transform_3(%arg0: i32) -> (i32, i32) {
    %c0_i32 = arith.constant 0 : i32
    %c0_i32_0 = arith.constant 0 : i32
    %c0_i32_1 = arith.constant 0 : i32
    return %c0_i32, %c0_i32_0 : i32, i32
  }
  func.func @transform_4(%arg0: i32) -> (i32, i32) {
    %c0_i32 = arith.constant 0 : i32
    %c0_i32_0 = arith.constant 0 : i32
    %c0_i32_1 = arith.constant 0 : i32
    return %c0_i32, %c0_i32_0 : i32, i32
  }
  func.func @transform_5(%arg0: i32) -> (i32, i32) {
    %c0_i32 = arith.constant 0 : i32
    %c0_i32_0 = arith.constant 0 : i32
    %c0_i32_1 = arith.constant 0 : i32
    return %c0_i32, %c0_i32_0 : i32, i32
  }
  func.func @transform_6(%arg0: i32) -> (i32, i32) {
    %c0_i32 = arith.constant 0 : i32
    %c0_i32_0 = arith.constant 0 : i32
    return %arg0, %c0_i32 : i32, i32
  }
}

module attributes {stable_mosaic.version = 11 : i64} {
  func.func @convt_fused_kernel(%arg0: i32, %arg1: memref<328x64xf32, #tpu.memory_space<vmem>>, %arg2: memref<328x1xf32, #tpu.memory_space<vmem>>, %arg3: memref<1x64xf32, #tpu.memory_space<vmem>>, %arg4: memref<1x64xf32, #tpu.memory_space<vmem>>, %arg5: memref<256x128xbf16, #tpu.memory_space<vmem>>, %arg6: memref<1x128xf32, #tpu.memory_space<vmem>>, %arg7: memref<328x128xf32, #tpu.memory_space<vmem>>, %arg8: memref<352x64xbf16, #tpu.memory_space<vmem>>) attributes {dimension_semantics = [#tpu.dimension_semantics<parallel>], iteration_bounds = array<i64: 2>, scalar_prefetch = 0 : i64, scratch_operands = 1 : i64, tpu.core_type = #tpu.core_type<tc>, window_params = [{transform_indices = @transform_0, window_bounds = array<i64: 328, 64>}, {transform_indices = @transform_1, window_bounds = array<i64: 328, 1>}, {pipeline_mode = #tpu.pipeline_mode<synchronous>, transform_indices = @transform_2, window_bounds = array<i64: 1, 64>}, {pipeline_mode = #tpu.pipeline_mode<synchronous>, transform_indices = @transform_3, window_bounds = array<i64: 1, 64>}, {pipeline_mode = #tpu.pipeline_mode<synchronous>, transform_indices = @transform_4, window_bounds = array<i64: 256, 128>}, {pipeline_mode = #tpu.pipeline_mode<synchronous>, transform_indices = @transform_5, window_bounds = array<i64: 1, 128>}, {transform_indices = @transform_6, window_bounds = array<i64: 328, 128>}]} {
    %c0 = arith.constant 0 : index
    %c0_0 = arith.constant 0 : index
    %0 = vector.load %arg1[%c0, %c0_0] : memref<328x64xf32, #tpu.memory_space<vmem>>, vector<328x64xf32>
    %c0_1 = arith.constant 0 : index
    %c0_2 = arith.constant 0 : index
    %1 = vector.load %arg3[%c0_1, %c0_2] : memref<1x64xf32, #tpu.memory_space<vmem>>, vector<1x64xf32>
    %2 = vector.broadcast %1 : vector<1x64xf32> to vector<328x64xf32>
    %3 = arith.mulf %0, %2 : vector<328x64xf32>
    %c0_3 = arith.constant 0 : index
    %c0_4 = arith.constant 0 : index
    %4 = vector.load %arg4[%c0_3, %c0_4] : memref<1x64xf32, #tpu.memory_space<vmem>>, vector<1x64xf32>
    %5 = vector.broadcast %4 : vector<1x64xf32> to vector<328x64xf32>
    %6 = arith.addf %3, %5 : vector<328x64xf32>
    %cst = arith.constant 0.000000e+00 : f32
    %7 = vector.broadcast %cst : f32 to vector<328x64xf32>
    %8 = arith.maximumf %6, %7 : vector<328x64xf32>
    %c0_5 = arith.constant 0 : index
    %c0_6 = arith.constant 0 : index
    %9 = vector.load %arg2[%c0_5, %c0_6] : memref<328x1xf32, #tpu.memory_space<vmem>>, vector<328x1xf32>
    %10 = vector.broadcast %9 : vector<328x1xf32> to vector<328x64xf32>
    %11 = arith.mulf %8, %10 : vector<328x64xf32>
    %12 = arith.truncf %11 : vector<328x64xf32> to vector<328x64xbf16>
    %c0_7 = arith.constant 0 : index
    %c0_8 = arith.constant 0 : index
    %13 = vector.load %arg8[%c0_7, %c0_8] : memref<352x64xbf16, #tpu.memory_space<vmem>>, vector<328x64xbf16>
    tpu.vector_store %arg8[%c0_7, %c0_8], %12 {strides = array<i32>} : memref<352x64xbf16, #tpu.memory_space<vmem>>, vector<328x64xbf16>,
    %cst_9 = arith.constant 0.000000e+00 : bf16
    %14 = vector.broadcast %cst_9 : bf16 to vector<24x64xbf16>
    %c328 = arith.constant 328 : index
    %c0_10 = arith.constant 0 : index
    %15 = vector.load %arg8[%c328, %c0_10] : memref<352x64xbf16, #tpu.memory_space<vmem>>, vector<24x64xbf16>
    tpu.vector_store %arg8[%c328, %c0_10], %14 {strides = array<i32>} : memref<352x64xbf16, #tpu.memory_space<vmem>>, vector<24x64xbf16>,
    %cst_11 = arith.constant 0.000000e+00 : f32
    %16 = vector.broadcast %cst_11 : f32 to vector<328x128xf32>
    %c0_12 = arith.constant 0 : index
    %c0_13 = arith.constant 0 : index
    %17 = vector.load %arg8[%c0_12, %c0_13] : memref<352x64xbf16, #tpu.memory_space<vmem>>, vector<328x64xbf16>
    %c0_14 = arith.constant 0 : index
    %c0_15 = arith.constant 0 : index
    %18 = vector.load %arg5[%c0_14, %c0_15] : memref<256x128xbf16, #tpu.memory_space<vmem>>, vector<64x128xbf16>
    %cst_16 = arith.constant dense<0.000000e+00> : vector<328x128xf32>
    %19 = tpu.matmul %17, %18, %cst_16 {dimension_numbers = #tpu.dot_dimension_numbers<[1], [0], [0], [1], [0, 0, 1, 1], [], []>} : vector<328x64xbf16>, vector<64x128xbf16>, vector<328x128xf32> -> vector<328x128xf32>
    %20 = arith.addf %16, %19 : vector<328x128xf32>
    %c1 = arith.constant 1 : index
    %c0_17 = arith.constant 0 : index
    %21 = vector.load %arg8[%c1, %c0_17] : memref<352x64xbf16, #tpu.memory_space<vmem>>, vector<328x64xbf16>
    %c64 = arith.constant 64 : index
    %c0_18 = arith.constant 0 : index
    %22 = vector.load %arg5[%c64, %c0_18] : memref<256x128xbf16, #tpu.memory_space<vmem>>, vector<64x128xbf16>
    %cst_19 = arith.constant dense<0.000000e+00> : vector<328x128xf32>
    %23 = tpu.matmul %21, %22, %cst_19 {dimension_numbers = #tpu.dot_dimension_numbers<[1], [0], [0], [1], [0, 0, 1, 1], [], []>} : vector<328x64xbf16>, vector<64x128xbf16>, vector<328x128xf32> -> vector<328x128xf32>
    %24 = arith.addf %20, %23 : vector<328x128xf32>
    %c18 = arith.constant 18 : index
    %c0_20 = arith.constant 0 : index
    %25 = vector.load %arg8[%c18, %c0_20] : memref<352x64xbf16, #tpu.memory_space<vmem>>, vector<328x64xbf16>
    %c128 = arith.constant 128 : index
    %c0_21 = arith.constant 0 : index
    %26 = vector.load %arg5[%c128, %c0_21] : memref<256x128xbf16, #tpu.memory_space<vmem>>, vector<64x128xbf16>
    %cst_22 = arith.constant dense<0.000000e+00> : vector<328x128xf32>
    %27 = tpu.matmul %25, %26, %cst_22 {dimension_numbers = #tpu.dot_dimension_numbers<[1], [0], [0], [1], [0, 0, 1, 1], [], []>} : vector<328x64xbf16>, vector<64x128xbf16>, vector<328x128xf32> -> vector<328x128xf32>
    %28 = arith.addf %24, %27 : vector<328x128xf32>
    %c19 = arith.constant 19 : index
    %c0_23 = arith.constant 0 : index
    %29 = vector.load %arg8[%c19, %c0_23] : memref<352x64xbf16, #tpu.memory_space<vmem>>, vector<328x64xbf16>
    %c192 = arith.constant 192 : index
    %c0_24 = arith.constant 0 : index
    %30 = vector.load %arg5[%c192, %c0_24] : memref<256x128xbf16, #tpu.memory_space<vmem>>, vector<64x128xbf16>
    %cst_25 = arith.constant dense<0.000000e+00> : vector<328x128xf32>
    %31 = tpu.matmul %29, %30, %cst_25 {dimension_numbers = #tpu.dot_dimension_numbers<[1], [0], [0], [1], [0, 0, 1, 1], [], []>} : vector<328x64xbf16>, vector<64x128xbf16>, vector<328x128xf32> -> vector<328x128xf32>
    %32 = arith.addf %28, %31 : vector<328x128xf32>
    %c0_26 = arith.constant 0 : index
    %c0_27 = arith.constant 0 : index
    %33 = vector.load %arg6[%c0_26, %c0_27] : memref<1x128xf32, #tpu.memory_space<vmem>>, vector<1x128xf32>
    %34 = vector.broadcast %33 : vector<1x128xf32> to vector<328x128xf32>
    %35 = arith.addf %32, %34 : vector<328x128xf32>
    %36 = math.tanh %35 : vector<328x128xf32>
    %c0_28 = arith.constant 0 : index
    %c0_29 = arith.constant 0 : index
    %37 = vector.load %arg7[%c0_28, %c0_29] : memref<328x128xf32, #tpu.memory_space<vmem>>, vector<328x128xf32>
    tpu.vector_store %arg7[%c0_28, %c0_29], %36 {strides = array<i32>} : memref<328x128xf32, #tpu.memory_space<vmem>>, vector<328x128xf32>,
    return
  }
  func.func @transform_0(%arg0: i32) -> (i32, i32) {
    %c0_i32 = arith.constant 0 : i32
    %c0_i32_0 = arith.constant 0 : i32
    return %arg0, %c0_i32 : i32, i32
  }
  func.func @transform_1(%arg0: i32) -> (i32, i32) {
    %c0_i32 = arith.constant 0 : i32
    %c0_i32_0 = arith.constant 0 : i32
    return %arg0, %c0_i32 : i32, i32
  }
  func.func @transform_2(%arg0: i32) -> (i32, i32) {
    %c0_i32 = arith.constant 0 : i32
    %c0_i32_0 = arith.constant 0 : i32
    %c0_i32_1 = arith.constant 0 : i32
    return %c0_i32, %c0_i32_0 : i32, i32
  }
  func.func @transform_3(%arg0: i32) -> (i32, i32) {
    %c0_i32 = arith.constant 0 : i32
    %c0_i32_0 = arith.constant 0 : i32
    %c0_i32_1 = arith.constant 0 : i32
    return %c0_i32, %c0_i32_0 : i32, i32
  }
  func.func @transform_4(%arg0: i32) -> (i32, i32) {
    %c0_i32 = arith.constant 0 : i32
    %c0_i32_0 = arith.constant 0 : i32
    %c0_i32_1 = arith.constant 0 : i32
    return %c0_i32, %c0_i32_0 : i32, i32
  }
  func.func @transform_5(%arg0: i32) -> (i32, i32) {
    %c0_i32 = arith.constant 0 : i32
    %c0_i32_0 = arith.constant 0 : i32
    %c0_i32_1 = arith.constant 0 : i32
    return %c0_i32, %c0_i32_0 : i32, i32
  }
  func.func @transform_6(%arg0: i32) -> (i32, i32) {
    %c0_i32 = arith.constant 0 : i32
    %c0_i32_0 = arith.constant 0 : i32
    return %arg0, %c0_i32 : i32, i32
  }
}

</mosaic_0001>

<bundles_post_ra>
// kernel: generator_forward.4
= control target key start
LH: loop header
LB: loop body
LE: loop exit
PB: predicated region body
PF: predicated region fallthrough
CT: control target
= control target key end

     0   :  { %v2674_v3 = vmov 0   ;;  %vm578_vm0 = vcmask 261120   ;;  %vm1600_vm1 = vcmask 130048   ;;  %s3492_s1 = inlined_call_operand.vmem [shape: bf16[32,4096], index: 1, kind: input, shape index: {}]   ;;  %s3493_s0 = inlined_call_operand.vmem [shape: f32[2,32], index: 0, kind: input, shape index: {}]   ;;  %s3494_s4 = inlined_call_operand.vmem [shape: bf16[16,4096], index: 4, kind: input, shape index: {}]   ;;  %s3495_s3 = inlined_call_operand.vmem [shape: f32[2,16], index: 3, kind: input, shape index: {}]   ;;  %s3496_s2 = inlined_call_operand.vmem [shape: f32[1,4096], index: 2, kind: input, shape index: {}]   ;;  %s3497_s5 = inlined_call_operand.vmem [shape: f32[1,4096], index: 5, kind: input, shape index: {}]   ;;  %s3498_s6 = inlined_call_operand.vmem [shape: f32[2,4096], index: 6, kind: output, shape index: {}]  }
   0x1   :  { %v26_v0 = vld [vmem:[%s3492_s1] sm:$0xff]  ;;  %v27_v2 = vld [vmem:[%s3492_s1 + $0x8] sm:$0xff]  ;;  %614 = vmatprep.mubr.bf16.mxu0 %v2674_v3  ;;  %655 = vmatprep.mubr.bf16.mxu1 %v2674_v3  ;;  %v28_v15 = vld [vmem:[%s3492_s1 + $0x10] sm:$0xff] }
   0x2   :  { %v42_v1 = vld [vmem:[%s3492_s1 + $0x80] sm:$0xff]  ;;  %v43_v5 = vld [vmem:[%s3492_s1 + $0x88] sm:$0xff]  ;;  %v44_v16 = vld [vmem:[%s3492_s1 + $0x90] sm:$0xff] }
   0x3   :  { %v2545_v4 = vcombine.high %v26_v0, %v42_v1  ;;  %v2544_v6 = vcombine.low %v26_v0, %v42_v1  ;;  %v58_v7 = vld [vmem:[%s3492_s1 + $0x100] sm:$0xff]  ;;  %v2547_v9 = vcombine.high %v27_v2, %v43_v5  ;;  %v2546_v10 = vcombine.low %v27_v2, %v43_v5  ;;  %v59_v12 = vld [vmem:[%s3492_s1 + $0x108] sm:$0xff]  ;;  %v29_v17 = vld [vmem:[%s3492_s1 + $0x18] sm:$0xff] }
   0x4   :  { %v74_v8 = vld [vmem:[%s3492_s1 + $0x180] sm:$0xff]  ;;  %v75_v13 = vld [vmem:[%s3492_s1 + $0x188] sm:$0xff]  ;;  %v45_v20 = vld [vmem:[%s3492_s1 + $0x98] sm:$0xff]  ;;  %v2549_v22 = vcombine.high %v28_v15, %v44_v16  ;;  %v2548_v29 = vcombine.low %v28_v15, %v44_v16 }
   0x5   :  { %v2577_v11 = vcombine.high %v58_v7, %v74_v8  ;;  %582 = vmatprep.subr.bf16.mxu0 %v2545_v4  ;;  %v2579_v14 = vcombine.high %v59_v12, %v75_v13  ;;  %623 = vmatprep.subr.bf16.mxu1 %v2547_v9  ;;  %v2576_v18 = vcombine.low %v58_v7, %v74_v8  ;;  %v24_v19 = vld [vmem:[%s3493_s0] sm:$0x3]  ;;  %v60_v24 = vld [vmem:[%s3492_s1 + $0x110] sm:$0xff]  ;;  %v61_v27 = vld [vmem:[%s3492_s1 + $0x118] sm:$0xff] }
   0x6   :  { %583 = vmatpush1.bf16.msra.mxu0 %v2544_v6  ;;  %624 = vmatpush1.bf16.msra.mxu1 %v2546_v10  ;;  %v2578_v21 = vcombine.low %v59_v12, %v75_v13  ;;  %v2551_v23 = vcombine.high %v29_v17, %v45_v20  ;;  %v76_v25 = vld [vmem:[%s3492_s1 + $0x190] sm:$0xff]  ;;  %v2758_v26 = vpack.c.bf16 %v24_v19, %v24_v19  ;;  %v77_v28 = vld [vmem:[%s3492_s1 + $0x198] sm:$0xff]  ;;  %v30_v33 = vld [vmem:[%s3492_s1 + $0x20] sm:$0xff] }
   0x7   :  { %584 = vmatprep.subr.bf16.mxu0 %v2577_v11  ;;  %625 = vmatprep.subr.bf16.mxu1 %v2579_v14  ;;  %v2550_v30 = vcombine.low %v29_v17, %v45_v20  ;;  %v2581_v31 = vcombine.high %v60_v24, %v76_v25  ;;  %v2583_v32 = vcombine.high %v61_v27, %v77_v28  ;;  %v46_v34 = vld [vmem:[%s3492_s1 + $0xa0] sm:$0xff]  ;;  %v31_v35 = vld [vmem:[%s3492_s1 + $0x28] sm:$0xff]  ;;  %v32_v49 = vld [vmem:[%s3492_s1 + $0x30] sm:$0xff] }
   0x8   :  { %v47_v36 = vld [vmem:[%s3492_s1 + $0xa8] sm:$0xff]  ;;  %v2580_v37 = vcombine.low %v60_v24, %v76_v25  ;;  %v2582_v38 = vcombine.low %v61_v27, %v77_v28  ;;  %v2553_v39 = vcombine.high %v30_v33, %v46_v34  ;;  %v62_v41 = vld [vmem:[%s3492_s1 + $0x120] sm:$0xff]  ;;  %v2552_v45 = vcombine.low %v30_v33, %v46_v34  ;;  %v48_v50 = vld [vmem:[%s3492_s1 + $0xb0] sm:$0xff] }
   0x9   :  { %v2555_v40 = vcombine.high %v31_v35, %v47_v36  ;;  %v78_v42 = vld [vmem:[%s3492_s1 + $0x1a0] sm:$0xff]  ;;  %v63_v43 = vld [vmem:[%s3492_s1 + $0x128] sm:$0xff]  ;;  %v2554_v46 = vcombine.low %v31_v35, %v47_v36  ;;  %v33_v51 = vld [vmem:[%s3492_s1 + $0x38] sm:$0xff]  ;;  %v2557_v55 = vcombine.high %v32_v49, %v48_v50  ;;  %v2556_v61 = vcombine.low %v32_v49, %v48_v50 }
   0xa   :  { %585 = vmatpush1.bf16.msra.mxu0 %v2576_v18  ;;  %626 = vmatpush1.bf16.msra.mxu1 %v2578_v21  ;;  %v79_v44 = vld [vmem:[%s3492_s1 + $0x1a8] sm:$0xff]  ;;  %v2585_v47 = vcombine.high %v62_v41, %v78_v42  ;;  %v49_v52 = vld [vmem:[%s3492_s1 + $0xb8] sm:$0xff]  ;;  %v2584_v53 = vcombine.low %v62_v41, %v78_v42  ;;  %v64_v57 = vld [vmem:[%s3492_s1 + $0x130] sm:$0xff] }
   0xb   :  { %664 = vmatprep.subr.bf16.mxu0 %v2549_v22  ;;  %705 = vmatprep.subr.bf16.mxu1 %v2551_v23  ;;  %v2587_v48 = vcombine.high %v63_v43, %v79_v44  ;;  %v2586_v54 = vcombine.low %v63_v43, %v79_v44  ;;  %v2559_v56 = vcombine.high %v33_v51, %v49_v52  ;;  %v80_v58 = vld [vmem:[%s3492_s1 + $0x1b0] sm:$0xff]  ;;  %v65_v59 = vld [vmem:[%s3492_s1 + $0x138] sm:$0xff]  ;;  %v34_v1 = vld [vmem:[%s3492_s1 + $0x40] sm:$0xff] }
   0xc   :  { %v81_v60 = vld [vmem:[%s3492_s1 + $0x1b8] sm:$0xff]  ;;  %v2558_v62 = vcombine.low %v33_v51, %v49_v52  ;;  %v2589_v63 = vcombine.high %v64_v57, %v80_v58  ;;  %v50_v2 = vld [vmem:[%s3492_s1 + $0xc0] sm:$0xff]  ;;  %v35_v4 = vld [vmem:[%s3492_s1 + $0x48] sm:$0xff]  ;;  %v2588_v6 = vcombine.low %v64_v57, %v80_v58 }
   0xd   :  { %2608 = vmatmul.mubr.msk.bf16.vlgmr.msra.gmra.mrb[0].mxu0 %vm578_vm0, %v2758_v26  ;;  %2609 = vmatmul.mubr.msk.bf16.vlgmr.msra.gmra.mrb[0].mxu1 %vm578_vm0, %v2758_v26  ;;  %v2591_v0 = vcombine.high %v65_v59, %v81_v60  ;;  %v51_v5 = vld [vmem:[%s3492_s1 + $0xc8] sm:$0xff]  ;;  %v2590_v7 = vcombine.low %v65_v59, %v81_v60  ;;  %v2561_v8 = vcombine.high %v34_v1, %v50_v2  ;;  %v66_v10 = vld [vmem:[%s3492_s1 + $0x140] sm:$0xff]  ;;  %v36_v18 = vld [vmem:[%s3492_s1 + $0x50] sm:$0xff] }
   0xe   :  { %665 = vmatpush1.bf16.msra.mxu0 %v2548_v29  ;;  %706 = vmatpush1.bf16.msra.mxu1 %v2550_v30  ;;  %v2563_v9 = vcombine.high %v35_v4, %v51_v5  ;;  %v82_v11 = vld [vmem:[%s3492_s1 + $0x1c0] sm:$0xff]  ;;  %v67_v12 = vld [vmem:[%s3492_s1 + $0x148] sm:$0xff]  ;;  %v2560_v14 = vcombine.low %v34_v1, %v50_v2  ;;  %v2562_v15 = vcombine.low %v35_v4, %v51_v5  ;;  %v52_v19 = vld [vmem:[%s3492_s1 + $0xd0] sm:$0xff] }
   0xf   :  { %666 = vmatprep.subr.bf16.mxu0 %v2581_v31  ;;  %707 = vmatprep.subr.bf16.mxu1 %v2583_v32  ;;  %v83_v13 = vld [vmem:[%s3492_s1 + $0x1c8] sm:$0xff]  ;;  %v2593_v16 = vcombine.high %v66_v10, %v82_v11  ;;  %v37_v20 = vld [vmem:[%s3492_s1 + $0x58] sm:$0xff]  ;;  %v2592_v22 = vcombine.low %v66_v10, %v82_v11  ;;  %v2565_v24 = vcombine.high %v36_v18, %v52_v19  ;;  %v68_v27 = vld [vmem:[%s3492_s1 + $0x150] sm:$0xff] }
  0x10   :  { %696 = vmatprep.mubr.bf16.mxu0 %v2674_v3  ;;  %737 = vmatprep.mubr.bf16.mxu1 %v2674_v3  ;;  %v2595_v17 = vcombine.high %v67_v12, %v83_v13  ;;  %v53_v21 = vld [vmem:[%s3492_s1 + $0xd8] sm:$0xff]  ;;  %v2594_v23 = vcombine.low %v67_v12, %v83_v13  ;;  %v84_v28 = vld [vmem:[%s3492_s1 + $0x1d0] sm:$0xff]  ;;  %v2564_v31 = vcombine.low %v36_v18, %v52_v19  ;;  %v38_v35 = vld [vmem:[%s3492_s1 + $0x60] sm:$0xff] }
  0x11   :  { %v2567_v25 = vcombine.high %v37_v20, %v53_v21  ;;  %v69_v29 = vld [vmem:[%s3492_s1 + $0x158] sm:$0xff]  ;;  %v2566_v32 = vcombine.low %v37_v20, %v53_v21  ;;  %v2597_v33 = vcombine.high %v68_v27, %v84_v28  ;;  %v54_v36 = vld [vmem:[%s3492_s1 + $0xe0] sm:$0xff]  ;;  %v40_v51 = vld [vmem:[%s3492_s1 + $0x70] sm:$0xff] }
  0x12   :  { %667 = vmatpush1.bf16.msra.mxu0 %v2580_v37  ;;  %708 = vmatpush1.bf16.msra.mxu1 %v2582_v38  ;;  %v85_v30 = vld [vmem:[%s3492_s1 + $0x1d8] sm:$0xff]  ;;  %v39_v37 = vld [vmem:[%s3492_s1 + $0x68] sm:$0xff]  ;;  %v2569_v41 = vcombine.high %v38_v35, %v54_v36  ;;  %v70_v43 = vld [vmem:[%s3492_s1 + $0x160] sm:$0xff] }
  0x13   :  { %746 = vmatprep.subr.bf16.mxu0 %v2553_v39  ;;  %787 = vmatprep.subr.bf16.mxu1 %v2555_v40  ;;  %v2599_v34 = vcombine.high %v69_v29, %v85_v30  ;;  %v55_v38 = vld [vmem:[%s3492_s1 + $0xe8] sm:$0xff]  ;;  %v2596_v39 = vcombine.low %v68_v27, %v84_v28  ;;  %v2598_v40 = vcombine.low %v69_v29, %v85_v30  ;;  %v86_v44 = vld [vmem:[%s3492_s1 + $0x1e0] sm:$0xff]  ;;  %v56_v52 = vld [vmem:[%s3492_s1 + $0xf0] sm:$0xff] }
  0x14   :  { %v2571_v42 = vcombine.high %v39_v37, %v55_v38  ;;  %v2601_v49 = vcombine.high %v70_v43, %v86_v44  ;;  %v2573_v57 = vcombine.high %v40_v51, %v56_v52  ;;  %v72_v59 = vld [vmem:[%s3492_s1 + $0x170] sm:$0xff]  ;;  %v1240_v4 = vld [vmem:[%s3494_s4] sm:$0xff] }
  0x15   :  { %2610 = vmatmul.mubr.msk.bf16.vlgmr.msra.gmra.mrb[4].mxu0 %vm578_vm0, %v2758_v26  ;;  %2611 = vmatmul.mubr.msk.bf16.vlgmr.msra.gmra.mrb[4].mxu1 %vm578_vm0, %v2758_v26  ;;  %v88_v60 = vld [vmem:[%s3492_s1 + $0x1f0] sm:$0xff]  ;;  %v1256_v5 = vld [vmem:[%s3494_s4 + $0x80] sm:$0xff] }
  0x16   :  { %747 = vmatpush1.bf16.msra.mxu0 %v2552_v45  ;;  %788 = vmatpush1.bf16.msra.mxu1 %v2554_v46  ;;  %v71_v45 = vld [vmem:[%s3492_s1 + $0x168] sm:$0xff]  ;;  %v2605_v1 = vcombine.high %v72_v59, %v88_v60  ;;  %v2625_v10 = vcombine.high %v1240_v4, %v1256_v5  ;;  %v1242_v12 = vld [vmem:[%s3494_s4 + $0x10] sm:$0xff]  ;;  %v1238_v20 = vld [vmem:[%s3495_s3] sm:$0x3] }
  0x17   :  { %748 = vmatprep.subr.bf16.mxu0 %v2585_v47  ;;  %789 = vmatprep.subr.bf16.mxu1 %v2587_v48  ;;  %v87_v46 = vld [vmem:[%s3492_s1 + $0x1e8] sm:$0xff]  ;;  %v2568_v47 = vcombine.low %v38_v35, %v54_v36  ;;  %v2570_v48 = vcombine.low %v39_v37, %v55_v38  ;;  %v1258_v13 = vld [vmem:[%s3494_s4 + $0x90] sm:$0xff]  ;;  %v2985_v21 = vpack.c.bf16 %v1238_v20, %v1238_v20  ;;  %v1248_v38 = vld [vmem:[%s3494_s4 + $0x40] sm:$0xff] }
  0x18   :  { %778 = vmatprep.mubr.bf16.mxu0 %v2674_v3  ;;  %819 = vmatprep.mubr.bf16.mxu1 %v2674_v3  ;;  %v2603_v50 = vcombine.high %v71_v45, %v87_v46  ;;  %v2629_v18 = vcombine.high %v1242_v12, %v1258_v13  ;;  %v1246_v30 = vld [vmem:[%s3494_s4 + $0x30] sm:$0xff] }
  0x1a   :  { %749 = vmatpush1.bf16.msra.mxu0 %v2584_v53  ;;  %790 = vmatpush1.bf16.msra.mxu1 %v2586_v54  ;;  %v41_v53 = vld [vmem:[%s3492_s1 + $0x78] sm:$0xff] }
  0x1b   :  { %828 = vmatprep.subr.bf16.mxu0 %v2557_v55  ;;  %869 = vmatprep.subr.bf16.mxu1 %v2559_v56  ;;  %v57_v54 = vld [vmem:[%s3492_s1 + $0xf8] sm:$0xff]  ;;  %v2600_v55 = vcombine.low %v70_v43, %v86_v44  ;;  %v2602_v56 = vcombine.low %v71_v45, %v87_v46  ;;  %v1250_v46 = vld [vmem:[%s3494_s4 + $0x50] sm:$0xff] }
  0x1c   :  { %v2575_v58 = vcombine.high %v41_v53, %v57_v54 }
  0x1d   :  { %2612 = vmatmul.mubr.msk.bf16.vlgmr.msra.gmra.mrb[8].mxu0 %vm578_vm0, %v2758_v26  ;;  %2613 = vmatmul.mubr.msk.bf16.vlgmr.msra.gmra.mrb[8].mxu1 %vm578_vm0, %v2758_v26 }
  0x1e   :  { %829 = vmatpush1.bf16.msra.mxu0 %v2556_v61  ;;  %870 = vmatpush1.bf16.msra.mxu1 %v2558_v62  ;;  %v73_v61 = vld [vmem:[%s3492_s1 + $0x178] sm:$0xff] }
  0x1f   :  { %830 = vmatprep.subr.bf16.mxu0 %v2589_v63  ;;  %871 = vmatprep.subr.bf16.mxu1 %v2591_v0  ;;  %v89_v62 = vld [vmem:[%s3492_s1 + $0x1f8] sm:$0xff]  ;;  %v2572_v63 = vcombine.low %v40_v51, %v56_v52  ;;  %v2574_v0 = vcombine.low %v41_v53, %v57_v54  ;;  %v1252_v54 = vld [vmem:[%s3494_s4 + $0x60] sm:$0xff] }
  0x20   :  { %860 = vmatprep.mubr.bf16.mxu0 %v2674_v3  ;;  %901 = vmatprep.mubr.bf16.mxu1 %v2674_v3  ;;  %v2607_v2 = vcombine.high %v73_v61, %v89_v62 }
  0x22   :  { %831 = vmatpush1.bf16.msra.mxu0 %v2588_v6  ;;  %872 = vmatpush1.bf16.msra.mxu1 %v2590_v7  ;;  %v1241_v6 = vld [vmem:[%s3494_s4 + $0x8] sm:$0xff] }
  0x23   :  { %910 = vmatprep.subr.bf16.mxu0 %v2561_v8  ;;  %951 = vmatprep.subr.bf16.mxu1 %v2563_v9  ;;  %v1257_v7 = vld [vmem:[%s3494_s4 + $0x88] sm:$0xff]  ;;  %v2604_v8 = vcombine.low %v72_v59, %v88_v60  ;;  %v2606_v9 = vcombine.low %v73_v61, %v89_v62  ;;  %v1254_v62 = vld [vmem:[%s3494_s4 + $0x70] sm:$0xff] }
  0x24   :  { %v2627_v11 = vcombine.high %v1241_v6, %v1257_v7 }
  0x25   :  { %2614 = vmatmul.mubr.msk.bf16.vlgmr.msra.gmra.mrb[12].mxu0 %vm578_vm0, %v2758_v26  ;;  %2615 = vmatmul.mubr.msk.bf16.vlgmr.msra.gmra.mrb[12].mxu1 %vm578_vm0, %v2758_v26 }
  0x26   :  { %911 = vmatpush1.bf16.msra.mxu0 %v2560_v14  ;;  %952 = vmatpush1.bf16.msra.mxu1 %v2562_v15  ;;  %v2624_v14 = vcombine.low %v1240_v4, %v1256_v5  ;;  %v1243_v15 = vld [vmem:[%s3494_s4 + $0x18] sm:$0xff] }
  0x27   :  { %912 = vmatprep.subr.bf16.mxu0 %v2593_v16  ;;  %953 = vmatprep.subr.bf16.mxu1 %v2595_v17  ;;  %v1259_v16 = vld [vmem:[%s3494_s4 + $0x98] sm:$0xff]  ;;  %v2626_v17 = vcombine.low %v1241_v6, %v1257_v7 }
  0x28   :  { %942 = vmatprep.mubr.bf16.mxu0 %v2674_v3  ;;  %983 = vmatprep.mubr.bf16.mxu1 %v2674_v3  ;;  %v2631_v19 = vcombine.high %v1243_v15, %v1259_v16  ;;  %v2630_v27 = vcombine.low %v1243_v15, %v1259_v16 }
  0x2a   :  { %913 = vmatpush1.bf16.msra.mxu0 %v2592_v22  ;;  %954 = vmatpush1.bf16.msra.mxu1 %v2594_v23  ;;  %v1244_v22 = vld [vmem:[%s3494_s4 + $0x20] sm:$0xff]  ;;  %v2628_v23 = vcombine.low %v1242_v12, %v1258_v13 }
  0x2b   :  { %992 = vmatprep.subr.bf16.mxu0 %v2565_v24  ;;  %1033 = vmatprep.subr.bf16.mxu1 %v2567_v25  ;;  %v1245_v24 = vld [vmem:[%s3494_s4 + $0x28] sm:$0xff] }
  0x2c   :  { %v1261_v25 = vld [vmem:[%s3494_s4 + $0xa8] sm:$0xff] }
  0x2d   :  { %2616 = vmatmul.mubr.msk.bf16.vlgmr.msra.gmra.mrb[16].mxu0 %vm578_vm0, %v2758_v26  ;;  %2617 = vmatmul.mubr.msk.bf16.vlgmr.msra.gmra.mrb[16].mxu1 %vm578_vm0, %v2758_v26  ;;  %v2635_v29 = vcombine.high %v1245_v24, %v1261_v25  ;;  %v2634_v35 = vcombine.low %v1245_v24, %v1261_v25 }
  0x2e   :  { %993 = vmatpush1.bf16.msra.mxu0 %v2564_v31  ;;  %1034 = vmatpush1.bf16.msra.mxu1 %v2566_v32  ;;  %v1262_v31 = vld [vmem:[%s3494_s4 + $0xb0] sm:$0xff] }
  0x2f   :  { %994 = vmatprep.subr.bf16.mxu0 %v2597_v33  ;;  %1035 = vmatprep.subr.bf16.mxu1 %v2599_v34  ;;  %v1247_v33 = vld [vmem:[%s3494_s4 + $0x38] sm:$0xff]  ;;  %v2637_v36 = vcombine.high %v1246_v30, %v1262_v31 }
  0x30   :  { %1024 = vmatprep.mubr.bf16.mxu0 %v2674_v3  ;;  %1065 = vmatprep.mubr.bf16.mxu1 %v2674_v3  ;;  %v1263_v34 = vld [vmem:[%s3494_s4 + $0xb8] sm:$0xff] }
  0x31   :  { %v2639_v37 = vcombine.high %v1247_v33, %v1263_v34  ;;  %v2638_v43 = vcombine.low %v1247_v33, %v1263_v34 }
  0x32   :  { %995 = vmatpush1.bf16.msra.mxu0 %v2596_v39  ;;  %1036 = vmatpush1.bf16.msra.mxu1 %v2598_v40  ;;  %v1264_v39 = vld [vmem:[%s3494_s4 + $0xc0] sm:$0xff]  ;;  %v2636_v40 = vcombine.low %v1246_v30, %v1262_v31 }
  0x33   :  { %1074 = vmatprep.subr.bf16.mxu0 %v2569_v41  ;;  %1115 = vmatprep.subr.bf16.mxu1 %v2571_v42  ;;  %v1249_v41 = vld [vmem:[%s3494_s4 + $0x48] sm:$0xff]  ;;  %v2641_v44 = vcombine.high %v1248_v38, %v1264_v39 }
  0x34   :  { %v1265_v42 = vld [vmem:[%s3494_s4 + $0xc8] sm:$0xff] }
  0x35   :  { %2618 = vmatmul.mubr.msk.bf16.vlgmr.msra.gmra.mrb[20].mxu0 %vm578_vm0, %v2758_v26  ;;  %2619 = vmatmul.mubr.msk.bf16.vlgmr.msra.gmra.mrb[20].mxu1 %vm578_vm0, %v2758_v26  ;;  %v2643_v45 = vcombine.high %v1249_v41, %v1265_v42  ;;  %v2642_v51 = vcombine.low %v1249_v41, %v1265_v42 }
  0x36   :  { %1075 = vmatpush1.bf16.msra.mxu0 %v2568_v47  ;;  %1116 = vmatpush1.bf16.msra.mxu1 %v2570_v48  ;;  %v1266_v47 = vld [vmem:[%s3494_s4 + $0xd0] sm:$0xff]  ;;  %v2640_v48 = vcombine.low %v1248_v38, %v1264_v39 }
  0x37   :  { %1076 = vmatprep.subr.bf16.mxu0 %v2601_v49  ;;  %1117 = vmatprep.subr.bf16.mxu1 %v2603_v50  ;;  %v1251_v49 = vld [vmem:[%s3494_s4 + $0x58] sm:$0xff]  ;;  %v2645_v52 = vcombine.high %v1250_v46, %v1266_v47 }
  0x38   :  { %1106 = vmatprep.mubr.bf16.mxu0 %v2674_v3  ;;  %1147 = vmatprep.mubr.bf16.mxu1 %v2674_v3  ;;  %v1267_v50 = vld [vmem:[%s3494_s4 + $0xd8] sm:$0xff] }
  0x39   :  { %v2647_v53 = vcombine.high %v1251_v49, %v1267_v50  ;;  %v2646_v59 = vcombine.low %v1251_v49, %v1267_v50 }
  0x3a   :  { %1077 = vmatpush1.bf16.msra.mxu0 %v2600_v55  ;;  %1118 = vmatpush1.bf16.msra.mxu1 %v2602_v56  ;;  %v1268_v55 = vld [vmem:[%s3494_s4 + $0xe0] sm:$0xff]  ;;  %v2644_v56 = vcombine.low %v1250_v46, %v1266_v47 }
  0x3b   :  { %1156 = vmatprep.subr.bf16.mxu0 %v2573_v57  ;;  %1197 = vmatprep.subr.bf16.mxu1 %v2575_v58  ;;  %v1253_v57 = vld [vmem:[%s3494_s4 + $0x68] sm:$0xff]  ;;  %v2649_v60 = vcombine.high %v1252_v54, %v1268_v55 }
  0x3c   :  { %v1269_v58 = vld [vmem:[%s3494_s4 + $0xe8] sm:$0xff] }
  0x3d   :  { %2620 = vmatmul.mubr.msk.bf16.vlgmr.msra.gmra.mrb[24].mxu0 %vm578_vm0, %v2758_v26  ;;  %2621 = vmatmul.mubr.msk.bf16.vlgmr.msra.gmra.mrb[24].mxu1 %vm578_vm0, %v2758_v26  ;;  %v2651_v61 = vcombine.high %v1253_v57, %v1269_v58  ;;  %v2650_v4 = vcombine.low %v1253_v57, %v1269_v58 }
  0x3e   :  { %1157 = vmatpush1.bf16.msra.mxu0 %v2572_v63  ;;  %1198 = vmatpush1.bf16.msra.mxu1 %v2574_v0  ;;  %v1270_v63 = vld [vmem:[%s3494_s4 + $0xf0] sm:$0xff]  ;;  %v2648_v0 = vcombine.low %v1252_v54, %v1268_v55 }
  0x3f   :  { %1158 = vmatprep.subr.bf16.mxu0 %v2605_v1  ;;  %1199 = vmatprep.subr.bf16.mxu1 %v2607_v2  ;;  %v1255_v1 = vld [vmem:[%s3494_s4 + $0x78] sm:$0xff]  ;;  %v2653_v5 = vcombine.high %v1254_v62, %v1270_v63  ;;  %v2652_v7 = vcombine.low %v1254_v62, %v1270_v63 }
  0x40   :  { %1188 = vmatprep.mubr.bf16.mxu0 %v2674_v3  ;;  %1229 = vmatprep.mubr.bf16.mxu1 %v2674_v3  ;;  %v1271_v2 = vld [vmem:[%s3494_s4 + $0xf8] sm:$0xff] }
  0x41   :  { %v2655_v6 = vcombine.high %v1255_v1, %v1271_v2 }
  0x42   :  { %1159 = vmatpush1.bf16.msra.mxu0 %v2604_v8  ;;  %1200 = vmatpush1.bf16.msra.mxu1 %v2606_v9  ;;  %v2654_v8 = vcombine.low %v1255_v1, %v1271_v2 }
  0x43   :  { %1604 = vmatprep.subr.bf16.mxu0 %v2625_v10  ;;  %1645 = vmatprep.subr.bf16.mxu1 %v2627_v11 }
  0x45   :  { %2622 = vmatmul.mubr.msk.bf16.vlgmr.msra.gmra.mrb[28].mxu0 %vm578_vm0, %v2758_v26  ;;  %2623 = vmatmul.mubr.msk.bf16.vlgmr.msra.gmra.mrb[28].mxu1 %vm578_vm0, %v2758_v26  ;;  %v1260_v26 = vld [vmem:[%s3494_s4 + $0xa0] sm:$0xff] }
  0x46   :  { %1605 = vmatpush1.bf16.msra.mxu0 %v2624_v14  ;;  %1646 = vmatpush1.bf16.msra.mxu1 %v2626_v17  ;;  %v2633_v28 = vcombine.high %v1244_v22, %v1260_v26  ;;  %v2632_v32 = vcombine.low %v1244_v22, %v1260_v26 }
  0x47   :  { %1636 = vmatprep.mubr.bf16.mxu0 %v2674_v3  ;;  %1677 = vmatprep.mubr.bf16.mxu1 %v2674_v3 }
  0x48   :  { %1686 = vmatprep.subr.bf16.mxu0 %v2629_v18  ;;  %1727 = vmatprep.subr.bf16.mxu1 %v2631_v19 }
  0x4d   :  { %2656 = vmatmul.mubr.msk.bf16.vlgmr.msra.gmra.mrb[32].mxu0 %vm1600_vm1, %v2985_v21  ;;  %2657 = vmatmul.mubr.msk.bf16.vlgmr.msra.gmra.mrb[32].mxu1 %vm1600_vm1, %v2985_v21 }
  0x4e   :  { %1687 = vmatpush1.bf16.msra.mxu0 %v2628_v23  ;;  %1728 = vmatpush1.bf16.msra.mxu1 %v2630_v27 }
  0x4f   :  { %1718 = vmatprep.mubr.bf16.mxu0 %v2674_v3  ;;  %1759 = vmatprep.mubr.bf16.mxu1 %v2674_v3 }
  0x50   :  { %1768 = vmatprep.subr.bf16.mxu0 %v2633_v28  ;;  %1809 = vmatprep.subr.bf16.mxu1 %v2635_v29 }
  0x55   :  { %2658 = vmatmul.mubr.msk.bf16.vlgmr.msra.gmra.mrb[36].mxu0 %vm1600_vm1, %v2985_v21  ;;  %2659 = vmatmul.mubr.msk.bf16.vlgmr.msra.gmra.mrb[36].mxu1 %vm1600_vm1, %v2985_v21 }
  0x56   :  { %1769 = vmatpush1.bf16.msra.mxu0 %v2632_v32  ;;  %1810 = vmatpush1.bf16.msra.mxu1 %v2634_v35 }
  0x57   :  { %1800 = vmatprep.mubr.bf16.mxu0 %v2674_v3  ;;  %1841 = vmatprep.mubr.bf16.mxu1 %v2674_v3 }
  0x58   :  { %1850 = vmatprep.subr.bf16.mxu0 %v2637_v36  ;;  %1891 = vmatprep.subr.bf16.mxu1 %v2639_v37 }
  0x5d   :  { %2660 = vmatmul.mubr.msk.bf16.vlgmr.msra.gmra.mrb[40].mxu0 %vm1600_vm1, %v2985_v21  ;;  %2661 = vmatmul.mubr.msk.bf16.vlgmr.msra.gmra.mrb[40].mxu1 %vm1600_vm1, %v2985_v21 }
  0x5e   :  { %1851 = vmatpush1.bf16.msra.mxu0 %v2636_v40  ;;  %1892 = vmatpush1.bf16.msra.mxu1 %v2638_v43 }
  0x5f   :  { %1882 = vmatprep.mubr.bf16.mxu0 %v2674_v3  ;;  %1923 = vmatprep.mubr.bf16.mxu1 %v2674_v3 }
  0x60   :  { %1932 = vmatprep.subr.bf16.mxu0 %v2641_v44  ;;  %1973 = vmatprep.subr.bf16.mxu1 %v2643_v45 }
  0x65   :  { %2662 = vmatmul.mubr.msk.bf16.vlgmr.msra.gmra.mrb[44].mxu0 %vm1600_vm1, %v2985_v21  ;;  %2663 = vmatmul.mubr.msk.bf16.vlgmr.msra.gmra.mrb[44].mxu1 %vm1600_vm1, %v2985_v21 }
  0x66   :  { %1933 = vmatpush1.bf16.msra.mxu0 %v2640_v48  ;;  %1974 = vmatpush1.bf16.msra.mxu1 %v2642_v51 }
  0x67   :  { %1964 = vmatprep.mubr.bf16.mxu0 %v2674_v3  ;;  %2005 = vmatprep.mubr.bf16.mxu1 %v2674_v3 }
  0x68   :  { %2014 = vmatprep.subr.bf16.mxu0 %v2645_v52  ;;  %2055 = vmatprep.subr.bf16.mxu1 %v2647_v53 }
  0x6d   :  { %2664 = vmatmul.mubr.msk.bf16.vlgmr.msra.gmra.mrb[48].mxu0 %vm1600_vm1, %v2985_v21  ;;  %2665 = vmatmul.mubr.msk.bf16.vlgmr.msra.gmra.mrb[48].mxu1 %vm1600_vm1, %v2985_v21 }
  0x6e   :  { %2015 = vmatpush1.bf16.msra.mxu0 %v2644_v56  ;;  %2056 = vmatpush1.bf16.msra.mxu1 %v2646_v59  ;;  %v98_v56 = vlaneseq }
  0x6f   :  { %2046 = vmatprep.mubr.bf16.mxu0 %v2674_v3  ;;  %2087 = vmatprep.mubr.bf16.mxu1 %v2674_v3 }
  0x70   :  { %2096 = vmatprep.subr.bf16.mxu0 %v2649_v60  ;;  %2137 = vmatprep.subr.bf16.mxu1 %v2651_v61  ;;  %v3161_v62 = vshrl.u32 %v98_v56, 7 }
  0x72   :  { %v3164_v2 = vsub.s32 0, %v3161_v62 }
  0x75   :  { %2666 = vmatmul.mubr.msk.bf16.vlgmr.msra.gmra.mrb[52].mxu0 %vm1600_vm1, %v2985_v21  ;;  %2667 = vmatmul.mubr.msk.bf16.vlgmr.msra.gmra.mrb[52].mxu1 %vm1600_vm1, %v2985_v21 }
  0x76   :  { %2097 = vmatpush1.bf16.msra.mxu0 %v2648_v0  ;;  %2138 = vmatpush1.bf16.msra.mxu1 %v2650_v4  ;;  %v3169_v4 = vld [vmem:[%s3496_s2] sm:$0xff] }
  0x77   :  { %2128 = vmatprep.mubr.bf16.mxu0 %v2674_v3  ;;  %2169 = vmatprep.mubr.bf16.mxu1 %v2674_v3 }
  0x78   :  { %2178 = vmatprep.subr.bf16.mxu0 %v2653_v5  ;;  %2219 = vmatprep.subr.bf16.mxu1 %v2655_v6  ;;  %v3172_v5 = vsub.s32 2, %v3161_v62  ;;  %v3175_v6 = vsub.s32 1, %v3161_v62 }
  0x7d   :  { %2668 = vmatmul.mubr.msk.bf16.vlgmr.msra.gmra.mrb[56].mxu0 %vm1600_vm1, %v2985_v21  ;;  %2669 = vmatmul.mubr.msk.bf16.vlgmr.msra.gmra.mrb[56].mxu1 %vm1600_vm1, %v2985_v21 }
  0x7e   :  { %2179 = vmatpush1.bf16.msra.mxu0 %v2652_v7  ;;  %2220 = vmatpush1.bf16.msra.mxu1 %v2654_v8  ;;  %v3180_v8 = vsub.s32 3, %v3161_v62 }
  0x7f   :  { %2210 = vmatprep.mubr.bf16.mxu0 %v2674_v3  ;;  %2251 = vmatprep.mubr.bf16.mxu1 %v2674_v3 }
  0x85   :  { %2670 = vmatmul.mubr.msk.bf16.vlgmr.msra.gmra.mrb[60].mxu0 %vm1600_vm1, %v2985_v21  ;;  %2671 = vmatmul.mubr.msk.bf16.vlgmr.msra.gmra.mrb[60].mxu1 %vm1600_vm1, %v2985_v21 }
  0xe0   :  { %v3105_v9 = vpop.f32.mrb[0].mxu0  ;;  %v3107_v10 = vpop.f32.mrb[0].mxu1 }
  0xe1   :  { %v3109_v11 = vpop.f32.mrb[1].mxu0  ;;  %v3111_v12 = vpop.f32.mrb[1].mxu1 }
  0xe2   :  { %v620_v13 = vpop.f32.mrb[2].mxu0  ;;  %v661_v14 = vpop.f32.mrb[2].mxu1 }
  0xe3   :  { %v621_v15 = vpop.f32.mrb[3].mxu0  ;;  %v662_v16 = vpop.f32.mrb[3].mxu1  ;;  %v3183_v13 = vsub.s32 4, %v3161_v62  ;;  %v3186_v14 = vsub.s32 6, %v3161_v62 }
  0xe8   :  { %v3113_v17 = vpop.f32.mrb[4].mxu0  ;;  %v3115_v3 = vpop.f32.mrb[4].mxu1 }
  0xe9   :  { %v3117_v18 = vpop.f32.mrb[5].mxu0  ;;  %v3119_v19 = vpop.f32.mrb[5].mxu1 }
  0xea   :  { %v702_v20 = vpop.f32.mrb[6].mxu0  ;;  %v743_v21 = vpop.f32.mrb[6].mxu1 }
  0xeb   :  { %v703_v22 = vpop.f32.mrb[7].mxu0  ;;  %v744_v26 = vpop.f32.mrb[7].mxu1  ;;  %v3193_v20 = vsub.s32 5, %v3161_v62 }
  0xec   :  { %v3200_v26 = vld [vmem:[%s3497_s5] sm:$0xff] }
  0xf0   :  { %v3121_v23 = vpop.f32.mrb[8].mxu0  ;;  %v3123_v24 = vpop.f32.mrb[8].mxu1 }
  0xf1   :  { %v3125_v25 = vpop.f32.mrb[9].mxu0  ;;  %v3127_v27 = vpop.f32.mrb[9].mxu1 }
  0xf2   :  { %v784_v28 = vpop.f32.mrb[10].mxu0  ;;  %v825_v29 = vpop.f32.mrb[10].mxu1 }
  0xf3   :  { %v785_v30 = vpop.f32.mrb[11].mxu0  ;;  %v826_v31 = vpop.f32.mrb[11].mxu1  ;;  %v101_v28 = vrot.slane %v3169_v4, %v3164_v2  ;;  %v3205_v29 = vsub.s32 7, %v3161_v62 }
  0xf8   :  { %v3129_v32 = vpop.f32.mrb[12].mxu0  ;;  %v3131_v33 = vpop.f32.mrb[12].mxu1 }
  0xf9   :  { %v3133_v34 = vpop.f32.mrb[13].mxu0  ;;  %v3135_v35 = vpop.f32.mrb[13].mxu1 }
  0xfa   :  { %v866_v36 = vpop.f32.mrb[14].mxu0  ;;  %v907_v37 = vpop.f32.mrb[14].mxu1 }
  0xfb   :  { %v867_v38 = vpop.f32.mrb[15].mxu0  ;;  %v908_v39 = vpop.f32.mrb[15].mxu1  ;;  %v109_v36 = vrot.slane %v3169_v4, %v3172_v5  ;;  %v105_v37 = vrot.slane %v3169_v4, %v3175_v6 }
  0xfc   :  { %v3214_v38 = vld [vmem:[%s3496_s2 + $0x8] sm:$0xff] }
 0x100   :  { %v3137_v40 = vpop.f32.mrb[16].mxu0  ;;  %v3139_v41 = vpop.f32.mrb[16].mxu1 }
 0x101   :  { %v3141_v42 = vpop.f32.mrb[17].mxu0  ;;  %v3143_v43 = vpop.f32.mrb[17].mxu1 }
 0x102   :  { %v948_v44 = vpop.f32.mrb[18].mxu0  ;;  %v989_v45 = vpop.f32.mrb[18].mxu1 }
 0x103   :  { %v949_v46 = vpop.f32.mrb[19].mxu0  ;;  %v990_v47 = vpop.f32.mrb[19].mxu1  ;;  %v113_v44 = vrot.slane %v3169_v4, %v3180_v8  ;;  %v117_v45 = vrot.slane %v3169_v4, %v3183_v13 }
 0x104   :  { %v125_v46 = vrot.slane %v3169_v4, %v3186_v14  ;;  %v1283_v47 = vrot.slane %v3200_v26, %v3164_v2 }
 0x108   :  { %v3145_v48 = vpop.f32.mrb[20].mxu0  ;;  %v3147_v49 = vpop.f32.mrb[20].mxu1 }
 0x109   :  { %v3149_v50 = vpop.f32.mrb[21].mxu0  ;;  %v3151_v51 = vpop.f32.mrb[21].mxu1 }
 0x10a   :  { %v1030_v52 = vpop.f32.mrb[22].mxu0  ;;  %v1071_v53 = vpop.f32.mrb[22].mxu1 }
 0x10b   :  { %v1031_v54 = vpop.f32.mrb[23].mxu0  ;;  %v1072_v55 = vpop.f32.mrb[23].mxu1  ;;  %v121_v52 = vrot.slane %v3169_v4, %v3193_v20  ;;  %v1291_v53 = vrot.slane %v3200_v26, %v3172_v5 }
 0x10c   :  { %v1287_v54 = vrot.slane %v3200_v26, %v3175_v6  ;;  %v2675_v55 = vmov 1983009808  }
 0x10d   :  { %v2391_v56 = vunpack.c.l.s4 %v2675_v55 }
 0x110   :  { %v3153_v57 = vpop.f32.mrb[24].mxu0  ;;  %v3155_v58 = vpop.f32.mrb[24].mxu1 }
 0x111   :  { %3499 = vst [vmem:[#allocation2_spill] sm:$0xff] %v3153_v57  ;;  %3500 = vst [vmem:[#allocation3_spill] sm:$0xff] %v3155_v58  ;;  %v3157_v59 = vpop.f32.mrb[25].mxu0  ;;  %v3159_v60 = vpop.f32.mrb[25].mxu1 }
 0x112   :  { %3501 = vst [vmem:[#allocation4_spill] sm:$0xff] %v3157_v59  ;;  %3502 = vst [vmem:[#allocation5_spill] sm:$0xff] %v3159_v60  ;;  %v1112_v61 = vpop.f32.mrb[26].mxu0  ;;  %v1153_v63 = vpop.f32.mrb[26].mxu1 }
 0x113   :  { %v1113_v0 = vpop.f32.mrb[27].mxu0  ;;  %v1154_v1 = vpop.f32.mrb[27].mxu1  ;;  %v617_v61 = vadd.f32 %v3105_v9, %v101_v28  ;;  %v129_v63 = vrot.slane %v3169_v4, %v3205_v29  ;;  %v660_v28 = vadd.f32 %v3111_v12, %v113_v44  ;;  %v1299_v4 = vrot.slane %v3200_v26, %v3183_v13 }
 0x114   :  { %v1295_v1 = vrot.slane %v3200_v26, %v3180_v8 }
 0x115   :  { %v2263_v57 = vmax.f32 %v660_v28, 0.0 }
 0x118   :  { %v3177_v7 = vpop.f32.mrb[28].mxu0  ;;  %v3188_v15 = vpop.f32.mrb[28].mxu1 }
 0x119   :  { %3503 = vst [vmem:[#allocation6_spill] sm:$0xff] %v3177_v7  ;;  %3504 = vst [vmem:[#allocation7_spill] sm:$0xff] %v3188_v15  ;;  %v3190_v16 = vpop.f32.mrb[29].mxu0  ;;  %v3195_v21 = vpop.f32.mrb[29].mxu1  ;;  %v2260_v15 = vmax.f32 %v617_v61, 0.0  ;;  %v1303_v61 = vrot.slane %v3200_v26, %v3193_v20 }
 0x11a   :  { %3505 = vst [vmem:[#allocation8_spill] sm:$0xff] %v3190_v16  ;;  %3506 = vst [vmem:[#allocation9_spill] sm:$0xff] %v3195_v21  ;;  %v1194_v22 = vpop.f32.mrb[30].mxu0  ;;  %v1235_v30 = vpop.f32.mrb[30].mxu1 }
 0x11b   :  { %v1195_v31 = vpop.f32.mrb[31].mxu0  ;;  %v1236_v39 = vpop.f32.mrb[31].mxu1  ;;  %v658_v22 = vadd.f32 %v3107_v10, %v109_v36  ;;  %v619_v30 = vadd.f32 %v3109_v11, %v105_v37 }
 0x11c   :  { %v2392_v31 = vunpack.c.0.s8 %v2391_v56 }
 0x11d   :  { %v2262_v55 = vmax.f32 %v658_v22, 0.0  ;;  %v161_v22 = vrot.slane %v3214_v38, %v3205_v29 }
 0x11e   :  { %v3260_v56 = vsub.s32 %v2392_v31, %v3161_v62  ;;  %v701_v62 = vadd.f32 %v3117_v18, %v121_v52 }
 0x120   :  { %v1638_v9 = vpop.f32.mrb[32].mxu0  ;;  %v1679_v21 = vpop.f32.mrb[32].mxu1 }
 0x121   :  { %v1639_v0 = vadd.f32 %v1638_v9, %v1283_v47  ;;  %v1640_v10 = vpop.f32.mrb[33].mxu0  ;;  %v1680_v36 = vadd.f32 %v1679_v21, %v1291_v53  ;;  %v1681_v16 = vpop.f32.mrb[33].mxu1  ;;  %v2261_v47 = vmax.f32 %v619_v30, 0.0  ;;  %v1307_v53 = vrot.slane %v3200_v26, %v3186_v14 }
 0x122   :  { %v1641_v37 = vadd.f32 %v1640_v10, %v1287_v54  ;;  %v1642_v39 = vpop.f32.mrb[34].mxu0  ;;  %v1682_v12 = vadd.f32 %v1681_v16, %v1295_v1  ;;  %v1683_v44 = vpop.f32.mrb[34].mxu1  ;;  %v3257_v16 = vld [vmem:[%s3496_s2 + $0x10] sm:$0xff]  ;;  %v3272_v1 = vld [vmem:[%s3497_s5 + $0x8] sm:$0xff]  ;;  %v742_v30 = vadd.f32 %v3119_v19, %v129_v63 }
 0x123   :  { %v2292_v7 = vmax.f32 %v1639_v0, 0.0  ;;  %v1643_v60 = vpop.f32.mrb[35].mxu0  ;;  %v2294_v9 = vmax.f32 %v1680_v36, 0.0  ;;  %v1684_v58 = vpop.f32.mrb[35].mxu1  ;;  %v1311_v0 = vrot.slane %v3200_v26, %v3205_v29  ;;  %v1315_v52 = vrot.slane %v3272_v1, %v3164_v2 }
 0x124   :  { %v2293_v59 = vmax.f32 %v1641_v37, 0.0  ;;  %v2295_v21 = vmax.f32 %v1682_v12, 0.0  ;;  %v699_v58 = vadd.f32 %v3113_v17, %v117_v45 }
 0x125   :  { %v2324_v11 = vadd.f32 %v2292_v7, %v2260_v15  ;;  %v2326_v60 = vadd.f32 %v2294_v9, %v2262_v55  ;;  %v153_v7 = vrot.slane %v3214_v38, %v3193_v20 }
 0x126   :  { %v2325_v54 = vadd.f32 %v2293_v59, %v2261_v47  ;;  %v2327_v15 = vadd.f32 %v2295_v21, %v2263_v57  ;;  %v740_v59 = vadd.f32 %v3115_v3, %v125_v46  ;;  %v165_v57 = vrot.slane %v3257_v16, %v3164_v2 }
 0x128   :  { %v2388_v17 = vcombine.low %v2324_v11, %v2325_v54  ;;  %v1720_v45 = vpop.f32.mrb[36].mxu0  ;;  %v2389_v26 = vcombine.low %v2326_v60, %v2327_v15  ;;  %v1761_v39 = vpop.f32.mrb[36].mxu1  ;;  %v2264_v11 = vmax.f32 %v699_v58, 0.0  ;;  %v2266_v44 = vmax.f32 %v740_v59, 0.0 }
 0x129   :  { %v1721_v31 = vadd.f32 %v1720_v45, %v1299_v4  ;;  %v1722_v28 = vpop.f32.mrb[37].mxu0  ;;  %v1762_v10 = vadd.f32 %v1761_v39, %v1307_v53  ;;  %v1763_v46 = vpop.f32.mrb[37].mxu1  ;;  %v2265_v4 = vmax.f32 %v701_v62, 0.0  ;;  %v2267_v60 = vmax.f32 %v742_v30, 0.0 }
 0x12a   :  { %v2396_v55 = vrot.slane %v2388_v17, %v3260_v56  ;;  %v1723_v3 = vadd.f32 %v1722_v28, %v1303_v61  ;;  %v1724_v18 = vpop.f32.mrb[38].mxu0  ;;  %v2403_v36 = vrot.slane %v2389_v26, %v3260_v56  ;;  %v1764_v63 = vadd.f32 %v1763_v46, %v1311_v0  ;;  %v1765_v37 = vpop.f32.mrb[38].mxu1 }
 0x12b   :  { %v2296_v19 = vmax.f32 %v1721_v31, 0.0  ;;  %v1725_v12 = vpop.f32.mrb[39].mxu0  ;;  %v2298_v47 = vmax.f32 %v1762_v10, 0.0  ;;  %v1766_v21 = vpop.f32.mrb[39].mxu1  ;;  %v1323_v58 = vrot.slane %v3272_v1, %v3172_v5  ;;  %v1319_v45 = vrot.slane %v3272_v1, %v3175_v6 }
 0x12c   :  { %v2297_v9 = vmax.f32 %v1723_v3, 0.0  ;;  %v2404_v53 = vcombine.low %v2396_v55, %v2403_v36  ;;  %v2299_v61 = vmax.f32 %v1764_v63, 0.0  ;;  %v3507_v0 = vrot.slane %v3214_v38, %v3164_v2 }
 0x12d   :  { %v2328_v54 = vadd.f32 %v2296_v19, %v2264_v11  ;;  %v2330_v15 = vadd.f32 %v2298_v47, %v2266_v44  ;;  %v173_v62 = vrot.slane %v3257_v16, %v3172_v5  ;;  %v1327_v26 = vrot.slane %v3272_v1, %v3180_v8 }
 0x12e   :  { %v2329_v17 = vadd.f32 %v2297_v9, %v2265_v4  ;;  %v781_v59 = vadd.f32 %v3121_v23, %v3507_v0  ;;  %2532 = vst [vmem:[%s3498_s6] sm:$0xff] %v2404_v53  ;;  %v2331_v30 = vadd.f32 %v2299_v61, %v2267_v60  ;;  %v3508_v31 = vrot.slane %v3214_v38, %v3172_v5 }
 0x12f   :  { %v3509_v28 = vrot.slane %v3214_v38, %v3175_v6  ;;  %v169_v55 = vrot.slane %v3257_v16, %v3175_v6  ;;  %v3510_v46 = vrot.slane %v3214_v38, %v3180_v8  ;;  %v177_v11 = vrot.slane %v3257_v16, %v3180_v8 }
 0x130   :  { %v822_v39 = vadd.f32 %v3123_v24, %v3508_v31  ;;  %v2405_v10 = vcombine.low %v2328_v54, %v2329_v17  ;;  %v1802_v3 = vpop.f32.mrb[40].mxu0  ;;  %v2406_v36 = vcombine.low %v2330_v15, %v2331_v30  ;;  %v1843_v19 = vpop.f32.mrb[40].mxu1  ;;  %v1331_v47 = vrot.slane %v3272_v1, %v3183_v13 }
 0x131   :  { %v783_v23 = vadd.f32 %v3125_v25, %v3509_v28  ;;  %v824_v18 = vadd.f32 %v3127_v27, %v3510_v46  ;;  %v1803_v24 = vadd.f32 %v1802_v3, %v1315_v52  ;;  %v1804_v63 = vpop.f32.mrb[41].mxu0  ;;  %v1844_v25 = vadd.f32 %v1843_v19, %v1323_v58  ;;  %v1845_v44 = vpop.f32.mrb[41].mxu1 }
 0x132   :  { %v2413_v37 = vrot.slane %v2405_v10, %v3260_v56  ;;  %v1805_v12 = vadd.f32 %v1804_v63, %v1319_v45  ;;  %v1806_v4 = vpop.f32.mrb[42].mxu0  ;;  %v2268_v9 = vmax.f32 %v781_v59, 0.0  ;;  %v2420_v21 = vrot.slane %v2406_v36, %v3260_v56  ;;  %v1847_v53 = vpop.f32.mrb[42].mxu1  ;;  %v3338_v36 = vld [vmem:[%s3497_s5 + $0x10] sm:$0xff] }
 0x133   :  { %v2300_v27 = vmax.f32 %v1803_v24, 0.0  ;;  %v1846_v60 = vadd.f32 %v1845_v44, %v1327_v26  ;;  %v1807_v54 = vpop.f32.mrb[43].mxu0  ;;  %v2270_v61 = vmax.f32 %v822_v39, 0.0  ;;  %v2269_v52 = vmax.f32 %v783_v23, 0.0  ;;  %v1848_v0 = vpop.f32.mrb[43].mxu1 }
 0x134   :  { %v2302_v15 = vmax.f32 %v1844_v25, 0.0  ;;  %v2301_v17 = vmax.f32 %v1805_v12, 0.0  ;;  %v2271_v30 = vmax.f32 %v824_v18, 0.0  ;;  %v2421_v58 = vcombine.low %v2413_v37, %v2420_v21 }
 0x135   :  { %v2332_v45 = vadd.f32 %v2300_v27, %v2268_v9  ;;  %v2303_v31 = vmax.f32 %v1846_v60, 0.0  ;;  %v1339_v59 = vrot.slane %v3272_v1, %v3186_v14  ;;  %v1335_v3 = vrot.slane %v3272_v1, %v3193_v20 }
 0x136   :  { %v2334_v28 = vadd.f32 %v2302_v15, %v2270_v61  ;;  %v2333_v10 = vadd.f32 %v2301_v17, %v2269_v52  ;;  %v3511_v26 = vrot.slane %v3214_v38, %v3183_v13  ;;  %v181_v23 = vrot.slane %v3257_v16, %v3183_v13  ;;  %2533 = vst [vmem:[%s3498_s6 + $0x8] sm:$0xff] %v2421_v58 }
 0x137   :  { %v2335_v46 = vadd.f32 %v2303_v31, %v2271_v30  ;;  %v1343_v18 = vrot.slane %v3272_v1, %v3205_v29  ;;  %v3512_v24 = vrot.slane %v3214_v38, %v3186_v14  ;;  %v865_v19 = vadd.f32 %v3133_v34, %v153_v7 }
 0x138   :  { %v863_v39 = vadd.f32 %v3129_v32, %v3511_v26  ;;  %v189_v63 = vrot.slane %v3257_v16, %v3186_v14  ;;  %v2422_v37 = vcombine.low %v2332_v45, %v2333_v10  ;;  %v1884_v1 = vpop.f32.mrb[44].mxu0  ;;  %v906_v25 = vadd.f32 %v3135_v35, %v161_v22  ;;  %v1925_v4 = vpop.f32.mrb[44].mxu1  ;;  %v3363_v45 = vld [vmem:[%s3496_s2 + $0x18] sm:$0xff] }
 0x139   :  { %v904_v32 = vadd.f32 %v3131_v33, %v3512_v24  ;;  %v185_v12 = vrot.slane %v3257_v16, %v3193_v20  ;;  %v2423_v44 = vcombine.low %v2334_v28, %v2335_v46  ;;  %v1885_v33 = vadd.f32 %v1884_v1, %v1331_v47  ;;  %v1886_v9 = vpop.f32.mrb[45].mxu0  ;;  %v1927_v27 = vpop.f32.mrb[45].mxu1 }
 0x13a   :  { %v2430_v21 = vrot.slane %v2422_v37, %v3260_v56  ;;  %v1926_v34 = vadd.f32 %v1925_v4, %v1339_v59  ;;  %v1887_v7 = vadd.f32 %v1886_v9, %v1335_v3  ;;  %v1888_v60 = vpop.f32.mrb[46].mxu0  ;;  %v1347_v53 = vrot.slane %v3338_v36, %v3164_v2  ;;  %v1929_v61 = vpop.f32.mrb[46].mxu1 }
 0x13b   :  { %v2272_v54 = vmax.f32 %v863_v39, 0.0  ;;  %v2437_v38 = vrot.slane %v2423_v44, %v3260_v56  ;;  %v2304_v35 = vmax.f32 %v1885_v33, 0.0  ;;  %v1928_v22 = vadd.f32 %v1927_v27, %v1343_v18  ;;  %v1889_v52 = vpop.f32.mrb[47].mxu0  ;;  %v1930_v30 = vpop.f32.mrb[47].mxu1 }
 0x13c   :  { %v2274_v15 = vmax.f32 %v904_v32, 0.0  ;;  %v2273_v47 = vmax.f32 %v865_v19, 0.0  ;;  %v2306_v17 = vmax.f32 %v1926_v34, 0.0  ;;  %v2305_v0 = vmax.f32 %v1887_v7, 0.0 }
 0x13d   :  { %v2275_v58 = vmax.f32 %v906_v25, 0.0  ;;  %v2438_v31 = vcombine.low %v2430_v21, %v2437_v38  ;;  %v2336_v28 = vadd.f32 %v2304_v35, %v2272_v54  ;;  %v2307_v10 = vmax.f32 %v1928_v22, 0.0 }
 0x13e   :  { %v2338_v59 = vadd.f32 %v2306_v17, %v2274_v15  ;;  %v2337_v3 = vadd.f32 %v2305_v0, %v2273_v47  ;;  %v1355_v26 = vrot.slane %v3338_v36, %v3172_v5  ;;  %v1351_v39 = vrot.slane %v3338_v36, %v3175_v6 }
 0x13f   :  { %v945_v46 = vadd.f32 %v3137_v40, %v165_v57  ;;  %v193_v18 = vrot.slane %v3257_v16, %v3205_v29  ;;  %2534 = vst [vmem:[%s3498_s6 + $0x10] sm:$0xff] %v2438_v31  ;;  %v2339_v24 = vadd.f32 %v2307_v10, %v2275_v58  ;;  %v1359_v32 = vrot.slane %v3338_v36, %v3180_v8 }
 0x140   :  { %v986_v19 = vadd.f32 %v3139_v41, %v173_v62  ;;  %v947_v40 = vadd.f32 %v3141_v42, %v169_v55  ;;  %v197_v57 = vrot.slane %v3363_v45, %v3164_v2  ;;  %v2439_v37 = vcombine.low %v2336_v28, %v2337_v3  ;;  %v1966_v1 = vpop.f32.mrb[48].mxu0  ;;  %v2007_v62 = vpop.f32.mrb[48].mxu1 }
 0x141   :  { %v988_v25 = vadd.f32 %v3143_v43, %v177_v11  ;;  %v205_v44 = vrot.slane %v3363_v45, %v3172_v5  ;;  %v2440_v33 = vcombine.low %v2338_v59, %v2339_v24  ;;  %v1967_v41 = vadd.f32 %v1966_v1, %v1347_v53  ;;  %v1968_v4 = vpop.f32.mrb[49].mxu0  ;;  %v2009_v21 = vpop.f32.mrb[49].mxu1 }
 0x142   :  { %v2447_v9 = vrot.slane %v2439_v37, %v3260_v56  ;;  %v2008_v42 = vadd.f32 %v2007_v62, %v1355_v26  ;;  %v1969_v55 = vadd.f32 %v1968_v4, %v1351_v39  ;;  %v1970_v34 = vpop.f32.mrb[50].mxu0  ;;  %v1363_v7 = vrot.slane %v3338_v36, %v3183_v13  ;;  %v2011_v54 = vpop.f32.mrb[50].mxu1  ;;  %v3418_v39 = vld [vmem:[%s3497_s5 + $0x18] sm:$0xff] }
 0x143   :  { %v2276_v27 = vmax.f32 %v945_v46, 0.0  ;;  %v2454_v60 = vrot.slane %v2440_v33, %v3260_v56  ;;  %v2308_v43 = vmax.f32 %v1967_v41, 0.0  ;;  %v2010_v11 = vadd.f32 %v2009_v21, %v1359_v32  ;;  %v1971_v38 = vpop.f32.mrb[51].mxu0  ;;  %v2012_v52 = vpop.f32.mrb[51].mxu1 }
 0x144   :  { %v2278_v35 = vmax.f32 %v986_v19, 0.0  ;;  %v2277_v53 = vmax.f32 %v947_v40, 0.0  ;;  %v2310_v22 = vmax.f32 %v2008_v42, 0.0  ;;  %v2309_v61 = vmax.f32 %v1969_v55, 0.0 }
 0x145   :  { %v2279_v15 = vmax.f32 %v988_v25, 0.0  ;;  %v2455_v47 = vcombine.low %v2447_v9, %v2454_v60  ;;  %v2340_v17 = vadd.f32 %v2308_v43, %v2276_v27  ;;  %v2311_v0 = vmax.f32 %v2010_v11, 0.0 }
 0x146   :  { %v2342_v30 = vadd.f32 %v2310_v22, %v2278_v35  ;;  %v2341_v58 = vadd.f32 %v2309_v61, %v2277_v53  ;;  %v1371_v31 = vrot.slane %v3338_v36, %v3186_v14  ;;  %v1367_v28 = vrot.slane %v3338_v36, %v3193_v20  ;;  %v3513_v22 = vld [vmem:[#allocation2_spill] sm:$0xff] }
 0x147   :  { %v1027_v10 = vadd.f32 %v3145_v48, %v181_v23  ;;  %v201_v59 = vrot.slane %v3363_v45, %v3175_v6  ;;  %2535 = vst [vmem:[%s3498_s6 + $0x18] sm:$0xff] %v2455_v47  ;;  %v2343_v3 = vadd.f32 %v2311_v0, %v2279_v15  ;;  %v1375_v26 = vrot.slane %v3338_v36, %v3205_v29  ;;  %v3515_v0 = vld [vmem:[#allocation4_spill] sm:$0xff] }
 0x148   :  { %v1068_v48 = vadd.f32 %v3147_v49, %v189_v63  ;;  %v1029_v23 = vadd.f32 %v3149_v50, %v185_v12  ;;  %v209_v46 = vrot.slane %v3363_v45, %v3180_v8  ;;  %v2456_v24 = vcombine.low %v2340_v17, %v2341_v58  ;;  %v2048_v36 = vpop.f32.mrb[52].mxu0  ;;  %v2089_v1 = vpop.f32.mrb[52].mxu1 }
 0x149   :  { %v1070_v32 = vadd.f32 %v3151_v51, %v193_v18  ;;  %v213_v19 = vrot.slane %v3363_v45, %v3183_v13  ;;  %v2457_v40 = vcombine.low %v2342_v30, %v2343_v3  ;;  %v2049_v37 = vadd.f32 %v2048_v36, %v1363_v7  ;;  %v2050_v25 = vpop.f32.mrb[53].mxu0  ;;  %v2091_v33 = vpop.f32.mrb[53].mxu1 }
 0x14a   :  { %v2464_v49 = vrot.slane %v2456_v24, %v3260_v56  ;;  %v2090_v63 = vadd.f32 %v2089_v1, %v1371_v31  ;;  %v2051_v16 = vadd.f32 %v2050_v25, %v1367_v28  ;;  %v2052_v50 = vpop.f32.mrb[54].mxu0  ;;  %v1379_v12 = vrot.slane %v3418_v39, %v3164_v2  ;;  %v2093_v4 = vpop.f32.mrb[54].mxu1  ;;  %v3516_v31 = vld [vmem:[#allocation5_spill] sm:$0xff] }
 0x14b   :  { %v2280_v41 = vmax.f32 %v1027_v10, 0.0  ;;  %v2471_v62 = vrot.slane %v2457_v40, %v3260_v56  ;;  %v2312_v51 = vmax.f32 %v2049_v37, 0.0  ;;  %v2092_v18 = vadd.f32 %v2091_v33, %v1375_v26  ;;  %v2053_v9 = vpop.f32.mrb[55].mxu0  ;;  %v2094_v7 = vpop.f32.mrb[55].mxu1 }
 0x14c   :  { %v2282_v42 = vmax.f32 %v1068_v48, 0.0  ;;  %v2281_v55 = vmax.f32 %v1029_v23, 0.0  ;;  %v2314_v21 = vmax.f32 %v2090_v63, 0.0  ;;  %v2313_v34 = vmax.f32 %v2051_v16, 0.0 }
 0x14d   :  { %v2283_v27 = vmax.f32 %v1070_v32, 0.0  ;;  %v2472_v60 = vcombine.low %v2464_v49, %v2471_v62  ;;  %v2344_v43 = vadd.f32 %v2312_v51, %v2280_v41  ;;  %v2315_v11 = vmax.f32 %v2092_v18, 0.0 }
 0x14e   :  { %v2346_v54 = vadd.f32 %v2314_v21, %v2282_v42  ;;  %v2345_v38 = vadd.f32 %v2313_v34, %v2281_v55  ;;  %v1387_v35 = vrot.slane %v3418_v39, %v3172_v5  ;;  %v1383_v53 = vrot.slane %v3418_v39, %v3175_v6  ;;  %v3514_v6 = vld [vmem:[#allocation3_spill] sm:$0xff]  ;;  %v3517_v55 = vld [vmem:[#allocation6_spill] sm:$0xff] }
 0x14f   :  { %v1109_v61 = vadd.f32 %v3513_v22, %v197_v57  ;;  %v221_v52 = vrot.slane %v3363_v45, %v3186_v14  ;;  %2536 = vst [vmem:[%s3498_s6 + $0x20] sm:$0xff] %v2472_v60  ;;  %v2347_v15 = vadd.f32 %v2315_v11, %v2283_v27  ;;  %v1391_v47 = vrot.slane %v3418_v39, %v3180_v8  ;;  %v3518_v27 = vld [vmem:[#allocation7_spill] sm:$0xff] }
 0x150   :  { %v1150_v17 = vadd.f32 %v3514_v6, %v205_v44  ;;  %v1111_v2 = vadd.f32 %v3515_v0, %v201_v59  ;;  %v217_v57 = vrot.slane %v3363_v45, %v3193_v20  ;;  %v2473_v30 = vcombine.low %v2344_v43, %v2345_v38  ;;  %v2130_v58 = vpop.f32.mrb[56].mxu0  ;;  %v2171_v8 = vpop.f32.mrb[56].mxu1  ;;  %v3519_v43 = vld [vmem:[#allocation8_spill] sm:$0xff] }
 0x151   :  { %v1152_v28 = vadd.f32 %v3516_v31, %v209_v46  ;;  %v225_v10 = vrot.slane %v3363_v45, %v3205_v29  ;;  %v2474_v3 = vcombine.low %v2346_v54, %v2347_v15  ;;  %v2131_v26 = vadd.f32 %v2130_v58, %v1379_v12  ;;  %v2132_v48 = vpop.f32.mrb[57].mxu0  ;;  %v2173_v24 = vpop.f32.mrb[57].mxu1 }
 0x152   :  { %v2481_v5 = vrot.slane %v2473_v30, %v3260_v56  ;;  %v2172_v23 = vadd.f32 %v2171_v8, %v1387_v35  ;;  %v2133_v44 = vadd.f32 %v2132_v48, %v1383_v53  ;;  %v2134_v59 = vpop.f32.mrb[58].mxu0  ;;  %v1395_v36 = vrot.slane %v3418_v39, %v3183_v13  ;;  %v2175_v1 = vpop.f32.mrb[58].mxu1 }
 0x153   :  { %v2284_v32 = vmax.f32 %v1109_v61, 0.0  ;;  %v2488_v40 = vrot.slane %v2474_v3, %v3260_v56  ;;  %v2316_v46 = vmax.f32 %v2131_v26, 0.0  ;;  %v2174_v37 = vadd.f32 %v2173_v24, %v1391_v47  ;;  %v2135_v25 = vpop.f32.mrb[59].mxu0  ;;  %v2176_v50 = vpop.f32.mrb[59].mxu1 }
 0x154   :  { %v2286_v49 = vmax.f32 %v1150_v17, 0.0  ;;  %v2285_v63 = vmax.f32 %v1111_v2, 0.0  ;;  %v2318_v16 = vmax.f32 %v2172_v23, 0.0  ;;  %v2317_v33 = vmax.f32 %v2133_v44, 0.0 }
 0x155   :  { %v2287_v12 = vmax.f32 %v1152_v28, 0.0  ;;  %v2489_v41 = vcombine.low %v2481_v5, %v2488_v40  ;;  %v2348_v62 = vadd.f32 %v2316_v46, %v2284_v32  ;;  %v2319_v51 = vmax.f32 %v2174_v37, 0.0 }
 0x156   :  { %v2350_v18 = vadd.f32 %v2318_v16, %v2286_v49  ;;  %v2349_v4 = vadd.f32 %v2317_v33, %v2285_v63  ;;  %v1403_v9 = vrot.slane %v3418_v39, %v3186_v14  ;;  %v1399_v42 = vrot.slane %v3418_v39, %v3193_v20  ;;  %v3520_v20 = vld [vmem:[#allocation9_spill] sm:$0xff] }
 0x157   :  { %v1191_v21 = vadd.f32 %v3517_v55, %v213_v19  ;;  %2537 = vst [vmem:[%s3498_s6 + $0x28] sm:$0xff] %v2489_v41  ;;  %v2351_v34 = vadd.f32 %v2319_v51, %v2287_v12  ;;  %v1407_v7 = vrot.slane %v3418_v39, %v3205_v29  ;;  %v1232_v60 = vadd.f32 %v3518_v27, %v221_v52 }
 0x158   :  { %v1193_v14 = vadd.f32 %v3519_v43, %v217_v57  ;;  %v2490_v11 = vcombine.low %v2348_v62, %v2349_v4  ;;  %v2212_v54 = vpop.f32.mrb[60].mxu0  ;;  %v1234_v38 = vadd.f32 %v3520_v20, %v225_v10  ;;  %v2253_v45 = vpop.f32.mrb[60].mxu1 }
 0x159   :  { %v2491_v35 = vcombine.low %v2350_v18, %v2351_v34  ;;  %v2213_v13 = vadd.f32 %v2212_v54, %v1395_v36  ;;  %v2214_v19 = vpop.f32.mrb[61].mxu0  ;;  %v2254_v22 = vadd.f32 %v2253_v45, %v1403_v9  ;;  %v2255_v15 = vpop.f32.mrb[61].mxu1  ;;  %v2288_v6 = vmax.f32 %v1191_v21, 0.0 }
 0x15a   :  { %v2498_v53 = vrot.slane %v2490_v11, %v3260_v56  ;;  %v2215_v61 = vadd.f32 %v2214_v19, %v1399_v42  ;;  %v2216_v47 = vpop.f32.mrb[62].mxu0  ;;  %v2256_v52 = vadd.f32 %v2255_v15, %v1407_v7  ;;  %v2257_v17 = vpop.f32.mrb[62].mxu1  ;;  %v2290_v2 = vmax.f32 %v1232_v60, 0.0 }
 0x15b   :  { %v2505_v29 = vrot.slane %v2491_v35, %v3260_v56  ;;  %v2320_v39 = vmax.f32 %v2213_v13, 0.0  ;;  %v2217_v0 = vpop.f32.mrb[63].mxu0  ;;  %v2289_v57 = vmax.f32 %v1193_v14, 0.0  ;;  %v2322_v30 = vmax.f32 %v2254_v22, 0.0  ;;  %v2258_v31 = vpop.f32.mrb[63].mxu1 }
 0x15c   :  { %v2321_v58 = vmax.f32 %v2215_v61, 0.0  ;;  %v2291_v28 = vmax.f32 %v1234_v38, 0.0  ;;  %v2323_v26 = vmax.f32 %v2256_v52, 0.0 }
 0x15d   :  { %v2506_v10 = vcombine.low %v2498_v53, %v2505_v29  ;;  %v2352_v3 = vadd.f32 %v2320_v39, %v2288_v6  ;;  %v2354_v8 = vadd.f32 %v2322_v30, %v2290_v2 }
 0x15e   :  { %v2353_v48 = vadd.f32 %v2321_v58, %v2289_v57  ;;  %v2355_v5 = vadd.f32 %v2323_v26, %v2291_v28 }
 0x15f   :  { %2538 = vst [vmem:[%s3498_s6 + $0x30] sm:$0xff] %v2506_v10 }
 0x160   :  { %v2507_v23 = vcombine.low %v2352_v3, %v2353_v48  ;;  %v2508_v44 = vcombine.low %v2354_v8, %v2355_v5 }
 0x162   :  { %v2515_v24 = vrot.slane %v2507_v23, %v3260_v56  ;;  %v2522_v59 = vrot.slane %v2508_v44, %v3260_v56 }
 0x164   :  { %v2523_v36 = vcombine.low %v2515_v24, %v2522_v59 }
 0x166   :  { %2539 = vst [vmem:[%s3498_s6 + $0x38] sm:$0xff] %v2523_v36 }

// kernel: tile.33
= control target key start
LH: loop header
LB: loop body
LE: loop exit
PB: predicated region body
PF: predicated region fallthrough
CT: control target
= control target key end

     0   :  { %s22_s0 = inlined_call_operand.vmem [shape: f32[128], index: 0, kind: input, shape index: {}]   ;;  %s23_s1 = inlined_call_operand.vmem [shape: f32[4,128], index: 1, kind: output, shape index: {}]  }
   0x1   :  { %v4_v0 = vld [vmem:[%s22_s0] ss:$0 sm:$0xff] }
   0x2   :  { %5 = vst [vmem:[%s23_s1] sm:$0xf] %v4_v0 }

// kernel: generator_forward.5
= control target key start
LH: loop header
LB: loop body
LE: loop exit
PB: predicated region body
PF: predicated region fallthrough
CT: control target
= control target key end

     0   :  { %v3753_v0 = vmov 0   ;;  %vm507_vm0 = vcmask 1044480   ;;  %vm545_vm1 = vsmask.f32 4352  ;;  %vm398_vm2 = vsmask.f32 7424  ;;  %s5206_s1 = inlined_call_operand.vmem [shape: f32[80,1], index: 1, kind: input, shape index: {}]   ;;  %s5207_s4 = inlined_call_operand.vmem [shape: bf16[1024,512], index: 4, kind: input, shape index: {}]   ;;  %s5208_s2 = inlined_call_operand.vmem [shape: f32[1,256], index: 2, kind: input, shape index: {}]   ;;  %s5209_s3 = inlined_call_operand.vmem [shape: f32[1,256], index: 3, kind: input, shape index: {}]   ;;  %s5210_s0 = inlined_call_operand.vmem [shape: f32[80,256], index: 0, kind: input, shape index: {}]   ;;  %s5211_s5 = inlined_call_operand.vmem [shape: f32[1,512], index: 5, kind: input, shape index: {}]   ;;  %s5212_s6 = inlined_call_operand.vmem [shape: f32[80,512], index: 6, kind: output, shape index: {}]  }
   0x1   :  { %3354 = vset.pattern.permute.xlu1 %v3753_v0  ;;  %278 = vst [vmem:[#allocation2 + $0x50] sm:$0xff] %v3753_v0  ;;  %3353 = vset.pattern.permute.xlu0 %v3753_v0  ;;  %v130_v1 = vld [vmem:[%s5206_s1 + $0x10] sm:$0xff]  ;;  %v128_v2 = vld [vmem:[%s5206_s1] sm:$0xff]  ;;  %v131_v3 = vld [vmem:[%s5206_s1 + $0x18] sm:$0xff] }
   0x2   :  { %150 = vperm.xlu1 %3354, %v130_v1   ;;  %140 = vperm.xlu0 %3353, %v128_v2   ;;  %v129_v4 = vld [vmem:[%s5206_s1 + $0x8] sm:$0xff]  ;;  %v132_v6 = vld [vmem:[%s5206_s1 + $0x20] sm:$0xff]  ;;  %v135_v13 = vld [vmem:[%s5206_s1 + $0x38] sm:$0xff] }
   0x3   :  { %v133_v5 = vld [vmem:[%s5206_s1 + $0x28] sm:$0xff]  ;;  %v3355_v7 = vld [vmem:[%s5207_s4 + $0x4] ss:$16 sps:$4 sm:$0xff]   ;;  %v3359_v9 = vld [vmem:[%s5207_s4] ss:$16 sps:$4 sm:$0xff]  }
   0x4   :  { %v3357_v8 = vld [vmem:[%s5207_s4 + $0xc] ss:$16 sps:$4 sm:$0xff]   ;;  %v3360_v10 = vld [vmem:[%s5207_s4 + $0x8] ss:$16 sps:$4 sm:$0xff]   ;;  %2180 = vmatprep.subr.bf16.mxu0 %v3355_v7  ;;  %v3361_v11 = vld [vmem:[%s5207_s4 + $0x24] ss:$16 sps:$4 sm:$0xff]  }
   0x5   :  { %2512 = vmatprep.subr.bf16.mxu1 %v3357_v8  ;;  %2181 = vmatpush1.bf16.msra.mxu0 %v3359_v9  ;;  %v3363_v12 = vld [vmem:[%s5207_s4 + $0x2c] ss:$16 sps:$4 sm:$0xff]   ;;  %v134_v14 = vld [vmem:[%s5206_s1 + $0x30] sm:$0xff]  ;;  %v3366_v16 = vld [vmem:[%s5207_s4 + $0x28] ss:$16 sps:$4 sm:$0xff]  }
   0x6   :  { %155 = vperm.xlu1 %3354, %v131_v3   ;;  %145 = vperm.xlu0 %3353, %v129_v4   ;;  %v3365_v15 = vld [vmem:[%s5207_s4 + $0x20] ss:$16 sps:$4 sm:$0xff]   ;;  %v3367_v17 = vld [vmem:[%s5207_s4 + $0x44] ss:$16 sps:$4 sm:$0xff]   ;;  %v3369_v18 = vld [vmem:[%s5207_s4 + $0x4c] ss:$16 sps:$4 sm:$0xff]  }
   0x7   :  { %2513 = vmatpush1.bf16.msra.mxu1 %v3360_v10  ;;  %2182 = vmatprep.subr.bf16.mxu0 %v3361_v11  ;;  %v3371_v19 = vld [vmem:[%s5207_s4 + $0x40] ss:$16 sps:$4 sm:$0xff]   ;;  %v3372_v20 = vld [vmem:[%s5207_s4 + $0x48] ss:$16 sps:$4 sm:$0xff]   ;;  %v3373_v21 = vld [vmem:[%s5207_s4 + $0x64] ss:$16 sps:$4 sm:$0xff]  }
   0x8   :  { %2514 = vmatprep.subr.bf16.mxu1 %v3363_v12  ;;  %v137_v22 = vld [vmem:[%s5206_s1 + $0x48] sm:$0xff]  ;;  %v136_v23 = vld [vmem:[%s5206_s1 + $0x40] sm:$0xff] }
   0x9   :  { %2183 = vmatpush1.bf16.msra.mxu0 %v3365_v15  ;;  %v3375_v24 = vld [vmem:[%s5207_s4 + $0x6c] ss:$16 sps:$4 sm:$0xff]   ;;  %v3377_v25 = vld [vmem:[%s5207_s4 + $0x60] ss:$16 sps:$4 sm:$0xff]   ;;  %v3378_v26 = vld [vmem:[%s5207_s4 + $0x68] ss:$16 sps:$4 sm:$0xff]  }
   0xa   :  { %165 = vperm.xlu1 %3354, %v133_v5   ;;  %160 = vperm.xlu0 %3353, %v132_v6   ;;  %v3379_v27 = vld [vmem:[%s5207_s4 + $0x84] ss:$16 sps:$4 sm:$0xff]   ;;  %v3381_v28 = vld [vmem:[%s5207_s4 + $0x8c] ss:$16 sps:$4 sm:$0xff]   ;;  %v3383_v29 = vld [vmem:[%s5207_s4 + $0x80] ss:$16 sps:$4 sm:$0xff]  }
   0xb   :  { %2515 = vmatpush1.bf16.msra.mxu1 %v3366_v16  ;;  %2184 = vmatprep.subr.bf16.mxu0 %v3367_v17  ;;  %v3384_v30 = vld [vmem:[%s5207_s4 + $0x88] ss:$16 sps:$4 sm:$0xff]   ;;  %v3385_v31 = vld [vmem:[%s5207_s4 + $0xa4] ss:$16 sps:$4 sm:$0xff]   ;;  %v3387_v32 = vld [vmem:[%s5207_s4 + $0xac] ss:$16 sps:$4 sm:$0xff]  }
   0xc   :  { %2516 = vmatprep.subr.bf16.mxu1 %v3369_v18  ;;  %v3389_v33 = vld [vmem:[%s5207_s4 + $0xa0] ss:$16 sps:$4 sm:$0xff]   ;;  %v3390_v34 = vld [vmem:[%s5207_s4 + $0xa8] ss:$16 sps:$4 sm:$0xff]   ;;  %v3391_v35 = vld [vmem:[%s5207_s4 + $0xc4] ss:$16 sps:$4 sm:$0xff]  }
   0xd   :  { %2185 = vmatpush1.bf16.msra.mxu0 %v3371_v19  ;;  %v3393_v36 = vld [vmem:[%s5207_s4 + $0xcc] ss:$16 sps:$4 sm:$0xff]   ;;  %v3395_v37 = vld [vmem:[%s5207_s4 + $0xc0] ss:$16 sps:$4 sm:$0xff]   ;;  %v3396_v38 = vld [vmem:[%s5207_s4 + $0xc8] ss:$16 sps:$4 sm:$0xff]  }
   0xe   :  { %175 = vperm.xlu1 %3354, %v135_v13   ;;  %170 = vperm.xlu0 %3353, %v134_v14   ;;  %v3397_v39 = vld [vmem:[%s5207_s4 + $0xe4] ss:$16 sps:$4 sm:$0xff]   ;;  %v3399_v40 = vld [vmem:[%s5207_s4 + $0xec] ss:$16 sps:$4 sm:$0xff]   ;;  %v3401_v41 = vld [vmem:[%s5207_s4 + $0xe0] ss:$16 sps:$4 sm:$0xff]   ;;  %v46_v14 = vlaneseq }
   0xf   :  { %2517 = vmatpush1.bf16.msra.mxu1 %v3372_v20  ;;  %2186 = vmatprep.subr.bf16.mxu0 %v3373_v21  ;;  %v3402_v42 = vld [vmem:[%s5207_s4 + $0xe8] ss:$16 sps:$4 sm:$0xff]   ;;  %v3403_v43 = vld [vmem:[%s5207_s4 + $0x104] ss:$16 sps:$4 sm:$0xff]   ;;  %v3405_v44 = vld [vmem:[%s5207_s4 + $0x10c] ss:$16 sps:$4 sm:$0xff]  }
  0x10   :  { %2518 = vmatprep.subr.bf16.mxu1 %v3375_v24  ;;  %v3407_v45 = vld [vmem:[%s5207_s4 + $0x100] ss:$16 sps:$4 sm:$0xff]   ;;  %v3408_v46 = vld [vmem:[%s5207_s4 + $0x108] ss:$16 sps:$4 sm:$0xff]   ;;  %v3409_v47 = vld [vmem:[%s5207_s4 + $0x124] ss:$16 sps:$4 sm:$0xff]  }
  0x11   :  { %2187 = vmatpush1.bf16.msra.mxu0 %v3377_v25  ;;  %v3411_v48 = vld [vmem:[%s5207_s4 + $0x12c] ss:$16 sps:$4 sm:$0xff]   ;;  %v3413_v49 = vld [vmem:[%s5207_s4 + $0x120] ss:$16 sps:$4 sm:$0xff]   ;;  %v3414_v50 = vld [vmem:[%s5207_s4 + $0x128] ss:$16 sps:$4 sm:$0xff]  }
  0x12   :  { %185 = vperm.xlu1 %3354, %v137_v22   ;;  %180 = vperm.xlu0 %3353, %v136_v23   ;;  %v3415_v51 = vld [vmem:[%s5207_s4 + $0x144] ss:$16 sps:$4 sm:$0xff]   ;;  %v3417_v52 = vld [vmem:[%s5207_s4 + $0x14c] ss:$16 sps:$4 sm:$0xff]   ;;  %v3419_v53 = vld [vmem:[%s5207_s4 + $0x140] ss:$16 sps:$4 sm:$0xff]  }
  0x13   :  { %2519 = vmatpush1.bf16.msra.mxu1 %v3378_v26  ;;  %2188 = vmatprep.subr.bf16.mxu0 %v3379_v27  ;;  %v3420_v54 = vld [vmem:[%s5207_s4 + $0x148] ss:$16 sps:$4 sm:$0xff]   ;;  %v3421_v55 = vld [vmem:[%s5207_s4 + $0x164] ss:$16 sps:$4 sm:$0xff]   ;;  %v3423_v56 = vld [vmem:[%s5207_s4 + $0x16c] ss:$16 sps:$4 sm:$0xff]  }
  0x14   :  { %2520 = vmatprep.subr.bf16.mxu1 %v3381_v28  ;;  %v3425_v57 = vld [vmem:[%s5207_s4 + $0x160] ss:$16 sps:$4 sm:$0xff]   ;;  %v3426_v58 = vld [vmem:[%s5207_s4 + $0x168] ss:$16 sps:$4 sm:$0xff]   ;;  %v3427_v59 = vld [vmem:[%s5207_s4 + $0x184] ss:$16 sps:$4 sm:$0xff]  }
  0x15   :  { %2189 = vmatpush1.bf16.msra.mxu0 %v3383_v29  ;;  %v3429_v60 = vld [vmem:[%s5207_s4 + $0x18c] ss:$16 sps:$4 sm:$0xff]   ;;  %v3431_v61 = vld [vmem:[%s5207_s4 + $0x180] ss:$16 sps:$4 sm:$0xff]   ;;  %v3432_v62 = vld [vmem:[%s5207_s4 + $0x188] ss:$16 sps:$4 sm:$0xff]  }
  0x16   :  { %2190 = vmatprep.subr.bf16.mxu0 %v3385_v31  ;;  %v3433_v63 = vld [vmem:[%s5207_s4 + $0x1a4] ss:$16 sps:$4 sm:$0xff]   ;;  %v3435_v1 = vld [vmem:[%s5207_s4 + $0x1ac] ss:$16 sps:$4 sm:$0xff]   ;;  %v3437_v2 = vld [vmem:[%s5207_s4 + $0x1a0] ss:$16 sps:$4 sm:$0xff]  }
  0x17   :  { %2521 = vmatpush1.bf16.msra.mxu1 %v3384_v30  ;;  %v3438_v3 = vld [vmem:[%s5207_s4 + $0x1a8] ss:$16 sps:$4 sm:$0xff]   ;;  %v3439_v4 = vld [vmem:[%s5207_s4 + $0x1c4] ss:$16 sps:$4 sm:$0xff]   ;;  %v3441_v5 = vld [vmem:[%s5207_s4 + $0x1cc] ss:$16 sps:$4 sm:$0xff]  }
  0x18   :  { %2522 = vmatprep.subr.bf16.mxu1 %v3387_v32  ;;  %v3443_v6 = vld [vmem:[%s5207_s4 + $0x1c0] ss:$16 sps:$4 sm:$0xff]   ;;  %v3444_v7 = vld [vmem:[%s5207_s4 + $0x1c8] ss:$16 sps:$4 sm:$0xff]   ;;  %v3445_v8 = vld [vmem:[%s5207_s4 + $0x1e4] ss:$16 sps:$4 sm:$0xff]  }
  0x19   :  { %2191 = vmatpush1.bf16.msra.mxu0 %v3389_v33  ;;  %v3447_v9 = vld [vmem:[%s5207_s4 + $0x1ec] ss:$16 sps:$4 sm:$0xff]   ;;  %v3449_v10 = vld [vmem:[%s5207_s4 + $0x1e0] ss:$16 sps:$4 sm:$0xff]   ;;  %v3450_v11 = vld [vmem:[%s5207_s4 + $0x1e8] ss:$16 sps:$4 sm:$0xff]  }
  0x1a   :  { %2192 = vmatprep.subr.bf16.mxu0 %v3391_v35  ;;  %v3453_v12 = vld [vmem:[%s5207_s4 + $0x204] ss:$16 sps:$4 sm:$0xff]   ;;  %v3456_v13 = vld [vmem:[%s5207_s4 + $0x20c] ss:$16 sps:$4 sm:$0xff]   ;;  %v4020_v15 = vshrl.u32 %v46_v14, 7 }
  0x1b   :  { %2523 = vmatpush1.bf16.msra.mxu1 %v3390_v34  ;;  %v44_v18 = vld [vmem:[%s5208_s2] sm:$0x3]  ;;  %v29_v21 = vld [vmem:[%s5210_s0 + $0x28] sm:$0xff]  ;;  %v30_v26 = vld [vmem:[%s5210_s0 + $0x30] sm:$0xff] }
  0x1c   :  { %2524 = vmatprep.subr.bf16.mxu1 %v3393_v36  ;;  %v4023_v16 = vsub.s32 0, %v4020_v15  ;;  %v4026_v17 = vsub.s32 1, %v4020_v15  ;;  %v76_v19 = vld [vmem:[%s5209_s3] sm:$0x3]  ;;  %v25_v25 = vld [vmem:[%s5210_s0 + $0x8] sm:$0xff]  ;;  %v31_v27 = vld [vmem:[%s5210_s0 + $0x38] sm:$0xff] }
  0x1d   :  { %2193 = vmatpush1.bf16.msra.mxu0 %v3395_v37  ;;  %v28_v20 = vld [vmem:[%s5210_s0 + $0x20] sm:$0xff]  ;;  %v26_v28 = vld [vmem:[%s5210_s0 + $0x10] sm:$0xff]  ;;  %v27_v32 = vld [vmem:[%s5210_s0 + $0x18] sm:$0xff] }
  0x1e   :  { %2194 = vmatprep.subr.bf16.mxu0 %v3397_v39  ;;  %v4041_v22 = vrot.slane %v44_v18, %v4023_v16  ;;  %v4044_v23 = vrot.slane %v44_v18, %v4026_v17  ;;  %v24_v24 = vld [vmem:[%s5210_s0] sm:$0xff]  ;;  %v4062_v29 = vrot.slane %v76_v19, %v4023_v16  ;;  %v4065_v30 = vrot.slane %v76_v19, %v4026_v17  ;;  %v34_v33 = vld [vmem:[%s5210_s0 + $0x50] sm:$0xff] }
  0x1f   :  { %2525 = vmatpush1.bf16.msra.mxu1 %v3396_v38  ;;  %v35_v38 = vld [vmem:[%s5210_s0 + $0x58] sm:$0xff] }
  0x20   :  { %2526 = vmatprep.subr.bf16.mxu1 %v3399_v40  ;;  %v60_v31 = vmul.f32 %v4041_v22, %v28_v20  ;;  %v61_v34 = vmul.f32 %v4044_v23, %v29_v21  ;;  %v56_v35 = vmul.f32 %v4041_v22, %v24_v24  ;;  %v57_v36 = vmul.f32 %v4044_v23, %v25_v25  ;;  %v43_v21 = vld [vmem:[%s5210_s0 + $0x98] sm:$0xff]  ;;  %v40_v24 = vld [vmem:[%s5210_s0 + $0x80] sm:$0xff] }
  0x21   :  { %2195 = vmatpush1.bf16.msra.mxu0 %v3401_v41  ;;  %v62_v37 = vmul.f32 %v4041_v22, %v30_v26  ;;  %v63_v39 = vmul.f32 %v4044_v23, %v31_v27  ;;  %v58_v40 = vmul.f32 %v4041_v22, %v26_v28  ;;  %v32_v41 = vld [vmem:[%s5210_s0 + $0x40] sm:$0xff] }
  0x22   :  { %2196 = vmatprep.subr.bf16.mxu0 %v3403_v43  ;;  %v92_v43 = vadd.f32 %v4062_v29, %v60_v31  ;;  %v41_v31 = vld [vmem:[%s5210_s0 + $0x88] sm:$0xff] }
  0x23   :  { %2527 = vmatpush1.bf16.msra.mxu1 %v3402_v42  ;;  %v33_v42 = vld [vmem:[%s5210_s0 + $0x48] sm:$0xff] }
  0x24   :  { %2528 = vmatprep.subr.bf16.mxu1 %v3405_v44  ;;  %v59_v44 = vmul.f32 %v4044_v23, %v27_v32 }
  0x25   :  { %2197 = vmatpush1.bf16.msra.mxu0 %v3407_v45  ;;  %v66_v45 = vmul.f32 %v4041_v22, %v34_v33 }
  0x26   :  { %2198 = vmatprep.subr.bf16.mxu0 %v3409_v47  ;;  %v93_v47 = vadd.f32 %v4065_v30, %v61_v34 }
  0x27   :  { %2529 = vmatpush1.bf16.msra.mxu1 %v3408_v46  ;;  %v67_v46 = vmul.f32 %v4044_v23, %v35_v38 }
  0x28   :  { %2530 = vmatprep.subr.bf16.mxu1 %v3411_v48  ;;  %v88_v48 = vadd.f32 %v4062_v29, %v56_v35 }
  0x29   :  { %2199 = vmatpush1.bf16.msra.mxu0 %v3413_v49  ;;  %v89_v49 = vadd.f32 %v4065_v30, %v57_v36 }
  0x2a   :  { %2200 = vmatprep.subr.bf16.mxu0 %v3415_v51  ;;  %v64_v51 = vmul.f32 %v4041_v22, %v32_v41 }
  0x2b   :  { %2531 = vmatpush1.bf16.msra.mxu1 %v3414_v50  ;;  %v94_v50 = vadd.f32 %v4062_v29, %v62_v37 }
  0x2c   :  { %2532 = vmatprep.subr.bf16.mxu1 %v3417_v52  ;;  %v65_v52 = vmul.f32 %v4044_v23, %v33_v42  ;;  %v75_v42 = vmul.f32 %v4044_v23, %v43_v21  ;;  %v3468_v21 = vld [vmem:[%s5207_s4 + $0x24c] ss:$16 sps:$4 sm:$0xff]  }
  0x2d   :  { %2201 = vmatpush1.bf16.msra.mxu0 %v3419_v53  ;;  %v95_v53 = vadd.f32 %v4065_v30, %v63_v39 }
  0x2e   :  { %2202 = vmatprep.subr.bf16.mxu0 %v3421_v55  ;;  %v38_v55 = vld [vmem:[%s5210_s0 + $0x70] sm:$0xff] }
  0x2f   :  { %2533 = vmatpush1.bf16.msra.mxu1 %v3420_v54  ;;  %v90_v54 = vadd.f32 %v4062_v29, %v58_v40 }
  0x30   :  { %2534 = vmatprep.subr.bf16.mxu1 %v3423_v56  ;;  %v39_v56 = vld [vmem:[%s5210_s0 + $0x78] sm:$0xff] }
  0x31   :  { %2203 = vmatpush1.bf16.msra.mxu0 %v3425_v57  ;;  %v112_v57 = vmax.f32 %v92_v43, 0.0  ;;  %v72_v43 = vmul.f32 %v4041_v22, %v40_v24 }
  0x32   :  { %2204 = vmatprep.subr.bf16.mxu0 %v3427_v59  ;;  %v98_v59 = vadd.f32 %v4062_v29, %v66_v45 }
  0x33   :  { %2535 = vmatpush1.bf16.msra.mxu1 %v3426_v58  ;;  %v91_v58 = vadd.f32 %v4065_v30, %v59_v44  ;;  %v73_v44 = vmul.f32 %v4044_v23, %v41_v31 }
  0x34   :  { %2536 = vmatprep.subr.bf16.mxu1 %v3429_v60  ;;  %v99_v60 = vadd.f32 %v4065_v30, %v67_v46  ;;  %v118_v19 = vmax.f32 %v98_v59, 0.0 }
  0x35   :  { %2205 = vmatpush1.bf16.msra.mxu0 %v3431_v61  ;;  %v36_v61 = vld [vmem:[%s5210_s0 + $0x60] sm:$0xff]  ;;  %v111_v18 = vmax.f32 %v91_v58, 0.0 }
  0x36   :  { %2206 = vmatprep.subr.bf16.mxu0 %v3433_v63  ;;  %v113_v63 = vmax.f32 %v93_v47, 0.0  ;;  %v119_v20 = vmax.f32 %v99_v60, 0.0 }
  0x37   :  { %2537 = vmatpush1.bf16.msra.mxu1 %v3432_v62  ;;  %v37_v62 = vld [vmem:[%s5210_s0 + $0x68] sm:$0xff] }
  0x38   :  { %2538 = vmatprep.subr.bf16.mxu1 %v3435_v1  ;;  %v108_v1 = vmax.f32 %v88_v48, 0.0 }
  0x39   :  { %2207 = vmatpush1.bf16.msra.mxu0 %v3437_v2  ;;  %v109_v2 = vmax.f32 %v89_v49, 0.0 }
  0x3a   :  { %2208 = vmatprep.subr.bf16.mxu0 %v3439_v4  ;;  %v96_v4 = vadd.f32 %v4062_v29, %v64_v51 }
  0x3b   :  { %2539 = vmatpush1.bf16.msra.mxu1 %v3438_v3  ;;  %v114_v3 = vmax.f32 %v94_v50, 0.0 }
  0x3c   :  { %2540 = vmatprep.subr.bf16.mxu1 %v3441_v5  ;;  %v97_v5 = vadd.f32 %v4065_v30, %v65_v52  ;;  %v116_v32 = vmax.f32 %v96_v4, 0.0 }
  0x3d   :  { %2209 = vmatpush1.bf16.msra.mxu0 %v3443_v6  ;;  %v70_v6 = vmul.f32 %v4041_v22, %v38_v55 }
  0x3e   :  { %2210 = vmatprep.subr.bf16.mxu0 %v3445_v8  ;;  %v115_v8 = vmax.f32 %v95_v53, 0.0  ;;  %v117_v33 = vmax.f32 %v97_v5, 0.0 }
  0x3f   :  { %2541 = vmatpush1.bf16.msra.mxu1 %v3444_v7  ;;  %v71_v7 = vmul.f32 %v4044_v23, %v39_v56  ;;  %v102_v34 = vadd.f32 %v4062_v29, %v70_v6 }
  0x40   :  { %2542 = vmatprep.subr.bf16.mxu1 %v3447_v9  ;;  %v110_v9 = vmax.f32 %v90_v54, 0.0 }
  0x41   :  { %2211 = vmatpush1.bf16.msra.mxu0 %v3449_v10  ;;  %v68_v10 = vmul.f32 %v4041_v22, %v36_v61  ;;  %v103_v35 = vadd.f32 %v4065_v30, %v71_v7  ;;  %v122_v49 = vmax.f32 %v102_v34, 0.0  ;;  %v3463_v34 = vld [vmem:[%s5207_s4 + $0x240] ss:$16 sps:$4 sm:$0xff]  }
  0x42   :  { %2263 = vmatprep.subr.bf16.mxu0 %v3453_v12  ;;  %v42_v12 = vld [vmem:[%s5210_s0 + $0x90] sm:$0xff] }
  0x43   :  { %2543 = vmatpush1.bf16.msra.mxu1 %v3450_v11  ;;  %v69_v11 = vmul.f32 %v4044_v23, %v37_v62  ;;  %v100_v37 = vadd.f32 %v4062_v29, %v68_v10  ;;  %v74_v41 = vmul.f32 %v4041_v22, %v42_v12  ;;  %v123_v50 = vmax.f32 %v103_v35, 0.0  ;;  %v3466_v35 = vld [vmem:[%s5207_s4 + $0x248] ss:$16 sps:$4 sm:$0xff]  }
  0x44   :  { %2595 = vmatprep.subr.bf16.mxu1 %v3456_v13  ;;  %v107_v22 = vadd.f32 %v4065_v30, %v75_v42  ;;  %v104_v23 = vadd.f32 %v4062_v29, %v72_v43 }
  0x45   :  { %v101_v38 = vadd.f32 %v4065_v30, %v69_v11  ;;  %v120_v52 = vmax.f32 %v100_v37, 0.0  ;;  %v106_v56 = vadd.f32 %v4062_v29, %v74_v41  ;;  %v3454_v29 = vld [vmem:[%s5207_s4 + $0x208] ss:$16 sps:$4 sm:$0xff]  }
  0x46   :  { %v127_v5 = vmax.f32 %v107_v22, 0.0  ;;  %v124_v6 = vmax.f32 %v104_v23, 0.0  ;;  %v3483_v22 = vld [vmem:[%s5207_s4 + $0x2a4] ss:$16 sps:$4 sm:$0xff]  }
  0x47   :  { %v121_v53 = vmax.f32 %v101_v38, 0.0  ;;  %v126_v4 = vmax.f32 %v106_v56, 0.0  ;;  %v3474_v38 = vld [vmem:[%s5207_s4 + $0x26c] ss:$16 sps:$4 sm:$0xff]  }
  0x81   :  { %v151_v13 = vpop.permute.xlu1 %150  ;;  %v141_v14 = vpop.permute.xlu0 %140 }
  0x82   :  { %v4131_v25 = vmul.f32 %v151_v13, %v112_v57  ;;  %v193_v26 = vmul.f32 %v151_v13, %v113_v63  ;;  %v188_v27 = vmul.f32 %v141_v14, %v108_v1  ;;  %v189_v28 = vmul.f32 %v141_v14, %v109_v2  ;;  %v3451_v1 = vld [vmem:[%s5207_s4 + $0x200] ss:$16 sps:$4 sm:$0xff]  }
  0x83   :  { %v105_v57 = vadd.f32 %v4065_v30, %v73_v44  ;;  %v3459_v30 = vld [vmem:[%s5207_s4 + $0x224] ss:$16 sps:$4 sm:$0xff]   ;;  %v3457_v13 = vld [vmem:[%s5207_s4 + $0x220] ss:$16 sps:$4 sm:$0xff]  }
  0x84   :  { %v3182_v36 = vpack.c.bf16 %v189_v28, %v188_v27 }
  0x85   :  { %v156_v39 = vpop.permute.xlu1 %155  ;;  %v146_v40 = vpop.permute.xlu0 %145  ;;  %v125_v7 = vmax.f32 %v105_v57, 0.0 }
  0x86   :  { %268 = vst [vmem:[#allocation2] sm:$0xff] %v3182_v36  ;;  %v4144_v45 = vmul.f32 %v156_v39, %v114_v3  ;;  %v195_v46 = vmul.f32 %v156_v39, %v115_v8  ;;  %v190_v47 = vmul.f32 %v146_v40, %v110_v9  ;;  %v191_v48 = vmul.f32 %v146_v40, %v111_v18  ;;  %v3462_v8 = vld [vmem:[%s5207_s4 + $0x22c] ss:$16 sps:$4 sm:$0xff]  }
  0x87   :  { %v2925_v18 = vcombine.high %v3753_v0, %v3753_v0 }
  0x88   :  { %v4146_v51 = vpack.c.bf16 %v191_v48, %v190_v47  ;;  %v4156_v62 = vpack.c.bf16 %v190_v47, %v188_v27  ;;  %v4158_v63 = vpack.c.bf16 %v191_v48, %v189_v28  ;;  %v4187_v14 = vpack.c.bf16 %v195_v46, %v193_v26  ;;  %v3472_v46 = vld [vmem:[%s5207_s4 + $0x268] ss:$16 sps:$4 sm:$0xff]   ;;  %v3477_v47 = vld [vmem:[%s5207_s4 + $0x284] ss:$16 sps:$4 sm:$0xff]  }
  0x89   :  { %v166_v54 = vpop.permute.xlu1 %165  ;;  %v161_v55 = vpop.permute.xlu0 %160  ;;  %v2924_v27 = vcombine.low %v3753_v0, %v3753_v0  ;;  %v3471_v0 = vld [vmem:[%s5207_s4 + $0x264] ss:$16 sps:$4 sm:$0xff]   ;;  %v604_v36 = vshrl.u32 %v2925_v18, 16  ;;  %v4219_v37 = vpack.c.bf16 %v4144_v45, %v4131_v25  ;;  %v607_v39 = vshll.u32 %v2925_v18, 16  ;;  %v3469_v25 = vld [vmem:[%s5207_s4 + $0x260] ss:$16 sps:$4 sm:$0xff]  }
  0x8a   :  { %v4152_v58 = vmul.f32 %v166_v54, %v118_v19  ;;  %v199_v59 = vmul.f32 %v166_v54, %v119_v20  ;;  %v4154_v60 = vmul.f32 %v161_v55, %v116_v32  ;;  %v197_v61 = vmul.f32 %v161_v55, %v117_v33  ;;  %2212 = vmatprep.mubr.bf16.mxu0 %v4158_v63  ;;  %v3460_v19 = vld [vmem:[%s5207_s4 + $0x228] ss:$16 sps:$4 sm:$0xff]   ;;  %v3465_v20 = vld [vmem:[%s5207_s4 + $0x244] ss:$16 sps:$4 sm:$0xff]  }
  0x8b   :  { %2544 = vmatprep.mubr.bf16.mxu1 %v4158_v63  ;;  %2213 = vmatmul.mubr.bf16.vlgmr.msra.gmra.mrb[0].mxu0 %v4156_v62  ;;  %v595_v40 = vshrl.u32 %v2924_v27, 16  ;;  %v598_v42 = vshll.u32 %v2924_v27, 16  ;;  %v414_v43 = vshll.u32 %v4158_v63, 16  ;;  %v419_v44 = vshll.u32 %v4187_v14, 16  ;;  %v3478_v54 = vld [vmem:[%s5207_s4 + $0x288] ss:$16 sps:$4 sm:$0xff]  }
  0x8c   :  { %2264 = vmatpush1.bf16.msra.mxu0 %v3451_v1  ;;  %2545 = vmatmul.mubr.bf16.vlgmr.msra.gmra.mrb[0].mxu1 %v4156_v62  ;;  %v4225_v41 = vpack.c.bf16 %v199_v59, %v197_v61  ;;  %v4233_v45 = vrot.slane %v604_v36, 3  ;;  %v4242_v48 = vrot.slane %v607_v39, 4  ;;  %v4260_v56 = vpack.c.bf16 %v4152_v58, %v4154_v60  ;;  %v3486_v58 = vld [vmem:[%s5207_s4 + $0x2ac] ss:$16 sps:$4 sm:$0xff]   ;;  %v4310_v18 = vld [vmem:[#allocation2 + $0x50] sm:$0x77] }
  0x8d   :  { %v176_v2 = vpop.permute.xlu1 %175  ;;  %v171_v3 = vpop.permute.xlu0 %170  ;;  %2596 = vmatpush1.bf16.msra.mxu1 %v3454_v29  ;;  %2265 = vmatprep.subr.bf16.mxu0 %v3459_v30  ;;  %v4256_v55 = vrot.slane %v598_v42, 4  ;;  %v412_v23 = vshrl.u32 %v4158_v63, 16  ;;  %v4266_v57 = vrot.slane %v414_v43, 1  ;;  %v4270_v59 = vrot.slane %v419_v44, 1  ;;  %v3481_v30 = vld [vmem:[%s5207_s4 + $0x2a0] ss:$16 sps:$4 sm:$0xff]  }
  0x8e   :  { %v4174_v9 = vmul.f32 %v176_v2, %v122_v49  ;;  %v4176_v10 = vmul.f32 %v176_v2, %v123_v50  ;;  %v4178_v11 = vmul.f32 %v171_v3, %v120_v52  ;;  %v4180_v12 = vmul.f32 %v171_v3, %v121_v53  ;;  %2597 = vmatprep.subr.bf16.mxu1 %v3462_v8  ;;  %v3480_v49 = vld [vmem:[%s5207_s4 + $0x28c] ss:$16 sps:$4 sm:$0xff]   ;;  %v300_v50 = vld [vmem:[#allocation2] sm:$0x88] }
  0x8f   :  { %2222 = vmatprep.mubr.bf16.mxu0 %v4187_v14  ;;  %2554 = vmatprep.mubr.bf16.mxu1 %v4187_v14  ;;  %v4248_v52 = vrot.slane %v595_v40, 3  ;;  %v3475_v53 = vld [vmem:[%s5207_s4 + $0x280] ss:$16 sps:$4 sm:$0xff]   ;;  %v407_v1 = vshll.u32 %v4219_v37, 16  ;;  %v4285_v29 = vcombine.low %v300_v50, %v4146_v51  ;;  %v431_v3 = vshrl.u32 %v4187_v14, 16 }
  0x90   :  { %2266 = vmatpush1.bf16.msra.mxu0 %v3457_v13  ;;  %v4274_v61 = vpack.c.bf16 %v4176_v10, %v4180_v12  ;;  %v4281_v60 = vpack.c.bf16 %v4174_v9, %v4178_v11  ;;  %v423_v8 = vshrl.u32 %v4219_v37, 16  ;;  %v509_v10 = vrot.slane %v4219_v37, 3  ;;  %v3492_v27 = vld [vmem:[%s5207_s4 + $0x2cc] ss:$16 sps:$4 sm:$0xff]   ;;  %v3495_v40 = vld [vmem:[%s5207_s4 + $0x2e4] ss:$16 sps:$4 sm:$0xff]  }
  0x91   :  { %v186_v24 = vpop.permute.xlu1 %185  ;;  %v181_v26 = vpop.permute.xlu0 %180  ;;  %2598 = vmatpush1.bf16.msra.mxu1 %v3460_v19  ;;  %2267 = vmatprep.subr.bf16.mxu0 %v3465_v20  ;;  %v508_v9 = vrot.slane %v4285_v29, 3  ;;  %v516_v12 = vrot.slane %v4225_v41, 3  ;;  %v514_v13 = vrot.slane %v4260_v56, 3  ;;  %v3489_v19 = vld [vmem:[%s5207_s4 + $0x2c4] ss:$16 sps:$4 sm:$0xff]   ;;  %v427_v20 = vshll.u32 %v4260_v56, 16 }
  0x92   :  { %v4203_v28 = vmul.f32 %v186_v24, %v126_v4  ;;  %v207_v31 = vmul.f32 %v186_v24, %v127_v5  ;;  %v4205_v32 = vmul.f32 %v181_v26, %v124_v6  ;;  %v205_v33 = vmul.f32 %v181_v26, %v125_v7  ;;  %2599 = vmatprep.subr.bf16.mxu1 %v3468_v21  ;;  %v3484_v6 = vld [vmem:[%s5207_s4 + $0x2a8] ss:$16 sps:$4 sm:$0xff]  }
  0x93   :  { %2223 = vmatmul.mubr.bf16.gmra.mrb[4].mxu0 %v4219_v37  ;;  %v2921_v4 = vcombine.high %v300_v50, %v4146_v51  ;;  %v512_v5 = vrot.slane %v4187_v14, 3  ;;  %v435_v7 = vshll.u32 %v4225_v41, 16  ;;  %v4318_v21 = vsel %vm507_vm0, %v508_v9, %v509_v10  ;;  %v3555_v14 = vld [vmem:[%s5207_s4 + $0x424] ss:$16 sps:$4 sm:$0xff]  }
  0x94   :  { %2268 = vmatpush1.bf16.msra.mxu0 %v3463_v34  ;;  %2555 = vmatmul.mubr.bf16.gmra.mrb[4].mxu1 %v4219_v37  ;;  %v4290_v2 = vpack.c.bf16 %v207_v31, %v205_v33  ;;  %v4306_v51 = vpack.c.bf16 %v4203_v28, %v4205_v32  ;;  %v520_v24 = vrot.slane %v4274_v61, 3  ;;  %v518_v26 = vrot.slane %v4281_v60, 3  ;;  %v3487_v34 = vld [vmem:[%s5207_s4 + $0x2c0] ss:$16 sps:$4 sm:$0xff]  }
  0x95   :  { %2600 = vmatpush1.bf16.msra.mxu1 %v3466_v35  ;;  %2232 = vmatprep.mubr.bf16.mxu0 %v4225_v41  ;;  %v511_v11 = vrot.slane %v2921_v4, 3  ;;  %v4330_v31 = vsel %vm507_vm0, %v512_v5, %v516_v12  ;;  %v4333_v32 = vsel %vm507_vm0, %v509_v10, %v514_v13  ;;  %v3490_v35 = vld [vmem:[%s5207_s4 + $0x2c8] ss:$16 sps:$4 sm:$0xff]   ;;  %v2922_v39 = vcombine.low %v4310_v18, %v4310_v18  ;;  %v3559_v37 = vld [vmem:[%s5207_s4 + $0x440] ss:$16 sps:$4 sm:$0xff]  }
  0x96   :  { %2564 = vmatprep.mubr.bf16.mxu1 %v4225_v41  ;;  %2269 = vmatprep.subr.bf16.mxu0 %v3471_v0  ;;  %v5213_v33 = vrot.slane %v4290_v2, 3  ;;  %v554_v0 = vrot.slane %v423_v8, 3  ;;  %v4345_v36 = vsel %vm507_vm0, %v516_v12, %v520_v24  ;;  %v5216_v42 = vshrl.u32 %v4225_v41, 16 }
  0x97   :  { %2601 = vmatprep.subr.bf16.mxu1 %v3474_v38  ;;  %v4327_v28 = vsel %vm507_vm0, %v511_v11, %v512_v5  ;;  %v4348_v38 = vsel %vm507_vm0, %v514_v13, %v518_v26  ;;  %v522_v43 = vrot.slane %v4306_v51, 3  ;;  %v526_v50 = vrot.slane %v2922_v39, 3 }
  0x98   :  { %2270 = vmatpush1.bf16.msra.mxu0 %v3469_v25  ;;  %v4359_v25 = vsel %vm507_vm0, %v520_v24, %v5213_v33  ;;  %v566_v5 = vrot.slane %v431_v3, 3  ;;  %v5215_v9 = vshrl.u32 %v4260_v56, 16  ;;  %v547_v12 = vshrl.u32 %v4285_v29, 16 }
  0x99   :  { %2602 = vmatpush1.bf16.msra.mxu1 %v3472_v46  ;;  %2271 = vmatprep.subr.bf16.mxu0 %v3477_v47  ;;  %v559_v46 = vshrl.u32 %v2921_v4, 16  ;;  %v3498_v47 = vld [vmem:[%s5207_s4 + $0x2ec] ss:$16 sps:$4 sm:$0xff]   ;;  %v4384_v10 = vsel %vm507_vm0, %v522_v43, %v526_v50  ;;  %v443_v13 = vshll.u32 %v4281_v60, 16  ;;  %v455_v39 = vshrl.u32 %v4281_v60, 16 }
  0x9a   :  { %2603 = vmatprep.subr.bf16.mxu1 %v3480_v49  ;;  %v451_v49 = vshll.u32 %v4274_v61, 16  ;;  %v471_v63 = vshrl.u32 %v4306_v51, 16 }
  0x9b   :  { %2233 = vmatmul.mubr.bf16.gmra.mrb[8].mxu0 %v4260_v56 }
  0x9c   :  { %2272 = vmatpush1.bf16.msra.mxu0 %v3475_v53  ;;  %2565 = vmatmul.mubr.bf16.gmra.mrb[8].mxu1 %v4260_v56  ;;  %v562_v53 = vshll.u32 %v2921_v4, 16  ;;  %v3496_v4 = vld [vmem:[%s5207_s4 + $0x2e8] ss:$16 sps:$4 sm:$0xff]  }
  0x9d   :  { %2604 = vmatpush1.bf16.msra.mxu1 %v3478_v54  ;;  %2242 = vmatprep.mubr.bf16.mxu0 %v4274_v61  ;;  %v610_v54 = vor.u32 %v4242_v48, %v4233_v45 }
  0x9e   :  { %2574 = vmatprep.mubr.bf16.mxu1 %v4274_v61  ;;  %2273 = vmatprep.subr.bf16.mxu0 %v3483_v22  ;;  %v3493_v22 = vld [vmem:[%s5207_s4 + $0x2e0] ss:$16 sps:$4 sm:$0xff]   ;;  %v564_v11 = vrot.slane %v562_v53, 4  ;;  %v555_v53 = vrot.slane %v407_v1, 4 }
  0x9f   :  { %2605 = vmatprep.subr.bf16.mxu1 %v3486_v58  ;;  %v4372_v58 = vsel %vm507_vm0, %v518_v26, %v522_v43  ;;  %v550_v26 = vshll.u32 %v4285_v29, 16  ;;  %v3499_v29 = vld [vmem:[%s5207_s4 + $0x300] ss:$16 sps:$4 sm:$0xff]  }
  0xa0   :  { %2274 = vmatpush1.bf16.msra.mxu0 %v3481_v30  ;;  %v561_v30 = vrot.slane %v559_v46, 3  ;;  %v549_v46 = vrot.slane %v547_v12, 3  ;;  %v575_v12 = vrot.slane %v435_v7, 4 }
  0xa1   :  { %2606 = vmatpush1.bf16.msra.mxu1 %v3484_v6  ;;  %2275 = vmatprep.subr.bf16.mxu0 %v3489_v19  ;;  %v567_v6 = vrot.slane %v419_v44, 4  ;;  %v3501_v44 = vld [vmem:[%s5207_s4 + $0x304] ss:$16 sps:$4 sm:$0xff]   ;;  %v5214_v19 = vshrl.u32 %v4274_v61, 16  ;;  %v552_v50 = vrot.slane %v550_v26, 4  ;;  %v570_v26 = vrot.slane %v5215_v9, 3 }
  0xa2   :  { %2607 = vmatprep.subr.bf16.mxu1 %v3492_v27  ;;  %v3504_v27 = vld [vmem:[%s5207_s4 + $0x30c] ss:$16 sps:$4 sm:$0xff]   ;;  %v565_v43 = vor.u32 %v564_v11, %v561_v30  ;;  %v459_v30 = vshll.u32 %v4306_v51, 16 }
  0xa3   :  { %2243 = vmatmul.mubr.bf16.gmra.mrb[12].mxu0 %v4281_v60  ;;  %v568_v24 = vor.u32 %v567_v6, %v566_v5  ;;  %v574_v5 = vrot.slane %v5216_v42, 3  ;;  %v479_v6 = vshrl.u32 %v4290_v2, 16  ;;  %v553_v11 = vor.u32 %v552_v50, %v549_v46 }
  0xa4   :  { %2276 = vmatpush1.bf16.msra.mxu0 %v3487_v34  ;;  %2575 = vmatmul.mubr.bf16.gmra.mrb[12].mxu1 %v4281_v60  ;;  %v467_v34 = vshll.u32 %v4290_v2, 16  ;;  %v582_v33 = vrot.slane %v5214_v19, 3  ;;  %v601_v46 = vor.u32 %v4256_v55, %v4248_v52  ;;  %v578_v50 = vrot.slane %v455_v39, 3 }
  0xa5   :  { %2608 = vmatpush1.bf16.msra.mxu1 %v3490_v35  ;;  %2252 = vmatprep.mubr.bf16.mxu0 %v4290_v2  ;;  %v417_v35 = vor.u32 %v4266_v57, %v412_v23  ;;  %v4418_v23 = vsel %vm545_vm1, %v565_v43, %v568_v24  ;;  %v3507_v57 = vld [vmem:[%s5207_s4 + $0x324] ss:$16 sps:$4 sm:$0xff]   ;;  %v3510_v43 = vld [vmem:[%s5207_s4 + $0x32c] ss:$16 sps:$4 sm:$0xff]   ;;  %v590_v42 = vrot.slane %v479_v6, 3 }
  0xa6   :  { %2584 = vmatprep.mubr.bf16.mxu1 %v4290_v2  ;;  %2277 = vmatprep.subr.bf16.mxu0 %v3495_v40  ;;  %v3502_v40 = vld [vmem:[%s5207_s4 + $0x308] ss:$16 sps:$4 sm:$0xff]   ;;  %v591_v52 = vrot.slane %v467_v34, 4 }
  0xa7   :  { %2609 = vmatprep.subr.bf16.mxu1 %v3498_v47  ;;  %v556_v47 = vor.u32 %v555_v53, %v554_v0  ;;  %v583_v0 = vrot.slane %v451_v49, 4  ;;  %v579_v53 = vrot.slane %v443_v13, 4  ;;  %v422_v55 = vsel %vm398_vm2, %v417_v35, %v4270_v59  ;;  %v3513_v35 = vld [vmem:[%s5207_s4 + $0x344] ss:$16 sps:$4 sm:$0xff]  }
  0xa8   :  { %2278 = vmatpush1.bf16.msra.mxu0 %v3493_v22  ;;  %v571_v22 = vrot.slane %v427_v20, 4 }
  0xa9   :  { %2610 = vmatpush1.bf16.msra.mxu1 %v3496_v4  ;;  %2279 = vmatprep.subr.bf16.mxu0 %v3501_v44  ;;  %v4439_v4 = vsel %vm545_vm1, %v553_v11, %v556_v47  ;;  %v576_v44 = vor.u32 %v575_v12, %v574_v5  ;;  %v584_v9 = vor.u32 %v583_v0, %v582_v33  ;;  %v3508_v33 = vld [vmem:[%s5207_s4 + $0x328] ss:$16 sps:$4 sm:$0xff]   ;;  %v3516_v12 = vld [vmem:[%s5207_s4 + $0x34c] ss:$16 sps:$4 sm:$0xff]   ;;  %v587_v0 = vrot.slane %v459_v30, 4 }
  0xaa   :  { %2611 = vmatprep.subr.bf16.mxu1 %v3504_v27  ;;  %v572_v19 = vor.u32 %v571_v22, %v570_v26  ;;  %v3505_v27 = vld [vmem:[%s5207_s4 + $0x320] ss:$16 sps:$4 sm:$0xff]   ;;  %v580_v11 = vor.u32 %v579_v53, %v578_v50  ;;  %v592_v22 = vor.u32 %v591_v52, %v590_v42 }
  0xab   :  { %2253 = vmatmul.mubr.bf16.gmra.mrb[16].mxu0 %v4306_v51  ;;  %v4460_v5 = vsel %vm545_vm1, %v568_v24, %v576_v44  ;;  %v4474_v24 = vsel %vm545_vm1, %v576_v44, %v584_v9  ;;  %v3511_v42 = vld [vmem:[%s5207_s4 + $0x340] ss:$16 sps:$4 sm:$0xff]   ;;  %v3528_v44 = vld [vmem:[%s5207_s4 + $0x38c] ss:$16 sps:$4 sm:$0xff]  }
  0xac   :  { %2280 = vmatpush1.bf16.msra.mxu0 %v3499_v29  ;;  %2585 = vmatmul.mubr.bf16.gmra.mrb[16].mxu1 %v4306_v51  ;;  %v586_v29 = vrot.slane %v471_v63, 3  ;;  %v4471_v26 = vsel %vm545_vm1, %v556_v47, %v572_v19  ;;  %v4482_v50 = vsel %vm545_vm1, %v584_v9, %v592_v22  ;;  %v4488_v47 = vsel %vm545_vm1, %v592_v22, %v610_v54  ;;  %v3519_v9 = vld [vmem:[%s5207_s4 + $0x364] ss:$16 sps:$4 sm:$0xff]   ;;  %v3522_v54 = vld [vmem:[%s5207_s4 + $0x36c] ss:$16 sps:$4 sm:$0xff]  }
  0xad   :  { %2612 = vmatpush1.bf16.msra.mxu1 %v3502_v40  ;;  %2295 = vmatprep.mubr.bf16.mxu0 %v422_v55  ;;  %v4479_v40 = vsel %vm545_vm1, %v572_v19, %v580_v11  ;;  %v3514_v19 = vld [vmem:[%s5207_s4 + $0x348] ss:$16 sps:$4 sm:$0xff]   ;;  %v3523_v52 = vld [vmem:[%s5207_s4 + $0x380] ss:$16 sps:$4 sm:$0xff]   ;;  %v402_v22 = vshll.u32 %v4156_v62, 16 }
  0xae   :  { %2627 = vmatprep.mubr.bf16.mxu1 %v422_v55  ;;  %2281 = vmatprep.subr.bf16.mxu0 %v3507_v57  ;;  %v588_v53 = vor.u32 %v587_v0, %v586_v29  ;;  %v3517_v57 = vld [vmem:[%s5207_s4 + $0x360] ss:$16 sps:$4 sm:$0xff]   ;;  %v3526_v55 = vld [vmem:[%s5207_s4 + $0x388] ss:$16 sps:$4 sm:$0xff]  }
  0xaf   :  { %2613 = vmatprep.subr.bf16.mxu1 %v3510_v43  ;;  %v3520_v43 = vld [vmem:[%s5207_s4 + $0x368] ss:$16 sps:$4 sm:$0xff]   ;;  %v3535_v0 = vld [vmem:[%s5207_s4 + $0x3c0] ss:$16 sps:$4 sm:$0xff]  }
  0xb0   :  { %2282 = vmatpush1.bf16.msra.mxu0 %v3505_v27  ;;  %v4500_v45 = vsel %vm545_vm1, %v580_v11, %v588_v53  ;;  %v4503_v48 = vsel %vm545_vm1, %v588_v53, %v601_v46  ;;  %v3525_v46 = vld [vmem:[%s5207_s4 + $0x384] ss:$16 sps:$4 sm:$0xff]   ;;  %v3529_v11 = vld [vmem:[%s5207_s4 + $0x3a0] ss:$16 sps:$4 sm:$0xff]   ;;  %v3532_v29 = vld [vmem:[%s5207_s4 + $0x3a8] ss:$16 sps:$4 sm:$0xff]  }
  0xb1   :  { %2614 = vmatpush1.bf16.msra.mxu1 %v3508_v33  ;;  %2283 = vmatprep.subr.bf16.mxu0 %v3513_v35  ;;  %v3531_v27 = vld [vmem:[%s5207_s4 + $0x3a4] ss:$16 sps:$4 sm:$0xff]   ;;  %v3534_v33 = vld [vmem:[%s5207_s4 + $0x3ac] ss:$16 sps:$4 sm:$0xff]   ;;  %v3538_v53 = vld [vmem:[%s5207_s4 + $0x3c8] ss:$16 sps:$4 sm:$0xff]  }
  0xb2   :  { %2615 = vmatprep.subr.bf16.mxu1 %v3516_v12  ;;  %v3537_v35 = vld [vmem:[%s5207_s4 + $0x3c4] ss:$16 sps:$4 sm:$0xff]   ;;  %v3540_v12 = vld [vmem:[%s5207_s4 + $0x3cc] ss:$16 sps:$4 sm:$0xff]   ;;  %v3600_v51 = vld [vmem:[%s5207_s4 + $0x508] ss:$16 sps:$4 sm:$0xff]  }
  0xb4   :  { %2284 = vmatpush1.bf16.msra.mxu0 %v3511_v42  ;;  %v3543_v42 = vld [vmem:[%s5207_s4 + $0x3e4] ss:$16 sps:$4 sm:$0xff]  }
  0xb5   :  { %2616 = vmatpush1.bf16.msra.mxu1 %v3514_v19  ;;  %2285 = vmatprep.subr.bf16.mxu0 %v3519_v9  ;;  %v3546_v19 = vld [vmem:[%s5207_s4 + $0x3ec] ss:$16 sps:$4 sm:$0xff]   ;;  %v404_v9 = vrot.slane %v402_v22, 1  ;;  %v3561_v22 = vld [vmem:[%s5207_s4 + $0x444] ss:$16 sps:$4 sm:$0xff]  }
  0xb6   :  { %2617 = vmatprep.subr.bf16.mxu1 %v3522_v54  ;;  %v3541_v54 = vld [vmem:[%s5207_s4 + $0x3e0] ss:$16 sps:$4 sm:$0xff]  }
  0xb8   :  { %2286 = vmatpush1.bf16.msra.mxu0 %v3517_v57  ;;  %v400_v57 = vshrl.u32 %v4156_v62, 16  ;;  %v433_v62 = vor.u32 %v431_v3, %v4270_v59  ;;  %v3558_v3 = vld [vmem:[%s5207_s4 + $0x42c] ss:$16 sps:$4 sm:$0xff]  }
  0xb9   :  { %2618 = vmatpush1.bf16.msra.mxu1 %v3520_v43  ;;  %2287 = vmatprep.subr.bf16.mxu0 %v3525_v46  ;;  %v3544_v43 = vld [vmem:[%s5207_s4 + $0x3e8] ss:$16 sps:$4 sm:$0xff]   ;;  %v3549_v46 = vld [vmem:[%s5207_s4 + $0x404] ss:$16 sps:$4 sm:$0xff]  }
  0xba   :  { %2619 = vmatprep.subr.bf16.mxu1 %v3528_v44  ;;  %v405_v44 = vor.u32 %v404_v9, %v400_v57  ;;  %v3565_v57 = vld [vmem:[%s5207_s4 + $0x460] ss:$16 sps:$4 sm:$0xff]  }
  0xbc   :  { %2288 = vmatpush1.bf16.msra.mxu0 %v3523_v52  ;;  %v409_v52 = vrot.slane %v407_v1, 1 }
  0xbd   :  { %2620 = vmatpush1.bf16.msra.mxu1 %v3526_v55  ;;  %2289 = vmatprep.subr.bf16.mxu0 %v3531_v27  ;;  %v3552_v55 = vld [vmem:[%s5207_s4 + $0x40c] ss:$16 sps:$4 sm:$0xff]   ;;  %v437_v27 = vrot.slane %v435_v7, 1  ;;  %v3553_v7 = vld [vmem:[%s5207_s4 + $0x420] ss:$16 sps:$4 sm:$0xff]  }
  0xbe   :  { %2621 = vmatprep.subr.bf16.mxu1 %v3534_v33  ;;  %v3547_v33 = vld [vmem:[%s5207_s4 + $0x400] ss:$16 sps:$4 sm:$0xff]   ;;  %v410_v1 = vsel %vm398_vm2, %v405_v44, %v409_v52  ;;  %v3573_v44 = vld [vmem:[%s5207_s4 + $0x484] ss:$16 sps:$4 sm:$0xff]  }
  0xbf   :  { %v438_v59 = vsel %vm398_vm2, %v433_v62, %v437_v27 }
  0xc0   :  { %2290 = vmatpush1.bf16.msra.mxu0 %v3529_v11  ;;  %v3550_v11 = vld [vmem:[%s5207_s4 + $0x408] ss:$16 sps:$4 sm:$0xff]  }
  0xc1   :  { %2622 = vmatpush1.bf16.msra.mxu1 %v3532_v29  ;;  %2291 = vmatprep.subr.bf16.mxu0 %v3537_v35  ;;  %v3556_v29 = vld [vmem:[%s5207_s4 + $0x428] ss:$16 sps:$4 sm:$0xff]   ;;  %v425_v35 = vor.u32 %v423_v8, %v409_v52  ;;  %v5217_v8 = vshrl.u32 %v4225_v41, 16  ;;  %v3570_v41 = vld [vmem:[%s5207_s4 + $0x46c] ss:$16 sps:$4 sm:$0xff]  }
  0xc2   :  { %2623 = vmatprep.subr.bf16.mxu1 %v3540_v12  ;;  %v429_v12 = vrot.slane %v427_v20, 1  ;;  %v3576_v52 = vld [vmem:[%s5207_s4 + $0x48c] ss:$16 sps:$4 sm:$0xff]  }
  0xc3   :  { %v449_v20 = vor.u32 %v5217_v8, %v437_v27  ;;  %v5218_v27 = vshrl.u32 %v4260_v56, 16  ;;  %v3579_v56 = vld [vmem:[%s5207_s4 + $0x4a4] ss:$16 sps:$4 sm:$0xff]  }
  0xc4   :  { %2292 = vmatpush1.bf16.msra.mxu0 %v3535_v0  ;;  %v3564_v0 = vld [vmem:[%s5207_s4 + $0x44c] ss:$16 sps:$4 sm:$0xff]  }
  0xc5   :  { %2624 = vmatpush1.bf16.msra.mxu1 %v3538_v53  ;;  %2293 = vmatprep.subr.bf16.mxu0 %v3543_v42  ;;  %v453_v53 = vrot.slane %v451_v49, 1  ;;  %v430_v42 = vsel %vm398_vm2, %v425_v35, %v429_v12  ;;  %v3567_v49 = vld [vmem:[%s5207_s4 + $0x464] ss:$16 sps:$4 sm:$0xff]   ;;  %v461_v35 = vrot.slane %v459_v30, 1  ;;  %v3583_v30 = vld [vmem:[%s5207_s4 + $0x4c0] ss:$16 sps:$4 sm:$0xff]  }
  0xc6   :  { %2625 = vmatprep.subr.bf16.mxu1 %v3546_v19  ;;  %v3562_v19 = vld [vmem:[%s5207_s4 + $0x448] ss:$16 sps:$4 sm:$0xff]  }
  0xc7   :  { %v454_v9 = vsel %vm398_vm2, %v449_v20, %v453_v53 }
  0xc8   :  { %2294 = vmatpush1.bf16.msra.mxu0 %v3541_v54  ;;  %v299_v54 = vld [vmem:[#allocation2 + $0x50] sm:$0x11] }
  0xc9   :  { %2626 = vmatpush1.bf16.msra.mxu1 %v3544_v43  ;;  %2346 = vmatprep.subr.bf16.mxu0 %v3549_v46  ;;  %v3568_v43 = vld [vmem:[%s5207_s4 + $0x468] ss:$16 sps:$4 sm:$0xff]   ;;  %v445_v46 = vrot.slane %v443_v13, 1  ;;  %v2919_v62 = vcombine.high %v299_v54, %v299_v54  ;;  %v3571_v13 = vld [vmem:[%s5207_s4 + $0x480] ss:$16 sps:$4 sm:$0xff]  }
  0xca   :  { %2678 = vmatprep.subr.bf16.mxu1 %v3552_v55  ;;  %v469_v55 = vrot.slane %v467_v34, 1  ;;  %v3574_v34 = vld [vmem:[%s5207_s4 + $0x488] ss:$16 sps:$4 sm:$0xff]  }
  0xcb   :  { %2296 = vmatmul.mubr.bf16.vlgmr.msra.gmra.mrb[0].mxu0 %v410_v1  ;;  %v457_v8 = vor.u32 %v455_v39, %v445_v46  ;;  %v3595_v39 = vld [vmem:[%s5207_s4 + $0x4ec] ss:$16 sps:$4 sm:$0xff]  }
  0xcc   :  { %2628 = vmatmul.mubr.bf16.vlgmr.msra.gmra.mrb[0].mxu1 %v410_v1  ;;  %2305 = vmatprep.mubr.bf16.mxu0 %v438_v59  ;;  %v5219_v1 = vshrl.u32 %v4274_v61, 16  ;;  %v3582_v61 = vld [vmem:[%s5207_s4 + $0x4ac] ss:$16 sps:$4 sm:$0xff]  }
  0xcd   :  { %2347 = vmatpush1.bf16.msra.mxu0 %v3547_v33  ;;  %2637 = vmatprep.mubr.bf16.mxu1 %v438_v59  ;;  %v441_v33 = vor.u32 %v5218_v27, %v429_v12  ;;  %v3585_v12 = vld [vmem:[%s5207_s4 + $0x4c4] ss:$16 sps:$4 sm:$0xff]   ;;  %v462_v20 = vsel %vm398_vm2, %v457_v8, %v461_v35 }
  0xce   :  { %2679 = vmatpush1.bf16.msra.mxu1 %v3550_v11  ;;  %2348 = vmatprep.subr.bf16.mxu0 %v3555_v14  ;;  %v465_v11 = vor.u32 %v5219_v1, %v453_v53  ;;  %v481_v53 = vor.u32 %v479_v6, %v469_v55  ;;  %v3592_v6 = vld [vmem:[%s5207_s4 + $0x4e4] ss:$16 sps:$4 sm:$0xff]  }
  0xcf   :  { %2680 = vmatprep.subr.bf16.mxu1 %v3558_v3  ;;  %v446_v14 = vsel %vm398_vm2, %v441_v33, %v445_v46  ;;  %v483_v3 = vshll.u32 %v2919_v62, 16  ;;  %v3597_v46 = vld [vmem:[%s5207_s4 + $0x500] ss:$16 sps:$4 sm:$0xff]   ;;  %v3606_v62 = vld [vmem:[%s5207_s4 + $0x528] ss:$16 sps:$4 sm:$0xff]  }
  0xd0   :  { %v470_v59 = vsel %vm398_vm2, %v465_v11, %v469_v55  ;;  %v3603_v55 = vld [vmem:[%s5207_s4 + $0x520] ss:$16 sps:$4 sm:$0xff]   ;;  %v3611_v27 = vld [vmem:[%s5207_s4 + $0x544] ss:$16 sps:$4 sm:$0xff]   ;;  %v3614_v33 = vld [vmem:[%s5207_s4 + $0x54c] ss:$16 sps:$4 sm:$0xff]  }
  0xd1   :  { %2349 = vmatpush1.bf16.msra.mxu0 %v3553_v7  ;;  %v3577_v7 = vld [vmem:[%s5207_s4 + $0x4a0] ss:$16 sps:$4 sm:$0xff]   ;;  %v3617_v1 = vld [vmem:[%s5207_s4 + $0x564] ss:$16 sps:$4 sm:$0xff]   ;;  %v3620_v11 = vld [vmem:[%s5207_s4 + $0x56c] ss:$16 sps:$4 sm:$0xff]  }
  0xd2   :  { %2681 = vmatpush1.bf16.msra.mxu1 %v3556_v29  ;;  %2350 = vmatprep.subr.bf16.mxu0 %v3561_v22  ;;  %v3580_v29 = vld [vmem:[%s5207_s4 + $0x4a8] ss:$16 sps:$4 sm:$0xff]   ;;  %v2918_v22 = vcombine.low %v299_v54, %v299_v54  ;;  %v3641_v8 = vld [vmem:[%s5207_s4 + $0x5e4] ss:$16 sps:$4 sm:$0xff]  }
  0xd3   :  { %2306 = vmatmul.mubr.bf16.gmra.mrb[4].mxu0 %v430_v42  ;;  %2682 = vmatprep.subr.bf16.mxu1 %v3564_v0  ;;  %v3588_v0 = vld [vmem:[%s5207_s4 + $0x4cc] ss:$16 sps:$4 sm:$0xff]  }
  0xd4   :  { %2638 = vmatmul.mubr.bf16.gmra.mrb[4].mxu1 %v430_v42  ;;  %2315 = vmatprep.mubr.bf16.mxu0 %v454_v9  ;;  %v3586_v42 = vld [vmem:[%s5207_s4 + $0x4c8] ss:$16 sps:$4 sm:$0xff]  }
  0xd5   :  { %2351 = vmatpush1.bf16.msra.mxu0 %v3559_v37  ;;  %2647 = vmatprep.mubr.bf16.mxu1 %v454_v9  ;;  %v485_v37 = vrot.slane %v483_v3, 1  ;;  %v3593_v9 = vld [vmem:[%s5207_s4 + $0x4e8] ss:$16 sps:$4 sm:$0xff]  }
  0xd6   :  { %2683 = vmatpush1.bf16.msra.mxu1 %v3562_v19  ;;  %2352 = vmatprep.subr.bf16.mxu0 %v3567_v49  ;;  %v475_v19 = vshll.u32 %v2918_v22, 16  ;;  %v3590_v49 = vld [vmem:[%s5207_s4 + $0x4e0] ss:$16 sps:$4 sm:$0xff]   ;;  %v3624_v3 = vld [vmem:[%s5207_s4 + $0x588] ss:$16 sps:$4 sm:$0xff]  }
  0xd7   :  { %2684 = vmatprep.subr.bf16.mxu1 %v3570_v41  ;;  %v486_v60 = vsel %vm398_vm2, %v481_v53, %v485_v37  ;;  %v473_v41 = vor.u32 %v471_v63, %v461_v35  ;;  %v3605_v63 = vld [vmem:[%s5207_s4 + $0x524] ss:$16 sps:$4 sm:$0xff]   ;;  %v3627_v35 = vld [vmem:[%s5207_s4 + $0x5a0] ss:$16 sps:$4 sm:$0xff]   ;;  %v3636_v37 = vld [vmem:[%s5207_s4 + $0x5c8] ss:$16 sps:$4 sm:$0xff]  }
  0xd8   :  { %v477_v54 = vrot.slane %v475_v19, 1  ;;  %v3635_v22 = vld [vmem:[%s5207_s4 + $0x5c4] ss:$16 sps:$4 sm:$0xff]   ;;  %v3633_v53 = vld [vmem:[%s5207_s4 + $0x5c0] ss:$16 sps:$4 sm:$0xff]  }
  0xd9   :  { %2353 = vmatpush1.bf16.msra.mxu0 %v3565_v57  ;;  %v3599_v57 = vld [vmem:[%s5207_s4 + $0x504] ss:$16 sps:$4 sm:$0xff]   ;;  %v3650_v19 = vld [vmem:[%s5207_s4 + $0x60c] ss:$16 sps:$4 sm:$0xff]  }
  0xda   :  { %2685 = vmatpush1.bf16.msra.mxu1 %v3568_v43  ;;  %2354 = vmatprep.subr.bf16.mxu0 %v3573_v44  ;;  %v3602_v43 = vld [vmem:[%s5207_s4 + $0x50c] ss:$16 sps:$4 sm:$0xff]   ;;  %v478_v44 = vsel %vm398_vm2, %v473_v41, %v477_v54  ;;  %v3651_v41 = vld [vmem:[%s5207_s4 + $0x620] ss:$16 sps:$4 sm:$0xff]   ;;  %v3654_v54 = vld [vmem:[%s5207_s4 + $0x628] ss:$16 sps:$4 sm:$0xff]  }
  0xdb   :  { %2316 = vmatmul.mubr.bf16.gmra.mrb[8].mxu0 %v446_v14  ;;  %2686 = vmatprep.subr.bf16.mxu1 %v3576_v52  ;;  %v3608_v52 = vld [vmem:[%s5207_s4 + $0x52c] ss:$16 sps:$4 sm:$0xff]  }
  0xdc   :  { %2648 = vmatmul.mubr.bf16.gmra.mrb[8].mxu1 %v446_v14  ;;  %2325 = vmatprep.mubr.bf16.mxu0 %v470_v59  ;;  %v3615_v14 = vld [vmem:[%s5207_s4 + $0x560] ss:$16 sps:$4 sm:$0xff]  }
  0xdd   :  { %2355 = vmatpush1.bf16.msra.mxu0 %v3571_v13  ;;  %2657 = vmatprep.mubr.bf16.mxu1 %v470_v59  ;;  %v3612_v13 = vld [vmem:[%s5207_s4 + $0x548] ss:$16 sps:$4 sm:$0xff]   ;;  %v3626_v59 = vld [vmem:[%s5207_s4 + $0x58c] ss:$16 sps:$4 sm:$0xff]  }
  0xde   :  { %2687 = vmatpush1.bf16.msra.mxu1 %v3574_v34  ;;  %2356 = vmatprep.subr.bf16.mxu0 %v3579_v56  ;;  %v3618_v34 = vld [vmem:[%s5207_s4 + $0x568] ss:$16 sps:$4 sm:$0xff]   ;;  %v3623_v56 = vld [vmem:[%s5207_s4 + $0x584] ss:$16 sps:$4 sm:$0xff]  }
  0xdf   :  { %2688 = vmatprep.subr.bf16.mxu1 %v3582_v61  ;;  %v3621_v61 = vld [vmem:[%s5207_s4 + $0x580] ss:$16 sps:$4 sm:$0xff]  }
  0xe1   :  { %2357 = vmatpush1.bf16.msra.mxu0 %v3577_v7  ;;  %v3629_v7 = vld [vmem:[%s5207_s4 + $0x5a4] ss:$16 sps:$4 sm:$0xff]  }
  0xe2   :  { %2689 = vmatpush1.bf16.msra.mxu1 %v3580_v29  ;;  %2358 = vmatprep.subr.bf16.mxu0 %v3585_v12  ;;  %v3632_v29 = vld [vmem:[%s5207_s4 + $0x5ac] ss:$16 sps:$4 sm:$0xff]   ;;  %v3630_v12 = vld [vmem:[%s5207_s4 + $0x5a8] ss:$16 sps:$4 sm:$0xff]  }
  0xe3   :  { %2326 = vmatmul.mubr.bf16.gmra.mrb[12].mxu0 %v462_v20  ;;  %2690 = vmatprep.subr.bf16.mxu1 %v3588_v0  ;;  %v3638_v0 = vld [vmem:[%s5207_s4 + $0x5cc] ss:$16 sps:$4 sm:$0xff]  }
  0xe4   :  { %2658 = vmatmul.mubr.bf16.gmra.mrb[12].mxu1 %v462_v20  ;;  %2335 = vmatprep.mubr.bf16.mxu0 %v486_v60  ;;  %v3639_v20 = vld [vmem:[%s5207_s4 + $0x5e0] ss:$16 sps:$4 sm:$0xff]  }
  0xe5   :  { %2359 = vmatpush1.bf16.msra.mxu0 %v3583_v30  ;;  %2667 = vmatprep.mubr.bf16.mxu1 %v486_v60  ;;  %v3644_v30 = vld [vmem:[%s5207_s4 + $0x5ec] ss:$16 sps:$4 sm:$0xff]   ;;  %v3645_v60 = vld [vmem:[%s5207_s4 + $0x600] ss:$16 sps:$4 sm:$0xff]  }
  0xe6   :  { %2691 = vmatpush1.bf16.msra.mxu1 %v3586_v42  ;;  %2360 = vmatprep.subr.bf16.mxu0 %v3592_v6  ;;  %v3642_v42 = vld [vmem:[%s5207_s4 + $0x5e8] ss:$16 sps:$4 sm:$0xff]   ;;  %v3647_v6 = vld [vmem:[%s5207_s4 + $0x604] ss:$16 sps:$4 sm:$0xff]  }
  0xe7   :  { %2692 = vmatprep.subr.bf16.mxu1 %v3595_v39  ;;  %v3648_v39 = vld [vmem:[%s5207_s4 + $0x608] ss:$16 sps:$4 sm:$0xff]  }
  0xe9   :  { %2361 = vmatpush1.bf16.msra.mxu0 %v3590_v49  ;;  %v3653_v49 = vld [vmem:[%s5207_s4 + $0x624] ss:$16 sps:$4 sm:$0xff]  }
  0xea   :  { %2693 = vmatpush1.bf16.msra.mxu1 %v3593_v9  ;;  %2362 = vmatprep.subr.bf16.mxu0 %v3599_v57  ;;  %v3656_v9 = vld [vmem:[%s5207_s4 + $0x62c] ss:$16 sps:$4 sm:$0xff]   ;;  %v3659_v57 = vld [vmem:[%s5207_s4 + $0x644] ss:$16 sps:$4 sm:$0xff]  }
  0xeb   :  { %2336 = vmatmul.mubr.bf16.gmra.mrb[16].mxu0 %v478_v44  ;;  %2694 = vmatprep.subr.bf16.mxu1 %v3602_v43  ;;  %v3660_v43 = vld [vmem:[%s5207_s4 + $0x648] ss:$16 sps:$4 sm:$0xff]  }
  0xec   :  { %2668 = vmatmul.mubr.bf16.gmra.mrb[16].mxu1 %v478_v44  ;;  %2378 = vmatprep.mubr.bf16.mxu0 %v4327_v28  ;;  %v3668_v44 = vld [vmem:[%s5207_s4 + $0x66c] ss:$16 sps:$4 sm:$0xff]  }
  0xed   :  { %2363 = vmatpush1.bf16.msra.mxu0 %v3597_v46  ;;  %2710 = vmatprep.mubr.bf16.mxu1 %v4327_v28  ;;  %v3609_v28 = vld [vmem:[%s5207_s4 + $0x540] ss:$16 sps:$4 sm:$0xff]   ;;  %v3665_v46 = vld [vmem:[%s5207_s4 + $0x664] ss:$16 sps:$4 sm:$0xff]  }
  0xee   :  { %2695 = vmatpush1.bf16.msra.mxu1 %v3600_v51  ;;  %2364 = vmatprep.subr.bf16.mxu0 %v3605_v63  ;;  %v3663_v51 = vld [vmem:[%s5207_s4 + $0x660] ss:$16 sps:$4 sm:$0xff]   ;;  %v3666_v63 = vld [vmem:[%s5207_s4 + $0x668] ss:$16 sps:$4 sm:$0xff]  }
  0xef   :  { %2696 = vmatprep.subr.bf16.mxu1 %v3608_v52  ;;  %v3671_v52 = vld [vmem:[%s5207_s4 + $0x684] ss:$16 sps:$4 sm:$0xff]  }
  0xf1   :  { %2365 = vmatpush1.bf16.msra.mxu0 %v3603_v55  ;;  %v3672_v55 = vld [vmem:[%s5207_s4 + $0x688] ss:$16 sps:$4 sm:$0xff]  }
  0xf2   :  { %2697 = vmatpush1.bf16.msra.mxu1 %v3606_v62  ;;  %2366 = vmatprep.subr.bf16.mxu0 %v3611_v27  ;;  %v3677_v62 = vld [vmem:[%s5207_s4 + $0x6a4] ss:$16 sps:$4 sm:$0xff]   ;;  %v3680_v27 = vld [vmem:[%s5207_s4 + $0x6ac] ss:$16 sps:$4 sm:$0xff]  }
  0xf3   :  { %2698 = vmatprep.subr.bf16.mxu1 %v3614_v33  ;;  %v2923_v33 = vcombine.high %v4310_v18, %v4310_v18  ;;  %v3683_v18 = vld [vmem:[%s5207_s4 + $0x6c4] ss:$16 sps:$4 sm:$0xff]  }
  0xf5   :  { %2367 = vmatpush1.bf16.msra.mxu0 %v3609_v28  ;;  %v3675_v28 = vld [vmem:[%s5207_s4 + $0x6a0] ss:$16 sps:$4 sm:$0xff]  }
  0xf6   :  { %2699 = vmatpush1.bf16.msra.mxu1 %v3612_v13  ;;  %2368 = vmatprep.subr.bf16.mxu0 %v3617_v1  ;;  %v3678_v13 = vld [vmem:[%s5207_s4 + $0x6a8] ss:$16 sps:$4 sm:$0xff]   ;;  %v3681_v1 = vld [vmem:[%s5207_s4 + $0x6c0] ss:$16 sps:$4 sm:$0xff]  }
  0xf7   :  { %2700 = vmatprep.subr.bf16.mxu1 %v3620_v11  ;;  %v3684_v11 = vld [vmem:[%s5207_s4 + $0x6c8] ss:$16 sps:$4 sm:$0xff]  }
  0xf9   :  { %2369 = vmatpush1.bf16.msra.mxu0 %v3615_v14  ;;  %v3690_v14 = vld [vmem:[%s5207_s4 + $0x6e4] ss:$16 sps:$4 sm:$0xff]  }
  0xfa   :  { %2701 = vmatpush1.bf16.msra.mxu1 %v3618_v34  ;;  %2370 = vmatprep.subr.bf16.mxu0 %v3623_v56  ;;  %v5220_v34 = vrot.slane %v4290_v2, 3  ;;  %v3691_v2 = vld [vmem:[%s5207_s4 + $0x6e8] ss:$16 sps:$4 sm:$0xff]  }
  0xfb   :  { %2702 = vmatprep.subr.bf16.mxu1 %v3626_v59  ;;  %v3693_v59 = vld [vmem:[%s5207_s4 + $0x6ec] ss:$16 sps:$4 sm:$0xff]  }
  0xfd   :  { %2371 = vmatpush1.bf16.msra.mxu0 %v3621_v61  ;;  %v3688_v61 = vld [vmem:[%s5207_s4 + $0x6e0] ss:$16 sps:$4 sm:$0xff]  }
  0xfe   :  { %2703 = vmatpush1.bf16.msra.mxu1 %v3624_v3  ;;  %2372 = vmatprep.subr.bf16.mxu0 %v3629_v7  ;;  %v3697_v3 = vld [vmem:[%s5207_s4 + $0x704] ss:$16 sps:$4 sm:$0xff]   ;;  %v3695_v7 = vld [vmem:[%s5207_s4 + $0x700] ss:$16 sps:$4 sm:$0xff]  }
  0xff   :  { %2704 = vmatprep.subr.bf16.mxu1 %v3632_v29  ;;  %v3698_v29 = vld [vmem:[%s5207_s4 + $0x708] ss:$16 sps:$4 sm:$0xff]  }
 0x101   :  { %2373 = vmatpush1.bf16.msra.mxu0 %v3627_v35  ;;  %v3703_v35 = vld [vmem:[%s5207_s4 + $0x724] ss:$16 sps:$4 sm:$0xff]  }
 0x102   :  { %2705 = vmatpush1.bf16.msra.mxu1 %v3630_v12  ;;  %2374 = vmatprep.subr.bf16.mxu0 %v3635_v22  ;;  %v3706_v12 = vld [vmem:[%s5207_s4 + $0x72c] ss:$16 sps:$4 sm:$0xff]   ;;  %v3701_v22 = vld [vmem:[%s5207_s4 + $0x720] ss:$16 sps:$4 sm:$0xff]  }
 0x103   :  { %2706 = vmatprep.subr.bf16.mxu1 %v3638_v0  ;;  %v3704_v0 = vld [vmem:[%s5207_s4 + $0x728] ss:$16 sps:$4 sm:$0xff]  }
 0x105   :  { %2375 = vmatpush1.bf16.msra.mxu0 %v3633_v53  ;;  %v3709_v53 = vld [vmem:[%s5207_s4 + $0x744] ss:$16 sps:$4 sm:$0xff]  }
 0x106   :  { %2707 = vmatpush1.bf16.msra.mxu1 %v3636_v37  ;;  %2376 = vmatprep.subr.bf16.mxu0 %v3641_v8  ;;  %v3710_v37 = vld [vmem:[%s5207_s4 + $0x748] ss:$16 sps:$4 sm:$0xff]   ;;  %v3715_v8 = vld [vmem:[%s5207_s4 + $0x764] ss:$16 sps:$4 sm:$0xff]  }
 0x107   :  { %2708 = vmatprep.subr.bf16.mxu1 %v3644_v30  ;;  %v3718_v30 = vld [vmem:[%s5207_s4 + $0x76c] ss:$16 sps:$4 sm:$0xff]  }
 0x109   :  { %2377 = vmatpush1.bf16.msra.mxu0 %v3639_v20  ;;  %v3713_v20 = vld [vmem:[%s5207_s4 + $0x760] ss:$16 sps:$4 sm:$0xff]  }
 0x10a   :  { %2709 = vmatpush1.bf16.msra.mxu1 %v3642_v42  ;;  %2429 = vmatprep.subr.bf16.mxu0 %v3647_v6  ;;  %v3716_v42 = vld [vmem:[%s5207_s4 + $0x768] ss:$16 sps:$4 sm:$0xff]   ;;  %v3721_v6 = vld [vmem:[%s5207_s4 + $0x784] ss:$16 sps:$4 sm:$0xff]  }
 0x10b   :  { %2761 = vmatprep.subr.bf16.mxu1 %v3650_v19  ;;  %v3724_v19 = vld [vmem:[%s5207_s4 + $0x78c] ss:$16 sps:$4 sm:$0xff]  }
 0x10c   :  { %2379 = vmatmul.mubr.bf16.vlgmr.msra.gmra.mrb[0].mxu0 %v4318_v21 }
 0x10d   :  { %2711 = vmatmul.mubr.bf16.vlgmr.msra.gmra.mrb[0].mxu1 %v4318_v21  ;;  %2388 = vmatprep.mubr.bf16.mxu0 %v4330_v31  ;;  %v3662_v21 = vld [vmem:[%s5207_s4 + $0x64c] ss:$16 sps:$4 sm:$0xff]  }
 0x10e   :  { %2430 = vmatpush1.bf16.msra.mxu0 %v3645_v60  ;;  %2720 = vmatprep.mubr.bf16.mxu1 %v4330_v31  ;;  %v3657_v31 = vld [vmem:[%s5207_s4 + $0x640] ss:$16 sps:$4 sm:$0xff]  }
 0x10f   :  { %2762 = vmatpush1.bf16.msra.mxu1 %v3648_v39  ;;  %2431 = vmatprep.subr.bf16.mxu0 %v3653_v49  ;;  %v3719_v60 = vld [vmem:[%s5207_s4 + $0x780] ss:$16 sps:$4 sm:$0xff]   ;;  %v3722_v39 = vld [vmem:[%s5207_s4 + $0x788] ss:$16 sps:$4 sm:$0xff]   ;;  %v3727_v49 = vld [vmem:[%s5207_s4 + $0x7a4] ss:$16 sps:$4 sm:$0xff]  }
 0x110   :  { %2763 = vmatprep.subr.bf16.mxu1 %v3656_v9  ;;  %v3730_v9 = vld [vmem:[%s5207_s4 + $0x7ac] ss:$16 sps:$4 sm:$0xff]  }
 0x112   :  { %2432 = vmatpush1.bf16.msra.mxu0 %v3651_v41  ;;  %v3725_v41 = vld [vmem:[%s5207_s4 + $0x7a0] ss:$16 sps:$4 sm:$0xff]  }
 0x113   :  { %2764 = vmatpush1.bf16.msra.mxu1 %v3654_v54  ;;  %2433 = vmatprep.subr.bf16.mxu0 %v3659_v57  ;;  %v3728_v54 = vld [vmem:[%s5207_s4 + $0x7a8] ss:$16 sps:$4 sm:$0xff]   ;;  %v3733_v57 = vld [vmem:[%s5207_s4 + $0x7c4] ss:$16 sps:$4 sm:$0xff]  }
 0x114   :  { %2389 = vmatmul.mubr.bf16.gmra.mrb[4].mxu0 %v4333_v32  ;;  %2765 = vmatprep.subr.bf16.mxu1 %v3662_v21  ;;  %v3736_v21 = vld [vmem:[%s5207_s4 + $0x7cc] ss:$16 sps:$4 sm:$0xff]  }
 0x115   :  { %2721 = vmatmul.mubr.bf16.gmra.mrb[4].mxu1 %v4333_v32  ;;  %2398 = vmatprep.mubr.bf16.mxu0 %v4345_v36  ;;  %v3674_v32 = vld [vmem:[%s5207_s4 + $0x68c] ss:$16 sps:$4 sm:$0xff]  }
 0x116   :  { %2434 = vmatpush1.bf16.msra.mxu0 %v3657_v31  ;;  %2730 = vmatprep.mubr.bf16.mxu1 %v4345_v36  ;;  %v3669_v36 = vld [vmem:[%s5207_s4 + $0x680] ss:$16 sps:$4 sm:$0xff]  }
 0x117   :  { %2766 = vmatpush1.bf16.msra.mxu1 %v3660_v43  ;;  %2435 = vmatprep.subr.bf16.mxu0 %v3665_v46  ;;  %v3731_v31 = vld [vmem:[%s5207_s4 + $0x7c0] ss:$16 sps:$4 sm:$0xff]   ;;  %v3734_v43 = vld [vmem:[%s5207_s4 + $0x7c8] ss:$16 sps:$4 sm:$0xff]   ;;  %v3739_v46 = vld [vmem:[%s5207_s4 + $0x7e4] ss:$16 sps:$4 sm:$0xff]  }
 0x118   :  { %2767 = vmatprep.subr.bf16.mxu1 %v3668_v44  ;;  %v3742_v44 = vld [vmem:[%s5207_s4 + $0x7ec] ss:$16 sps:$4 sm:$0xff]  }
 0x11a   :  { %2436 = vmatpush1.bf16.msra.mxu0 %v3663_v51  ;;  %v3737_v51 = vld [vmem:[%s5207_s4 + $0x7e0] ss:$16 sps:$4 sm:$0xff]  }
 0x11b   :  { %2768 = vmatpush1.bf16.msra.mxu1 %v3666_v63  ;;  %2437 = vmatprep.subr.bf16.mxu0 %v3671_v52  ;;  %v3740_v63 = vld [vmem:[%s5207_s4 + $0x7e8] ss:$16 sps:$4 sm:$0xff]  }
 0x11c   :  { %2399 = vmatmul.mubr.bf16.gmra.mrb[8].mxu0 %v4348_v38  ;;  %2769 = vmatprep.subr.bf16.mxu1 %v3674_v32 }
 0x11d   :  { %2731 = vmatmul.mubr.bf16.gmra.mrb[8].mxu1 %v4348_v38  ;;  %2408 = vmatprep.mubr.bf16.mxu0 %v4359_v25  ;;  %v3686_v38 = vld [vmem:[%s5207_s4 + $0x6cc] ss:$16 sps:$4 sm:$0xff]  }
 0x11e   :  { %2438 = vmatpush1.bf16.msra.mxu0 %v3669_v36  ;;  %2740 = vmatprep.mubr.bf16.mxu1 %v4359_v25  ;;  %v528_v25 = vrot.slane %v2923_v33, 3 }
 0x11f   :  { %2770 = vmatpush1.bf16.msra.mxu1 %v3672_v55  ;;  %2439 = vmatprep.subr.bf16.mxu0 %v3677_v62 }
 0x120   :  { %2771 = vmatprep.subr.bf16.mxu1 %v3680_v27  ;;  %v529_v56 = vsel %vm507_vm0, %v5220_v34, %v528_v25 }
 0x122   :  { %2440 = vmatpush1.bf16.msra.mxu0 %v3675_v28 }
 0x123   :  { %2772 = vmatpush1.bf16.msra.mxu1 %v3678_v13  ;;  %2441 = vmatprep.subr.bf16.mxu0 %v3683_v18 }
 0x124   :  { %2409 = vmatmul.mubr.bf16.gmra.mrb[12].mxu0 %v4372_v58  ;;  %2773 = vmatprep.subr.bf16.mxu1 %v3686_v38 }
 0x125   :  { %2741 = vmatmul.mubr.bf16.gmra.mrb[12].mxu1 %v4372_v58  ;;  %2418 = vmatprep.mubr.bf16.mxu0 %v529_v56  ;;  %v3700_v58 = vld [vmem:[%s5207_s4 + $0x70c] ss:$16 sps:$4 sm:$0xff]  }
 0x126   :  { %2442 = vmatpush1.bf16.msra.mxu0 %v3681_v1  ;;  %2750 = vmatprep.mubr.bf16.mxu1 %v529_v56 }
 0x127   :  { %2774 = vmatpush1.bf16.msra.mxu1 %v3684_v11  ;;  %2443 = vmatprep.subr.bf16.mxu0 %v3690_v14 }
 0x128   :  { %2775 = vmatprep.subr.bf16.mxu1 %v3693_v59 }
 0x12a   :  { %2444 = vmatpush1.bf16.msra.mxu0 %v3688_v61 }
 0x12b   :  { %2776 = vmatpush1.bf16.msra.mxu1 %v3691_v2  ;;  %2445 = vmatprep.subr.bf16.mxu0 %v3697_v3 }
 0x12c   :  { %2419 = vmatmul.mubr.bf16.gmra.mrb[16].mxu0 %v4384_v10  ;;  %2777 = vmatprep.subr.bf16.mxu1 %v3700_v58 }
 0x12d   :  { %2751 = vmatmul.mubr.bf16.gmra.mrb[16].mxu1 %v4384_v10  ;;  %2461 = vmatprep.mubr.bf16.mxu0 %v4418_v23  ;;  %v3712_v10 = vld [vmem:[%s5207_s4 + $0x74c] ss:$16 sps:$4 sm:$0xff]  }
 0x12e   :  { %2446 = vmatpush1.bf16.msra.mxu0 %v3695_v7  ;;  %2793 = vmatprep.mubr.bf16.mxu1 %v4418_v23  ;;  %v3707_v23 = vld [vmem:[%s5207_s4 + $0x740] ss:$16 sps:$4 sm:$0xff]  }
 0x12f   :  { %2778 = vmatpush1.bf16.msra.mxu1 %v3698_v29  ;;  %2447 = vmatprep.subr.bf16.mxu0 %v3703_v35 }
 0x130   :  { %2779 = vmatprep.subr.bf16.mxu1 %v3706_v12 }
 0x132   :  { %2448 = vmatpush1.bf16.msra.mxu0 %v3701_v22 }
 0x133   :  { %2780 = vmatpush1.bf16.msra.mxu1 %v3704_v0  ;;  %2449 = vmatprep.subr.bf16.mxu0 %v3709_v53 }
 0x134   :  { %2781 = vmatprep.subr.bf16.mxu1 %v3712_v10 }
 0x136   :  { %2450 = vmatpush1.bf16.msra.mxu0 %v3707_v23 }
 0x137   :  { %2782 = vmatpush1.bf16.msra.mxu1 %v3710_v37  ;;  %2451 = vmatprep.subr.bf16.mxu0 %v3715_v8 }
 0x138   :  { %2783 = vmatprep.subr.bf16.mxu1 %v3718_v30 }
 0x13a   :  { %2452 = vmatpush1.bf16.msra.mxu0 %v3713_v20 }
 0x13b   :  { %2784 = vmatpush1.bf16.msra.mxu1 %v3716_v42  ;;  %2453 = vmatprep.subr.bf16.mxu0 %v3721_v6 }
 0x13c   :  { %2785 = vmatprep.subr.bf16.mxu1 %v3724_v19 }
 0x13e   :  { %2454 = vmatpush1.bf16.msra.mxu0 %v3719_v60 }
 0x13f   :  { %2786 = vmatpush1.bf16.msra.mxu1 %v3722_v39  ;;  %2455 = vmatprep.subr.bf16.mxu0 %v3727_v49 }
 0x140   :  { %2787 = vmatprep.subr.bf16.mxu1 %v3730_v9 }
 0x142   :  { %2456 = vmatpush1.bf16.msra.mxu0 %v3725_v41 }
 0x143   :  { %2788 = vmatpush1.bf16.msra.mxu1 %v3728_v54  ;;  %2457 = vmatprep.subr.bf16.mxu0 %v3733_v57 }
 0x144   :  { %2789 = vmatprep.subr.bf16.mxu1 %v3736_v21 }
 0x146   :  { %2458 = vmatpush1.bf16.msra.mxu0 %v3731_v31 }
 0x147   :  { %2790 = vmatpush1.bf16.msra.mxu1 %v3734_v43  ;;  %2459 = vmatprep.subr.bf16.mxu0 %v3739_v46 }
 0x148   :  { %2791 = vmatprep.subr.bf16.mxu1 %v3742_v44 }
 0x14a   :  { %2460 = vmatpush1.bf16.msra.mxu0 %v3737_v51 }
 0x14b   :  { %2792 = vmatpush1.bf16.msra.mxu1 %v3740_v63 }
 0x14d   :  { %2462 = vmatmul.mubr.bf16.vlgmr.msra.gmra.mrb[0].mxu0 %v4439_v4 }
 0x14e   :  { %2794 = vmatmul.mubr.bf16.vlgmr.msra.gmra.mrb[0].mxu1 %v4439_v4  ;;  %2471 = vmatprep.mubr.bf16.mxu0 %v4460_v5  ;;  %v878_v4 = vld [vmem:[%s5211_s5] sm:$0xf] }
 0x14f   :  { %2803 = vmatprep.mubr.bf16.mxu1 %v4460_v5  ;;  %v890_v5 = vsub.s32 2, %v4020_v15 }
 0x155   :  { %2472 = vmatmul.mubr.bf16.gmra.mrb[4].mxu0 %v4471_v26 }
 0x156   :  { %2804 = vmatmul.mubr.bf16.gmra.mrb[4].mxu1 %v4471_v26  ;;  %2481 = vmatprep.mubr.bf16.mxu0 %v4474_v24  ;;  %v894_v26 = vsub.s32 3, %v4020_v15 }
 0x157   :  { %2813 = vmatprep.mubr.bf16.mxu1 %v4474_v24  ;;  %v5037_v24 = vrot.slane %v878_v4, %v4023_v16 }
 0x15d   :  { %2482 = vmatmul.mubr.bf16.gmra.mrb[8].mxu0 %v4479_v40 }
 0x15e   :  { %2814 = vmatmul.mubr.bf16.gmra.mrb[8].mxu1 %v4479_v40  ;;  %2491 = vmatprep.mubr.bf16.mxu0 %v4482_v50  ;;  %v5039_v40 = vrot.slane %v878_v4, %v890_v5 }
 0x15f   :  { %2823 = vmatprep.mubr.bf16.mxu1 %v4482_v50  ;;  %v5042_v50 = vrot.slane %v878_v4, %v4026_v17 }
 0x165   :  { %2492 = vmatmul.mubr.bf16.gmra.mrb[12].mxu0 %v4500_v45 }
 0x166   :  { %2824 = vmatmul.mubr.bf16.gmra.mrb[12].mxu1 %v4500_v45  ;;  %2501 = vmatprep.mubr.bf16.mxu0 %v4488_v47 }
 0x167   :  { %2833 = vmatprep.mubr.bf16.mxu1 %v4488_v47  ;;  %v5044_v47 = vrot.slane %v878_v4, %v894_v26 }
 0x16d   :  { %2502 = vmatmul.mubr.bf16.gmra.mrb[16].mxu0 %v4503_v48 }
 0x16e   :  { %2834 = vmatmul.mubr.bf16.gmra.mrb[16].mxu1 %v4503_v48 }
 0x220   :  { %v2463_v45 = vpop.f32.mrb[0].mxu0 }
 0x221   :  { %v3192_v48 = vadd.f32 %v2463_v45, %v5037_v24  ;;  %v2795_v52 = vpop.f32.mrb[0].mxu1  ;;  %v2465_v32 = vpop.f32.mrb[1].mxu0 }
 0x222   :  { %v3212_v36 = vadd.f32 %v2795_v52, %v5039_v40  ;;  %v3193_v55 = vadd.f32 %v2465_v32, %v5042_v50  ;;  %v2797_v15 = vpop.f32.mrb[1].mxu1  ;;  %v2467_v62 = vpop.f32.mrb[2].mxu0 }
 0x223   :  { %2844 = vst [vmem:[%s5212_s6] sm:$0xff] %v3192_v48  ;;  %v3213_v16 = vadd.f32 %v2797_v15, %v5044_v47  ;;  %v3194_v17 = vadd.f32 %v2467_v62, %v5037_v24  ;;  %v2799_v27 = vpop.f32.mrb[2].mxu1  ;;  %v2469_v33 = vpop.f32.mrb[3].mxu0 }
 0x224   :  { %2846 = vst [vmem:[%s5212_s6 + $0x10] sm:$0xff] %v3212_v36  ;;  %2845 = vst [vmem:[%s5212_s6 + $0x8] sm:$0xff] %v3193_v55  ;;  %v3214_v28 = vadd.f32 %v2799_v27, %v5039_v40  ;;  %v3195_v13 = vadd.f32 %v2469_v33, %v5042_v50  ;;  %v2801_v18 = vpop.f32.mrb[3].mxu1 }
 0x225   :  { %2847 = vst [vmem:[%s5212_s6 + $0x18] sm:$0xff] %v3213_v16  ;;  %2848 = vst [vmem:[%s5212_s6 + $0x20] sm:$0xff] %v3194_v17  ;;  %v3215_v38 = vadd.f32 %v2801_v18, %v5044_v47 }
 0x226   :  { %2850 = vst [vmem:[%s5212_s6 + $0x30] sm:$0xff] %v3214_v28  ;;  %2849 = vst [vmem:[%s5212_s6 + $0x28] sm:$0xff] %v3195_v13 }
 0x227   :  { %2851 = vst [vmem:[%s5212_s6 + $0x38] sm:$0xff] %v3215_v38 }
 0x228   :  { %v2473_v25 = vpop.f32.mrb[4].mxu0 }
 0x229   :  { %v3196_v1 = vadd.f32 %v2473_v25, %v5037_v24  ;;  %v2805_v11 = vpop.f32.mrb[4].mxu1  ;;  %v2475_v14 = vpop.f32.mrb[5].mxu0 }
 0x22a   :  { %v3216_v34 = vadd.f32 %v2805_v11, %v5039_v40  ;;  %v3197_v56 = vadd.f32 %v2475_v14, %v5042_v50  ;;  %v2807_v59 = vpop.f32.mrb[5].mxu1  ;;  %v2477_v61 = vpop.f32.mrb[6].mxu0 }
 0x22b   :  { %2852 = vst [vmem:[%s5212_s6 + $0x40] sm:$0xff] %v3196_v1  ;;  %v3217_v2 = vadd.f32 %v2807_v59, %v5044_v47  ;;  %v3198_v3 = vadd.f32 %v2477_v61, %v5037_v24  ;;  %v2809_v58 = vpop.f32.mrb[6].mxu1  ;;  %v2479_v7 = vpop.f32.mrb[7].mxu0 }
 0x22c   :  { %2854 = vst [vmem:[%s5212_s6 + $0x50] sm:$0xff] %v3216_v34  ;;  %2853 = vst [vmem:[%s5212_s6 + $0x48] sm:$0xff] %v3197_v56  ;;  %v3218_v29 = vadd.f32 %v2809_v58, %v5039_v40  ;;  %v3199_v35 = vadd.f32 %v2479_v7, %v5042_v50  ;;  %v2811_v12 = vpop.f32.mrb[7].mxu1 }
 0x22d   :  { %2855 = vst [vmem:[%s5212_s6 + $0x58] sm:$0xff] %v3217_v2  ;;  %2856 = vst [vmem:[%s5212_s6 + $0x60] sm:$0xff] %v3198_v3  ;;  %v3219_v22 = vadd.f32 %v2811_v12, %v5044_v47 }
 0x22e   :  { %2858 = vst [vmem:[%s5212_s6 + $0x70] sm:$0xff] %v3218_v29  ;;  %2857 = vst [vmem:[%s5212_s6 + $0x68] sm:$0xff] %v3199_v35 }
 0x22f   :  { %2859 = vst [vmem:[%s5212_s6 + $0x78] sm:$0xff] %v3219_v22 }
 0x230   :  { %v2483_v0 = vpop.f32.mrb[8].mxu0 }
 0x231   :  { %v3200_v53 = vadd.f32 %v2483_v0, %v5037_v24  ;;  %v2815_v10 = vpop.f32.mrb[8].mxu1  ;;  %v2485_v23 = vpop.f32.mrb[9].mxu0 }
 0x232   :  { %v3220_v37 = vadd.f32 %v2815_v10, %v5039_v40  ;;  %v3201_v8 = vadd.f32 %v2485_v23, %v5042_v50  ;;  %v2817_v30 = vpop.f32.mrb[9].mxu1  ;;  %v2487_v20 = vpop.f32.mrb[10].mxu0 }
 0x233   :  { %2860 = vst [vmem:[%s5212_s6 + $0x80] sm:$0xff] %v3200_v53  ;;  %v3221_v42 = vadd.f32 %v2817_v30, %v5044_v47  ;;  %v3202_v6 = vadd.f32 %v2487_v20, %v5037_v24  ;;  %v2819_v19 = vpop.f32.mrb[10].mxu1  ;;  %v2489_v60 = vpop.f32.mrb[11].mxu0 }
 0x234   :  { %2862 = vst [vmem:[%s5212_s6 + $0x90] sm:$0xff] %v3220_v37  ;;  %2861 = vst [vmem:[%s5212_s6 + $0x88] sm:$0xff] %v3201_v8  ;;  %v3222_v39 = vadd.f32 %v2819_v19, %v5039_v40  ;;  %v3203_v49 = vadd.f32 %v2489_v60, %v5042_v50  ;;  %v2821_v9 = vpop.f32.mrb[11].mxu1 }
 0x235   :  { %2863 = vst [vmem:[%s5212_s6 + $0x98] sm:$0xff] %v3221_v42  ;;  %2864 = vst [vmem:[%s5212_s6 + $0xa0] sm:$0xff] %v3202_v6  ;;  %v3223_v41 = vadd.f32 %v2821_v9, %v5044_v47 }
 0x236   :  { %2866 = vst [vmem:[%s5212_s6 + $0xb0] sm:$0xff] %v3222_v39  ;;  %2865 = vst [vmem:[%s5212_s6 + $0xa8] sm:$0xff] %v3203_v49 }
 0x237   :  { %2867 = vst [vmem:[%s5212_s6 + $0xb8] sm:$0xff] %v3223_v41 }
 0x238   :  { %v2493_v54 = vpop.f32.mrb[12].mxu0 }
 0x239   :  { %v3204_v57 = vadd.f32 %v2493_v54, %v5037_v24  ;;  %v2825_v21 = vpop.f32.mrb[12].mxu1  ;;  %v2495_v31 = vpop.f32.mrb[13].mxu0 }
 0x23a   :  { %v3224_v43 = vadd.f32 %v2825_v21, %v5039_v40  ;;  %v3205_v46 = vadd.f32 %v2495_v31, %v5042_v50  ;;  %v2827_v44 = vpop.f32.mrb[13].mxu1  ;;  %v2497_v51 = vpop.f32.mrb[14].mxu0 }
 0x23b   :  { %2868 = vst [vmem:[%s5212_s6 + $0xc0] sm:$0xff] %v3204_v57  ;;  %v3225_v63 = vadd.f32 %v2827_v44, %v5044_v47  ;;  %v3206_v4 = vadd.f32 %v2497_v51, %v5037_v24  ;;  %v2829_v5 = vpop.f32.mrb[14].mxu1  ;;  %v2499_v26 = vpop.f32.mrb[15].mxu0 }
 0x23c   :  { %2870 = vst [vmem:[%s5212_s6 + $0xd0] sm:$0xff] %v3224_v43  ;;  %2869 = vst [vmem:[%s5212_s6 + $0xc8] sm:$0xff] %v3205_v46  ;;  %v3226_v45 = vadd.f32 %v2829_v5, %v5039_v40  ;;  %v3207_v48 = vadd.f32 %v2499_v26, %v5042_v50  ;;  %v2831_v52 = vpop.f32.mrb[15].mxu1 }
 0x23d   :  { %2871 = vst [vmem:[%s5212_s6 + $0xd8] sm:$0xff] %v3225_v63  ;;  %2872 = vst [vmem:[%s5212_s6 + $0xe0] sm:$0xff] %v3206_v4  ;;  %v3227_v32 = vadd.f32 %v2831_v52, %v5044_v47 }
 0x23e   :  { %2874 = vst [vmem:[%s5212_s6 + $0xf0] sm:$0xff] %v3226_v45  ;;  %2873 = vst [vmem:[%s5212_s6 + $0xe8] sm:$0xff] %v3207_v48 }
 0x23f   :  { %2875 = vst [vmem:[%s5212_s6 + $0xf8] sm:$0xff] %v3227_v32 }
 0x240   :  { %v2503_v36 = vpop.f32.mrb[16].mxu0 }
 0x241   :  { %v3208_v55 = vadd.f32 %v2503_v36, %v5037_v24  ;;  %v2835_v15 = vpop.f32.mrb[16].mxu1  ;;  %v2505_v62 = vpop.f32.mrb[17].mxu0 }
 0x242   :  { %v3228_v16 = vadd.f32 %v2835_v15, %v5039_v40  ;;  %v3209_v17 = vadd.f32 %v2505_v62, %v5042_v50  ;;  %v2837_v27 = vpop.f32.mrb[17].mxu1  ;;  %v2507_v33 = vpop.f32.mrb[18].mxu0 }
 0x243   :  { %2876 = vst [vmem:[%s5212_s6 + $0x100] sm:$0xff] %v3208_v55  ;;  %v3229_v28 = vadd.f32 %v2837_v27, %v5044_v47  ;;  %v3210_v13 = vadd.f32 %v2507_v33, %v5037_v24  ;;  %v2839_v18 = vpop.f32.mrb[18].mxu1  ;;  %v2509_v38 = vpop.f32.mrb[19].mxu0 }
 0x244   :  { %2878 = vst [vmem:[%s5212_s6 + $0x110] sm:$0xff] %v3228_v16  ;;  %2877 = vst [vmem:[%s5212_s6 + $0x108] sm:$0xff] %v3209_v17  ;;  %v3230_v25 = vadd.f32 %v2839_v18, %v5039_v40  ;;  %v3211_v1 = vadd.f32 %v2509_v38, %v5042_v50  ;;  %v2841_v11 = vpop.f32.mrb[19].mxu1 }
 0x245   :  { %2879 = vst [vmem:[%s5212_s6 + $0x118] sm:$0xff] %v3229_v28  ;;  %2880 = vst [vmem:[%s5212_s6 + $0x120] sm:$0xff] %v3210_v13  ;;  %v3231_v24 = vadd.f32 %v2841_v11, %v5044_v47 }
 0x246   :  { %2882 = vst [vmem:[%s5212_s6 + $0x130] sm:$0xff] %v3230_v25  ;;  %2881 = vst [vmem:[%s5212_s6 + $0x128] sm:$0xff] %v3211_v1 }
 0x247   :  { %2883 = vst [vmem:[%s5212_s6 + $0x138] sm:$0xff] %v3231_v24 }

// kernel: tile.43
= control target key start
LH: loop header
LB: loop body
LE: loop exit
PB: predicated region body
PF: predicated region fallthrough
CT: control target
= control target key end

     0   :  { %s22_s0 = inlined_call_operand.vmem [shape: f32[64], index: 0, kind: input, shape index: {}]   ;;  %s23_s1 = inlined_call_operand.vmem [shape: f32[4,64], index: 1, kind: output, shape index: {}]  }
   0x1   :  { %v4_v0 = vld [vmem:[%s22_s0] ss:$0 sm:$0xff] }
   0x2   :  { %5 = vst [vmem:[%s23_s1] sm:$0xf] %v4_v0 }

// kernel: tile.44
= control target key start
LH: loop header
LB: loop body
LE: loop exit
PB: predicated region body
PF: predicated region fallthrough
CT: control target
= control target key end

     0   :  { %s6_s8 = smov 3  ;;  %vm8_vm0 = vcmask 523264   ;;  %s30_s9 = smov 64   ;;  %vm15_vm1 = vcmask 1048064   ;;  %s50_s0 = inlined_call_operand.vmem [shape: f32[4,64], index: 0, kind: input, shape index: {}]   ;;  %s51_s1 = inlined_call_operand.vmem [shape: f32[1,256], index: 1, kind: output, shape index: {}]  }
   0x1   :  { %v4_v0 = vld [vmem:[%s50_s0] sm:$0xf]  ;;  %s11_s0 = smov 3 }
   0x2   :  { %5 = vst [vmem:[#allocation1] sm:$0xf] %v4_v0 }
   0x9   :  { %v12_v1 = vld [vmem:[#allocation1 + $0x1] ss:$2 sm:%s11_s0]   ;;  %v7_v2 = vld [vmem:[#allocation1] ss:$2 sm:%s6_s8]  }
   0xa   :  { %13 = vrot.lane.b32.xlu0 %v12_v1, %s30_s9  ;;  %9 = vst.msk [vmem:[#allocation0] ss:$8 sm:$0x3] %vm8_vm0, %v7_v2  }
  0x7c   :  { %v14_v3 = vpop.permute.xlu0 %13  }
  0x7d   :  { %16 = vst.msk [vmem:[#allocation0] ss:$8 sm:$0x3] %vm15_vm1, %v14_v3  }
  0x84   :  { %v20_v4 = vld [vmem:[#allocation0] sm:$0x1]  ;;  %v24_v5 = vld [vmem:[#allocation0 + $0x8] sm:$0x1] }
  0x85   :  { %22 = vst [vmem:[%s51_s1] sm:$0x1] %v20_v4  ;;  %28 = vst [vmem:[%s51_s1 + $0x1] sm:$0x1] %v24_v5 }

// kernel: generator_forward.6
= control target key start
LH: loop header
LB: loop body
LE: loop exit
PB: predicated region body
PF: predicated region fallthrough
CT: control target
= control target key end

     0   :  { %v1684_v0 = vmov 0   ;;  %vm381_vm0 = vsmask.f32 7424  ;;  %vm558_vm1 = vsmask.f32 2304  ;;  %vm517_vm2 = vcmask 1042432   ;;  %s2488_s1 = inlined_call_operand.vmem [shape: f32[208,1], index: 1, kind: input, shape index: {}]   ;;  %s2489_s4 = inlined_call_operand.vmem [shape: bf16[512,256], index: 4, kind: input, shape index: {}]   ;;  %s2490_s2 = inlined_call_operand.vmem [shape: f32[1,128], index: 2, kind: input, shape index: {}]   ;;  %s2491_s0 = inlined_call_operand.vmem [shape: f32[208,128], index: 0, kind: input, shape index: {}]   ;;  %s2492_s3 = inlined_call_operand.vmem [shape: f32[1,128], index: 3, kind: input, shape index: {}]   ;;  %s2493_s5 = inlined_call_operand.vmem [shape: f32[1,256], index: 5, kind: input, shape index: {}]   ;;  %s2494_s6 = inlined_call_operand.vmem [shape: f32[208,256], index: 6, kind: output, shape index: {}]  }
   0x1   :  { %1587 = vset.pattern.permute.xlu1 %v1684_v0  ;;  %350 = vst [vmem:[#allocation2 + $0x68] sm:$0xff] %v1684_v0  ;;  %1586 = vset.pattern.permute.xlu0 %v1684_v0  ;;  %v144_v1 = vld [vmem:[%s2488_s1 + $0x10] sm:$0xff]  ;;  %v142_v2 = vld [vmem:[%s2488_s1] sm:$0xff]  ;;  %v145_v3 = vld [vmem:[%s2488_s1 + $0x18] sm:$0xff] }
   0x2   :  { %180 = vperm.xlu1 %1587, %v144_v1   ;;  %170 = vperm.xlu0 %1586, %v142_v2   ;;  %v143_v4 = vld [vmem:[%s2488_s1 + $0x8] sm:$0xff]  ;;  %v146_v6 = vld [vmem:[%s2488_s1 + $0x20] sm:$0xff]  ;;  %v149_v7 = vld [vmem:[%s2488_s1 + $0x38] sm:$0xff] }
   0x3   :  { %v147_v5 = vld [vmem:[%s2488_s1 + $0x28] sm:$0xff]  ;;  %v148_v8 = vld [vmem:[%s2488_s1 + $0x30] sm:$0xff]  ;;  %v150_v14 = vld [vmem:[%s2488_s1 + $0x40] sm:$0xff] }
   0x4   :  { %v1588_v9 = vld [vmem:[%s2489_s4 + $0x4] ss:$8 sps:$4 sm:$0xff]   ;;  %v1592_v11 = vld [vmem:[%s2489_s4] ss:$8 sps:$4 sm:$0xff]   ;;  %v1594_v15 = vld [vmem:[%s2489_s4 + $0x14] ss:$8 sps:$4 sm:$0xff]  }
   0x5   :  { %v1590_v10 = vld [vmem:[%s2489_s4 + $0x104] ss:$8 sps:$4 sm:$0xff]   ;;  %1033 = vmatprep.subr.bf16.mxu1 %v1588_v9  ;;  %v1593_v12 = vld [vmem:[%s2489_s4 + $0x100] ss:$8 sps:$4 sm:$0xff]   ;;  %v1596_v16 = vld [vmem:[%s2489_s4 + $0x114] ss:$8 sps:$4 sm:$0xff]  }
   0x6   :  { %185 = vperm.xlu1 %1587, %v145_v3   ;;  %175 = vperm.xlu0 %1586, %v143_v4   ;;  %v151_v13 = vld [vmem:[%s2488_s1 + $0x48] sm:$0xff]  ;;  %v1598_v17 = vld [vmem:[%s2489_s4 + $0x10] ss:$8 sps:$4 sm:$0xff]   ;;  %v1606_v25 = vld [vmem:[%s2489_s4 + $0x34] ss:$8 sps:$4 sm:$0xff]  }
   0x7   :  { %1196 = vmatprep.subr.bf16.mxu0 %v1590_v10  ;;  %1034 = vmatpush1.bf16.msra.mxu1 %v1592_v11  ;;  %v1599_v18 = vld [vmem:[%s2489_s4 + $0x110] ss:$8 sps:$4 sm:$0xff]   ;;  %v1600_v19 = vld [vmem:[%s2489_s4 + $0x24] ss:$8 sps:$4 sm:$0xff]   ;;  %v1604_v22 = vld [vmem:[%s2489_s4 + $0x20] ss:$8 sps:$4 sm:$0xff]  }
   0x8   :  { %1197 = vmatpush1.bf16.msra.mxu0 %v1593_v12  ;;  %1035 = vmatprep.subr.bf16.mxu1 %v1594_v15  ;;  %v1602_v20 = vld [vmem:[%s2489_s4 + $0x124] ss:$8 sps:$4 sm:$0xff]   ;;  %v153_v21 = vld [vmem:[%s2488_s1 + $0x58] sm:$0xff]  ;;  %v152_v23 = vld [vmem:[%s2488_s1 + $0x50] sm:$0xff] }
   0x9   :  { %1198 = vmatprep.subr.bf16.mxu0 %v1596_v16  ;;  %v1605_v24 = vld [vmem:[%s2489_s4 + $0x120] ss:$8 sps:$4 sm:$0xff]   ;;  %v1608_v26 = vld [vmem:[%s2489_s4 + $0x134] ss:$8 sps:$4 sm:$0xff]   ;;  %v1610_v27 = vld [vmem:[%s2489_s4 + $0x30] ss:$8 sps:$4 sm:$0xff]  }
   0xa   :  { %195 = vperm.xlu1 %1587, %v147_v5   ;;  %190 = vperm.xlu0 %1586, %v146_v6   ;;  %v155_v28 = vld [vmem:[%s2488_s1 + $0x68] sm:$0xff]  ;;  %v154_v29 = vld [vmem:[%s2488_s1 + $0x60] sm:$0xff]  ;;  %v1611_v30 = vld [vmem:[%s2489_s4 + $0x130] ss:$8 sps:$4 sm:$0xff]  }
   0xb   :  { %1036 = vmatpush1.bf16.msra.mxu1 %v1598_v17  ;;  %v1612_v31 = vld [vmem:[%s2489_s4 + $0x44] ss:$8 sps:$4 sm:$0xff]   ;;  %v157_v33 = vld [vmem:[%s2488_s1 + $0x78] sm:$0xff]  ;;  %v1616_v34 = vld [vmem:[%s2489_s4 + $0x40] ss:$8 sps:$4 sm:$0xff]  }
   0xc   :  { %1199 = vmatpush1.bf16.msra.mxu0 %v1599_v18  ;;  %1037 = vmatprep.subr.bf16.mxu1 %v1600_v19  ;;  %v1614_v32 = vld [vmem:[%s2489_s4 + $0x144] ss:$8 sps:$4 sm:$0xff]   ;;  %v156_v35 = vld [vmem:[%s2488_s1 + $0x70] sm:$0xff]  ;;  %v1617_v36 = vld [vmem:[%s2489_s4 + $0x140] ss:$8 sps:$4 sm:$0xff]  }
   0xd   :  { %1200 = vmatprep.subr.bf16.mxu0 %v1602_v20  ;;  %v1618_v37 = vld [vmem:[%s2489_s4 + $0x54] ss:$8 sps:$4 sm:$0xff]   ;;  %v1622_v39 = vld [vmem:[%s2489_s4 + $0x50] ss:$8 sps:$4 sm:$0xff]   ;;  %v159_v40 = vld [vmem:[%s2488_s1 + $0x88] sm:$0xff] }
   0xe   :  { %205 = vperm.xlu1 %1587, %v149_v7   ;;  %200 = vperm.xlu0 %1586, %v148_v8   ;;  %v1620_v38 = vld [vmem:[%s2489_s4 + $0x154] ss:$8 sps:$4 sm:$0xff]   ;;  %v158_v41 = vld [vmem:[%s2488_s1 + $0x80] sm:$0xff]  ;;  %v1623_v42 = vld [vmem:[%s2489_s4 + $0x150] ss:$8 sps:$4 sm:$0xff]  }
   0xf   :  { %1038 = vmatpush1.bf16.msra.mxu1 %v1604_v22  ;;  %v1624_v43 = vld [vmem:[%s2489_s4 + $0x64] ss:$8 sps:$4 sm:$0xff]   ;;  %v161_v45 = vld [vmem:[%s2488_s1 + $0x98] sm:$0xff]  ;;  %v1628_v46 = vld [vmem:[%s2489_s4 + $0x60] ss:$8 sps:$4 sm:$0xff]  }
  0x10   :  { %1201 = vmatpush1.bf16.msra.mxu0 %v1605_v24  ;;  %1039 = vmatprep.subr.bf16.mxu1 %v1606_v25  ;;  %v1626_v44 = vld [vmem:[%s2489_s4 + $0x164] ss:$8 sps:$4 sm:$0xff]   ;;  %v160_v47 = vld [vmem:[%s2488_s1 + $0x90] sm:$0xff]  ;;  %v1629_v48 = vld [vmem:[%s2489_s4 + $0x160] ss:$8 sps:$4 sm:$0xff]  }
  0x11   :  { %1202 = vmatprep.subr.bf16.mxu0 %v1608_v26  ;;  %v1630_v49 = vld [vmem:[%s2489_s4 + $0x74] ss:$8 sps:$4 sm:$0xff]   ;;  %v163_v51 = vld [vmem:[%s2488_s1 + $0xa8] sm:$0xff]  ;;  %v1634_v52 = vld [vmem:[%s2489_s4 + $0x70] ss:$8 sps:$4 sm:$0xff]  }
  0x12   :  { %215 = vperm.xlu1 %1587, %v151_v13   ;;  %210 = vperm.xlu0 %1586, %v150_v14   ;;  %v1632_v50 = vld [vmem:[%s2489_s4 + $0x174] ss:$8 sps:$4 sm:$0xff]   ;;  %v162_v53 = vld [vmem:[%s2488_s1 + $0xa0] sm:$0xff]  ;;  %v1635_v54 = vld [vmem:[%s2489_s4 + $0x170] ss:$8 sps:$4 sm:$0xff]  }
  0x13   :  { %1040 = vmatpush1.bf16.msra.mxu1 %v1610_v27  ;;  %v1636_v55 = vld [vmem:[%s2489_s4 + $0x84] ss:$8 sps:$4 sm:$0xff]   ;;  %v1640_v57 = vld [vmem:[%s2489_s4 + $0x80] ss:$8 sps:$4 sm:$0xff]   ;;  %v165_v58 = vld [vmem:[%s2488_s1 + $0xb8] sm:$0xff] }
  0x14   :  { %1203 = vmatpush1.bf16.msra.mxu0 %v1611_v30  ;;  %1041 = vmatprep.subr.bf16.mxu1 %v1612_v31  ;;  %v1638_v56 = vld [vmem:[%s2489_s4 + $0x184] ss:$8 sps:$4 sm:$0xff]   ;;  %v164_v59 = vld [vmem:[%s2488_s1 + $0xb0] sm:$0xff]  ;;  %v1641_v60 = vld [vmem:[%s2489_s4 + $0x180] ss:$8 sps:$4 sm:$0xff]  }
  0x15   :  { %1204 = vmatprep.subr.bf16.mxu0 %v1614_v32  ;;  %v1642_v61 = vld [vmem:[%s2489_s4 + $0x94] ss:$8 sps:$4 sm:$0xff]   ;;  %v1646_v63 = vld [vmem:[%s2489_s4 + $0x90] ss:$8 sps:$4 sm:$0xff]   ;;  %v167_v0 = vld [vmem:[%s2488_s1 + $0xc8] sm:$0xff] }
  0x16   :  { %225 = vperm.xlu1 %1587, %v153_v21   ;;  %220 = vperm.xlu0 %1586, %v152_v23   ;;  %v1644_v62 = vld [vmem:[%s2489_s4 + $0x194] ss:$8 sps:$4 sm:$0xff]   ;;  %v166_v1 = vld [vmem:[%s2488_s1 + $0xc0] sm:$0xff]  ;;  %v1647_v2 = vld [vmem:[%s2489_s4 + $0x190] ss:$8 sps:$4 sm:$0xff]  }
  0x17   :  { %1042 = vmatpush1.bf16.msra.mxu1 %v1616_v34  ;;  %v1648_v3 = vld [vmem:[%s2489_s4 + $0xa4] ss:$8 sps:$4 sm:$0xff]   ;;  %v1652_v5 = vld [vmem:[%s2489_s4 + $0xa0] ss:$8 sps:$4 sm:$0xff]   ;;  %v1654_v6 = vld [vmem:[%s2489_s4 + $0xb4] ss:$8 sps:$4 sm:$0xff]  }
  0x18   :  { %1205 = vmatpush1.bf16.msra.mxu0 %v1617_v36  ;;  %1043 = vmatprep.subr.bf16.mxu1 %v1618_v37  ;;  %v1650_v4 = vld [vmem:[%s2489_s4 + $0x1a4] ss:$8 sps:$4 sm:$0xff]   ;;  %v1653_v7 = vld [vmem:[%s2489_s4 + $0x1a0] ss:$8 sps:$4 sm:$0xff]   ;;  %v1656_v8 = vld [vmem:[%s2489_s4 + $0x1b4] ss:$8 sps:$4 sm:$0xff]  }
  0x19   :  { %1206 = vmatprep.subr.bf16.mxu0 %v1620_v38  ;;  %v1658_v9 = vld [vmem:[%s2489_s4 + $0xb0] ss:$8 sps:$4 sm:$0xff]   ;;  %v1660_v10 = vld [vmem:[%s2489_s4 + $0xc4] ss:$8 sps:$4 sm:$0xff]   ;;  %v1664_v13 = vld [vmem:[%s2489_s4 + $0xc0] ss:$8 sps:$4 sm:$0xff]  }
  0x1a   :  { %235 = vperm.xlu1 %1587, %v155_v28   ;;  %230 = vperm.xlu0 %1586, %v154_v29   ;;  %v1659_v11 = vld [vmem:[%s2489_s4 + $0x1b0] ss:$8 sps:$4 sm:$0xff]   ;;  %v1662_v12 = vld [vmem:[%s2489_s4 + $0x1c4] ss:$8 sps:$4 sm:$0xff]   ;;  %v1666_v14 = vld [vmem:[%s2489_s4 + $0xd4] ss:$8 sps:$4 sm:$0xff]  }
  0x1b   :  { %1044 = vmatpush1.bf16.msra.mxu1 %v1622_v39  ;;  %v1665_v15 = vld [vmem:[%s2489_s4 + $0x1c0] ss:$8 sps:$4 sm:$0xff]   ;;  %v1668_v16 = vld [vmem:[%s2489_s4 + $0x1d4] ss:$8 sps:$4 sm:$0xff]   ;;  %v1670_v17 = vld [vmem:[%s2489_s4 + $0xd0] ss:$8 sps:$4 sm:$0xff]  }
  0x1c   :  { %1207 = vmatpush1.bf16.msra.mxu0 %v1623_v42  ;;  %1045 = vmatprep.subr.bf16.mxu1 %v1624_v43  ;;  %v1672_v18 = vld [vmem:[%s2489_s4 + $0xe4] ss:$8 sps:$4 sm:$0xff]   ;;  %v1671_v19 = vld [vmem:[%s2489_s4 + $0x1d0] ss:$8 sps:$4 sm:$0xff]   ;;  %v1676_v21 = vld [vmem:[%s2489_s4 + $0xe0] ss:$8 sps:$4 sm:$0xff]  }
  0x1d   :  { %1208 = vmatprep.subr.bf16.mxu0 %v1626_v44  ;;  %v1674_v20 = vld [vmem:[%s2489_s4 + $0x1e4] ss:$8 sps:$4 sm:$0xff]   ;;  %v1678_v22 = vld [vmem:[%s2489_s4 + $0xf4] ss:$8 sps:$4 sm:$0xff]   ;;  %v1677_v23 = vld [vmem:[%s2489_s4 + $0x1e0] ss:$8 sps:$4 sm:$0xff]  }
  0x1e   :  { %245 = vperm.xlu1 %1587, %v157_v33   ;;  %240 = vperm.xlu0 %1586, %v156_v35   ;;  %v1680_v24 = vld [vmem:[%s2489_s4 + $0x1f4] ss:$8 sps:$4 sm:$0xff]   ;;  %v1682_v25 = vld [vmem:[%s2489_s4 + $0xf0] ss:$8 sps:$4 sm:$0xff]   ;;  %v1996_v28 = vld [vmem:[%s2490_s2] ss:$0 sm:$0xff] }
  0x1f   :  { %1046 = vmatpush1.bf16.msra.mxu1 %v1628_v46  ;;  %v1683_v26 = vld [vmem:[%s2489_s4 + $0x1f0] ss:$8 sps:$4 sm:$0xff]   ;;  %v24_v29 = vld [vmem:[%s2491_s0] sm:$0xff]  ;;  %v25_v31 = vld [vmem:[%s2491_s0 + $0x8] sm:$0xff] }
  0x20   :  { %1209 = vmatpush1.bf16.msra.mxu0 %v1629_v48  ;;  %1047 = vmatprep.subr.bf16.mxu1 %v1630_v49  ;;  %v26_v27 = vld [vmem:[%s2491_s0 + $0x10] sm:$0xff]  ;;  %v27_v30 = vld [vmem:[%s2491_s0 + $0x18] sm:$0xff]  ;;  %v57_v33 = vmul.f32 %v1996_v28, %v24_v29  ;;  %v58_v35 = vmul.f32 %v1996_v28, %v25_v31  ;;  %v29_v36 = vld [vmem:[%s2491_s0 + $0x28] sm:$0xff] }
  0x21   :  { %1210 = vmatprep.subr.bf16.mxu0 %v1632_v50  ;;  %v59_v32 = vmul.f32 %v1996_v28, %v26_v27  ;;  %v60_v34 = vmul.f32 %v1996_v28, %v27_v30  ;;  %v2017_v37 = vld [vmem:[%s2492_s3] ss:$0 sm:$0xff]  ;;  %v30_v42 = vld [vmem:[%s2491_s0 + $0x30] sm:$0xff]  ;;  %v33_v43 = vld [vmem:[%s2491_s0 + $0x48] sm:$0xff] }
  0x22   :  { %255 = vperm.xlu1 %1587, %v159_v40   ;;  %250 = vperm.xlu0 %1586, %v158_v41   ;;  %v28_v38 = vld [vmem:[%s2491_s0 + $0x20] sm:$0xff]  ;;  %v31_v40 = vld [vmem:[%s2491_s0 + $0x38] sm:$0xff]  ;;  %v62_v41 = vmul.f32 %v1996_v28, %v29_v36  ;;  %v90_v44 = vadd.f32 %v2017_v37, %v57_v33  ;;  %v91_v46 = vadd.f32 %v2017_v37, %v58_v35  ;;  %v41_v31 = vld [vmem:[%s2491_s0 + $0x88] sm:$0xff] }
  0x23   :  { %1048 = vmatpush1.bf16.msra.mxu1 %v1634_v52  ;;  %v92_v39 = vadd.f32 %v2017_v37, %v59_v32  ;;  %v32_v48 = vld [vmem:[%s2491_s0 + $0x40] sm:$0xff]  ;;  %v35_v49 = vld [vmem:[%s2491_s0 + $0x58] sm:$0xff]  ;;  %v64_v50 = vmul.f32 %v1996_v28, %v31_v40  ;;  %v63_v52 = vmul.f32 %v1996_v28, %v30_v42 }
  0x24   :  { %1211 = vmatpush1.bf16.msra.mxu0 %v1635_v54  ;;  %1049 = vmatprep.subr.bf16.mxu1 %v1636_v55  ;;  %v34_v54 = vld [vmem:[%s2491_s0 + $0x50] sm:$0xff]  ;;  %v40_v36 = vld [vmem:[%s2491_s0 + $0x80] sm:$0xff] }
  0x25   :  { %1212 = vmatprep.subr.bf16.mxu0 %v1638_v56 }
  0x26   :  { %265 = vperm.xlu1 %1587, %v161_v45   ;;  %260 = vperm.xlu0 %1586, %v160_v47   ;;  %v93_v45 = vadd.f32 %v2017_v37, %v60_v34  ;;  %v61_v47 = vmul.f32 %v1996_v28, %v28_v38 }
  0x27   :  { %1050 = vmatpush1.bf16.msra.mxu1 %v1640_v57  ;;  %v95_v57 = vadd.f32 %v2017_v37, %v62_v41 }
  0x28   :  { %1213 = vmatpush1.bf16.msra.mxu0 %v1641_v60  ;;  %1051 = vmatprep.subr.bf16.mxu1 %v1642_v61  ;;  %v116_v60 = vmax.f32 %v90_v44, 0.0  ;;  %v119_v61 = vmax.f32 %v93_v45, 0.0  ;;  %v74_v45 = vmul.f32 %v1996_v28, %v41_v31 }
  0x29   :  { %1214 = vmatprep.subr.bf16.mxu0 %v1644_v62  ;;  %v117_v62 = vmax.f32 %v91_v46, 0.0  ;;  %v43_v46 = vld [vmem:[%s2491_s0 + $0x98] sm:$0xff] }
  0x2a   :  { %275 = vperm.xlu1 %1587, %v163_v51   ;;  %270 = vperm.xlu0 %1586, %v162_v53   ;;  %v118_v51 = vmax.f32 %v92_v39, 0.0  ;;  %v66_v53 = vmul.f32 %v1996_v28, %v33_v43 }
  0x2b   :  { %1052 = vmatpush1.bf16.msra.mxu1 %v1646_v63  ;;  %v94_v63 = vadd.f32 %v2017_v37, %v61_v47 }
  0x2c   :  { %1215 = vmatpush1.bf16.msra.mxu0 %v1647_v2  ;;  %1053 = vmatprep.subr.bf16.mxu1 %v1648_v3  ;;  %v96_v3 = vadd.f32 %v2017_v37, %v63_v52  ;;  %v73_v52 = vmul.f32 %v1996_v28, %v40_v36 }
  0x2d   :  { %1216 = vmatprep.subr.bf16.mxu0 %v1650_v4  ;;  %v2057_v4 = vadd.f32 %v2017_v37, %v66_v53 }
  0x2e   :  { %285 = vperm.xlu1 %1587, %v165_v58   ;;  %280 = vperm.xlu0 %1586, %v164_v59   ;;  %v65_v58 = vmul.f32 %v1996_v28, %v32_v48  ;;  %v68_v59 = vmul.f32 %v1996_v28, %v35_v49 }
  0x2f   :  { %1054 = vmatpush1.bf16.msra.mxu1 %v1652_v5 }
  0x30   :  { %1055 = vmatprep.subr.bf16.mxu1 %v1654_v6  ;;  %1217 = vmatpush1.bf16.msra.mxu0 %v1653_v7  ;;  %v121_v7 = vmax.f32 %v95_v57, 0.0 }
  0x31   :  { %1218 = vmatprep.subr.bf16.mxu0 %v1656_v8  ;;  %v2060_v8 = vadd.f32 %v2017_v37, %v65_v58 }
  0x32   :  { %295 = vperm.xlu1 %1587, %v167_v0   ;;  %290 = vperm.xlu0 %1586, %v166_v1   ;;  %v97_v0 = vadd.f32 %v2017_v37, %v64_v50  ;;  %v67_v1 = vmul.f32 %v1996_v28, %v34_v54 }
  0x33   :  { %1056 = vmatpush1.bf16.msra.mxu1 %v1658_v9  ;;  %v2063_v9 = vadd.f32 %v2017_v37, %v68_v59 }
  0x34   :  { %1057 = vmatprep.subr.bf16.mxu1 %v1660_v10  ;;  %1219 = vmatpush1.bf16.msra.mxu0 %v1659_v11 }
  0x35   :  { %1220 = vmatprep.subr.bf16.mxu0 %v1662_v12  ;;  %v127_v27 = vmax.f32 %v2063_v9, 0.0 }
  0x37   :  { %1058 = vmatpush1.bf16.msra.mxu1 %v1664_v13  ;;  %v120_v13 = vmax.f32 %v94_v63, 0.0 }
  0x38   :  { %1059 = vmatprep.subr.bf16.mxu1 %v1666_v14  ;;  %1221 = vmatpush1.bf16.msra.mxu0 %v1665_v15  ;;  %v37_v14 = vld [vmem:[%s2491_s0 + $0x68] sm:$0xff]  ;;  %v36_v15 = vld [vmem:[%s2491_s0 + $0x60] sm:$0xff] }
  0x39   :  { %1222 = vmatprep.subr.bf16.mxu0 %v1668_v16  ;;  %v123_v16 = vmax.f32 %v97_v0, 0.0  ;;  %v70_v29 = vmul.f32 %v1996_v28, %v37_v14  ;;  %v69_v30 = vmul.f32 %v1996_v28, %v36_v15 }
  0x3b   :  { %1060 = vmatpush1.bf16.msra.mxu1 %v1670_v17  ;;  %v2072_v17 = vadd.f32 %v2017_v37, %v67_v1  ;;  %v2105_v49 = vadd.f32 %v2017_v37, %v70_v29  ;;  %v2108_v50 = vadd.f32 %v2017_v37, %v69_v30 }
  0x3c   :  { %1061 = vmatprep.subr.bf16.mxu1 %v1672_v18  ;;  %1223 = vmatpush1.bf16.msra.mxu0 %v1671_v19  ;;  %v39_v18 = vld [vmem:[%s2491_s0 + $0x78] sm:$0xff] }
  0x3d   :  { %1224 = vmatprep.subr.bf16.mxu0 %v1674_v20  ;;  %v72_v35 = vmul.f32 %v1996_v28, %v39_v18  ;;  %v126_v38 = vmax.f32 %v2072_v17, 0.0  ;;  %v128_v14 = vmax.f32 %v2108_v50, 0.0  ;;  %v44_v50 = vld [vmem:[%s2491_s0 + $0xa0] sm:$0xff] }
  0x3f   :  { %1062 = vmatpush1.bf16.msra.mxu1 %v1676_v21  ;;  %v122_v21 = vmax.f32 %v96_v3, 0.0  ;;  %v2113_v58 = vadd.f32 %v2017_v37, %v72_v35 }
  0x40   :  { %1063 = vmatprep.subr.bf16.mxu1 %v1678_v22  ;;  %1225 = vmatpush1.bf16.msra.mxu0 %v1677_v23  ;;  %v125_v22 = vmax.f32 %v2057_v4, 0.0  ;;  %v38_v23 = vld [vmem:[%s2491_s0 + $0x70] sm:$0xff] }
  0x41   :  { %1226 = vmatprep.subr.bf16.mxu0 %v1680_v24  ;;  %v71_v41 = vmul.f32 %v1996_v28, %v38_v23  ;;  %v131_v36 = vmax.f32 %v2113_v58, 0.0 }
  0x43   :  { %1064 = vmatpush1.bf16.msra.mxu1 %v1682_v25  ;;  %v2123_v0 = vadd.f32 %v2017_v37, %v71_v41 }
  0x44   :  { %1227 = vmatpush1.bf16.msra.mxu0 %v1683_v26  ;;  %v124_v26 = vmax.f32 %v2060_v8, 0.0 }
  0x81   :  { %v181_v55 = vpop.permute.xlu1 %180  ;;  %v171_v56 = vpop.permute.xlu0 %170 }
  0x82   :  { %v300_v2 = vmul.f32 %v181_v55, %v118_v51  ;;  %v298_v10 = vmul.f32 %v171_v56, %v116_v60  ;;  %v2117_v60 = vmul.f32 %v1996_v28, %v43_v46 }
  0x85   :  { %v186_v5 = vpop.permute.xlu1 %185  ;;  %v176_v6 = vpop.permute.xlu0 %175 }
  0x86   :  { %v301_v11 = vmul.f32 %v186_v5, %v119_v61  ;;  %v299_v12 = vmul.f32 %v176_v6, %v117_v62 }
  0x88   :  { %v2077_v19 = vpack.c.bf16 %v301_v11, %v300_v2  ;;  %v324_v20 = vpack.c.bf16 %v299_v12, %v298_v10 }
  0x89   :  { %v196_v24 = vpop.permute.xlu1 %195  ;;  %v191_v25 = vpop.permute.xlu0 %190 }
  0x8a   :  { %337 = vst [vmem:[#allocation2] sm:$0xff] %v324_v20  ;;  %v303_v32 = vmul.f32 %v196_v24, %v121_v7  ;;  %v302_v33 = vmul.f32 %v191_v25, %v120_v13  ;;  %v385_v34 = vshll.u32 %v324_v20, 16  ;;  %v390_v39 = vshll.u32 %v2077_v19, 16 }
  0x8b   :  { %v394_v40 = vshrl.u32 %v2077_v19, 16  ;;  %v383_v43 = vshrl.u32 %v324_v20, 16  ;;  %v129_v13 = vmax.f32 %v2105_v49, 0.0  ;;  %v519_v35 = vrot.slane %v2077_v19, 5  ;;  %v45_v49 = vld [vmem:[%s2491_s0 + $0xa8] sm:$0xff] }
  0x8c   :  { %v2098_v42 = vpack.c.bf16 %v303_v32, %v302_v33  ;;  %v387_v44 = vrot.slane %v385_v34, 1  ;;  %v392_v51 = vrot.slane %v390_v39, 1  ;;  %v568_v5 = vrot.slane %v390_v39, 6 }
  0x8d   :  { %v206_v47 = vpop.permute.xlu1 %205  ;;  %v201_v48 = vpop.permute.xlu0 %200  ;;  %v567_v4 = vrot.slane %v394_v40, 5  ;;  %v106_v39 = vadd.f32 %v2017_v37, %v73_v52  ;;  %v78_v58 = vmul.f32 %v1996_v28, %v45_v49 }
  0x8e   :  { %v305_v53 = vmul.f32 %v206_v47, %v123_v16  ;;  %v304_v54 = vmul.f32 %v201_v48, %v122_v21  ;;  %v388_v55 = vor.u32 %v387_v44, %v383_v43  ;;  %v398_v56 = vshll.u32 %v2098_v42, 16 }
  0x8f   :  { %v396_v57 = vor.u32 %v394_v40, %v392_v51  ;;  %v402_v59 = vshrl.u32 %v2098_v42, 16  ;;  %v2129_v16 = vadd.f32 %v2017_v37, %v74_v45  ;;  %v569_v25 = vor.u32 %v568_v5, %v567_v4 }
  0x90   :  { %v2119_v61 = vpack.c.bf16 %v305_v53, %v304_v54  ;;  %v393_v62 = vsel %vm381_vm0, %v388_v55, %v392_v51  ;;  %v400_v63 = vrot.slane %v398_v56, 1  ;;  %v572_v7 = vrot.slane %v398_v56, 6 }
  0x91   :  { %v216_v1 = vpop.permute.xlu1 %215  ;;  %v211_v2 = vpop.permute.xlu0 %210  ;;  %1065 = vmatprep.mubr.bf16.mxu1 %v393_v62  ;;  %v378_v3 = vld [vmem:[#allocation2] sm:$0xe0]  ;;  %v571_v6 = vrot.slane %v402_v59, 5  ;;  %v130_v44 = vmax.f32 %v2123_v0, 0.0  ;;  %v109_v55 = vadd.f32 %v2017_v37, %v2117_v60  ;;  %v46_v62 = vld [vmem:[%s2491_s0 + $0xb0] sm:$0xff]  ;;  %v133_v60 = vmax.f32 %v2129_v16, 0.0 }
  0x92   :  { %v307_v8 = vmul.f32 %v216_v1, %v125_v22  ;;  %v306_v10 = vmul.f32 %v211_v2, %v124_v26  ;;  %v560_v11 = vshrl.u32 %v378_v3, 16  ;;  %v563_v12 = vshll.u32 %v378_v3, 16  ;;  %1066 = vmatmul.mubr.bf16.vlgmr.msra.gmra.mrb[0].mxu1 %v324_v20  ;;  %v42_v20 = vld [vmem:[%s2491_s0 + $0x90] sm:$0xff] }
  0x93   :  { %v401_v15 = vsel %vm381_vm0, %v396_v57, %v400_v63  ;;  %v406_v22 = vshll.u32 %v2119_v61, 16  ;;  %v518_v26 = vrot.slane %v378_v3, 5  ;;  %v573_v29 = vor.u32 %v572_v7, %v571_v6 }
  0x94   :  { %v2131_v17 = vpack.c.bf16 %v307_v8, %v306_v10  ;;  %v562_v18 = vrot.slane %v560_v11, 5  ;;  %v565_v21 = vrot.slane %v563_v12, 6  ;;  %1075 = vmatprep.mubr.bf16.mxu1 %v401_v15  ;;  %v410_v30 = vshrl.u32 %v2119_v61, 16 }
  0x95   :  { %v226_v23 = vpop.permute.xlu1 %225  ;;  %v221_v24 = vpop.permute.xlu0 %220  ;;  %v408_v34 = vrot.slane %v406_v22, 1  ;;  %v75_v40 = vmul.f32 %v1996_v28, %v42_v20  ;;  %v404_v45 = vor.u32 %v402_v59, %v400_v63  ;;  %v574_v46 = vsel %vm558_vm1, %v569_v25, %v573_v29 }
  0x96   :  { %v309_v31 = vmul.f32 %v226_v23, %v127_v27  ;;  %v308_v32 = vmul.f32 %v221_v24, %v126_v38  ;;  %v566_v33 = vor.u32 %v565_v21, %v562_v18  ;;  %v520_v38 = vsel %vm517_vm2, %v518_v26, %v519_v35  ;;  %v49_v18 = vld [vmem:[%s2491_s0 + $0xc8] sm:$0xff] }
  0x97   :  { %v575_v47 = vrot.slane %v410_v30, 5  ;;  %v576_v48 = vrot.slane %v406_v22, 6  ;;  %v409_v53 = vsel %vm381_vm0, %v404_v45, %v408_v34  ;;  %v414_v54 = vshll.u32 %v2131_v17, 16 }
  0x98   :  { %v2144_v41 = vpack.c.bf16 %v309_v31, %v308_v32  ;;  %v570_v43 = vsel %vm558_vm1, %v566_v33, %v569_v25  ;;  %v108_v56 = vadd.f32 %v2017_v37, %v75_v40  ;;  %v77_v59 = vmul.f32 %v1996_v28, %v44_v50  ;;  %v48_v25 = vld [vmem:[%s2491_s0 + $0xc0] sm:$0xff] }
  0x99   :  { %v236_v9 = vpop.permute.xlu1 %235  ;;  %v231_v27 = vpop.permute.xlu0 %230  ;;  %1228 = vmatprep.mubr.bf16.mxu0 %v570_v43  ;;  %v132_v1 = vmax.f32 %v106_v39, 0.0  ;;  %v521_v2 = vrot.slane %v2098_v42, 5  ;;  %v577_v3 = vor.u32 %v576_v48, %v575_v47  ;;  %v416_v6 = vrot.slane %v414_v54, 1 }
  0x9a   :  { %v311_v51 = vmul.f32 %v236_v9, %v129_v13  ;;  %v310_v52 = vmul.f32 %v231_v27, %v128_v14  ;;  %1229 = vmatmul.mubr.bf16.vlgmr.msra.gmra.mrb[0].mxu0 %v520_v38  ;;  %1076 = vmatmul.mubr.bf16.gmra.mrb[4].mxu1 %v2077_v19  ;;  %v47_v19 = vld [vmem:[%s2491_s0 + $0xb8] sm:$0xff]  ;;  %v418_v7 = vshrl.u32 %v2131_v17, 16  ;;  %v135_v8 = vmax.f32 %v109_v55, 0.0 }
  0x9b   :  { %1238 = vmatprep.mubr.bf16.mxu0 %v574_v46  ;;  %1085 = vmatprep.mubr.bf16.mxu1 %v409_v53  ;;  %v134_v10 = vmax.f32 %v108_v56, 0.0  ;;  %v80_v11 = vmul.f32 %v1996_v28, %v47_v19  ;;  %v79_v12 = vmul.f32 %v1996_v28, %v46_v62  ;;  %v111_v14 = vadd.f32 %v2017_v37, %v78_v58 }
  0x9c   :  { %v2162_v57 = vpack.c.bf16 %v311_v51, %v310_v52  ;;  %v110_v15 = vadd.f32 %v2017_v37, %v77_v59  ;;  %v412_v16 = vor.u32 %v410_v30, %v408_v34  ;;  %v522_v20 = vsel %vm517_vm2, %v519_v35, %v521_v2 }
  0x9d   :  { %v246_v63 = vpop.permute.xlu1 %245  ;;  %v241_v0 = vpop.permute.xlu0 %240  ;;  %v578_v23 = vsel %vm558_vm1, %v573_v29, %v577_v3  ;;  %v580_v24 = vrot.slane %v414_v54, 6  ;;  %v422_v26 = vshll.u32 %v2144_v41, 16  ;;  %v579_v33 = vrot.slane %v418_v7, 5 }
  0x9e   :  { %v313_v4 = vmul.f32 %v246_v63, %v131_v36  ;;  %v312_v5 = vmul.f32 %v241_v0, %v130_v44  ;;  %v417_v30 = vsel %vm381_vm0, %v412_v16, %v416_v6  ;;  %v82_v34 = vmul.f32 %v1996_v28, %v49_v18 }
  0x9f   :  { %v113_v35 = vadd.f32 %v2017_v37, %v80_v11  ;;  %v112_v36 = vadd.f32 %v2017_v37, %v79_v12  ;;  %v81_v39 = vmul.f32 %v1996_v28, %v48_v25  ;;  %v137_v44 = vmax.f32 %v111_v14, 0.0 }
  0xa0   :  { %v2177_v13 = vpack.c.bf16 %v313_v4, %v312_v5  ;;  %v424_v45 = vrot.slane %v422_v26, 1  ;;  %v426_v9 = vshrl.u32 %v2144_v41, 16  ;;  %v136_v46 = vmax.f32 %v110_v15, 0.0 }
  0xa1   :  { %v256_v21 = vpop.permute.xlu1 %255  ;;  %v251_v22 = vpop.permute.xlu0 %250  ;;  %v581_v47 = vor.u32 %v580_v24, %v579_v33  ;;  %v115_v48 = vadd.f32 %v2017_v37, %v82_v34  ;;  %v420_v49 = vor.u32 %v418_v7, %v416_v6  ;;  %v139_v51 = vmax.f32 %v113_v35, 0.0 }
  0xa2   :  { %v315_v31 = vmul.f32 %v256_v21, %v133_v60  ;;  %v314_v32 = vmul.f32 %v251_v22, %v132_v1  ;;  %1239 = vmatmul.mubr.bf16.gmra.mrb[4].mxu0 %v522_v20  ;;  %1086 = vmatmul.mubr.bf16.gmra.mrb[8].mxu1 %v2098_v42  ;;  %v523_v42 = vrot.slane %v2119_v61, 5  ;;  %v138_v52 = vmax.f32 %v112_v36, 0.0 }
  0xa3   :  { %1248 = vmatprep.mubr.bf16.mxu0 %v578_v23  ;;  %1095 = vmatprep.mubr.bf16.mxu1 %v417_v30  ;;  %v114_v28 = vadd.f32 %v2017_v37, %v81_v39  ;;  %v425_v56 = vsel %vm381_vm0, %v420_v49, %v424_v45  ;;  %v583_v58 = vrot.slane %v426_v9, 5  ;;  %v584_v59 = vrot.slane %v422_v26, 6 }
  0xa4   :  { %v2193_v29 = vpack.c.bf16 %v315_v31, %v314_v32  ;;  %v524_v55 = vsel %vm517_vm2, %v521_v2, %v523_v42  ;;  %v582_v63 = vsel %vm558_vm1, %v577_v3, %v581_v47  ;;  %v430_v0 = vshll.u32 %v2162_v57, 16 }
  0xa5   :  { %v266_v40 = vpop.permute.xlu1 %265  ;;  %v261_v43 = vpop.permute.xlu0 %260  ;;  %v141_v2 = vmax.f32 %v115_v48, 0.0  ;;  %v525_v4 = vrot.slane %v2131_v17, 5  ;;  %v585_v5 = vor.u32 %v584_v59, %v583_v58  ;;  %v434_v6 = vshrl.u32 %v2162_v57, 16 }
  0xa6   :  { %v317_v27 = vmul.f32 %v266_v40, %v135_v8  ;;  %v316_v38 = vmul.f32 %v261_v43, %v134_v10  ;;  %v140_v10 = vmax.f32 %v114_v28, 0.0  ;;  %v432_v3 = vrot.slane %v430_v0, 1 }
  0xa7   :  { %v526_v15 = vsel %vm517_vm2, %v523_v42, %v525_v4  ;;  %v586_v16 = vsel %vm558_vm1, %v581_v47, %v585_v5  ;;  %v587_v18 = vrot.slane %v434_v6, 5  ;;  %v588_v21 = vrot.slane %v430_v0, 6 }
  0xa8   :  { %v2201_v50 = vpack.c.bf16 %v317_v27, %v316_v38  ;;  %v438_v24 = vshll.u32 %v2177_v13, 16  ;;  %v527_v26 = vrot.slane %v2144_v41, 5  ;;  %v442_v30 = vshrl.u32 %v2177_v13, 16 }
  0xa9   :  { %v276_v53 = vpop.permute.xlu1 %275  ;;  %v271_v54 = vpop.permute.xlu0 %270  ;;  %v589_v31 = vor.u32 %v588_v21, %v587_v18  ;;  %v436_v33 = vor.u32 %v434_v6, %v432_v3  ;;  %v446_v40 = vshll.u32 %v2193_v29, 16  ;;  %v529_v43 = vrot.slane %v2162_v57, 5 }
  0xaa   :  { %v319_v19 = vmul.f32 %v276_v53, %v137_v44  ;;  %v318_v62 = vmul.f32 %v271_v54, %v136_v46  ;;  %1249 = vmatmul.mubr.bf16.gmra.mrb[8].mxu0 %v524_v55  ;;  %1096 = vmatmul.mubr.bf16.gmra.mrb[12].mxu1 %v2119_v61  ;;  %v428_v61 = vor.u32 %v426_v9, %v424_v45  ;;  %v440_v32 = vrot.slane %v438_v24, 1 }
  0xab   :  { %1258 = vmatprep.mubr.bf16.mxu0 %v582_v63  ;;  %1105 = vmatprep.mubr.bf16.mxu1 %v425_v56  ;;  %v528_v34 = vsel %vm517_vm2, %v525_v4, %v527_v26  ;;  %v592_v35 = vrot.slane %v438_v24, 6  ;;  %v591_v39 = vrot.slane %v442_v30, 5  ;;  %v448_v42 = vrot.slane %v446_v40, 1  ;;  %v377_v24 = vld [vmem:[#allocation2 + $0x68] sm:$0x1] }
  0xac   :  { %v2209_v37 = vpack.c.bf16 %v319_v19, %v318_v62  ;;  %v433_v23 = vsel %vm381_vm0, %v428_v61, %v432_v3  ;;  %v441_v36 = vsel %vm381_vm0, %v436_v33, %v440_v32  ;;  %v450_v45 = vshrl.u32 %v2193_v29, 16 }
  0xad   :  { %v286_v60 = vpop.permute.xlu1 %285  ;;  %v281_v1 = vpop.permute.xlu0 %280  ;;  %v593_v44 = vor.u32 %v592_v35, %v591_v39  ;;  %v444_v9 = vor.u32 %v442_v30, %v440_v32  ;;  %v530_v27 = vsel %vm517_vm2, %v527_v26, %v529_v43  ;;  %v596_v38 = vrot.slane %v446_v40, 6  ;;  %v380_v35 = vld [vmem:[#allocation2 + $0x68] sm:$0x3f] }
  0xae   :  { %v321_v7 = vmul.f32 %v286_v60, %v139_v51  ;;  %v320_v8 = vmul.f32 %v281_v1, %v138_v52  ;;  %v595_v47 = vrot.slane %v450_v45, 5  ;;  %v454_v48 = vshll.u32 %v2201_v50, 16 }
  0xaf   :  { %v449_v46 = vsel %vm381_vm0, %v444_v9, %v448_v42  ;;  %v531_v49 = vrot.slane %v2177_v13, 5  ;;  %v458_v28 = vshrl.u32 %v2201_v50, 16  ;;  %v452_v53 = vor.u32 %v450_v45, %v448_v42 }
  0xb0   :  { %v2213_v11 = vpack.c.bf16 %v321_v7, %v320_v8  ;;  %v597_v51 = vor.u32 %v596_v38, %v595_v47  ;;  %v456_v52 = vrot.slane %v454_v48, 1  ;;  %v600_v55 = vrot.slane %v454_v48, 6  ;;  %v379_v48 = vld [vmem:[#allocation2 + $0x68] sm:$0x1f] }
  0xb1   :  { %v296_v12 = vpop.permute.xlu1 %295  ;;  %v291_v14 = vpop.permute.xlu0 %290  ;;  %v532_v54 = vsel %vm517_vm2, %v529_v43, %v531_v49  ;;  %v599_v58 = vrot.slane %v458_v28, 5  ;;  %v462_v59 = vshll.u32 %v2209_v37, 16  ;;  %v533_v19 = vrot.slane %v2193_v29, 5 }
  0xb2   :  { %v323_v22 = vmul.f32 %v296_v12, %v141_v2  ;;  %v322_v20 = vmul.f32 %v291_v14, %v140_v10  ;;  %1259 = vmatmul.mubr.bf16.gmra.mrb[12].mxu0 %v526_v15  ;;  %1106 = vmatmul.mubr.bf16.gmra.mrb[16].mxu1 %v2131_v17  ;;  %v590_v17 = vsel %vm558_vm1, %v585_v5, %v589_v31  ;;  %v466_v0 = vshrl.u32 %v2209_v37, 16 }
  0xb3   :  { %1268 = vmatprep.mubr.bf16.mxu0 %v586_v16  ;;  %1115 = vmatprep.mubr.bf16.mxu1 %v433_v23  ;;  %v457_v56 = vsel %vm381_vm0, %v452_v53, %v456_v52  ;;  %v601_v62 = vor.u32 %v600_v55, %v599_v58  ;;  %v464_v63 = vrot.slane %v462_v59, 1  ;;  %v460_v60 = vor.u32 %v458_v28, %v456_v52  ;;  %v701_v53 = vld [vmem:[%s2493_s5] sm:$0x3] }
  0xb4   :  { %v2220_v25 = vpack.c.bf16 %v323_v22, %v322_v20  ;;  %v534_v1 = vsel %vm517_vm2, %v531_v49, %v533_v19  ;;  %v604_v2 = vrot.slane %v462_v59, 6  ;;  %v603_v5 = vrot.slane %v466_v0, 5 }
  0xb5   :  { %v465_v4 = vsel %vm381_vm0, %v460_v60, %v464_v63  ;;  %v470_v6 = vshll.u32 %v2213_v11, 16  ;;  %v535_v7 = vrot.slane %v2201_v50, 5  ;;  %v474_v3 = vshrl.u32 %v2213_v11, 16 }
  0xb6   :  { %v605_v8 = vor.u32 %v604_v2, %v603_v5  ;;  %v468_v61 = vor.u32 %v466_v0, %v464_v63  ;;  %v478_v18 = vshll.u32 %v2220_v25, 16  ;;  %v537_v21 = vrot.slane %v2209_v37, 5 }
  0xb7   :  { %v472_v10 = vrot.slane %v470_v6, 1  ;;  %v536_v12 = vsel %vm517_vm2, %v533_v19, %v535_v7  ;;  %v608_v14 = vrot.slane %v470_v6, 6  ;;  %v607_v16 = vrot.slane %v474_v3, 5 }
  0xb8   :  { %v480_v20 = vrot.slane %v478_v18, 1  ;;  %v482_v23 = vshrl.u32 %v2220_v25, 16  ;;  %v486_v32 = vshll.u32 %v377_v24, 16  ;;  %v541_v38 = vrot.slane %v2220_v25, 5 }
  0xb9   :  { %v473_v15 = vsel %vm381_vm0, %v468_v61, %v472_v10  ;;  %v609_v22 = vor.u32 %v608_v14, %v607_v16  ;;  %v476_v26 = vor.u32 %v474_v3, %v472_v10  ;;  %v543_v49 = vrot.slane %v379_v48, 5 }
  0xba   :  { %1269 = vmatmul.mubr.bf16.gmra.mrb[16].mxu0 %v528_v34  ;;  %1116 = vmatmul.mubr.bf16.gmra.mrb[20].mxu1 %v2144_v41  ;;  %v594_v41 = vsel %vm558_vm1, %v589_v31, %v593_v44  ;;  %v538_v31 = vsel %vm517_vm2, %v535_v7, %v537_v21  ;;  %v611_v33 = vrot.slane %v482_v23, 5  ;;  %v612_v34 = vrot.slane %v478_v18, 6 }
  0xbb   :  { %1278 = vmatprep.mubr.bf16.mxu0 %v590_v17  ;;  %1125 = vmatprep.mubr.bf16.mxu1 %v441_v36  ;;  %v481_v30 = vsel %vm381_vm0, %v476_v26, %v480_v20  ;;  %v539_v17 = vrot.slane %v2213_v11, 5  ;;  %v616_v36 = vshrl.u32 %v380_v35, 16  ;;  %v484_v40 = vor.u32 %v482_v23, %v480_v20 }
  0xbc   :  { %v613_v39 = vor.u32 %v612_v34, %v611_v33  ;;  %v488_v43 = vrot.slane %v486_v32, 1 }
  0xbd   :  { %v540_v42 = vsel %vm517_vm2, %v537_v21, %v539_v17  ;;  %v618_v9 = vrot.slane %v616_v36, 5 }
  0xbe   :  { %v614_v45 = vsel %vm558_vm1, %v609_v22, %v613_v39 }
  0xc2   :  { %1279 = vmatmul.mubr.bf16.gmra.mrb[20].mxu0 %v530_v27  ;;  %1126 = vmatmul.mubr.bf16.gmra.mrb[24].mxu1 %v2162_v57  ;;  %v598_v57 = vsel %vm558_vm1, %v593_v44, %v597_v51  ;;  %v619_v44 = vshll.u32 %v380_v35, 16 }
  0xc3   :  { %1288 = vmatprep.mubr.bf16.mxu0 %v594_v41  ;;  %1135 = vmatprep.mubr.bf16.mxu1 %v449_v46  ;;  %v542_v46 = vsel %vm517_vm2, %v539_v17, %v541_v38 }
  0xc4   :  { %v621_v27 = vrot.slane %v619_v44, 6 }
  0xc6   :  { %v622_v41 = vor.u32 %v621_v27, %v618_v9 }
  0xc8   :  { %v623_v47 = vsel %vm558_vm1, %v613_v39, %v622_v41 }
  0xca   :  { %1289 = vmatmul.mubr.bf16.gmra.mrb[24].mxu0 %v532_v54  ;;  %1136 = vmatmul.mubr.bf16.gmra.mrb[28].mxu1 %v2177_v13  ;;  %v602_v13 = vsel %vm558_vm1, %v597_v51, %v601_v62  ;;  %v703_v51 = vlaneseq }
  0xcb   :  { %1298 = vmatprep.mubr.bf16.mxu0 %v598_v57  ;;  %1145 = vmatprep.mubr.bf16.mxu1 %v457_v56 }
  0xcc   :  { %v704_v52 = vshrl.u32 %v703_v51, 7 }
  0xce   :  { %v705_v28 = vsub.s32 0, %v704_v52  ;;  %v709_v55 = vsub.s32 1, %v704_v52 }
  0xd0   :  { %v2276_v58 = vrot.slane %v701_v53, %v705_v28  ;;  %v2278_v59 = vrot.slane %v701_v53, %v709_v55 }
  0xd2   :  { %1299 = vmatmul.mubr.bf16.gmra.mrb[28].mxu0 %v534_v1  ;;  %1146 = vmatmul.mubr.bf16.gmra.mrb[32].mxu1 %v2193_v29  ;;  %v606_v29 = vsel %vm558_vm1, %v601_v62, %v605_v8 }
  0xd3   :  { %1308 = vmatprep.mubr.bf16.mxu0 %v602_v13  ;;  %1155 = vmatprep.mubr.bf16.mxu1 %v465_v4 }
  0xda   :  { %1309 = vmatmul.mubr.bf16.gmra.mrb[32].mxu0 %v536_v12  ;;  %1156 = vmatmul.mubr.bf16.gmra.mrb[36].mxu1 %v2201_v50  ;;  %v610_v50 = vsel %vm558_vm1, %v605_v8, %v609_v22 }
  0xdb   :  { %1318 = vmatprep.mubr.bf16.mxu0 %v606_v29  ;;  %1165 = vmatprep.mubr.bf16.mxu1 %v473_v15 }
  0xe2   :  { %1319 = vmatmul.mubr.bf16.gmra.mrb[36].mxu0 %v538_v31  ;;  %1166 = vmatmul.mubr.bf16.gmra.mrb[40].mxu1 %v2209_v37  ;;  %v489_v37 = vsel %vm381_vm0, %v484_v40, %v488_v43 }
  0xe3   :  { %1328 = vmatprep.mubr.bf16.mxu0 %v610_v50  ;;  %1175 = vmatprep.mubr.bf16.mxu1 %v481_v30 }
  0xea   :  { %1329 = vmatmul.mubr.bf16.gmra.mrb[40].mxu0 %v540_v42  ;;  %1176 = vmatmul.mubr.bf16.gmra.mrb[44].mxu1 %v2213_v11  ;;  %v544_v11 = vsel %vm517_vm2, %v541_v38, %v543_v49 }
  0xeb   :  { %1338 = vmatprep.mubr.bf16.mxu0 %v614_v45  ;;  %1185 = vmatprep.mubr.bf16.mxu1 %v489_v37 }
  0xf2   :  { %1339 = vmatmul.mubr.bf16.gmra.mrb[44].mxu0 %v542_v46  ;;  %1186 = vmatmul.mubr.bf16.gmra.mrb[48].mxu1 %v2220_v25 }
  0xf3   :  { %1348 = vmatprep.mubr.bf16.mxu0 %v623_v47 }
  0xfa   :  { %1349 = vmatmul.mubr.bf16.gmra.mrb[48].mxu0 %v544_v11 }
 0x165   :  { %v1067_v54 = vpop.f32.mrb[0].mxu1 }
 0x166   :  { %v1069_v57 = vpop.f32.mrb[1].mxu1  ;;  %v1068_v19 = vadd.f32 %v1067_v54, %v2276_v58 }
 0x167   :  { %v1071_v56 = vpop.f32.mrb[2].mxu1  ;;  %v1070_v63 = vadd.f32 %v1069_v57, %v2278_v59 }
 0x168   :  { %v1073_v25 = vpop.f32.mrb[3].mxu1  ;;  %v1072_v2 = vadd.f32 %v1071_v56, %v2276_v58 }
 0x169   :  { %v1074_v6 = vadd.f32 %v1073_v25, %v2278_v59 }
 0x16d   :  { %v1230_v62 = vpop.f32.mrb[0].mxu0  ;;  %v1077_v0 = vpop.f32.mrb[4].mxu1 }
 0x16e   :  { %v1231_v60 = vadd.f32 %v1230_v62, %v1068_v19  ;;  %v1232_v1 = vpop.f32.mrb[1].mxu0  ;;  %v1079_v13 = vpop.f32.mrb[5].mxu1  ;;  %v1078_v12 = vadd.f32 %v1077_v0, %v2276_v58 }
 0x16f   :  { %v1233_v4 = vadd.f32 %v1232_v1, %v1070_v63  ;;  %v1234_v5 = vpop.f32.mrb[2].mxu0  ;;  %v1081_v7 = vpop.f32.mrb[6].mxu1  ;;  %v1080_v29 = vadd.f32 %v1079_v13, %v2278_v59 }
 0x170   :  { %1359 = vst [vmem:[%s2494_s6] sm:$0xff] %v1231_v60  ;;  %v1235_v8 = vadd.f32 %v1234_v5, %v1072_v2  ;;  %v1236_v10 = vpop.f32.mrb[3].mxu0  ;;  %v1083_v3 = vpop.f32.mrb[7].mxu1  ;;  %v1082_v21 = vadd.f32 %v1081_v7, %v2276_v58 }
 0x171   :  { %1360 = vst [vmem:[%s2494_s6 + $0x8] sm:$0xff] %v1233_v4  ;;  %v1237_v61 = vadd.f32 %v1236_v10, %v1074_v6  ;;  %v1084_v24 = vadd.f32 %v1083_v3, %v2278_v59 }
 0x172   :  { %1361 = vst [vmem:[%s2494_s6 + $0x10] sm:$0xff] %v1235_v8 }
 0x173   :  { %1362 = vst [vmem:[%s2494_s6 + $0x18] sm:$0xff] %v1237_v61 }
 0x175   :  { %v1240_v14 = vpop.f32.mrb[4].mxu0  ;;  %v1087_v15 = vpop.f32.mrb[8].mxu1 }
 0x176   :  { %v1241_v16 = vadd.f32 %v1240_v14, %v1078_v12  ;;  %v1242_v18 = vpop.f32.mrb[5].mxu0  ;;  %v1089_v22 = vpop.f32.mrb[9].mxu1  ;;  %v1088_v33 = vadd.f32 %v1087_v15, %v2276_v58 }
 0x177   :  { %v1243_v20 = vadd.f32 %v1242_v18, %v1080_v29  ;;  %v1244_v23 = vpop.f32.mrb[6].mxu0  ;;  %v1091_v26 = vpop.f32.mrb[10].mxu1  ;;  %v1090_v35 = vadd.f32 %v1089_v22, %v2278_v59 }
 0x178   :  { %1363 = vst [vmem:[%s2494_s6 + $0x20] sm:$0xff] %v1241_v16  ;;  %v1245_v31 = vadd.f32 %v1244_v23, %v1082_v21  ;;  %v1246_v32 = vpop.f32.mrb[7].mxu0  ;;  %v1093_v50 = vpop.f32.mrb[11].mxu1  ;;  %v1092_v40 = vadd.f32 %v1091_v26, %v2276_v58 }
 0x179   :  { %1364 = vst [vmem:[%s2494_s6 + $0x28] sm:$0xff] %v1243_v20  ;;  %v1247_v30 = vadd.f32 %v1246_v32, %v1084_v24  ;;  %v1094_v45 = vadd.f32 %v1093_v50, %v2278_v59 }
 0x17a   :  { %1365 = vst [vmem:[%s2494_s6 + $0x30] sm:$0xff] %v1245_v31 }
 0x17b   :  { %1366 = vst [vmem:[%s2494_s6 + $0x38] sm:$0xff] %v1247_v30 }
 0x17d   :  { %v1250_v34 = vpop.f32.mrb[8].mxu0  ;;  %v1097_v17 = vpop.f32.mrb[12].mxu1 }
 0x17e   :  { %v1251_v36 = vadd.f32 %v1250_v34, %v1088_v33  ;;  %v1252_v39 = vpop.f32.mrb[9].mxu0  ;;  %v1099_v43 = vpop.f32.mrb[13].mxu1  ;;  %v1098_v46 = vadd.f32 %v1097_v17, %v2276_v58 }
 0x17f   :  { %v1253_v44 = vadd.f32 %v1252_v39, %v1090_v35  ;;  %v1254_v42 = vpop.f32.mrb[10].mxu0  ;;  %v1101_v37 = vpop.f32.mrb[14].mxu1  ;;  %v1100_v48 = vadd.f32 %v1099_v43, %v2278_v59 }
 0x180   :  { %1367 = vst [vmem:[%s2494_s6 + $0x40] sm:$0xff] %v1251_v36  ;;  %v1255_v9 = vadd.f32 %v1254_v42, %v1092_v40  ;;  %v1256_v27 = vpop.f32.mrb[11].mxu0  ;;  %v1103_v38 = vpop.f32.mrb[15].mxu1  ;;  %v1102_v52 = vadd.f32 %v1101_v37, %v2276_v58 }
 0x181   :  { %1368 = vst [vmem:[%s2494_s6 + $0x48] sm:$0xff] %v1253_v44  ;;  %v1257_v41 = vadd.f32 %v1256_v27, %v1094_v45  ;;  %v1104_v55 = vadd.f32 %v1103_v38, %v2278_v59 }
 0x182   :  { %1369 = vst [vmem:[%s2494_s6 + $0x50] sm:$0xff] %v1255_v9 }
 0x183   :  { %1370 = vst [vmem:[%s2494_s6 + $0x58] sm:$0xff] %v1257_v41 }
 0x185   :  { %v1260_v47 = vpop.f32.mrb[12].mxu0  ;;  %v1107_v49 = vpop.f32.mrb[16].mxu1 }
 0x186   :  { %v1261_v11 = vadd.f32 %v1260_v47, %v1098_v46  ;;  %v1262_v51 = vpop.f32.mrb[13].mxu0  ;;  %v1109_v28 = vpop.f32.mrb[17].mxu1  ;;  %v1108_v63 = vadd.f32 %v1107_v49, %v2276_v58 }
 0x187   :  { %v1263_v53 = vadd.f32 %v1262_v51, %v1100_v48  ;;  %v1264_v54 = vpop.f32.mrb[14].mxu0  ;;  %v1111_v57 = vpop.f32.mrb[18].mxu1  ;;  %v1110_v60 = vadd.f32 %v1109_v28, %v2278_v59 }
 0x188   :  { %1371 = vst [vmem:[%s2494_s6 + $0x60] sm:$0xff] %v1261_v11  ;;  %v1265_v56 = vadd.f32 %v1264_v54, %v1102_v52  ;;  %v1266_v25 = vpop.f32.mrb[15].mxu0  ;;  %v1113_v19 = vpop.f32.mrb[19].mxu1  ;;  %v1112_v4 = vadd.f32 %v1111_v57, %v2276_v58 }
 0x189   :  { %1372 = vst [vmem:[%s2494_s6 + $0x68] sm:$0xff] %v1263_v53  ;;  %v1267_v62 = vadd.f32 %v1266_v25, %v1104_v55  ;;  %v1114_v8 = vadd.f32 %v1113_v19, %v2278_v59 }
 0x18a   :  { %1373 = vst [vmem:[%s2494_s6 + $0x70] sm:$0xff] %v1265_v56 }
 0x18b   :  { %1374 = vst [vmem:[%s2494_s6 + $0x78] sm:$0xff] %v1267_v62 }
 0x18d   :  { %v1270_v0 = vpop.f32.mrb[16].mxu0  ;;  %v1117_v1 = vpop.f32.mrb[20].mxu1 }
 0x18e   :  { %v1271_v2 = vadd.f32 %v1270_v0, %v1108_v63  ;;  %v1272_v13 = vpop.f32.mrb[17].mxu0  ;;  %v1119_v5 = vpop.f32.mrb[21].mxu1  ;;  %v1118_v29 = vadd.f32 %v1117_v1, %v2276_v58 }
 0x18f   :  { %v1273_v6 = vadd.f32 %v1272_v13, %v1110_v60  ;;  %v1274_v7 = vpop.f32.mrb[18].mxu0  ;;  %v1121_v10 = vpop.f32.mrb[22].mxu1  ;;  %v1120_v16 = vadd.f32 %v1119_v5, %v2278_v59 }
 0x190   :  { %1375 = vst [vmem:[%s2494_s6 + $0x80] sm:$0xff] %v1271_v2  ;;  %v1275_v3 = vadd.f32 %v1274_v7, %v1112_v4  ;;  %v1276_v61 = vpop.f32.mrb[19].mxu0  ;;  %v1123_v12 = vpop.f32.mrb[23].mxu1  ;;  %v1122_v20 = vadd.f32 %v1121_v10, %v2276_v58 }
 0x191   :  { %1376 = vst [vmem:[%s2494_s6 + $0x88] sm:$0xff] %v1273_v6  ;;  %v1277_v14 = vadd.f32 %v1276_v61, %v1114_v8  ;;  %v1124_v31 = vadd.f32 %v1123_v12, %v2278_v59 }
 0x192   :  { %1377 = vst [vmem:[%s2494_s6 + $0x90] sm:$0xff] %v1275_v3 }
 0x193   :  { %1378 = vst [vmem:[%s2494_s6 + $0x98] sm:$0xff] %v1277_v14 }
 0x195   :  { %v1280_v15 = vpop.f32.mrb[20].mxu0  ;;  %v1127_v18 = vpop.f32.mrb[24].mxu1 }
 0x196   :  { %v1281_v21 = vadd.f32 %v1280_v15, %v1118_v29  ;;  %v1282_v22 = vpop.f32.mrb[21].mxu0  ;;  %v1129_v23 = vpop.f32.mrb[25].mxu1  ;;  %v1128_v35 = vadd.f32 %v1127_v18, %v2276_v58 }
 0x197   :  { %v1283_v24 = vadd.f32 %v1282_v22, %v1120_v16  ;;  %v1284_v26 = vpop.f32.mrb[22].mxu0  ;;  %v1131_v32 = vpop.f32.mrb[26].mxu1  ;;  %v1130_v36 = vadd.f32 %v1129_v23, %v2278_v59 }
 0x198   :  { %1379 = vst [vmem:[%s2494_s6 + $0xa0] sm:$0xff] %v1281_v21  ;;  %v1285_v50 = vadd.f32 %v1284_v26, %v1122_v20  ;;  %v1286_v30 = vpop.f32.mrb[23].mxu0  ;;  %v1133_v33 = vpop.f32.mrb[27].mxu1  ;;  %v1132_v44 = vadd.f32 %v1131_v32, %v2276_v58 }
 0x199   :  { %1380 = vst [vmem:[%s2494_s6 + $0xa8] sm:$0xff] %v1283_v24  ;;  %v1287_v34 = vadd.f32 %v1286_v30, %v1124_v31  ;;  %v1134_v9 = vadd.f32 %v1133_v33, %v2278_v59 }
 0x19a   :  { %1381 = vst [vmem:[%s2494_s6 + $0xb0] sm:$0xff] %v1285_v50 }
 0x19b   :  { %1382 = vst [vmem:[%s2494_s6 + $0xb8] sm:$0xff] %v1287_v34 }
 0x19d   :  { %v1290_v17 = vpop.f32.mrb[24].mxu0  ;;  %v1137_v39 = vpop.f32.mrb[28].mxu1 }
 0x19e   :  { %v1291_v40 = vadd.f32 %v1290_v17, %v1128_v35  ;;  %v1292_v43 = vpop.f32.mrb[25].mxu0  ;;  %v1139_v42 = vpop.f32.mrb[29].mxu1  ;;  %v1138_v48 = vadd.f32 %v1137_v39, %v2276_v58 }
 0x19f   :  { %v1293_v45 = vadd.f32 %v1292_v43, %v1130_v36  ;;  %v1294_v37 = vpop.f32.mrb[26].mxu0  ;;  %v1141_v27 = vpop.f32.mrb[30].mxu1  ;;  %v1140_v11 = vadd.f32 %v1139_v42, %v2278_v59 }
 0x1a0   :  { %1383 = vst [vmem:[%s2494_s6 + $0xc0] sm:$0xff] %v1291_v40  ;;  %v1295_v38 = vadd.f32 %v1294_v37, %v1132_v44  ;;  %v1296_v41 = vpop.f32.mrb[27].mxu0  ;;  %v1143_v46 = vpop.f32.mrb[31].mxu1  ;;  %v1142_v53 = vadd.f32 %v1141_v27, %v2276_v58 }
 0x1a1   :  { %1384 = vst [vmem:[%s2494_s6 + $0xc8] sm:$0xff] %v1293_v45  ;;  %v1297_v47 = vadd.f32 %v1296_v41, %v1134_v9  ;;  %v1144_v56 = vadd.f32 %v1143_v46, %v2278_v59 }
 0x1a2   :  { %1385 = vst [vmem:[%s2494_s6 + $0xd0] sm:$0xff] %v1295_v38 }
 0x1a3   :  { %1386 = vst [vmem:[%s2494_s6 + $0xd8] sm:$0xff] %v1297_v47 }
 0x1a5   :  { %v1300_v49 = vpop.f32.mrb[28].mxu0  ;;  %v1147_v51 = vpop.f32.mrb[32].mxu1 }
 0x1a6   :  { %v1301_v52 = vadd.f32 %v1300_v49, %v1138_v48  ;;  %v1302_v28 = vpop.f32.mrb[29].mxu0  ;;  %v1149_v54 = vpop.f32.mrb[33].mxu1  ;;  %v1148_v60 = vadd.f32 %v1147_v51, %v2276_v58 }
 0x1a7   :  { %v1303_v55 = vadd.f32 %v1302_v28, %v1140_v11  ;;  %v1304_v57 = vpop.f32.mrb[30].mxu0  ;;  %v1151_v25 = vpop.f32.mrb[34].mxu1  ;;  %v1150_v2 = vadd.f32 %v1149_v54, %v2278_v59 }
 0x1a8   :  { %1387 = vst [vmem:[%s2494_s6 + $0xe0] sm:$0xff] %v1301_v52  ;;  %v1305_v19 = vadd.f32 %v1304_v57, %v1142_v53  ;;  %v1306_v62 = vpop.f32.mrb[31].mxu0  ;;  %v1153_v63 = vpop.f32.mrb[35].mxu1  ;;  %v1152_v6 = vadd.f32 %v1151_v25, %v2276_v58 }
 0x1a9   :  { %1388 = vst [vmem:[%s2494_s6 + $0xe8] sm:$0xff] %v1303_v55  ;;  %v1307_v0 = vadd.f32 %v1306_v62, %v1144_v56  ;;  %v1154_v3 = vadd.f32 %v1153_v63, %v2278_v59 }
 0x1aa   :  { %1389 = vst [vmem:[%s2494_s6 + $0xf0] sm:$0xff] %v1305_v19 }
 0x1ab   :  { %1390 = vst [vmem:[%s2494_s6 + $0xf8] sm:$0xff] %v1307_v0 }
 0x1ad   :  { %v1310_v1 = vpop.f32.mrb[32].mxu0  ;;  %v1157_v13 = vpop.f32.mrb[36].mxu1 }
 0x1ae   :  { %v1311_v4 = vadd.f32 %v1310_v1, %v1148_v60  ;;  %v1312_v5 = vpop.f32.mrb[33].mxu0  ;;  %v1159_v7 = vpop.f32.mrb[37].mxu1  ;;  %v1158_v16 = vadd.f32 %v1157_v13, %v2276_v58 }
 0x1af   :  { %v1313_v8 = vadd.f32 %v1312_v5, %v1150_v2  ;;  %v1314_v10 = vpop.f32.mrb[34].mxu0  ;;  %v1161_v61 = vpop.f32.mrb[38].mxu1  ;;  %v1160_v21 = vadd.f32 %v1159_v7, %v2278_v59 }
 0x1b0   :  { %1391 = vst [vmem:[%s2494_s6 + $0x100] sm:$0xff] %v1311_v4  ;;  %v1315_v12 = vadd.f32 %v1314_v10, %v1152_v6  ;;  %v1316_v14 = vpop.f32.mrb[35].mxu0  ;;  %v1163_v29 = vpop.f32.mrb[39].mxu1  ;;  %v1162_v24 = vadd.f32 %v1161_v61, %v2276_v58 }
 0x1b1   :  { %1392 = vst [vmem:[%s2494_s6 + $0x108] sm:$0xff] %v1313_v8  ;;  %v1317_v15 = vadd.f32 %v1316_v14, %v1154_v3  ;;  %v1164_v50 = vadd.f32 %v1163_v29, %v2278_v59 }
 0x1b2   :  { %1393 = vst [vmem:[%s2494_s6 + $0x110] sm:$0xff] %v1315_v12 }
 0x1b3   :  { %1394 = vst [vmem:[%s2494_s6 + $0x118] sm:$0xff] %v1317_v15 }
 0x1b5   :  { %v1320_v18 = vpop.f32.mrb[36].mxu0  ;;  %v1167_v22 = vpop.f32.mrb[40].mxu1 }
 0x1b6   :  { %v1321_v20 = vadd.f32 %v1320_v18, %v1158_v16  ;;  %v1322_v23 = vpop.f32.mrb[37].mxu0  ;;  %v1169_v26 = vpop.f32.mrb[41].mxu1  ;;  %v1168_v36 = vadd.f32 %v1167_v22, %v2276_v58 }
 0x1b7   :  { %v1323_v31 = vadd.f32 %v1322_v23, %v1160_v21  ;;  %v1324_v32 = vpop.f32.mrb[38].mxu0  ;;  %v1171_v30 = vpop.f32.mrb[42].mxu1  ;;  %v1170_v40 = vadd.f32 %v1169_v26, %v2278_v59 }
 0x1b8   :  { %1395 = vst [vmem:[%s2494_s6 + $0x120] sm:$0xff] %v1321_v20  ;;  %v1325_v33 = vadd.f32 %v1324_v32, %v1162_v24  ;;  %v1326_v34 = vpop.f32.mrb[39].mxu0  ;;  %v1173_v35 = vpop.f32.mrb[43].mxu1  ;;  %v1172_v45 = vadd.f32 %v1171_v30, %v2276_v58 }
 0x1b9   :  { %1396 = vst [vmem:[%s2494_s6 + $0x128] sm:$0xff] %v1323_v31  ;;  %v1327_v17 = vadd.f32 %v1326_v34, %v1164_v50  ;;  %v1174_v38 = vadd.f32 %v1173_v35, %v2278_v59 }
 0x1ba   :  { %1397 = vst [vmem:[%s2494_s6 + $0x130] sm:$0xff] %v1325_v33 }
 0x1bb   :  { %1398 = vst [vmem:[%s2494_s6 + $0x138] sm:$0xff] %v1327_v17 }
 0x1bd   :  { %v1330_v39 = vpop.f32.mrb[40].mxu0  ;;  %v1177_v43 = vpop.f32.mrb[44].mxu1 }
 0x1be   :  { %v1331_v44 = vadd.f32 %v1330_v39, %v1168_v36  ;;  %v1332_v42 = vpop.f32.mrb[41].mxu0  ;;  %v1179_v37 = vpop.f32.mrb[45].mxu1  ;;  %v1178_v11 = vadd.f32 %v1177_v43, %v2276_v58 }
 0x1bf   :  { %v1333_v9 = vadd.f32 %v1332_v42, %v1170_v40  ;;  %v1334_v27 = vpop.f32.mrb[42].mxu0  ;;  %v1181_v41 = vpop.f32.mrb[46].mxu1  ;;  %v1180_v52 = vadd.f32 %v1179_v37, %v2278_v59 }
 0x1c0   :  { %1399 = vst [vmem:[%s2494_s6 + $0x140] sm:$0xff] %v1331_v44  ;;  %v1335_v46 = vadd.f32 %v1334_v27, %v1172_v45  ;;  %v1336_v47 = vpop.f32.mrb[43].mxu0  ;;  %v1183_v48 = vpop.f32.mrb[47].mxu1  ;;  %v1182_v55 = vadd.f32 %v1181_v41, %v2276_v58 }
 0x1c1   :  { %1400 = vst [vmem:[%s2494_s6 + $0x148] sm:$0xff] %v1333_v9  ;;  %v1337_v49 = vadd.f32 %v1336_v47, %v1174_v38  ;;  %v1184_v19 = vadd.f32 %v1183_v48, %v2278_v59 }
 0x1c2   :  { %1401 = vst [vmem:[%s2494_s6 + $0x150] sm:$0xff] %v1335_v46 }
 0x1c3   :  { %1402 = vst [vmem:[%s2494_s6 + $0x158] sm:$0xff] %v1337_v49 }
 0x1c5   :  { %v1340_v51 = vpop.f32.mrb[44].mxu0  ;;  %v1187_v28 = vpop.f32.mrb[48].mxu1 }
 0x1c6   :  { %v1341_v53 = vadd.f32 %v1340_v51, %v1178_v11  ;;  %v1342_v54 = vpop.f32.mrb[45].mxu0  ;;  %v1189_v57 = vpop.f32.mrb[49].mxu1  ;;  %v1188_v2 = vadd.f32 %v1187_v28, %v2276_v58 }
 0x1c7   :  { %v1343_v56 = vadd.f32 %v1342_v54, %v1180_v52  ;;  %v1344_v25 = vpop.f32.mrb[46].mxu0  ;;  %v1191_v62 = vpop.f32.mrb[50].mxu1  ;;  %v1190_v4 = vadd.f32 %v1189_v57, %v2278_v59 }
 0x1c8   :  { %1403 = vst [vmem:[%s2494_s6 + $0x160] sm:$0xff] %v1341_v53  ;;  %v1345_v63 = vadd.f32 %v1344_v25, %v1182_v55  ;;  %v1346_v0 = vpop.f32.mrb[47].mxu0  ;;  %v1193_v60 = vpop.f32.mrb[51].mxu1  ;;  %v1192_v7 = vadd.f32 %v1191_v62, %v2276_v58 }
 0x1c9   :  { %1404 = vst [vmem:[%s2494_s6 + $0x168] sm:$0xff] %v1343_v56  ;;  %v1347_v1 = vadd.f32 %v1346_v0, %v1184_v19  ;;  %v1194_v3 = vadd.f32 %v1193_v60, %v2278_v59 }
 0x1ca   :  { %1405 = vst [vmem:[%s2494_s6 + $0x170] sm:$0xff] %v1345_v63 }
 0x1cb   :  { %1406 = vst [vmem:[%s2494_s6 + $0x178] sm:$0xff] %v1347_v1 }
 0x1cd   :  { %v1350_v13 = vpop.f32.mrb[48].mxu0 }
 0x1ce   :  { %v1351_v5 = vadd.f32 %v1350_v13, %v1188_v2  ;;  %v1352_v6 = vpop.f32.mrb[49].mxu0 }
 0x1cf   :  { %v1353_v8 = vadd.f32 %v1352_v6, %v1190_v4  ;;  %v1354_v10 = vpop.f32.mrb[50].mxu0 }
 0x1d0   :  { %1407 = vst [vmem:[%s2494_s6 + $0x180] sm:$0xff] %v1351_v5  ;;  %v1355_v61 = vadd.f32 %v1354_v10, %v1192_v7  ;;  %v1356_v12 = vpop.f32.mrb[51].mxu0 }
 0x1d1   :  { %1408 = vst [vmem:[%s2494_s6 + $0x188] sm:$0xff] %v1353_v8  ;;  %v1357_v14 = vadd.f32 %v1356_v12, %v1194_v3 }
 0x1d2   :  { %1409 = vst [vmem:[%s2494_s6 + $0x190] sm:$0xff] %v1355_v61 }
 0x1d3   :  { %1410 = vst [vmem:[%s2494_s6 + $0x198] sm:$0xff] %v1357_v14 }

// kernel: tile.53
= control target key start
LH: loop header
LB: loop body
LE: loop exit
PB: predicated region body
PF: predicated region fallthrough
CT: control target
= control target key end

     0   :  { %s22_s0 = inlined_call_operand.vmem [shape: f32[32], index: 0, kind: input, shape index: {}]   ;;  %s23_s1 = inlined_call_operand.vmem [shape: f32[4,32], index: 1, kind: output, shape index: {}]  }
   0x1   :  { %v4_v0 = vld [vmem:[%s22_s0] ss:$0 sm:$0xff] }
   0x2   :  { %5 = vst [vmem:[%s23_s1] sm:$0xf] %v4_v0 }

// kernel: tile.54
= control target key start
LH: loop header
LB: loop body
LE: loop exit
PB: predicated region body
PF: predicated region fallthrough
CT: control target
= control target key end

     0   :  { %vm7_vm0 = vcmask 261120   ;;  %s37_s8 = smov 32   ;;  %s38_s9 = smov 64   ;;  %vm13_vm1 = vcmask 1048320   ;;  %vm19_vm2 = vcmask 785920   ;;  %vm25_vm3 = vcmask 523520   ;;  %s55_s0 = inlined_call_operand.vmem [shape: f32[4,32], index: 0, kind: input, shape index: {}]   ;;  %s56_s1 = inlined_call_operand.vmem [shape: f32[1,128], index: 1, kind: output, shape index: {}]  }
   0x1   :  { %v4_v0 = vld [vmem:[%s55_s0] sm:$0xf]  ;;  %s36_s0 = smov 96  }
   0x2   :  { %5 = vst [vmem:[#allocation1] sm:$0xf] %v4_v0 }
   0x9   :  { %v10_v1 = vld [vmem:[#allocation1 + $0x3] sm:$0x1]   ;;  %v22_v2 = vld [vmem:[#allocation1 + $0x1] sm:$0x1]   ;;  %v6_v3 = vld [vmem:[#allocation1] sm:$0x1]  }
   0xa   :  { %11 = vrot.lane.b32.xlu0 %v10_v1, %s36_s0  ;;  %23 = vrot.lane.b32.xlu1 %v22_v2, %s37_s8  ;;  %v16_v4 = vld [vmem:[#allocation1 + $0x2] sm:$0x1]   ;;  %8 = vst.msk [vmem:[#allocation0] sm:$0x1] %vm7_vm0, %v6_v3  }
   0xe   :  { %17 = vrot.lane.b32.xlu0 %v16_v4, %s38_s9 }
  0x7c   :  { %v12_v5 = vpop.permute.xlu0 %11   ;;  %v24_v6 = vpop.permute.xlu1 %23  }
  0x7d   :  { %14 = vst.msk [vmem:[#allocation0] sm:$0x1] %vm13_vm1, %v12_v5  }
  0x80   :  { %v18_v7 = vpop.permute.xlu0 %17  }
  0x81   :  { %20 = vst.msk [vmem:[#allocation0] sm:$0x1] %vm19_vm2, %v18_v7  }
  0x82   :  { %26 = vst.msk [vmem:[#allocation0] sm:$0x1] %vm25_vm3, %v24_v6  }
  0x89   :  { %v30_v8 = vld [vmem:[#allocation0] sm:$0x1] }
  0x8a   :  { %32 = vst [vmem:[%s56_s1] sm:$0x1] %v30_v8 }

// kernel: generator_forward.7
= control target key start
LH: loop header
LB: loop body
LE: loop exit
PB: predicated region body
PF: predicated region fallthrough
CT: control target
= control target key end

     0   :  { %s3432_s21 = smov 0   ;;  %s4737_s0 = inlined_call_operand.vmem [shape: f32[656,64], index: 0, kind: input, shape index: {}]   ;;  %s4738_s1 = inlined_call_operand.vmem [shape: f32[656,1], index: 1, kind: input, shape index: {}]   ;;  %s4739_s2 = inlined_call_operand.vmem [shape: f32[1,64], index: 2, kind: input, shape index: {}]   ;;  %s4740_s3 = inlined_call_operand.vmem [shape: f32[1,64], index: 3, kind: input, shape index: {}]   ;;  %s4741_s4 = inlined_call_operand.vmem [shape: bf16[256,128], index: 4, kind: input, shape index: {}]   ;;  %s4742_s5 = inlined_call_operand.vmem [shape: f32[1,128], index: 5, kind: input, shape index: {}]   ;;  %s4743_s6 = inlined_call_operand.vmem [shape: f32[656,128], index: 6, kind: output, shape index: {}]  }
   0x1 LB: > { %s2694_s22 = sadd.s32 4294967295, %s3392_s21   ;;  %p2698_p0 = scmp.ge.s32.totalorder %s3392_s21, 1  ;;  %s3392_s21 = sphi %s3432_s21, %s16_s21  }
   0x2   : > { %p224_p1 = scmp.lt.s32.totalorder %s3392_s21, 3 }
   0x4   : > { %p225_p2 = pnand %p2698_p0, %p224_p1 }
   0x5   : > { %vm764_vm0 = vcmask (!%p225_p2), 523264   ;;  %vm787_vm1 = vcmask (!%p225_p2), 523268   ;;  %s259_s23 = smul.u32 (!%p225_p2), 41, %s2694_s22  ;;  %v3394_v0 = vmov (!%p225_p2), 0   ;;  %v3395_v5 = vmov (!%p225_p2), 0.0   ;;  %v3288_v12 = vld [vmem:[%s4741_s4] sm:$0xff] (!%p225_p2)  }
   0x6   : > { %228 = sbr.rel (%p225_p2) target bundleno = 727 (0x2d7), region = 44  ;;  %3287 = vset.pattern.permute.xlu1 (!%p225_p2), %v3394_v0  ;;  %788 = vst.msk [vmem:[#allocation2 + $0xa0] sm:$0xf0] (!%p225_p2), %vm787_vm1, %v3394_v0  ;;  %3286 = vset.pattern.permute.xlu0 (!%p225_p2), %v3394_v0  ;;  %v3290_v13 = vld [vmem:[%s4741_s4 + $0x20] sm:$0xff] (!%p225_p2)   ;;  %v3289_v14 = vld [vmem:[%s4741_s4 + $0x8] sm:$0xff] (!%p225_p2)   ;;  %vm3396_vm2 = vmmov (!%p225_p2), 0  }
   0x7   : > { %789 = vst.msk [vmem:[#allocation2 + $0xa8] sm:$0xff] (!%p225_p2), %vm764_vm0, %v3394_v0  ;;  %p260_p3 = scmp.lt.s32.totalorder (!%p225_p2), %s259_s23, 81  ;;  %2999 = vmatprep.subr.bf16.mxu1 (!%p225_p2), %v3395_v5  ;;  %2907 = vmatprep.subr.bf16.mxu0 (!%p225_p2), %v3395_v5  ;;  %v3292_v17 = vld [vmem:[%s4741_s4 + $0x28] sm:$0xff] (!%p225_p2)   ;;  %v3291_v19 = vld [vmem:[%s4741_s4 + $0x10] sm:$0xff] (!%p225_p2)   ;;  %v3293_v23 = vld [vmem:[%s4741_s4 + $0x18] sm:$0xff] (!%p225_p2)   ;;  %vm1600_vm4 = vcmask (!%p225_p2), 1046528  }
   0x8   : > { %3000 = vmatpush3.bf16.msra.mxu1 (!%p225_p2), %v3288_v12  ;;  %3007 = vmatprep.mubr.msk.bf16.mxu1 (!%p225_p2), %vm3396_vm2, %v3395_v5  ;;  %v3294_v21 = vld [vmem:[%s4741_s4 + $0x30] sm:$0xff] (!%p225_p2)   ;;  %v3295_v25 = vld [vmem:[%s4741_s4 + $0x38] sm:$0xff] (!%p225_p2)   ;;  %v3530_v44 = vld [vmem:[%s4739_s2] ss:$0 sm:$0xff] (!%p225_p2)  ;;  %vm828_vm3 = vsmask.f32 (!%p225_p2), 7424 }
   0x9   : > { %3001 = vmatprep.subr.bf16.mxu1 (!%p225_p2), %v3395_v5  ;;  %2908 = vmatpush3.bf16.msra.mxu0 (!%p225_p2), %v3290_v13  ;;  %v3539_v49 = vld [vmem:[%s4740_s3] ss:$0 sm:$0xff] (!%p225_p2)  ;;  %vm1979_vm5 = vsmask.f32 (!%p225_p2), 6400  ;;  %vm785_vm6 = vcmask (!%p225_p2), 519168  }
   0xa   : > { %2909 = vmatprep.subr.bf16.mxu0 (!%p225_p2), %v3395_v5  ;;  %2915 = vmatprep.mubr.msk.bf16.mxu0 (!%p225_p2), %vm3396_vm2, %v3395_v5 }
   0xc   : > { %3002 = vmatpush3.bf16.msra.mxu1 (!%p225_p2), %v3289_v14 }
   0xd   : > { %s4781_s23 = smov (!%p260_p3, %s259_s23), 81  ;;  %3003 = vmatprep.subr.bf16.mxu1 %v3395_v5  ;;  %2910 = vmatpush3.bf16.msra.mxu0 %v3292_v17 }
   0xe   : > { %s3441_s24 = sshll.u32 %s4781_s23, 3  ;;  %2911 = vmatprep.subr.bf16.mxu0 %v3395_v5 }
   0xf   : > { %s3447_s27 = scalar_lea.vmem %s4738_s1, %s3441_s24  ;;  %s3525_s23 = scalar_lea.vmem %s4737_s0, %s3441_s24 }
  0x10   : > { %v458_v1 = vld [vmem:[%s3447_s27 + $0x10] sm:$0xff]  ;;  %v456_v2 = vld [vmem:[%s3447_s27] sm:$0xff]  ;;  %v459_v3 = vld [vmem:[%s3447_s27 + $0x18] sm:$0xff]  ;;  %3004 = vmatpush3.bf16.msra.mxu1 %v3291_v19  ;;  %s4616_s28 = scalar_lea.vmem %s4743_s6, %s3441_s24 }
  0x11   : > { %509 = vperm.xlu1 %3287, %v458_v1   ;;  %499 = vperm.xlu0 %3286, %v456_v2   ;;  %v457_v4 = vld [vmem:[%s3447_s27 + $0x8] sm:$0xff]  ;;  %v460_v7 = vld [vmem:[%s3447_s27 + $0x20] sm:$0xff]  ;;  %v463_v8 = vld [vmem:[%s3447_s27 + $0x38] sm:$0xff] }
  0x12   : > { %v461_v6 = vld [vmem:[%s3447_s27 + $0x28] sm:$0xff]  ;;  %v462_v9 = vld [vmem:[%s3447_s27 + $0x30] sm:$0xff]  ;;  %v464_v11 = vld [vmem:[%s3447_s27 + $0x40] sm:$0xff]  ;;  %3005 = vmatprep.subr.bf16.mxu1 %v3395_v5  ;;  %2912 = vmatpush3.bf16.msra.mxu0 %v3294_v21 }
  0x13   : > { %v465_v10 = vld [vmem:[%s3447_s27 + $0x48] sm:$0xff]  ;;  %v467_v15 = vld [vmem:[%s3447_s27 + $0x58] sm:$0xff]  ;;  %v466_v16 = vld [vmem:[%s3447_s27 + $0x50] sm:$0xff]  ;;  %2913 = vmatprep.subr.bf16.mxu0 %v3395_v5 }
  0x14   : > { %v469_v18 = vld [vmem:[%s3447_s27 + $0x68] sm:$0xff]  ;;  %v468_v20 = vld [vmem:[%s3447_s27 + $0x60] sm:$0xff]  ;;  %v471_v22 = vld [vmem:[%s3447_s27 + $0x78] sm:$0xff]  ;;  %3006 = vmatpush3.bf16.msra.mxu1 %v3293_v23 }
  0x15   : > { %514 = vperm.xlu1 %3287, %v459_v3   ;;  %504 = vperm.xlu0 %3286, %v457_v4   ;;  %v470_v24 = vld [vmem:[%s3447_s27 + $0x70] sm:$0xff]  ;;  %v473_v26 = vld [vmem:[%s3447_s27 + $0x88] sm:$0xff]  ;;  %v472_v27 = vld [vmem:[%s3447_s27 + $0x80] sm:$0xff] }
  0x16   : > { %2914 = vmatpush3.bf16.msra.mxu0 %v3295_v25  ;;  %3183 = vmatprep.subr.bf16.mxu1 %v3395_v5  ;;  %v475_v28 = vld [vmem:[%s3447_s27 + $0x98] sm:$0xff]  ;;  %v474_v29 = vld [vmem:[%s3447_s27 + $0x90] sm:$0xff]  ;;  %v477_v30 = vld [vmem:[%s3447_s27 + $0xa8] sm:$0xff] }
  0x17   : > { %3091 = vmatprep.subr.bf16.mxu0 %v3395_v5  ;;  %v476_v31 = vld [vmem:[%s3447_s27 + $0xa0] sm:$0xff]  ;;  %v479_v32 = vld [vmem:[%s3447_s27 + $0xb8] sm:$0xff]  ;;  %v478_v33 = vld [vmem:[%s3447_s27 + $0xb0] sm:$0xff] }
  0x18   : > { %v481_v34 = vld [vmem:[%s3447_s27 + $0xc8] sm:$0xff]  ;;  %v480_v35 = vld [vmem:[%s3447_s27 + $0xc0] sm:$0xff]  ;;  %v483_v36 = vld [vmem:[%s3447_s27 + $0xd8] sm:$0xff] }
  0x19   : > { %524 = vperm.xlu1 %3287, %v461_v6   ;;  %519 = vperm.xlu0 %3286, %v460_v7   ;;  %v482_v37 = vld [vmem:[%s3447_s27 + $0xd0] sm:$0xff]  ;;  %v485_v38 = vld [vmem:[%s3447_s27 + $0xe8] sm:$0xff]  ;;  %v484_v39 = vld [vmem:[%s3447_s27 + $0xe0] sm:$0xff] }
  0x1a   : > { %v487_v40 = vld [vmem:[%s3447_s27 + $0xf8] sm:$0xff]  ;;  %v486_v41 = vld [vmem:[%s3447_s27 + $0xf0] sm:$0xff]  ;;  %v489_v42 = vld [vmem:[%s3447_s27 + $0x108] sm:$0xff] }
  0x1b   : > { %v488_v43 = vld [vmem:[%s3447_s27 + $0x100] sm:$0xff]  ;;  %v313_v45 = vld [vmem:[%s3525_s23 + $0x118] sm:$0xff]  ;;  %v312_v46 = vld [vmem:[%s3525_s23 + $0x110] sm:$0xff] }
  0x1c   : > { %v361_v47 = vmul.f32 %v3530_v44, %v313_v45  ;;  %v360_v48 = vmul.f32 %v3530_v44, %v312_v46  ;;  %v491_v50 = vld [vmem:[%s3447_s27 + $0x118] sm:$0xff]  ;;  %v490_v51 = vld [vmem:[%s3447_s27 + $0x110] sm:$0xff]  ;;  %v315_v54 = vld [vmem:[%s3525_s23 + $0x128] sm:$0xff] }
  0x1d   : > { %534 = vperm.xlu1 %3287, %v463_v8   ;;  %529 = vperm.xlu0 %3286, %v462_v9   ;;  %v314_v55 = vld [vmem:[%s3525_s23 + $0x120] sm:$0xff]  ;;  %v363_v56 = vmul.f32 %v3530_v44, %v315_v54  ;;  %v493_v58 = vld [vmem:[%s3447_s27 + $0x128] sm:$0xff]  ;;  %v317_v62 = vld [vmem:[%s3525_s23 + $0x138] sm:$0xff] }
  0x1e   : > { %v3544_v52 = vadd.f32 %v3539_v49, %v361_v47  ;;  %v3547_v53 = vadd.f32 %v3539_v49, %v360_v48  ;;  %v362_v57 = vmul.f32 %v3530_v44, %v314_v55  ;;  %v492_v59 = vld [vmem:[%s3447_s27 + $0x120] sm:$0xff]  ;;  %v316_v63 = vld [vmem:[%s3525_s23 + $0x130] sm:$0xff]  ;;  %v365_v0 = vmul.f32 %v3530_v44, %v317_v62  ;;  %v495_v2 = vld [vmem:[%s3447_s27 + $0x138] sm:$0xff] }
  0x1f   : > { %v3556_v60 = vadd.f32 %v3539_v49, %v363_v56  ;;  %v364_v1 = vmul.f32 %v3530_v44, %v316_v63  ;;  %v494_v3 = vld [vmem:[%s3447_s27 + $0x130] sm:$0xff]  ;;  %v318_v7 = vld [vmem:[%s3525_s23 + $0x140] sm:$0xff]  ;;  %v281_v13 = vld [vmem:[%s3525_s23 + $0x18] sm:$0xff] }
  0x20   : > { %v3559_v61 = vadd.f32 %v3539_v49, %v362_v57  ;;  %v3568_v4 = vadd.f32 %v3539_v49, %v365_v0  ;;  %v366_v8 = vmul.f32 %v3530_v44, %v318_v7  ;;  %v496_v9 = vld [vmem:[%s3447_s27 + $0x140] sm:$0xff]  ;;  %v279_v14 = vld [vmem:[%s3525_s23 + $0x8] sm:$0xff]  ;;  %v329_v17 = vmul.f32 %v3530_v44, %v281_v13  ;;  %v285_v21 = vld [vmem:[%s3525_s23 + $0x38] sm:$0xff] }
  0x21   : > { %544 = vperm.xlu1 %3287, %v465_v10   ;;  %539 = vperm.xlu0 %3286, %v464_v11   ;;  %v3571_v6 = vadd.f32 %v3539_v49, %v364_v1  ;;  %v280_v11 = vld [vmem:[%s3525_s23 + $0x10] sm:$0xff]  ;;  %v278_v12 = vld [vmem:[%s3525_s23] sm:$0xff]  ;;  %v283_v19 = vld [vmem:[%s3525_s23 + $0x28] sm:$0xff] }
  0x22   : > { %v3577_v10 = vadd.f32 %v3539_v49, %v366_v8  ;;  %v289_v45 = vld [vmem:[%s3525_s23 + $0x58] sm:$0xff]  ;;  %v288_v46 = vld [vmem:[%s3525_s23 + $0x50] sm:$0xff]  ;;  %v291_v55 = vld [vmem:[%s3525_s23 + $0x68] sm:$0xff] }
  0x23   : > { %v290_v56 = vld [vmem:[%s3525_s23 + $0x60] sm:$0xff]  ;;  %v293_v63 = vld [vmem:[%s3525_s23 + $0x78] sm:$0xff]  ;;  %v292_v0 = vld [vmem:[%s3525_s23 + $0x70] sm:$0xff]  ;;  %v337_v7 = vmul.f32 %v3530_v44, %v289_v45  ;;  %v336_v8 = vmul.f32 %v3530_v44, %v288_v46 }
  0x24   : > { %v295_v1 = vld [vmem:[%s3525_s23 + $0x88] sm:$0xff]  ;;  %v3297_v46 = vld [vmem:[%s4741_s4 + $0x60] sm:$0xff]  }
  0x25   : > { %554 = vperm.xlu1 %3287, %v467_v15   ;;  %549 = vperm.xlu0 %3286, %v466_v16   ;;  %v328_v15 = vmul.f32 %v3530_v44, %v280_v11  ;;  %v326_v16 = vmul.f32 %v3530_v44, %v278_v12 }
  0x27   : > { %v376_v25 = vadd.f32 %v3539_v49, %v328_v15 }
  0x29   : > { %564 = vperm.xlu1 %3287, %v469_v18   ;;  %559 = vperm.xlu0 %3286, %v468_v20   ;;  %v327_v18 = vmul.f32 %v3530_v44, %v279_v14  ;;  %v282_v20 = vld [vmem:[%s3525_s23 + $0x20] sm:$0xff]  ;;  %v339_v14 = vmul.f32 %v3530_v44, %v291_v55 }
  0x2a   : > { %v330_v23 = vmul.f32 %v3530_v44, %v282_v20  ;;  %v343_v20 = vmul.f32 %v3530_v44, %v295_v1 }
  0x2d   : > { %574 = vperm.xlu1 %3287, %v471_v22   ;;  %569 = vperm.xlu0 %3286, %v470_v24   ;;  %v331_v22 = vmul.f32 %v3530_v44, %v283_v19  ;;  %v284_v24 = vld [vmem:[%s3525_s23 + $0x30] sm:$0xff]  ;;  %v340_v19 = vmul.f32 %v3530_v44, %v292_v0 }
  0x31   : > { %584 = vperm.xlu1 %3287, %v473_v26   ;;  %579 = vperm.xlu0 %3286, %v472_v27   ;;  %v374_v26 = vadd.f32 %v3539_v49, %v326_v16  ;;  %v377_v27 = vadd.f32 %v3539_v49, %v329_v17  ;;  %v338_v17 = vmul.f32 %v3530_v44, %v290_v56 }
  0x35   : > { %594 = vperm.xlu1 %3287, %v475_v28   ;;  %589 = vperm.xlu0 %3286, %v474_v29   ;;  %v375_v28 = vadd.f32 %v3539_v49, %v327_v18  ;;  %v333_v29 = vmul.f32 %v3530_v44, %v285_v21  ;;  %v341_v18 = vmul.f32 %v3530_v44, %v293_v63 }
  0x39   : > { %604 = vperm.xlu1 %3287, %v477_v30   ;;  %599 = vperm.xlu0 %3286, %v476_v31   ;;  %v332_v30 = vmul.f32 %v3530_v44, %v284_v24  ;;  %v287_v31 = vld [vmem:[%s3525_s23 + $0x48] sm:$0xff] }
  0x3d   : > { %614 = vperm.xlu1 %3287, %v479_v32   ;;  %609 = vperm.xlu0 %3286, %v478_v33  }
  0x41   : > { %624 = vperm.xlu1 %3287, %v481_v34   ;;  %619 = vperm.xlu0 %3286, %v480_v35   ;;  %v379_v34 = vadd.f32 %v3539_v49, %v331_v22  ;;  %v378_v35 = vadd.f32 %v3539_v49, %v330_v23 }
  0x45   : > { %634 = vperm.xlu1 %3287, %v483_v36   ;;  %629 = vperm.xlu0 %3286, %v482_v37   ;;  %v417_v36 = vmax.f32 %v376_v25, 0.0  ;;  %v415_v37 = vmax.f32 %v374_v26, 0.0  ;;  %v3628_v25 = vadd.f32 %v3539_v49, %v337_v7 }
  0x47   : > { %v426_v45 = vmax.f32 %v3628_v25, 0.0 }
  0x49   : > { %644 = vperm.xlu1 %3287, %v485_v38   ;;  %639 = vperm.xlu0 %3286, %v484_v39   ;;  %v418_v38 = vmax.f32 %v377_v27, 0.0  ;;  %v416_v39 = vmax.f32 %v375_v28, 0.0  ;;  %v3631_v28 = vadd.f32 %v3539_v49, %v336_v8 }
  0x4d   : > { %654 = vperm.xlu1 %3287, %v487_v40   ;;  %649 = vperm.xlu0 %3286, %v486_v41   ;;  %v286_v40 = vld [vmem:[%s3525_s23 + $0x40] sm:$0xff]  ;;  %v381_v41 = vadd.f32 %v3539_v49, %v333_v29  ;;  %v3634_v29 = vadd.f32 %v3539_v49, %v339_v14 }
  0x4e   : > { %v334_v54 = vmul.f32 %v3530_v44, %v286_v40 }
  0x4f   : > { %v428_v55 = vmax.f32 %v3634_v29, 0.0 }
  0x50   : > { %v382_v23 = vadd.f32 %v3539_v49, %v334_v54  ;;  %v425_v54 = vmax.f32 %v3631_v28, 0.0 }
  0x51   : > { %664 = vperm.xlu1 %3287, %v489_v42   ;;  %659 = vperm.xlu0 %3286, %v488_v43   ;;  %v335_v42 = vmul.f32 %v3530_v44, %v287_v31  ;;  %v380_v43 = vadd.f32 %v3539_v49, %v332_v30  ;;  %v297_v30 = vld [vmem:[%s3525_s23 + $0x98] sm:$0xff]  ;;  %v296_v31 = vld [vmem:[%s3525_s23 + $0x90] sm:$0xff] }
  0x53   : > { %v421_v13 = vmax.f32 %v380_v43, 0.0 }
  0x55   : > { %674 = vperm.xlu1 %3287, %v491_v50   ;;  %669 = vperm.xlu0 %3286, %v490_v51   ;;  %v420_v50 = vmax.f32 %v379_v34, 0.0  ;;  %v419_v51 = vmax.f32 %v378_v35, 0.0  ;;  %v3640_v35 = vadd.f32 %v3539_v49, %v338_v17 }
  0x59   : > { %684 = vperm.xlu1 %3287, %v493_v58   ;;  %679 = vperm.xlu0 %3286, %v492_v59  }
  0x5d   : > { %694 = vperm.xlu1 %3287, %v495_v2   ;;  %689 = vperm.xlu0 %3286, %v494_v3   ;;  %v422_v2 = vmax.f32 %v381_v41, 0.0  ;;  %v383_v3 = vadd.f32 %v3539_v49, %v335_v42  ;;  %v423_v42 = vmax.f32 %v382_v23, 0.0 }
  0x5f   : > { %v424_v27 = vmax.f32 %v383_v3, 0.0 }
  0x61   : > { %699 = vperm.xlu0 %3286, %v496_v9   ;;  %v294_v9 = vld [vmem:[%s3525_s23 + $0x80] sm:$0xff] }
  0x62   : > { %v342_v24 = vmul.f32 %v3530_v44, %v294_v9 }
  0x64   : > { %v3654_v43 = vadd.f32 %v3539_v49, %v342_v24 }
  0x66   : > { %v431_v9 = vmax.f32 %v3654_v43, 0.0 }
  0x90   : > { %v510_v32 = vpop.permute.xlu1 %509  ;;  %v500_v33 = vpop.permute.xlu0 %499 }
  0x91   : > { %v704_v57 = vmul.f32 %v510_v32, %v417_v36  ;;  %v702_v58 = vmul.f32 %v500_v33, %v415_v37  ;;  %v299_v32 = vld [vmem:[%s3525_s23 + $0xa8] sm:$0xff]  ;;  %v3643_v36 = vadd.f32 %v3539_v49, %v341_v18  ;;  %v3646_v37 = vadd.f32 %v3539_v49, %v340_v19 }
  0x92   : > { %v3299_v18 = vld [vmem:[%s4741_s4 + $0x68] sm:$0xff]  }
  0x93   : > { %v430_v0 = vmax.f32 %v3643_v36, 0.0  ;;  %v429_v1 = vmax.f32 %v3646_v37, 0.0  ;;  %v3300_v36 = vld [vmem:[%s4741_s4 + $0x50] sm:$0xff]  }
  0x94   : > { %v515_v47 = vpop.permute.xlu1 %514  ;;  %v505_v48 = vpop.permute.xlu0 %504 }
  0x95   : > { %v705_v59 = vmul.f32 %v515_v47, %v418_v38  ;;  %v703_v62 = vmul.f32 %v505_v48, %v416_v39  ;;  %v3649_v38 = vadd.f32 %v3539_v49, %v343_v20  ;;  %v298_v39 = vld [vmem:[%s3525_s23 + $0xa0] sm:$0xff]  ;;  %v345_v47 = vmul.f32 %v3530_v44, %v297_v30 }
  0x96   : > { %v344_v48 = vmul.f32 %v3530_v44, %v296_v31  ;;  %v346_v56 = vmul.f32 %v3530_v44, %v298_v39 }
  0x97   : > { %v744_v11 = vpack.c.bf16 %v705_v59, %v704_v57  ;;  %v743_v12 = vpack.c.bf16 %v703_v62, %v702_v58  ;;  %v427_v62 = vmax.f32 %v3640_v35, 0.0 }
  0x98   : > { %v525_v15 = vpop.permute.xlu1 %524  ;;  %v520_v16 = vpop.permute.xlu0 %519 }
  0x99   : > { %766 = vst.msk [vmem:[#allocation2 + $0x8] sm:$0xff] %vm764_vm0, %v744_v11  ;;  %765 = vst.msk [vmem:[#allocation2] sm:$0xff] %vm764_vm0, %v743_v12  ;;  %v707_v21 = vmul.f32 %v525_v15, %v420_v50  ;;  %v706_v22 = vmul.f32 %v520_v16, %v419_v51  ;;  %v347_v50 = vmul.f32 %v3530_v44, %v299_v32  ;;  %v301_v11 = vld [vmem:[%s3525_s23 + $0xb8] sm:$0xff]  ;;  %v300_v12 = vld [vmem:[%s3525_s23 + $0xb0] sm:$0xff] }
  0x9a   : > { %v3682_v15 = vadd.f32 %v3539_v49, %v345_v47  ;;  %v3685_v16 = vadd.f32 %v3539_v49, %v344_v48  ;;  %v348_v28 = vmul.f32 %v3530_v44, %v300_v12 }
  0x9b   : > { %v745_v26 = vpack.c.bf16 %v707_v21, %v706_v22  ;;  %v3688_v17 = vadd.f32 %v3539_v49, %v347_v50  ;;  %v3694_v22 = vadd.f32 %v3539_v49, %v346_v56 }
  0x9c   : > { %v535_v33 = vpop.permute.xlu1 %534  ;;  %v530_v34 = vpop.permute.xlu0 %529 }
  0x9d   : > { %767 = vst.msk [vmem:[#allocation2 + $0x10] sm:$0xff] %vm764_vm0, %v745_v26  ;;  %v709_v40 = vmul.f32 %v535_v33, %v422_v2  ;;  %v708_v41 = vmul.f32 %v530_v34, %v421_v13  ;;  %v432_v2 = vmax.f32 %v3649_v38, 0.0  ;;  %v303_v13 = vld [vmem:[%s3525_s23 + $0xc8] sm:$0xff]  ;;  %v3296_v34 = vld [vmem:[%s4741_s4 + $0x40] sm:$0xff]   ;;  %v435_v50 = vmax.f32 %v3694_v22, 0.0 }
  0x9e   : > { %v351_v30 = vmul.f32 %v3530_v44, %v303_v13 }
  0x9f   : > { %v746_v51 = vpack.c.bf16 %v709_v40, %v708_v41  ;;  %v302_v40 = vld [vmem:[%s3525_s23 + $0xc0] sm:$0xff]  ;;  %v434_v41 = vmax.f32 %v3682_v15, 0.0 }
  0xa0   : > { %v545_v57 = vpop.permute.xlu1 %544  ;;  %v540_v58 = vpop.permute.xlu0 %539  ;;  %v790_v59 = vld [vmem:[#allocation2] sm:$0xff]  ;;  %v3667_v63 = vld [vmem:[#allocation2 + $0x8] sm:$0xff] }
  0xa1   : > { %768 = vst.msk [vmem:[#allocation2 + $0x18] sm:$0xff] %vm764_vm0, %v746_v51  ;;  %v711_v3 = vmul.f32 %v545_v57, %v424_v27  ;;  %v710_v7 = vmul.f32 %v540_v58, %v423_v42  ;;  %v832_v8 = vshll.u32 %v790_v59, 16  ;;  %3008 = vmatmul.mubr.msk.bf16.vlgmr.msra.gmra.mrb[0].mxu1 %vm764_vm0, %v790_v59  ;;  %v837_v14 = vshll.u32 %v3667_v63, 16  ;;  %v3301_v51 = vld [vmem:[%s4741_s4 + $0x70] sm:$0xff]  }
  0xa2   : > { %3011 = vmatprep.mubr.msk.bf16.mxu1 %vm3396_vm2, %v3395_v5  ;;  %3184 = vmatpush3.bf16.msra.mxu1 %v3297_v46  ;;  %v830_v20 = vshrl.u32 %v790_v59, 16  ;;  %v349_v27 = vmul.f32 %v3530_v44, %v301_v11  ;;  %v433_v42 = vmax.f32 %v3685_v16, 0.0  ;;  %v436_v46 = vmax.f32 %v3688_v17, 0.0 }
  0xa3   : > { %v747_v19 = vpack.c.bf16 %v711_v3, %v710_v7  ;;  %v834_v21 = vrot.slane %v832_v8, 1  ;;  %3185 = vmatprep.subr.bf16.mxu1 %v3395_v5  ;;  %v3697_v25 = vrot.slane %v837_v14, 1  ;;  %v3728_v3 = vadd.f32 %v3539_v49, %v348_v28 }
  0xa4   : > { %v555_v23 = vpop.permute.xlu1 %554  ;;  %v550_v24 = vpop.permute.xlu0 %549  ;;  %v3699_v26 = vld [vmem:[#allocation2 + $0x10] sm:$0xff]  ;;  %v3725_v59 = vadd.f32 %v3539_v49, %v349_v27  ;;  %v350_v7 = vmul.f32 %v3530_v44, %v302_v40  ;;  %v3742_v14 = vadd.f32 %v3539_v49, %v351_v30 }
  0xa5   : > { %769 = vst.msk [vmem:[#allocation2 + $0x20] sm:$0xff] %vm764_vm0, %v747_v19  ;;  %v835_v31 = vor.u32 %v834_v21, %v830_v20  ;;  %v713_v32 = vmul.f32 %v555_v23, %v426_v45  ;;  %v712_v33 = vmul.f32 %v550_v24, %v425_v54  ;;  %v845_v39 = vshll.u32 %v3699_v26, 16  ;;  %v305_v23 = vld [vmem:[%s3525_s23 + $0xd8] sm:$0xff] }
  0xa6   : > { %v849_v47 = vshrl.u32 %v3699_v26, 16  ;;  %3186 = vmatpush3.bf16.msra.mxu1 %v3299_v18  ;;  %v3298_v18 = vld [vmem:[%s4741_s4 + $0x48] sm:$0xff]   ;;  %v841_v20 = vshrl.u32 %v3667_v63, 16  ;;  %v3303_v24 = vld [vmem:[%s4741_s4 + $0x78] sm:$0xff]  }
  0xa7   : > { %v748_v48 = vpack.c.bf16 %v713_v32, %v712_v33  ;;  %v840_v45 = vsel %vm828_vm3, %v835_v31, %v3697_v25  ;;  %3187 = vmatprep.subr.bf16.mxu1 %v3395_v5  ;;  %v1994_v54 = vrot.slane %v845_v39, 2  ;;  %v3757_v21 = vrot.slane %v845_v39, 1 }
  0xa8   : > { %v565_v56 = vpop.permute.xlu1 %564  ;;  %v560_v57 = vpop.permute.xlu0 %559  ;;  %2916 = vmatmul.mubr.msk.bf16.vlgmr.msra.gmra.mrb[0].mxu0 %vm764_vm0, %v840_v45  ;;  %v3722_v58 = vld [vmem:[#allocation2 + $0x18] sm:$0xff]  ;;  %v1991_v8 = vrot.slane %v849_v47, 1  ;;  %v438_v31 = vmax.f32 %v3725_v59, 0.0  ;;  %v3785_v45 = vadd.f32 %v3539_v49, %v350_v7 }
  0xa9   : > { %770 = vst.msk [vmem:[#allocation2 + $0x28] sm:$0xff] %vm764_vm0, %v748_v48  ;;  %v715_v11 = vmul.f32 %v565_v56, %v428_v55  ;;  %v714_v12 = vmul.f32 %v560_v57, %v427_v62  ;;  %3092 = vmatpush3.bf16.msra.mxu0 %v3296_v34  ;;  %3012 = vmatmul.mubr.msk.bf16.gmra.mrb[4].mxu1 %vm764_vm0, %v3667_v63  ;;  %v853_v13 = vshll.u32 %v3722_v58, 16  ;;  %v857_v29 = vshrl.u32 %v3722_v58, 16 }
  0xaa   : > { %2919 = vmatprep.mubr.msk.bf16.mxu0 %vm3396_vm2, %v3395_v5  ;;  %3015 = vmatprep.mubr.msk.bf16.mxu1 %vm3396_vm2, %v3395_v5  ;;  %v3752_v35 = vor.u32 %v1994_v54, %v1991_v8  ;;  %v4744_v55 = vrot.slane %v3699_v26, 1  ;;  %v1604_v62 = vrot.slane %v3722_v58, 1  ;;  %v437_v63 = vmax.f32 %v3728_v3, 0.0  ;;  %v311_v3 = vld [vmem:[%s3525_s23 + $0x108] sm:$0xff] }
  0xab   : > { %v749_v19 = vpack.c.bf16 %v715_v11, %v714_v12  ;;  %3093 = vmatprep.subr.bf16.mxu0 %v3395_v5  ;;  %3188 = vmatpush3.bf16.msra.mxu1 %v3301_v51  ;;  %v2003_v27 = vrot.slane %v853_v13, 2  ;;  %v2000_v33 = vrot.slane %v857_v29, 1  ;;  %v843_v48 = vor.u32 %v841_v20, %v3697_v25  ;;  %v304_v51 = vld [vmem:[%s3525_s23 + $0xd0] sm:$0xff] }
  0xac   : > { %v575_v28 = vpop.permute.xlu1 %574  ;;  %v570_v30 = vpop.permute.xlu0 %569  ;;  %v3768_v32 = vld [vmem:[#allocation2 + $0x20] sm:$0xff]  ;;  %3189 = vmatprep.subr.bf16.mxu1 %v3395_v5  ;;  %v3776_v34 = vsel %vm1600_vm4, %v4744_v55, %v1604_v62  ;;  %v353_v56 = vmul.f32 %v3530_v44, %v305_v23  ;;  %v440_v25 = vmax.f32 %v3742_v14, 0.0  ;;  %v352_v12 = vmul.f32 %v3530_v44, %v304_v51 }
  0xad   : > { %771 = vst.msk [vmem:[#allocation2 + $0x30] sm:$0xff] %vm764_vm0, %v749_v19  ;;  %v717_v39 = vmul.f32 %v575_v28, %v430_v0  ;;  %v716_v40 = vmul.f32 %v570_v30, %v429_v1  ;;  %3094 = vmatpush3.bf16.msra.mxu0 %v3298_v18  ;;  %v861_v54 = vshll.u32 %v3768_v32, 16  ;;  %v865_v57 = vshrl.u32 %v3768_v32, 16  ;;  %v307_v28 = vld [vmem:[%s3525_s23 + $0xe8] sm:$0xff] }
  0xae   : > { %3095 = vmatprep.subr.bf16.mxu0 %v3395_v5  ;;  %v2004_v37 = vor.u32 %v2003_v27, %v2000_v33  ;;  %v848_v1 = vsel %vm828_vm3, %v843_v48, %v3757_v21  ;;  %v1606_v7 = vrot.slane %v3768_v32, 1  ;;  %v439_v38 = vmax.f32 %v3785_v45, 0.0 }
  0xaf   : > { %v750_v0 = vpack.c.bf16 %v717_v39, %v716_v40  ;;  %3190 = vmatpush3.bf16.msra.mxu1 %v3303_v24  ;;  %v2009_v20 = vrot.slane %v865_v57, 1  ;;  %v2012_v23 = vrot.slane %v861_v54, 2  ;;  %v3827_v43 = vadd.f32 %v3539_v49, %v353_v56 }
  0xb0   : > { %v585_v8 = vpop.permute.xlu1 %584  ;;  %v580_v11 = vpop.permute.xlu0 %579  ;;  %2920 = vmatmul.mubr.msk.bf16.gmra.mrb[4].mxu0 %vm764_vm0, %v848_v1  ;;  %v3801_v18 = vld [vmem:[#allocation2 + $0x28] sm:$0xff]  ;;  %v3805_v19 = vsel %vm1979_vm5, %v3752_v35, %v2004_v37  ;;  %v855_v48 = vrot.slane %v853_v13, 1  ;;  %v3837_v51 = vsel %vm1600_vm4, %v1604_v62, %v1606_v7  ;;  %v355_v1 = vmul.f32 %v3530_v44, %v307_v28 }
  0xb1   : > { %772 = vst.msk [vmem:[#allocation2 + $0x38] sm:$0xff] %vm764_vm0, %v750_v0  ;;  %v719_v24 = vmul.f32 %v585_v8, %v432_v2  ;;  %v718_v27 = vmul.f32 %v580_v11, %v431_v9  ;;  %3016 = vmatmul.mubr.msk.bf16.gmra.mrb[8].mxu1 %vm764_vm0, %v3699_v26  ;;  %2923 = vmatprep.mubr.msk.bf16.mxu0 %vm3396_vm2, %v3395_v5  ;;  %v869_v30 = vshll.u32 %v3801_v18, 16  ;;  %v4746_v33 = vshrl.u32 %v3801_v18, 16  ;;  %v3302_v2 = vld [vmem:[%s4741_s4 + $0x58] sm:$0xff]   ;;  %v306_v8 = vld [vmem:[%s3525_s23 + $0xe0] sm:$0xff] }
  0xb2   : > { %3019 = vmatprep.mubr.msk.bf16.mxu1 %vm3396_vm2, %v3395_v5  ;;  %3096 = vmatpush3.bf16.msra.mxu0 %v3300_v36  ;;  %v2013_v9 = vor.u32 %v2012_v23, %v2009_v20  ;;  %v1608_v39 = vrot.slane %v3801_v18, 1  ;;  %v442_v16 = vmax.f32 %v3827_v43, 0.0  ;;  %v359_v14 = vmul.f32 %v3530_v44, %v311_v3 }
  0xb3   : > { %v751_v40 = vpack.c.bf16 %v719_v24, %v718_v27  ;;  %3097 = vmatprep.subr.bf16.mxu0 %v3395_v5  ;;  %v2018_v56 = vrot.slane %v4746_v33, 1  ;;  %v2021_v13 = vrot.slane %v869_v30, 2  ;;  %v3862_v27 = vadd.f32 %v3539_v49, %v352_v12 }
  0xb4   : > { %v595_v36 = vpop.permute.xlu1 %594  ;;  %v590_v0 = vpop.permute.xlu0 %589  ;;  %v3843_v11 = vld [vmem:[#allocation2 + $0x30] sm:$0xff]  ;;  %v3846_v20 = vsel %vm1979_vm5, %v2004_v37, %v2013_v9  ;;  %v3851_v62 = vsel %vm1600_vm4, %v1606_v7, %v1608_v39  ;;  %v851_v37 = vor.u32 %v849_v47, %v3757_v21  ;;  %v309_v47 = vld [vmem:[%s3525_s23 + $0xf8] sm:$0xff] }
  0xb5   : > { %773 = vst.msk [vmem:[#allocation2 + $0x40] sm:$0xff] %vm764_vm0, %v751_v40  ;;  %v721_v23 = vmul.f32 %v595_v36, %v434_v41  ;;  %v720_v24 = vmul.f32 %v590_v0, %v433_v42  ;;  %v877_v28 = vshll.u32 %v3843_v11, 16  ;;  %v4745_v7 = vshrl.u32 %v3843_v11, 16 }
  0xb6   : > { %3098 = vmatpush3.bf16.msra.mxu0 %v3302_v2  ;;  %v2022_v55 = vor.u32 %v2021_v13, %v2018_v56  ;;  %v1610_v40 = vrot.slane %v3843_v11, 1  ;;  %v856_v41 = vsel %vm828_vm3, %v851_v37, %v855_v48  ;;  %v354_v42 = vmul.f32 %v3530_v44, %v306_v8 }
  0xb7   : > { %v752_v15 = vpack.c.bf16 %v721_v23, %v720_v24  ;;  %v3873_v36 = vadd.f32 %v3539_v49, %v355_v1  ;;  %v2027_v0 = vrot.slane %v4745_v7, 1  ;;  %v2030_v13 = vrot.slane %v877_v28, 2 }
  0xb8   : > { %v605_v21 = vpop.permute.xlu1 %604  ;;  %v600_v12 = vpop.permute.xlu0 %599  ;;  %2924 = vmatmul.mubr.msk.bf16.gmra.mrb[8].mxu0 %vm764_vm0, %v856_v41  ;;  %v3875_v2 = vld [vmem:[#allocation2 + $0x38] sm:$0xff]  ;;  %v3878_v56 = vsel %vm1979_vm5, %v2013_v9, %v2022_v55  ;;  %v308_v9 = vld [vmem:[%s3525_s23 + $0xf0] sm:$0xff]  ;;  %v441_v17 = vmax.f32 %v3862_v27, 0.0  ;;  %v3910_v33 = vadd.f32 %v3539_v49, %v354_v42  ;;  %v859_v42 = vor.u32 %v857_v29, %v855_v48 }
  0xb9   : > { %774 = vst.msk [vmem:[#allocation2 + $0x48] sm:$0xff] %vm764_vm0, %v752_v15  ;;  %v723_v8 = vmul.f32 %v605_v21, %v436_v46  ;;  %v722_v1 = vmul.f32 %v600_v12, %v435_v50  ;;  %3020 = vmatmul.mubr.msk.bf16.gmra.mrb[12].mxu1 %vm764_vm0, %v3722_v58  ;;  %2927 = vmatprep.mubr.msk.bf16.mxu0 %vm3396_vm2, %v3395_v5  ;;  %v4748_v23 = vshll.u32 %v3875_v2, 16  ;;  %v4747_v24 = vshrl.u32 %v3875_v2, 16 }
  0xba   : > { %3023 = vmatprep.mubr.msk.bf16.mxu1 %vm3396_vm2, %v3395_v5  ;;  %v357_v46 = vmul.f32 %v3530_v44, %v309_v47  ;;  %v2031_v22 = vor.u32 %v2030_v13, %v2027_v0  ;;  %v3901_v50 = vsel %vm1600_vm4, %v1608_v39, %v1610_v40  ;;  %v863_v15 = vrot.slane %v861_v54, 1 }
  0xbb   : > { %v753_v37 = vpack.c.bf16 %v723_v8, %v722_v1  ;;  %v2036_v41 = vrot.slane %v4747_v24, 1  ;;  %v2039_v21 = vrot.slane %v4748_v23, 2  ;;  %v356_v47 = vmul.f32 %v3530_v44, %v308_v9 }
  0xbc   : > { %v615_v12 = vpop.permute.xlu1 %614  ;;  %v610_v7 = vpop.permute.xlu0 %609  ;;  %v3913_v39 = vld [vmem:[#allocation2 + $0x40] sm:$0xff]  ;;  %v3916_v0 = vsel %vm1979_vm5, %v2022_v55, %v2031_v22  ;;  %v1612_v54 = vrot.slane %v3875_v2, 1  ;;  %v444_v1 = vmax.f32 %v3873_v36, 0.0  ;;  %v864_v59 = vsel %vm828_vm3, %v859_v42, %v863_v15 }
  0xbd   : > { %775 = vst.msk [vmem:[#allocation2 + $0x50] sm:$0xff] %vm764_vm0, %v753_v37  ;;  %v725_v13 = vmul.f32 %v615_v12, %v438_v31  ;;  %v724_v8 = vmul.f32 %v610_v7, %v437_v63  ;;  %v893_v9 = vshll.u32 %v3913_v39, 16  ;;  %v897_v55 = vshrl.u32 %v3913_v39, 16 }
  0xbe   : > { %v2040_v24 = vor.u32 %v2039_v21, %v2036_v41  ;;  %v3930_v23 = vsel %vm1600_vm4, %v1610_v40, %v1612_v54  ;;  %v3934_v31 = vadd.f32 %v3539_v49, %v357_v46  ;;  %v1614_v58 = vrot.slane %v3913_v39, 1 }
  0xbf   : > { %v754_v37 = vpack.c.bf16 %v725_v13, %v724_v8  ;;  %v3940_v48 = vadd.f32 %v3539_v49, %v356_v47  ;;  %v2045_v46 = vrot.slane %v897_v55, 1  ;;  %v2048_v41 = vrot.slane %v893_v9, 2 }
  0xc0   : > { %v625_v29 = vpop.permute.xlu1 %624  ;;  %v620_v63 = vpop.permute.xlu0 %619  ;;  %2928 = vmatmul.mubr.msk.bf16.gmra.mrb[12].mxu0 %vm764_vm0, %v864_v59  ;;  %v3942_v7 = vld [vmem:[#allocation2 + $0x48] sm:$0xff]  ;;  %v3945_v40 = vsel %vm1979_vm5, %v2031_v22, %v2040_v24  ;;  %v310_v22 = vld [vmem:[%s3525_s23 + $0x100] sm:$0xff]  ;;  %v443_v8 = vmax.f32 %v3910_v33, 0.0  ;;  %v871_v42 = vrot.slane %v869_v30, 1 }
  0xc1   : > { %776 = vst.msk [vmem:[#allocation2 + $0x58] sm:$0xff] %vm764_vm0, %v754_v37  ;;  %v727_v21 = vmul.f32 %v625_v29, %v440_v25  ;;  %v726_v12 = vmul.f32 %v620_v63, %v439_v38  ;;  %3024 = vmatmul.mubr.msk.bf16.gmra.mrb[16].mxu1 %vm764_vm0, %v3768_v32  ;;  %2931 = vmatprep.mubr.msk.bf16.mxu0 %vm3396_vm2, %v3395_v5  ;;  %v901_v47 = vshll.u32 %v3942_v7, 16  ;;  %v4749_v13 = vshrl.u32 %v3942_v7, 16 }
  0xc2   : > { %3027 = vmatprep.mubr.msk.bf16.mxu1 %vm3396_vm2, %v3395_v5  ;;  %v2049_v45 = vor.u32 %v2048_v41, %v2045_v46  ;;  %v3968_v25 = vsel %vm1600_vm4, %v1612_v54, %v1614_v58  ;;  %v446_v63 = vmax.f32 %v3934_v31, 0.0  ;;  %v358_v3 = vmul.f32 %v3530_v44, %v310_v22 }
  0xc3   : > { %v755_v38 = vpack.c.bf16 %v727_v21, %v726_v12  ;;  %v2054_v37 = vrot.slane %v4749_v13, 1  ;;  %v2057_v59 = vrot.slane %v901_v47, 2  ;;  %v1616_v41 = vrot.slane %v3942_v7, 1 }
  0xc4   : > { %v635_v33 = vpop.permute.xlu1 %634  ;;  %v630_v29 = vpop.permute.xlu0 %629  ;;  %v3978_v46 = vld [vmem:[#allocation2 + $0x50] sm:$0xff]  ;;  %v3981_v54 = vsel %vm1979_vm5, %v2040_v24, %v2049_v45  ;;  %v867_v31 = vor.u32 %v865_v57, %v863_v15  ;;  %v445_v44 = vmax.f32 %v3940_v48, 0.0  ;;  %v406_v57 = vadd.f32 %v3539_v49, %v358_v3 }
  0xc5   : > { %777 = vst.msk [vmem:[#allocation2 + $0x60] sm:$0xff] %vm764_vm0, %v755_v38  ;;  %v729_v30 = vmul.f32 %v635_v33, %v442_v16  ;;  %v728_v21 = vmul.f32 %v630_v29, %v441_v17  ;;  %v909_v12 = vshll.u32 %v3978_v46, 16  ;;  %v4751_v24 = vshrl.u32 %v3978_v46, 16 }
  0xc6   : > { %v2058_v22 = vor.u32 %v2057_v59, %v2054_v37  ;;  %v3995_v13 = vsel %vm1600_vm4, %v1614_v58, %v1616_v41  ;;  %v872_v43 = vsel %vm828_vm3, %v867_v31, %v871_v42  ;;  %v407_v16 = vadd.f32 %v3539_v49, %v359_v14 }
  0xc7   : > { %v756_v38 = vpack.c.bf16 %v729_v30, %v728_v21  ;;  %v1618_v27 = vrot.slane %v3978_v46, 1  ;;  %v2063_v58 = vrot.slane %v4751_v24, 1  ;;  %v2066_v37 = vrot.slane %v909_v12, 2 }
  0xc8   : > { %v645_v17 = vpop.permute.xlu1 %644  ;;  %v640_v32 = vpop.permute.xlu0 %639  ;;  %2932 = vmatmul.mubr.msk.bf16.gmra.mrb[16].mxu0 %vm764_vm0, %v872_v43  ;;  %v4002_v15 = vld [vmem:[#allocation2 + $0x58] sm:$0xff]  ;;  %v4005_v48 = vsel %vm1979_vm5, %v2049_v45, %v2058_v22  ;;  %v448_v31 = vmax.f32 %v407_v16, 0.0 }
  0xc9   : > { %778 = vst.msk [vmem:[#allocation2 + $0x68] sm:$0xff] %vm764_vm0, %v756_v38  ;;  %v731_v14 = vmul.f32 %v645_v17, %v444_v1  ;;  %v730_v59 = vmul.f32 %v640_v32, %v443_v8  ;;  %3028 = vmatmul.mubr.msk.bf16.gmra.mrb[20].mxu1 %vm764_vm0, %v3801_v18  ;;  %2935 = vmatprep.mubr.msk.bf16.mxu0 %vm3396_vm2, %v3395_v5  ;;  %v4752_v49 = vshll.u32 %v4002_v15, 16  ;;  %v4750_v45 = vshrl.u32 %v4002_v15, 16 }
  0xca   : > { %3031 = vmatprep.mubr.msk.bf16.mxu1 %vm3396_vm2, %v3395_v5  ;;  %v2067_v33 = vor.u32 %v2066_v37, %v2063_v58  ;;  %v4023_v29 = vsel %vm1600_vm4, %v1616_v41, %v1618_v27  ;;  %v879_v1 = vrot.slane %v877_v28, 1  ;;  %v1620_v41 = vrot.slane %v4002_v15, 1 }
  0xcb   : > { %v757_v36 = vpack.c.bf16 %v731_v14, %v730_v59  ;;  %v2072_v8 = vrot.slane %v4750_v45, 1  ;;  %v2075_v3 = vrot.slane %v4752_v49, 2  ;;  %v447_v32 = vmax.f32 %v406_v57, 0.0 }
  0xcc   : > { %v655_v30 = vpop.permute.xlu1 %654  ;;  %v650_v21 = vpop.permute.xlu0 %649  ;;  %v4031_v38 = vld [vmem:[#allocation2 + $0x60] sm:$0xff]  ;;  %v4034_v43 = vsel %vm1979_vm5, %v2058_v22, %v2067_v33  ;;  %v4762_v58 = vshrl.u32 %v3801_v18, 16  ;;  %v4043_v45 = vsel %vm1600_vm4, %v1618_v27, %v1620_v41  ;;  %v450_v49 = vmax.f32 %v3544_v52, 0.0 }
  0xcd   : > { %779 = vst.msk [vmem:[#allocation2 + $0x70] sm:$0xff] %vm764_vm0, %v757_v36  ;;  %v733_v17 = vmul.f32 %v655_v30, %v446_v63  ;;  %v732_v28 = vmul.f32 %v650_v21, %v445_v44  ;;  %v4756_v14 = vshll.u32 %v4031_v38, 16  ;;  %v4754_v59 = vshrl.u32 %v4031_v38, 16 }
  0xce   : > { %v875_v37 = vor.u32 %v4762_v58, %v871_v42  ;;  %v2076_v16 = vor.u32 %v2075_v3, %v2072_v8  ;;  %v1622_v63 = vrot.slane %v4031_v38, 1  ;;  %v449_v18 = vmax.f32 %v3547_v53, 0.0 }
  0xcf   : > { %v758_v22 = vpack.c.bf16 %v733_v17, %v732_v28  ;;  %v2081_v27 = vrot.slane %v4754_v59, 1  ;;  %v2084_v8 = vrot.slane %v4756_v14, 2 }
  0xd0   : > { %v880_v24 = vsel %vm828_vm3, %v875_v37, %v879_v1  ;;  %v665_v44 = vpop.permute.xlu1 %664  ;;  %v660_v57 = vpop.permute.xlu0 %659  ;;  %v4050_v42 = vld [vmem:[#allocation2 + $0x68] sm:$0xff]  ;;  %v4053_v36 = vsel %vm1979_vm5, %v2067_v33, %v2076_v16  ;;  %v4069_v30 = vsel %vm1600_vm4, %v1620_v41, %v1622_v63 }
  0xd1   : > { %2936 = vmatmul.mubr.msk.bf16.gmra.mrb[20].mxu0 %vm764_vm0, %v880_v24  ;;  %780 = vst.msk [vmem:[#allocation2 + $0x78] sm:$0xff] %vm764_vm0, %v758_v22  ;;  %v735_v52 = vmul.f32 %v665_v44, %v448_v31  ;;  %v734_v3 = vmul.f32 %v660_v57, %v447_v32  ;;  %3032 = vmatmul.mubr.msk.bf16.gmra.mrb[24].mxu1 %vm764_vm0, %v3843_v11  ;;  %v4755_v53 = vshll.u32 %v4050_v42, 16  ;;  %v4753_v24 = vshrl.u32 %v4050_v42, 16 }
  0xd2   : > { %2939 = vmatprep.mubr.msk.bf16.mxu0 %vm3396_vm2, %v3395_v5  ;;  %3035 = vmatprep.mubr.msk.bf16.mxu1 %vm3396_vm2, %v3395_v5  ;;  %v2085_v33 = vor.u32 %v2084_v8, %v2081_v27  ;;  %v4763_v31 = vshll.u32 %v3875_v2, 16  ;;  %v452_v22 = vmax.f32 %v3556_v60, 0.0  ;;  %v1624_v41 = vrot.slane %v4050_v42, 1 }
  0xd3   : > { %v759_v21 = vpack.c.bf16 %v735_v52, %v734_v3  ;;  %v2090_v28 = vrot.slane %v4753_v24, 1  ;;  %v2093_v32 = vrot.slane %v4755_v53, 2  ;;  %v451_v52 = vmax.f32 %v3559_v61, 0.0 }
  0xd4   : > { %v887_v17 = vrot.slane %v4763_v31, 1  ;;  %v675_v58 = vpop.permute.xlu1 %674  ;;  %v670_v37 = vpop.permute.xlu0 %669  ;;  %v4078_v44 = vld [vmem:[#allocation2 + $0x70] sm:$0xff]  ;;  %v4081_v57 = vsel %vm1979_vm5, %v2076_v16, %v2085_v33  ;;  %v4764_v3 = vshrl.u32 %v3843_v11, 16  ;;  %v4091_v53 = vsel %vm1600_vm4, %v1622_v63, %v1624_v41 }
  0xd5   : > { %781 = vst.msk [vmem:[#allocation2 + $0x80] sm:$0xff] %vm764_vm0, %v759_v21  ;;  %v737_v27 = vmul.f32 %v675_v58, %v450_v49  ;;  %v736_v8 = vmul.f32 %v670_v37, %v449_v18  ;;  %v941_v24 = vshll.u32 %v4078_v44, 16  ;;  %v4758_v60 = vshrl.u32 %v4078_v44, 16 }
  0xd6   : > { %v883_v31 = vor.u32 %v4764_v3, %v879_v1  ;;  %v2094_v59 = vor.u32 %v2093_v32, %v2090_v28  ;;  %v454_v21 = vmax.f32 %v3568_v4, 0.0  ;;  %v1626_v49 = vrot.slane %v4078_v44, 1 }
  0xd7   : > { %v760_v16 = vpack.c.bf16 %v737_v27, %v736_v8  ;;  %v453_v11 = vmax.f32 %v3571_v6, 0.0  ;;  %v2099_v63 = vrot.slane %v4758_v60, 1  ;;  %v2102_v32 = vrot.slane %v941_v24, 2 }
  0xd8   : > { %v888_v14 = vsel %vm828_vm3, %v883_v31, %v887_v17  ;;  %v685_v18 = vpop.permute.xlu1 %684  ;;  %v680_v61 = vpop.permute.xlu0 %679  ;;  %v4098_v1 = vld [vmem:[#allocation2 + $0x78] sm:$0xff]  ;;  %v4101_v28 = vsel %vm1979_vm5, %v2085_v33, %v2094_v59  ;;  %v4117_v37 = vsel %vm1600_vm4, %v1624_v41, %v1626_v49 }
  0xd9   : > { %2940 = vmatmul.mubr.msk.bf16.gmra.mrb[24].mxu0 %vm764_vm0, %v888_v14  ;;  %782 = vst.msk [vmem:[#allocation2 + $0x88] sm:$0xff] %vm764_vm0, %v760_v16  ;;  %v739_v4 = vmul.f32 %v685_v18, %v452_v22  ;;  %v738_v58 = vmul.f32 %v680_v61, %v451_v52  ;;  %3036 = vmatmul.mubr.msk.bf16.gmra.mrb[28].mxu1 %vm764_vm0, %v3875_v2  ;;  %v4759_v6 = vshll.u32 %v4098_v1, 16  ;;  %v4757_v14 = vshrl.u32 %v4098_v1, 16 }
  0xda   : > { %2943 = vmatprep.mubr.msk.bf16.mxu0 %vm3396_vm2, %v3395_v5  ;;  %3039 = vmatprep.mubr.msk.bf16.mxu1 %vm3396_vm2, %v3395_v5  ;;  %v2103_v33 = vor.u32 %v2102_v32, %v2099_v63  ;;  %v895_v22 = vrot.slane %v893_v9, 1  ;;  %v4760_v41 = vrot.slane %v4098_v1, 1  ;;  %v455_v9 = vmax.f32 %v3577_v10, 0.0 }
  0xdb   : > { %v761_v27 = vpack.c.bf16 %v739_v4, %v738_v58  ;;  %v2108_v8 = vrot.slane %v4757_v14, 1  ;;  %v2111_v52 = vrot.slane %v4759_v6, 2  ;;  %v4765_v32 = vshrl.u32 %v3875_v2, 16 }
  0xdc   : > { %v695_v3 = vpop.permute.xlu1 %694  ;;  %v690_v31 = vpop.permute.xlu0 %689  ;;  %v4125_v16 = vld [vmem:[#allocation2 + $0x80] sm:$0xff]  ;;  %v4128_v18 = vsel %vm1979_vm5, %v2094_v59, %v2103_v33  ;;  %v4140_v59 = vsel %vm1600_vm4, %v1626_v49, %v4760_v41 }
  0xdd   : > { %783 = vst.msk [vmem:[#allocation2 + $0x90] sm:$0xff] %vm764_vm0, %v761_v27  ;;  %v741_v61 = vmul.f32 %v695_v3, %v454_v21  ;;  %v740_v63 = vmul.f32 %v690_v31, %v453_v11  ;;  %v891_v4 = vor.u32 %v4765_v32, %v887_v17  ;;  %v957_v58 = vshll.u32 %v4125_v16, 16 }
  0xde   : > { %v961_v14 = vshrl.u32 %v4125_v16, 16  ;;  %v2112_v60 = vor.u32 %v2111_v52, %v2108_v8  ;;  %v899_v32 = vor.u32 %v897_v55, %v895_v22 }
  0xdf   : > { %v762_v6 = vpack.c.bf16 %v741_v61, %v740_v63  ;;  %v896_v27 = vsel %vm828_vm3, %v891_v4, %v895_v22  ;;  %v2120_v11 = vrot.slane %v957_v58, 2 }
  0xe0   : > { %v700_v21 = vpop.permute.xlu0 %699  ;;  %v4144_v10 = vld [vmem:[#allocation2 + $0x88] sm:$0xff]  ;;  %v4147_v2 = vsel %vm1979_vm5, %v2103_v33, %v2112_v60  ;;  %v2117_v17 = vrot.slane %v961_v14, 1 }
  0xe1   : > { %2944 = vmatmul.mubr.msk.bf16.gmra.mrb[28].mxu0 %vm764_vm0, %v896_v27  ;;  %784 = vst.msk [vmem:[#allocation2 + $0x98] sm:$0xff] %vm764_vm0, %v762_v6  ;;  %v742_v49 = vmul.f32 %v700_v21, %v455_v9  ;;  %3040 = vmatmul.mubr.msk.bf16.gmra.mrb[32].mxu1 %vm764_vm0, %v3913_v39  ;;  %v965_v8 = vshll.u32 %v4144_v10, 16  ;;  %v969_v33 = vshrl.u32 %v4144_v10, 16  ;;  %v903_v6 = vrot.slane %v901_v47, 1 }
  0xe2   : > { %2947 = vmatprep.mubr.msk.bf16.mxu0 %vm3396_vm2, %v3395_v5  ;;  %3043 = vmatprep.mubr.msk.bf16.mxu1 %vm3396_vm2, %v3395_v5  ;;  %v2121_v52 = vor.u32 %v2120_v11, %v2117_v17 }
  0xe3   : > { %v763_v3 = vpack.c.bf16 %v742_v49, %v742_v49  ;;  %v2126_v31 = vrot.slane %v969_v33, 1  ;;  %v2129_v61 = vrot.slane %v965_v8, 2  ;;  %v904_v21 = vsel %vm828_vm3, %v899_v32, %v903_v6 }
  0xe4   : > { %v4168_v63 = vld [vmem:[#allocation2 + $0x90] sm:$0xff]  ;;  %v4171_v9 = vsel %vm1979_vm5, %v2112_v60, %v2121_v52  ;;  %v4766_v32 = vshrl.u32 %v3942_v7, 16 }
  0xe5   : > { %786 = vst.msk [vmem:[#allocation2 + $0xa0] sm:$0xf] %vm785_vm6, %v763_v3  ;;  %v973_v4 = vshll.u32 %v4168_v63, 16  ;;  %v4761_v27 = vshrl.u32 %v4168_v63, 16  ;;  %v2130_v47 = vor.u32 %v2129_v61, %v2126_v31  ;;  %v911_v3 = vrot.slane %v909_v12, 1 }
  0xe7   : > { %v2135_v17 = vrot.slane %v4761_v27, 1  ;;  %v2138_v11 = vrot.slane %v973_v4, 2  ;;  %v4186_v39 = vsel %vm1979_vm5, %v2121_v52, %v2130_v47 }
  0xe8   : > { %v4183_v60 = vld [vmem:[#allocation2 + $0x98] sm:$0xff] }
  0xe9   : > { %2948 = vmatmul.mubr.msk.bf16.gmra.mrb[32].mxu0 %vm764_vm0, %v904_v21  ;;  %3044 = vmatmul.mubr.msk.bf16.gmra.mrb[36].mxu1 %vm764_vm0, %v3942_v7  ;;  %v981_v55 = vshll.u32 %v4183_v60, 16  ;;  %v985_v22 = vshrl.u32 %v4183_v60, 16  ;;  %v2139_v49 = vor.u32 %v2138_v11, %v2135_v17  ;;  %v907_v21 = vor.u32 %v4766_v32, %v903_v6 }
  0xea   : > { %2951 = vmatprep.mubr.msk.bf16.mxu0 %vm3396_vm2, %v3395_v5  ;;  %3047 = vmatprep.mubr.msk.bf16.mxu1 %vm3396_vm2, %v3395_v5  ;;  %v4767_v7 = vshll.u32 %v4002_v15, 16  ;;  %v4769_v11 = vshll.u32 %v4031_v38, 16 }
  0xeb   : > { %v2144_v52 = vrot.slane %v985_v22, 1  ;;  %v2147_v31 = vrot.slane %v981_v55, 2  ;;  %v4203_v61 = vsel %vm1979_vm5, %v2130_v47, %v2139_v49  ;;  %v912_v27 = vsel %vm828_vm3, %v907_v21, %v911_v3 }
  0xec   : > { %v919_v6 = vrot.slane %v4767_v7, 1  ;;  %v4768_v47 = vshrl.u32 %v3978_v46, 16  ;;  %v4772_v21 = vshrl.u32 %v4031_v38, 16 }
  0xed   : > { %v4207_v41 = vor.u32 %v2147_v31, %v2144_v52  ;;  %v4770_v52 = vshrl.u32 %v4002_v15, 16  ;;  %v4771_v31 = vshll.u32 %v4050_v42, 16 }
  0xee   : > { %v915_v17 = vor.u32 %v4768_v47, %v911_v3  ;;  %v4773_v47 = vshrl.u32 %v4050_v42, 16 }
  0xef   : > { %v4213_v12 = vsel %vm1979_vm5, %v2139_v49, %v4207_v41  ;;  %v927_v49 = vrot.slane %v4769_v11, 1  ;;  %v935_v32 = vrot.slane %v4771_v31, 1  ;;  %v967_v31 = vrot.slane %v965_v8, 1 }
  0xf1   : > { %2952 = vmatmul.mubr.msk.bf16.gmra.mrb[36].mxu0 %vm764_vm0, %v912_v27  ;;  %3048 = vmatmul.mubr.msk.bf16.gmra.mrb[40].mxu1 %vm764_vm0, %v3978_v46  ;;  %v920_v27 = vsel %vm828_vm3, %v915_v17, %v919_v6  ;;  %v923_v46 = vor.u32 %v4770_v52, %v919_v6  ;;  %v943_v6 = vrot.slane %v941_v24, 1  ;;  %v4775_v24 = vshrl.u32 %v4078_v44, 16 }
  0xf2   : > { %2955 = vmatprep.mubr.msk.bf16.mxu0 %vm3396_vm2, %v3395_v5  ;;  %3051 = vmatprep.mubr.msk.bf16.mxu1 %vm3396_vm2, %v3395_v5  ;;  %v959_v52 = vrot.slane %v957_v58, 1  ;;  %v971_v8 = vor.u32 %v969_v33, %v967_v31 }
  0xf3   : > { %v928_v3 = vsel %vm828_vm3, %v923_v46, %v927_v49  ;;  %v4776_v46 = vshrl.u32 %v4098_v1, 16 }
  0xf4   : > { %v963_v58 = vor.u32 %v961_v14, %v959_v52 }
  0xf9   : > { %2956 = vmatmul.mubr.msk.bf16.gmra.mrb[40].mxu0 %vm764_vm0, %v920_v27  ;;  %3052 = vmatmul.mubr.msk.bf16.gmra.mrb[44].mxu1 %vm764_vm0, %v4002_v15  ;;  %v931_v15 = vor.u32 %v4772_v21, %v927_v49  ;;  %v4774_v27 = vshll.u32 %v4098_v1, 16  ;;  %v975_v21 = vrot.slane %v973_v4, 1  ;;  %v819_v4 = vld [vmem:[#allocation2 + $0xa0] sm:$0x1f] }
  0xfa   : > { %2959 = vmatprep.mubr.msk.bf16.mxu0 %vm3396_vm2, %v3395_v5  ;;  %3055 = vmatprep.mubr.msk.bf16.mxu1 %vm3396_vm2, %v3395_v5 }
  0xfb   : > { %v936_v7 = vsel %vm828_vm3, %v931_v15, %v935_v32  ;;  %v951_v11 = vrot.slane %v4774_v27, 1  ;;  %v976_v14 = vsel %vm828_vm3, %v971_v8, %v975_v21  ;;  %v983_v15 = vrot.slane %v981_v55, 1  ;;  %v1550_v55 = vld [vmem:[#allocation2 + $0x8] sm:$0xfe] }
  0xfc   : > { %v1981_v27 = vshrl.u32 %v1550_v55, 16 }
 0x101   : > { %2960 = vmatmul.mubr.msk.bf16.gmra.mrb[44].mxu0 %vm764_vm0, %v928_v3  ;;  %3056 = vmatmul.mubr.msk.bf16.gmra.mrb[48].mxu1 %vm764_vm0, %v4031_v38  ;;  %v939_v38 = vor.u32 %v4773_v47, %v935_v32  ;;  %v968_v32 = vsel %vm828_vm3, %v963_v58, %v967_v31  ;;  %v989_v47 = vshll.u32 %v819_v4, 16  ;;  %v1601_v31 = vrot.slane %v1550_v55, 1 }
 0x102   : > { %2963 = vmatprep.mubr.msk.bf16.mxu0 %vm3396_vm2, %v3395_v5  ;;  %3059 = vmatprep.mubr.msk.bf16.mxu1 %vm3396_vm2, %v3395_v5  ;;  %v4778_v58 = vrot.slane %v3699_v26, 1 }
 0x103   : > { %v944_v17 = vsel %vm828_vm3, %v939_v38, %v943_v6  ;;  %v991_v38 = vrot.slane %v989_v47, 1 }
 0x109   : > { %2964 = vmatmul.mubr.msk.bf16.gmra.mrb[48].mxu0 %vm764_vm0, %v936_v7  ;;  %3060 = vmatmul.mubr.msk.bf16.gmra.mrb[52].mxu1 %vm764_vm0, %v4050_v42  ;;  %v947_v42 = vor.u32 %v4775_v24, %v943_v6  ;;  %v4777_v7 = vshrl.u32 %v4168_v63, 16 }
 0x10a   : > { %2967 = vmatprep.mubr.msk.bf16.mxu0 %vm3396_vm2, %v3395_v5  ;;  %3063 = vmatprep.mubr.msk.bf16.mxu1 %vm3396_vm2, %v3395_v5 }
 0x10b   : > { %v952_v49 = vsel %vm828_vm3, %v947_v42, %v951_v11  ;;  %v979_v33 = vor.u32 %v4777_v7, %v975_v21  ;;  %v810_v42 = vld [vmem:[#allocation2 + $0xa0] sm:$0xf] }
 0x10d   : > { %v984_v6 = vsel %vm828_vm3, %v979_v33, %v983_v15 }
 0x111   : > { %2968 = vmatmul.mubr.msk.bf16.gmra.mrb[52].mxu0 %vm764_vm0, %v944_v17  ;;  %3064 = vmatmul.mubr.msk.bf16.gmra.mrb[56].mxu1 %vm764_vm0, %v4078_v44  ;;  %v955_v44 = vor.u32 %v4776_v46, %v951_v11  ;;  %v987_v17 = vor.u32 %v985_v22, %v983_v15  ;;  %v1984_v11 = vshll.u32 %v1550_v55, 16  ;;  %v993_v46 = vshrl.u32 %v819_v4, 16 }
 0x112   : > { %2971 = vmatprep.mubr.msk.bf16.mxu0 %vm3396_vm2, %v3395_v5  ;;  %3067 = vmatprep.mubr.msk.bf16.mxu1 %vm3396_vm2, %v3395_v5 }
 0x113   : > { %v960_v3 = vsel %vm828_vm3, %v955_v44, %v959_v52  ;;  %v992_v24 = vsel %vm828_vm3, %v987_v17, %v991_v38  ;;  %v1986_v52 = vrot.slane %v1984_v11, 2  ;;  %v995_v44 = vor.u32 %v993_v46, %v991_v38 }
 0x119   : > { %2972 = vmatmul.mubr.msk.bf16.gmra.mrb[56].mxu0 %vm764_vm0, %v952_v49  ;;  %3068 = vmatmul.mubr.msk.bf16.gmra.mrb[60].mxu1 %vm764_vm0, %v4098_v1  ;;  %v1983_v49 = vrot.slane %v1981_v27, 1 }
 0x11a   : > { %2975 = vmatprep.mubr.msk.bf16.mxu0 %vm3396_vm2, %v3395_v5  ;;  %3071 = vmatprep.mubr.msk.bf16.mxu1 %vm3396_vm2, %v3395_v5 }
 0x11b   : > { %v1987_v22 = vor.u32 %v1986_v52, %v1983_v49 }
 0x121   : > { %2976 = vmatmul.mubr.msk.bf16.gmra.mrb[60].mxu0 %vm764_vm0, %v960_v3  ;;  %3072 = vmatmul.mubr.msk.bf16.gmra.mrb[64].mxu1 %vm764_vm0, %v4125_v16  ;;  %v1996_v3 = vsel %vm1979_vm5, %v1987_v22, %v3752_v35 }
 0x122   : > { %2979 = vmatprep.mubr.msk.bf16.mxu0 %vm3396_vm2, %v3395_v5  ;;  %3075 = vmatprep.mubr.msk.bf16.mxu1 %vm3396_vm2, %v3395_v5 }
 0x129   : > { %2980 = vmatmul.mubr.msk.bf16.gmra.mrb[64].mxu0 %vm764_vm0, %v968_v32  ;;  %3076 = vmatmul.mubr.msk.bf16.gmra.mrb[68].mxu1 %vm764_vm0, %v4144_v10  ;;  %v1603_v32 = vsel %vm1600_vm4, %v1601_v31, %v4778_v58 }
 0x12a   : > { %2983 = vmatprep.mubr.msk.bf16.mxu0 %vm3396_vm2, %v3395_v5  ;;  %3079 = vmatprep.mubr.msk.bf16.mxu1 %vm3396_vm2, %v3395_v5 }
 0x131   : > { %2984 = vmatmul.mubr.msk.bf16.gmra.mrb[68].mxu0 %vm764_vm0, %v976_v14  ;;  %3080 = vmatmul.mubr.msk.bf16.gmra.mrb[72].mxu1 %vm764_vm0, %v4168_v63 }
 0x132   : > { %2987 = vmatprep.mubr.msk.bf16.mxu0 %vm3396_vm2, %v3395_v5  ;;  %3083 = vmatprep.mubr.msk.bf16.mxu1 %vm3396_vm2, %v3395_v5 }
 0x139   : > { %2988 = vmatmul.mubr.msk.bf16.gmra.mrb[72].mxu0 %vm764_vm0, %v984_v6  ;;  %3084 = vmatmul.mubr.msk.bf16.gmra.mrb[76].mxu1 %vm764_vm0, %v4183_v60 }
 0x13a   : > { %2991 = vmatprep.mubr.msk.bf16.mxu0 %vm3396_vm2, %v3395_v5  ;;  %3087 = vmatprep.mubr.msk.bf16.mxu1 %vm3396_vm2, %v3395_v5 }
 0x141   : > { %2992 = vmatmul.mubr.msk.bf16.gmra.mrb[76].mxu0 %vm764_vm0, %v992_v24  ;;  %3088 = vmatmul.mubr.msk.bf16.gmra.mrb[80].mxu1 %vm764_vm0, %v810_v42 }
 0x142   : > { %2995 = vmatprep.mubr.msk.bf16.mxu0 %vm3396_vm2, %v3395_v5  ;;  %3191 = vmatprep.mubr.msk.bf16.mxu1 %vm3396_vm2, %v3395_v5 }
 0x149   : > { %2996 = vmatmul.mubr.msk.bf16.gmra.mrb[80].mxu0 %vm764_vm0, %v995_v44  ;;  %3192 = vmatmul.mubr.msk.bf16.vlgmr.msra.gmra.mrb[84].mxu1 %vm764_vm0, %v1996_v3 }
 0x14a   : > { %3099 = vmatprep.mubr.msk.bf16.mxu0 %vm3396_vm2, %v3395_v5  ;;  %3195 = vmatprep.mubr.msk.bf16.mxu1 %vm3396_vm2, %v3395_v5 }
 0x151   : > { %3100 = vmatmul.mubr.msk.bf16.vlgmr.msra.gmra.mrb[84].mxu0 %vm764_vm0, %v1603_v32  ;;  %3196 = vmatmul.mubr.msk.bf16.gmra.mrb[88].mxu1 %vm764_vm0, %v3805_v19 }
 0x152   : > { %3103 = vmatprep.mubr.msk.bf16.mxu0 %vm3396_vm2, %v3395_v5  ;;  %3199 = vmatprep.mubr.msk.bf16.mxu1 %vm3396_vm2, %v3395_v5 }
 0x159   : > { %3104 = vmatmul.mubr.msk.bf16.gmra.mrb[88].mxu0 %vm764_vm0, %v3776_v34  ;;  %3200 = vmatmul.mubr.msk.bf16.gmra.mrb[92].mxu1 %vm764_vm0, %v3846_v20 }
 0x15a   : > { %3107 = vmatprep.mubr.msk.bf16.mxu0 %vm3396_vm2, %v3395_v5  ;;  %3203 = vmatprep.mubr.msk.bf16.mxu1 %vm3396_vm2, %v3395_v5 }
 0x161   : > { %3108 = vmatmul.mubr.msk.bf16.gmra.mrb[92].mxu0 %vm764_vm0, %v3837_v51  ;;  %3204 = vmatmul.mubr.msk.bf16.gmra.mrb[96].mxu1 %vm764_vm0, %v3878_v56 }
 0x162   : > { %3111 = vmatprep.mubr.msk.bf16.mxu0 %vm3396_vm2, %v3395_v5  ;;  %3207 = vmatprep.mubr.msk.bf16.mxu1 %vm3396_vm2, %v3395_v5 }
 0x169   : > { %3112 = vmatmul.mubr.msk.bf16.gmra.mrb[96].mxu0 %vm764_vm0, %v3851_v62  ;;  %3208 = vmatmul.mubr.msk.bf16.gmra.mrb[100].mxu1 %vm764_vm0, %v3916_v0 }
 0x16a   : > { %3115 = vmatprep.mubr.msk.bf16.mxu0 %vm3396_vm2, %v3395_v5  ;;  %3211 = vmatprep.mubr.msk.bf16.mxu1 %vm3396_vm2, %v3395_v5 }
 0x171   : > { %3116 = vmatmul.mubr.msk.bf16.gmra.mrb[100].mxu0 %vm764_vm0, %v3901_v50  ;;  %3212 = vmatmul.mubr.msk.bf16.gmra.mrb[104].mxu1 %vm764_vm0, %v3945_v40 }
 0x172   : > { %3119 = vmatprep.mubr.msk.bf16.mxu0 %vm3396_vm2, %v3395_v5  ;;  %3215 = vmatprep.mubr.msk.bf16.mxu1 %vm3396_vm2, %v3395_v5 }
 0x174   : > { %v1384_v26 = vpop.f32.mrb[0].mxu1 }
 0x175   : > { %v3009_v35 = vpop.f32.mrb[1].mxu1 }
 0x176   : > { %v1387_v34 = vpop.f32.mrb[2].mxu1 }
 0x177   : > { %v3010_v19 = vpop.f32.mrb[3].mxu1 }
 0x179   : > { %3120 = vmatmul.mubr.msk.bf16.gmra.mrb[104].mxu0 %vm764_vm0, %v3930_v23  ;;  %3216 = vmatmul.mubr.msk.bf16.gmra.mrb[108].mxu1 %vm764_vm0, %v3981_v54 }
 0x17a   : > { %3123 = vmatprep.mubr.msk.bf16.mxu0 %vm3396_vm2, %v3395_v5  ;;  %3219 = vmatprep.mubr.msk.bf16.mxu1 %vm3396_vm2, %v3395_v5 }
 0x17b   : > { %v1117_v51 = vpop.f32.mrb[0].mxu0 }
 0x17c   : > { %v4396_v20 = vadd.f32 %v1384_v26, %v1117_v51  ;;  %v2917_v62 = vpop.f32.mrb[1].mxu0  ;;  %v1392_v56 = vpop.f32.mrb[4].mxu1 }
 0x17d   : > { %v1120_v50 = vpop.f32.mrb[2].mxu0  ;;  %v3013_v0 = vpop.f32.mrb[5].mxu1 }
 0x17e   : > { %v4398_v40 = vadd.f32 %v1387_v34, %v1120_v50  ;;  %v2918_v21 = vpop.f32.mrb[3].mxu0  ;;  %v1395_v23 = vpop.f32.mrb[6].mxu1 }
 0x17f   : > { %v3014_v8 = vpop.f32.mrb[7].mxu1 }
 0x181   : > { %3124 = vmatmul.mubr.msk.bf16.gmra.mrb[108].mxu0 %vm764_vm0, %v3968_v25  ;;  %3220 = vmatmul.mubr.msk.bf16.gmra.mrb[112].mxu1 %vm764_vm0, %v4005_v48 }
 0x182   : > { %3127 = vmatprep.mubr.msk.bf16.mxu0 %vm3396_vm2, %v3395_v5  ;;  %3223 = vmatprep.mubr.msk.bf16.mxu1 %vm3396_vm2, %v3395_v5 }
 0x183   : > { %v1125_v54 = vpop.f32.mrb[4].mxu0 }
 0x184   : > { %v4408_v14 = vadd.f32 %v1392_v56, %v1125_v54  ;;  %v2921_v15 = vpop.f32.mrb[5].mxu0  ;;  %v1400_v4 = vpop.f32.mrb[8].mxu1 }
 0x185   : > { %v1128_v7 = vpop.f32.mrb[6].mxu0  ;;  %v3017_v33 = vpop.f32.mrb[9].mxu1 }
 0x186   : > { %v4410_v6 = vadd.f32 %v1395_v23, %v1128_v7  ;;  %v2922_v47 = vpop.f32.mrb[7].mxu0  ;;  %v1403_v25 = vpop.f32.mrb[10].mxu1 }
 0x187   : > { %v3018_v38 = vpop.f32.mrb[11].mxu1 }
 0x189   : > { %3128 = vmatmul.mubr.msk.bf16.gmra.mrb[112].mxu0 %vm764_vm0, %v3995_v13  ;;  %3224 = vmatmul.mubr.msk.bf16.gmra.mrb[116].mxu1 %vm764_vm0, %v4034_v43 }
 0x18a   : > { %3131 = vmatprep.mubr.msk.bf16.mxu0 %vm3396_vm2, %v3395_v5  ;;  %3227 = vmatprep.mubr.msk.bf16.mxu1 %vm3396_vm2, %v3395_v5 }
 0x18b   : > { %v1133_v48 = vpop.f32.mrb[8].mxu0 }
 0x18c   : > { %v4420_v55 = vadd.f32 %v1400_v4, %v1133_v48  ;;  %v2925_v17 = vpop.f32.mrb[9].mxu0  ;;  %v1408_v27 = vpop.f32.mrb[12].mxu1 }
 0x18d   : > { %v1136_v11 = vpop.f32.mrb[10].mxu0  ;;  %v3021_v24 = vpop.f32.mrb[13].mxu1 }
 0x18e   : > { %v4422_v42 = vadd.f32 %v1403_v25, %v1136_v11  ;;  %v2926_v49 = vpop.f32.mrb[11].mxu0  ;;  %v1411_v13 = vpop.f32.mrb[14].mxu1 }
 0x18f   : > { %v3022_v52 = vpop.f32.mrb[15].mxu1 }
 0x191   : > { %3132 = vmatmul.mubr.msk.bf16.gmra.mrb[116].mxu0 %vm764_vm0, %v4023_v29  ;;  %3228 = vmatmul.mubr.msk.bf16.gmra.mrb[120].mxu1 %vm764_vm0, %v4053_v36 }
 0x192   : > { %3135 = vmatprep.mubr.msk.bf16.mxu0 %vm3396_vm2, %v3395_v5  ;;  %3231 = vmatprep.mubr.msk.bf16.mxu1 %vm3396_vm2, %v3395_v5 }
 0x193   : > { %v1141_v43 = vpop.f32.mrb[12].mxu0 }
 0x194   : > { %v4432_v46 = vadd.f32 %v1408_v27, %v1141_v43  ;;  %v2929_v44 = vpop.f32.mrb[13].mxu0  ;;  %v1416_v22 = vpop.f32.mrb[16].mxu1 }
 0x195   : > { %v1144_v3 = vpop.f32.mrb[14].mxu0  ;;  %v3025_v31 = vpop.f32.mrb[17].mxu1 }
 0x196   : > { %v4434_v58 = vadd.f32 %v1411_v13, %v1144_v3  ;;  %v2930_v32 = vpop.f32.mrb[15].mxu0  ;;  %v1419_v29 = vpop.f32.mrb[18].mxu1 }
 0x197   : > { %v3026_v26 = vpop.f32.mrb[19].mxu1  ;;  %v1630_v32 = vrot.slane %v4125_v16, 1 }
 0x199   : > { %3136 = vmatmul.mubr.msk.bf16.gmra.mrb[120].mxu0 %vm764_vm0, %v4043_v45  ;;  %3232 = vmatmul.mubr.msk.bf16.gmra.mrb[124].mxu1 %vm764_vm0, %v4081_v57 }
 0x19a   : > { %3139 = vmatprep.mubr.msk.bf16.mxu0 %vm3396_vm2, %v3395_v5  ;;  %3235 = vmatprep.mubr.msk.bf16.mxu1 %vm3396_vm2, %v3395_v5 }
 0x19b   : > { %v1149_v36 = vpop.f32.mrb[16].mxu0 }
 0x19c   : > { %v4444_v35 = vadd.f32 %v1416_v22, %v1149_v36  ;;  %v2933_v34 = vpop.f32.mrb[17].mxu0  ;;  %v1424_v19 = vpop.f32.mrb[20].mxu1 }
 0x19d   : > { %v1152_v51 = vpop.f32.mrb[18].mxu0  ;;  %v3029_v62 = vpop.f32.mrb[21].mxu1 }
 0x19e   : > { %v4446_v56 = vadd.f32 %v1419_v29, %v1152_v51  ;;  %v2934_v50 = vpop.f32.mrb[19].mxu0  ;;  %v1427_v45 = vpop.f32.mrb[22].mxu1 }
 0x19f   : > { %v3030_v0 = vpop.f32.mrb[23].mxu1  ;;  %v4779_v50 = vrot.slane %v4098_v1, 1 }
 0x1a0   : > { %v1632_v0 = vrot.slane %v4144_v10, 1  ;;  %v4518_v10 = vld [vmem:[#allocation2 + $0xa0] sm:$0xff] }
 0x1a1   : > { %3140 = vmatmul.mubr.msk.bf16.gmra.mrb[124].mxu0 %vm764_vm0, %v4069_v30  ;;  %3236 = vmatmul.mubr.msk.bf16.gmra.mrb[128].mxu1 %vm764_vm0, %v4101_v28 }
 0x1a2   : > { %3143 = vmatprep.mubr.msk.bf16.mxu0 %vm3396_vm2, %v3395_v5  ;;  %3239 = vmatprep.mubr.msk.bf16.mxu1 %vm3396_vm2, %v3395_v5 }
 0x1a4   : > { %v1157_v57 = vpop.f32.mrb[20].mxu0  ;;  %v1432_v8 = vpop.f32.mrb[24].mxu1 }
 0x1a5   : > { %v4456_v21 = vadd.f32 %v1424_v19, %v1157_v57  ;;  %v2937_v23 = vpop.f32.mrb[21].mxu0  ;;  %v3033_v15 = vpop.f32.mrb[25].mxu1 }
 0x1a6   : > { %v1160_v54 = vpop.f32.mrb[22].mxu0  ;;  %v1435_v30 = vpop.f32.mrb[26].mxu1 }
 0x1a7   : > { %v4458_v4 = vadd.f32 %v1427_v45, %v1160_v54  ;;  %v2938_v7 = vpop.f32.mrb[23].mxu0  ;;  %v3034_v33 = vpop.f32.mrb[27].mxu1  ;;  %v1631_v45 = vsel %vm1600_vm4, %v4779_v50, %v1630_v32 }
 0x1a8   : > { %v1633_v33 = vsel %vm1600_vm4, %v1630_v32, %v1632_v0 }
 0x1a9   : > { %3144 = vmatmul.mubr.msk.bf16.gmra.mrb[128].mxu0 %vm764_vm0, %v4091_v53  ;;  %3240 = vmatmul.mubr.msk.bf16.gmra.mrb[132].mxu1 %vm764_vm0, %v4128_v18 }
 0x1aa   : > { %3147 = vmatprep.mubr.msk.bf16.mxu0 %vm3396_vm2, %v3395_v5  ;;  %3243 = vmatprep.mubr.msk.bf16.mxu1 %vm3396_vm2, %v3395_v5 }
 0x1ac   : > { %v1165_v28 = vpop.f32.mrb[24].mxu0  ;;  %v1440_v38 = vpop.f32.mrb[28].mxu1 }
 0x1ad   : > { %v4468_v47 = vadd.f32 %v1432_v8, %v1165_v28  ;;  %v2941_v25 = vpop.f32.mrb[25].mxu0  ;;  %v3037_v17 = vpop.f32.mrb[29].mxu1 }
 0x1ae   : > { %v1168_v48 = vpop.f32.mrb[26].mxu0  ;;  %v1443_v53 = vpop.f32.mrb[30].mxu1  ;;  %v1634_v25 = vrot.slane %v4168_v63, 1 }
 0x1af   : > { %v4470_v27 = vadd.f32 %v1435_v30, %v1168_v48  ;;  %v2942_v11 = vpop.f32.mrb[27].mxu0  ;;  %v3038_v24 = vpop.f32.mrb[31].mxu1 }
 0x1b0   : > { %v2151_v11 = vshrl.u32 %v4518_v10, 16 }
 0x1b1   : > { %3148 = vmatmul.mubr.msk.bf16.gmra.mrb[132].mxu0 %vm764_vm0, %v4117_v37  ;;  %3244 = vmatmul.mubr.msk.bf16.gmra.mrb[136].mxu1 %vm764_vm0, %v4147_v2 }
 0x1b2   : > { %3151 = vmatprep.mubr.msk.bf16.mxu0 %vm3396_vm2, %v3395_v5  ;;  %3247 = vmatprep.mubr.msk.bf16.mxu1 %vm3396_vm2, %v3395_v5  ;;  %v2153_v63 = vrot.slane %v2151_v11, 1 }
 0x1b4   : > { %v1173_v18 = vpop.f32.mrb[28].mxu0  ;;  %v1448_v52 = vpop.f32.mrb[32].mxu1 }
 0x1b5   : > { %v4480_v49 = vadd.f32 %v1440_v38, %v1173_v18  ;;  %v2945_v13 = vpop.f32.mrb[29].mxu0  ;;  %v3041_v44 = vpop.f32.mrb[33].mxu1 }
 0x1b6   : > { %v1176_v43 = vpop.f32.mrb[30].mxu0  ;;  %v1451_v37 = vpop.f32.mrb[34].mxu1  ;;  %v1635_v44 = vsel %vm1600_vm4, %v1632_v0, %v1634_v25 }
 0x1b7   : > { %v4482_v22 = vadd.f32 %v1443_v53, %v1176_v43  ;;  %v2946_v3 = vpop.f32.mrb[31].mxu0  ;;  %v3042_v31 = vpop.f32.mrb[35].mxu1  ;;  %v2154_v53 = vshll.u32 %v4518_v10, 16 }
 0x1b9   : > { %3152 = vmatmul.mubr.msk.bf16.gmra.mrb[136].mxu0 %vm764_vm0, %v4140_v59  ;;  %3248 = vmatmul.mubr.msk.bf16.gmra.mrb[140].mxu1 %vm764_vm0, %v4171_v9  ;;  %v2156_v3 = vrot.slane %v2154_v53, 2 }
 0x1ba   : > { %3155 = vmatprep.mubr.msk.bf16.mxu0 %vm3396_vm2, %v3395_v5  ;;  %3251 = vmatprep.mubr.msk.bf16.mxu1 %vm3396_vm2, %v3395_v5 }
 0x1bc   : > { %v1181_v2 = vpop.f32.mrb[32].mxu0  ;;  %v1456_v36 = vpop.f32.mrb[36].mxu1 }
 0x1bd   : > { %v4493_v29 = vadd.f32 %v1448_v52, %v1181_v2  ;;  %v2949_v26 = vpop.f32.mrb[33].mxu0  ;;  %v3045_v19 = vpop.f32.mrb[37].mxu1  ;;  %v1636_v2 = vrot.slane %v4183_v60, 1 }
 0x1be   : > { %v1184_v34 = vpop.f32.mrb[34].mxu0  ;;  %v1459_v62 = vpop.f32.mrb[38].mxu1 }
 0x1bf   : > { %v4495_v51 = vadd.f32 %v1451_v37, %v1184_v34  ;;  %v2950_v59 = vpop.f32.mrb[35].mxu0  ;;  %v3046_v9 = vpop.f32.mrb[39].mxu1  ;;  %v1970_v37 = vld [vmem:[#allocation2 + $0xa8] sm:$0x3f]  ;;  %v2157_v34 = vor.u32 %v2156_v3, %v2153_v63  ;;  %v1637_v0 = vsel %vm1600_vm4, %v1634_v25, %v1636_v2 }
 0x1c0   : > { %v2160_v19 = vshrl.u32 %v1970_v37, 16  ;;  %v2163_v59 = vshll.u32 %v1970_v37, 16 }
 0x1c1   : > { %3156 = vmatmul.mubr.msk.bf16.gmra.mrb[140].mxu0 %vm764_vm0, %v1631_v45  ;;  %3252 = vmatmul.mubr.msk.bf16.gmra.mrb[144].mxu1 %vm764_vm0, %v4186_v39  ;;  %v2158_v60 = vsel %vm1979_vm5, %v4207_v41, %v2157_v34 }
 0x1c2   : > { %3159 = vmatprep.mubr.msk.bf16.mxu0 %vm3396_vm2, %v3395_v5  ;;  %3255 = vmatprep.mubr.msk.bf16.mxu1 %vm3396_vm2, %v3395_v5 }
 0x1c4   : > { %v1189_v16 = vpop.f32.mrb[36].mxu0  ;;  %v1464_v1 = vpop.f32.mrb[40].mxu1 }
 0x1c5   : > { %v4508_v57 = vadd.f32 %v1456_v36, %v1189_v16  ;;  %v2953_v23 = vpop.f32.mrb[37].mxu0  ;;  %v3049_v54 = vpop.f32.mrb[41].mxu1 }
 0x1c6   : > { %v1192_v8 = vpop.f32.mrb[38].mxu0  ;;  %v1467_v30 = vpop.f32.mrb[42].mxu1  ;;  %v2162_v23 = vrot.slane %v2160_v19, 1  ;;  %v1638_v54 = vrot.slane %v4518_v10, 1 }
 0x1c7   : > { %v4510_v15 = vadd.f32 %v1459_v62, %v1192_v8  ;;  %v2954_v7 = vpop.f32.mrb[39].mxu0  ;;  %v3050_v39 = vpop.f32.mrb[43].mxu1 }
 0x1c8   : > { %v1639_v53 = vsel %vm1600_vm4, %v1636_v2, %v1638_v54 }
 0x1c9   : > { %3160 = vmatmul.mubr.msk.bf16.gmra.mrb[144].mxu0 %vm764_vm0, %v1633_v33  ;;  %3256 = vmatmul.mubr.msk.bf16.gmra.mrb[148].mxu1 %vm764_vm0, %v4203_v61 }
 0x1ca   : > { %3163 = vmatprep.mubr.msk.bf16.mxu0 %vm3396_vm2, %v3395_v5  ;;  %3259 = vmatprep.mubr.msk.bf16.mxu1 %vm3396_vm2, %v3395_v5 }
 0x1cc   : > { %v1197_v28 = vpop.f32.mrb[40].mxu0  ;;  %v1472_v17 = vpop.f32.mrb[44].mxu1 }
 0x1cd   : > { %v4523_v38 = vadd.f32 %v1464_v1, %v1197_v28  ;;  %v2957_v48 = vpop.f32.mrb[41].mxu0  ;;  %v3053_v24 = vpop.f32.mrb[45].mxu1  ;;  %v2165_v1 = vrot.slane %v2163_v59, 2 }
 0x1ce   : > { %v1200_v61 = vpop.f32.mrb[42].mxu0  ;;  %v1475_v52 = vpop.f32.mrb[46].mxu1  ;;  %v1570_v24 = vld [vmem:[#allocation2 + $0xa8] sm:$0x1f] }
 0x1cf   : > { %v4527_v18 = vadd.f32 %v1467_v30, %v1200_v61  ;;  %v2958_v13 = vpop.f32.mrb[43].mxu0  ;;  %v3054_v43 = vpop.f32.mrb[47].mxu1  ;;  %v2166_v33 = vor.u32 %v2165_v1, %v2162_v23 }
 0x1d0   : > { %v1640_v13 = vrot.slane %v1570_v24, 1 }
 0x1d1   : > { %3164 = vmatmul.mubr.msk.bf16.gmra.mrb[148].mxu0 %vm764_vm0, %v1635_v44  ;;  %3260 = vmatmul.mubr.msk.bf16.gmra.mrb[152].mxu1 %vm764_vm0, %v4213_v12  ;;  %v2167_v61 = vsel %vm1979_vm5, %v2157_v34, %v2166_v33 }
 0x1d2   : > { %3167 = vmatprep.mubr.msk.bf16.mxu0 %vm3396_vm2, %v3395_v5  ;;  %3263 = vmatprep.mubr.msk.bf16.mxu1 %vm3396_vm2, %v3395_v5 }
 0x1d4   : > { %v1205_v31 = vpop.f32.mrb[44].mxu0  ;;  %v1480_v36 = vpop.f32.mrb[48].mxu1 }
 0x1d5   : > { %v4538_v32 = vadd.f32 %v1472_v17, %v1205_v31  ;;  %v2961_v26 = vpop.f32.mrb[45].mxu0  ;;  %v3057_v9 = vpop.f32.mrb[49].mxu1 }
 0x1d6   : > { %v1208_v62 = vpop.f32.mrb[46].mxu0  ;;  %v1483_v45 = vpop.f32.mrb[50].mxu1 }
 0x1d7   : > { %v4540_v12 = vadd.f32 %v1475_v52, %v1208_v62  ;;  %v2962_v50 = vpop.f32.mrb[47].mxu0  ;;  %v3058_v16 = vpop.f32.mrb[51].mxu1 }
 0x1d9   : > { %3168 = vmatmul.mubr.msk.bf16.gmra.mrb[152].mxu0 %vm764_vm0, %v1637_v0  ;;  %3264 = vmatmul.mubr.msk.bf16.gmra.mrb[156].mxu1 %vm764_vm0, %v2158_v60 }
 0x1da   : > { %3171 = vmatprep.mubr.msk.bf16.mxu0 %vm3396_vm2, %v3395_v5  ;;  %3267 = vmatprep.mubr.msk.bf16.mxu1 %vm3396_vm2, %v3395_v5 }
 0x1dc   : > { %v1213_v8 = vpop.f32.mrb[48].mxu0  ;;  %v1488_v39 = vpop.f32.mrb[52].mxu1 }
 0x1dd   : > { %v4552_v7 = vadd.f32 %v1480_v36, %v1213_v8  ;;  %v2965_v30 = vpop.f32.mrb[49].mxu0  ;;  %v3061_v41 = vpop.f32.mrb[53].mxu1  ;;  %v1641_v36 = vsel %vm1600_vm4, %v1638_v54, %v1640_v13 }
 0x1de   : > { %v1216_v28 = vpop.f32.mrb[50].mxu0  ;;  %v1491_v17 = vpop.f32.mrb[54].mxu1 }
 0x1df   : > { %v4554_v25 = vadd.f32 %v1483_v45, %v1216_v28  ;;  %v2966_v48 = vpop.f32.mrb[51].mxu0  ;;  %v3062_v11 = vpop.f32.mrb[55].mxu1 }
 0x1e1   : > { %3172 = vmatmul.mubr.msk.bf16.gmra.mrb[156].mxu0 %vm764_vm0, %v1639_v53  ;;  %3268 = vmatmul.mubr.msk.bf16.gmra.mrb[160].mxu1 %vm764_vm0, %v2167_v61 }
 0x1e2   : > { %3175 = vmatprep.mubr.msk.bf16.mxu0 %vm3396_vm2, %v3395_v5  ;;  %3271 = vmatprep.mubr.msk.bf16.mxu1 %vm3396_vm2, %v3395_v5 }
 0x1e4   : > { %v1221_v10 = vpop.f32.mrb[52].mxu0  ;;  %v1496_v44 = vpop.f32.mrb[56].mxu1 }
 0x1e5   : > { %v4564_v52 = vadd.f32 %v1488_v39, %v1221_v10  ;;  %v2969_v43 = vpop.f32.mrb[53].mxu0  ;;  %v3065_v3 = vpop.f32.mrb[57].mxu1 }
 0x1e6   : > { %v1224_v63 = vpop.f32.mrb[54].mxu0  ;;  %v1499_v2 = vpop.f32.mrb[58].mxu1 }
 0x1e7   : > { %v4566_v37 = vadd.f32 %v1491_v17, %v1224_v63  ;;  %v2970_v31 = vpop.f32.mrb[55].mxu0  ;;  %v3066_v26 = vpop.f32.mrb[59].mxu1 }
 0x1e9   : > { %3176 = vmatmul.mubr.msk.bf16.gmra.mrb[160].mxu0 %vm764_vm0, %v1641_v36  ;;  %3272 = vmatmul.mubr.msk.bf16.gmra.mrb[164].mxu1 %vm764_vm0, %v2166_v33 }
 0x1ea   : > { %3179 = vmatprep.mubr.msk.bf16.mxu0 %vm3396_vm2, %v3395_v5 }
 0x1ec   : > { %v1229_v34 = vpop.f32.mrb[56].mxu0  ;;  %v1504_v62 = vpop.f32.mrb[60].mxu1 }
 0x1ed   : > { %v4573_v19 = vadd.f32 %v1496_v44, %v1229_v34  ;;  %v2973_v59 = vpop.f32.mrb[57].mxu0  ;;  %v3069_v50 = vpop.f32.mrb[61].mxu1 }
 0x1ee   : > { %v1232_v9 = vpop.f32.mrb[58].mxu0  ;;  %v1507_v0 = vpop.f32.mrb[62].mxu1 }
 0x1ef   : > { %v4575_v45 = vadd.f32 %v1499_v2, %v1232_v9  ;;  %v2974_v16 = vpop.f32.mrb[59].mxu0  ;;  %v3070_v60 = vpop.f32.mrb[63].mxu1 }
 0x1f1   : > { %3180 = vmatmul.mubr.msk.bf16.gmra.mrb[164].mxu0 %vm764_vm0, %v1640_v13 }
 0x1f4   : > { %v1237_v23 = vpop.f32.mrb[60].mxu0  ;;  %v1512_v8 = vpop.f32.mrb[64].mxu1 }
 0x1f5   : > { %v4578_v1 = vadd.f32 %v1504_v62, %v1237_v23  ;;  %v2977_v5 = vpop.f32.mrb[61].mxu0  ;;  %v3073_v30 = vpop.f32.mrb[65].mxu1 }
 0x1f6   : > { %v1240_v54 = vpop.f32.mrb[62].mxu0  ;;  %v1515_v28 = vpop.f32.mrb[66].mxu1 }
 0x1f7   : > { %v4580_v39 = vadd.f32 %v1507_v0, %v1240_v54  ;;  %v2978_v33 = vpop.f32.mrb[63].mxu0  ;;  %v3074_v41 = vpop.f32.mrb[67].mxu1 }
 0x1fc   : > { %v1245_v48 = vpop.f32.mrb[64].mxu0  ;;  %v1520_v53 = vpop.f32.mrb[68].mxu1 }
 0x1fd   : > { %v4582_v17 = vadd.f32 %v1512_v8, %v1245_v48  ;;  %v2981_v11 = vpop.f32.mrb[65].mxu0  ;;  %v3077_v24 = vpop.f32.mrb[69].mxu1 }
 0x1fe   : > { %v1248_v61 = vpop.f32.mrb[66].mxu0  ;;  %v1523_v43 = vpop.f32.mrb[70].mxu1 }
 0x1ff   : > { %v4584_v10 = vadd.f32 %v1515_v28, %v1248_v61  ;;  %v2982_v13 = vpop.f32.mrb[67].mxu0  ;;  %v3078_v44 = vpop.f32.mrb[71].mxu1 }
 0x204   : > { %v1253_v63 = vpop.f32.mrb[68].mxu0  ;;  %v1528_v2 = vpop.f32.mrb[72].mxu1 }
 0x205   : > { %v4586_v3 = vadd.f32 %v1520_v53, %v1253_v63  ;;  %v2985_v31 = vpop.f32.mrb[69].mxu0  ;;  %v3081_v36 = vpop.f32.mrb[73].mxu1 }
 0x206   : > { %v1256_v26 = vpop.f32.mrb[70].mxu0  ;;  %v1531_v62 = vpop.f32.mrb[74].mxu1 }
 0x207   : > { %v4588_v34 = vadd.f32 %v1523_v43, %v1256_v26  ;;  %v2986_v59 = vpop.f32.mrb[71].mxu0  ;;  %v3082_v9 = vpop.f32.mrb[75].mxu1 }
 0x20c   : > { %v1261_v50 = vpop.f32.mrb[72].mxu0  ;;  %v1536_v60 = vpop.f32.mrb[76].mxu1 }
 0x20d   : > { %v4590_v16 = vadd.f32 %v1528_v2, %v1261_v50  ;;  %v2989_v0 = vpop.f32.mrb[73].mxu0  ;;  %v3085_v5 = vpop.f32.mrb[77].mxu1 }
 0x20e   : > { %v1264_v23 = vpop.f32.mrb[74].mxu0  ;;  %v1539_v30 = vpop.f32.mrb[78].mxu1 }
 0x20f   : > { %v4592_v8 = vadd.f32 %v1531_v62, %v1264_v23  ;;  %v2990_v54 = vpop.f32.mrb[75].mxu0  ;;  %v3086_v33 = vpop.f32.mrb[79].mxu1 }
 0x210   : > { %v4604_v54 = vld [vmem:[%s4742_s5] ss:$0 sm:$0xff] }
 0x214   : > { %v1269_v28 = vpop.f32.mrb[76].mxu0  ;;  %v1544_v11 = vpop.f32.mrb[80].mxu1 }
 0x215   : > { %v4594_v41 = vadd.f32 %v1536_v60, %v1269_v28  ;;  %v2993_v48 = vpop.f32.mrb[77].mxu0  ;;  %v3089_v61 = vpop.f32.mrb[81].mxu1 }
 0x216   : > { %v1272_v53 = vpop.f32.mrb[78].mxu0  ;;  %v1547_v43 = vpop.f32.mrb[82].mxu1 }
 0x217   : > { %v4596_v24 = vadd.f32 %v1539_v30, %v1272_v53  ;;  %v2994_v13 = vpop.f32.mrb[79].mxu0  ;;  %v3090_v44 = vpop.f32.mrb[83].mxu1 }
 0x21c   : > { %v1277_v63 = vpop.f32.mrb[80].mxu0  ;;  %v2289_v26 = vpop.f32.mrb[84].mxu1 }
 0x21d   : > { %v4598_v31 = vadd.f32 %v1544_v11, %v1277_v63  ;;  %v2997_v2 = vpop.f32.mrb[81].mxu0  ;;  %v3193_v59 = vpop.f32.mrb[85].mxu1 }
 0x21e   : > { %v1280_v36 = vpop.f32.mrb[82].mxu0  ;;  %v2292_v9 = vpop.f32.mrb[86].mxu1 }
 0x21f   : > { %v2998_v62 = vpop.f32.mrb[83].mxu0  ;;  %v3194_v50 = vpop.f32.mrb[87].mxu1 }
 0x224   : > { %v1763_v0 = vpop.f32.mrb[84].mxu0  ;;  %v2297_v5 = vpop.f32.mrb[88].mxu1 }
 0x225   : > { %v1929_v60 = vadd.f32 %v1763_v0, %v4396_v20  ;;  %v3101_v23 = vpop.f32.mrb[85].mxu0  ;;  %v3197_v33 = vpop.f32.mrb[89].mxu1 }
 0x226   : > { %v1766_v30 = vpop.f32.mrb[86].mxu0  ;;  %v2300_v53 = vpop.f32.mrb[90].mxu1 }
 0x227   : > { %v2455_v28 = vadd.f32 %v2289_v26, %v1929_v60  ;;  %v1930_v48 = vadd.f32 %v1766_v30, %v4398_v40  ;;  %v3102_v11 = vpop.f32.mrb[87].mxu0  ;;  %v3198_v61 = vpop.f32.mrb[91].mxu1 }
 0x229   : > { %v2503_v13 = vadd.f32 %v4604_v54, %v2455_v28  ;;  %v2456_v43 = vadd.f32 %v2292_v9, %v1930_v48 }
 0x22b   : > { %3304 = vtanh.f32 %v2503_v13  ;;  %v2504_v20 = vadd.f32 %v4604_v54, %v2456_v43 }
 0x22c   : > { %v1771_v44 = vpop.f32.mrb[88].mxu0  ;;  %v2305_v36 = vpop.f32.mrb[92].mxu1 }
 0x22d   : > { %3306 = vtanh.f32 %v2504_v20  ;;  %v1931_v63 = vadd.f32 %v1771_v44, %v4408_v14  ;;  %v3105_v2 = vpop.f32.mrb[89].mxu0  ;;  %v3201_v26 = vpop.f32.mrb[93].mxu1 }
 0x22e   : > { %v1774_v59 = vpop.f32.mrb[90].mxu0  ;;  %v2308_v0 = vpop.f32.mrb[94].mxu1 }
 0x22f   : > { %v2457_v62 = vadd.f32 %v2297_v5, %v1931_v63  ;;  %v1932_v40 = vadd.f32 %v1774_v59, %v4410_v6  ;;  %v3106_v50 = vpop.f32.mrb[91].mxu0  ;;  %v3202_v60 = vpop.f32.mrb[95].mxu1 }
 0x231   : > { %v2505_v9 = vadd.f32 %v4604_v54, %v2457_v62  ;;  %v2458_v23 = vadd.f32 %v2300_v53, %v1932_v40 }
 0x233   : > { %3308 = vtanh.f32 %v2505_v9  ;;  %v2506_v14 = vadd.f32 %v4604_v54, %v2458_v23 }
 0x234   : > { %v1779_v30 = vpop.f32.mrb[92].mxu0  ;;  %v2313_v28 = vpop.f32.mrb[96].mxu1 }
 0x235   : > { %v3305_v5 = vpop.eup %3304  ;;  %3310 = vtanh.f32 %v2506_v14  ;;  %v1933_v6 = vadd.f32 %v1779_v30, %v4420_v55  ;;  %v3109_v33 = vpop.f32.mrb[93].mxu0 }
 0x236   : > { %2585 = vst [vmem:[%s4616_s28] sm:$0xff] %v3305_v5  ;;  %v1782_v48 = vpop.f32.mrb[94].mxu0  ;;  %v3205_v11 = vpop.f32.mrb[97].mxu1 }
 0x237   : > { %v3307_v53 = vpop.eup %3306  ;;  %v2459_v61 = vadd.f32 %v2305_v36, %v1933_v6  ;;  %v1934_v13 = vadd.f32 %v1782_v48, %v4422_v42  ;;  %v3110_v43 = vpop.f32.mrb[95].mxu0 }
 0x238   : > { %v2316_v20 = vpop.f32.mrb[98].mxu1  ;;  %2586 = vst [vmem:[%s4616_s28 + $0x8] sm:$0xff] %v3307_v53 }
 0x239   : > { %v3206_v44 = vpop.f32.mrb[99].mxu1  ;;  %v2507_v63 = vadd.f32 %v4604_v54, %v2459_v61  ;;  %v2460_v2 = vadd.f32 %v2308_v0, %v1934_v13 }
 0x23b   : > { %3312 = vtanh.f32 %v2507_v63  ;;  %v2508_v55 = vadd.f32 %v4604_v54, %v2460_v2 }
 0x23c   : > { %v1787_v59 = vpop.f32.mrb[96].mxu0  ;;  %v2321_v40 = vpop.f32.mrb[100].mxu1 }
 0x23d   : > { %v3309_v26 = vpop.eup %3308  ;;  %3314 = vtanh.f32 %v2508_v55  ;;  %v1935_v62 = vadd.f32 %v1787_v59, %v4432_v46  ;;  %v3113_v36 = vpop.f32.mrb[97].mxu0 }
 0x23e   : > { %2587 = vst [vmem:[%s4616_s28 + $0x10] sm:$0xff] %v3309_v26  ;;  %v1790_v42 = vpop.f32.mrb[98].mxu0  ;;  %v3209_v50 = vpop.f32.mrb[101].mxu1 }
 0x23f   : > { %v3311_v60 = vpop.eup %3310  ;;  %v2461_v9 = vadd.f32 %v2313_v28, %v1935_v62  ;;  %v1936_v23 = vadd.f32 %v1790_v42, %v4434_v58  ;;  %v3114_v0 = vpop.f32.mrb[99].mxu0 }
 0x240   : > { %v2324_v14 = vpop.f32.mrb[102].mxu1  ;;  %2588 = vst [vmem:[%s4616_s28 + $0x18] sm:$0xff] %v3311_v60 }
 0x241   : > { %v3210_v30 = vpop.f32.mrb[103].mxu1  ;;  %v2509_v5 = vadd.f32 %v4604_v54, %v2461_v9  ;;  %v2462_v6 = vadd.f32 %v2316_v20, %v1936_v23 }
 0x243   : > { %3316 = vtanh.f32 %v2509_v5  ;;  %v2510_v46 = vadd.f32 %v4604_v54, %v2462_v6 }
 0x244   : > { %v1795_v33 = vpop.f32.mrb[100].mxu0  ;;  %v2329_v53 = vpop.f32.mrb[104].mxu1 }
 0x245   : > { %v3313_v48 = vpop.eup %3312  ;;  %3318 = vtanh.f32 %v2510_v46  ;;  %v1937_v11 = vadd.f32 %v1795_v33, %v4444_v35  ;;  %v3117_v28 = vpop.f32.mrb[101].mxu0 }
 0x246   : > { %2589 = vst [vmem:[%s4616_s28 + $0x20] sm:$0xff] %v3313_v48  ;;  %v1798_v58 = vpop.f32.mrb[102].mxu0  ;;  %v3213_v61 = vpop.f32.mrb[105].mxu1 }
 0x247   : > { %v3315_v13 = vpop.eup %3314  ;;  %v2463_v43 = vadd.f32 %v2321_v40, %v1937_v11  ;;  %v1938_v44 = vadd.f32 %v1798_v58, %v4446_v56  ;;  %v3118_v20 = vpop.f32.mrb[103].mxu0 }
 0x248   : > { %v2332_v63 = vpop.f32.mrb[106].mxu1  ;;  %2590 = vst [vmem:[%s4616_s28 + $0x28] sm:$0xff] %v3315_v13 }
 0x249   : > { %v3214_v2 = vpop.f32.mrb[107].mxu1  ;;  %v2511_v55 = vadd.f32 %v4604_v54, %v2463_v43  ;;  %v2464_v59 = vadd.f32 %v2324_v14, %v1938_v44 }
 0x24b   : > { %3320 = vtanh.f32 %v2511_v55  ;;  %v2512_v35 = vadd.f32 %v4604_v54, %v2464_v59 }
 0x24c   : > { %v1803_v26 = vpop.f32.mrb[104].mxu0  ;;  %v2337_v42 = vpop.f32.mrb[108].mxu1 }
 0x24d   : > { %v3317_v62 = vpop.eup %3316  ;;  %3322 = vtanh.f32 %v2512_v35  ;;  %v1939_v36 = vadd.f32 %v1803_v26, %v4456_v21  ;;  %v3121_v40 = vpop.f32.mrb[105].mxu0 }
 0x24e   : > { %2591 = vst [vmem:[%s4616_s28 + $0x30] sm:$0xff] %v3317_v62  ;;  %v1806_v56 = vpop.f32.mrb[106].mxu0  ;;  %v3217_v50 = vpop.f32.mrb[109].mxu1 }
 0x24f   : > { %v3319_v60 = vpop.eup %3318  ;;  %v2465_v9 = vadd.f32 %v2329_v53, %v1939_v36  ;;  %v1940_v23 = vadd.f32 %v1806_v56, %v4458_v4  ;;  %v3122_v0 = vpop.f32.mrb[107].mxu0 }
 0x250   : > { %v2340_v14 = vpop.f32.mrb[110].mxu1  ;;  %2592 = vst [vmem:[%s4616_s28 + $0x38] sm:$0xff] %v3319_v60 }
 0x251   : > { %v3218_v30 = vpop.f32.mrb[111].mxu1  ;;  %v2513_v5 = vadd.f32 %v4604_v54, %v2465_v9  ;;  %v2466_v6 = vadd.f32 %v2332_v63, %v1940_v23 }
 0x253   : > { %3324 = vtanh.f32 %v2513_v5  ;;  %v2514_v21 = vadd.f32 %v4604_v54, %v2466_v6 }
 0x254   : > { %v1811_v46 = vpop.f32.mrb[108].mxu0  ;;  %v2345_v28 = vpop.f32.mrb[112].mxu1 }
 0x255   : > { %v3321_v33 = vpop.eup %3320  ;;  %3326 = vtanh.f32 %v2514_v21  ;;  %v1941_v48 = vadd.f32 %v1811_v46, %v4468_v47  ;;  %v3125_v11 = vpop.f32.mrb[109].mxu0 }
 0x256   : > { %2593 = vst [vmem:[%s4616_s28 + $0x40] sm:$0xff] %v3321_v33  ;;  %v1814_v4 = vpop.f32.mrb[110].mxu0  ;;  %v3221_v53 = vpop.f32.mrb[113].mxu1 }
 0x257   : > { %v3323_v58 = vpop.eup %3322  ;;  %v2467_v61 = vadd.f32 %v2337_v42, %v1941_v48  ;;  %v1942_v13 = vadd.f32 %v1814_v4, %v4470_v27  ;;  %v3126_v43 = vpop.f32.mrb[111].mxu0 }
 0x258   : > { %v2348_v44 = vpop.f32.mrb[114].mxu1  ;;  %2594 = vst [vmem:[%s4616_s28 + $0x48] sm:$0xff] %v3323_v58 }
 0x259   : > { %v3222_v20 = vpop.f32.mrb[115].mxu1  ;;  %v2515_v63 = vadd.f32 %v4604_v54, %v2467_v61  ;;  %v2468_v2 = vadd.f32 %v2340_v14, %v1942_v13 }
 0x25b   : > { %3328 = vtanh.f32 %v2515_v63  ;;  %v2516_v47 = vadd.f32 %v4604_v54, %v2468_v2 }
 0x25c   : > { %v1819_v55 = vpop.f32.mrb[112].mxu0  ;;  %v2353_v62 = vpop.f32.mrb[116].mxu1 }
 0x25d   : > { %v3325_v59 = vpop.eup %3324  ;;  %3330 = vtanh.f32 %v2516_v47  ;;  %v1943_v35 = vadd.f32 %v1819_v55, %v4480_v49  ;;  %v3129_v26 = vpop.f32.mrb[113].mxu0 }
 0x25e   : > { %2595 = vst [vmem:[%s4616_s28 + $0x50] sm:$0xff] %v3325_v59  ;;  %v1822_v27 = vpop.f32.mrb[114].mxu0  ;;  %v3225_v36 = vpop.f32.mrb[117].mxu1 }
 0x25f   : > { %v3327_v40 = vpop.eup %3326  ;;  %v2469_v42 = vadd.f32 %v2345_v28, %v1943_v35  ;;  %v1944_v56 = vadd.f32 %v1822_v27, %v4482_v22  ;;  %v3130_v50 = vpop.f32.mrb[115].mxu0 }
 0x260   : > { %v2356_v60 = vpop.f32.mrb[118].mxu1  ;;  %2596 = vst [vmem:[%s4616_s28 + $0x58] sm:$0xff] %v3327_v40 }
 0x261   : > { %v3226_v9 = vpop.f32.mrb[119].mxu1  ;;  %v2517_v23 = vadd.f32 %v4604_v54, %v2469_v42  ;;  %v2470_v0 = vadd.f32 %v2348_v44, %v1944_v56 }
 0x263   : > { %3332 = vtanh.f32 %v2517_v23  ;;  %v2518_v49 = vadd.f32 %v4604_v54, %v2470_v0 }
 0x264   : > { %v1827_v14 = vpop.f32.mrb[116].mxu0  ;;  %v2361_v21 = vpop.f32.mrb[120].mxu1 }
 0x265   : > { %v3329_v30 = vpop.eup %3328  ;;  %3334 = vtanh.f32 %v2518_v49  ;;  %v1945_v5 = vadd.f32 %v1827_v14, %v4493_v29  ;;  %v3133_v6 = vpop.f32.mrb[117].mxu0 }
 0x266   : > { %2597 = vst [vmem:[%s4616_s28 + $0x60] sm:$0xff] %v3329_v30  ;;  %v1830_v22 = vpop.f32.mrb[118].mxu0  ;;  %v3229_v46 = vpop.f32.mrb[121].mxu1 }
 0x267   : > { %v3331_v33 = vpop.eup %3330  ;;  %v2471_v48 = vadd.f32 %v2353_v62, %v1945_v5  ;;  %v1946_v11 = vadd.f32 %v1830_v22, %v4495_v51  ;;  %v3134_v28 = vpop.f32.mrb[119].mxu0 }
 0x268   : > { %v2364_v4 = vpop.f32.mrb[122].mxu1  ;;  %2598 = vst [vmem:[%s4616_s28 + $0x68] sm:$0xff] %v3331_v33 }
 0x269   : > { %v3230_v53 = vpop.f32.mrb[123].mxu1  ;;  %v2519_v58 = vadd.f32 %v4604_v54, %v2471_v48  ;;  %v2472_v61 = vadd.f32 %v2356_v60, %v1946_v11 }
 0x26b   : > { %3336 = vtanh.f32 %v2519_v58  ;;  %v2520_v29 = vadd.f32 %v4604_v54, %v2472_v61 }
 0x26c   : > { %v1835_v13 = vpop.f32.mrb[120].mxu0  ;;  %v2369_v63 = vpop.f32.mrb[124].mxu1 }
 0x26d   : > { %v3333_v43 = vpop.eup %3332  ;;  %3338 = vtanh.f32 %v2520_v29  ;;  %v1947_v44 = vadd.f32 %v1835_v13, %v4508_v57  ;;  %v3137_v20 = vpop.f32.mrb[121].mxu0 }
 0x26e   : > { %2599 = vst [vmem:[%s4616_s28 + $0x70] sm:$0xff] %v3333_v43  ;;  %v1838_v51 = vpop.f32.mrb[122].mxu0  ;;  %v3233_v2 = vpop.f32.mrb[125].mxu1 }
 0x26f   : > { %v3335_v47 = vpop.eup %3334  ;;  %v2473_v55 = vadd.f32 %v2361_v21, %v1947_v44  ;;  %v1948_v59 = vadd.f32 %v1838_v51, %v4510_v15  ;;  %v3138_v35 = vpop.f32.mrb[123].mxu0 }
 0x270   : > { %v2372_v26 = vpop.f32.mrb[126].mxu1  ;;  %2600 = vst [vmem:[%s4616_s28 + $0x78] sm:$0xff] %v3335_v47 }
 0x271   : > { %v3234_v62 = vpop.f32.mrb[127].mxu1  ;;  %v2521_v27 = vadd.f32 %v4604_v54, %v2473_v55  ;;  %v2474_v36 = vadd.f32 %v2364_v4, %v1948_v59 }
 0x273   : > { %3340 = vtanh.f32 %v2521_v27  ;;  %v2522_v57 = vadd.f32 %v4604_v54, %v2474_v36 }
 0x274   : > { %v1843_v40 = vpop.f32.mrb[124].mxu0  ;;  %v2377_v60 = vpop.f32.mrb[128].mxu1 }
 0x275   : > { %v3337_v42 = vpop.eup %3336  ;;  %3342 = vtanh.f32 %v2522_v57  ;;  %v1949_v56 = vadd.f32 %v1843_v40, %v4523_v38  ;;  %v3141_v50 = vpop.f32.mrb[125].mxu0 }
 0x276   : > { %2601 = vst [vmem:[%s4616_s28 + $0x80] sm:$0xff] %v3337_v42  ;;  %v1846_v15 = vpop.f32.mrb[126].mxu0  ;;  %v3237_v9 = vpop.f32.mrb[129].mxu1 }
 0x277   : > { %v3339_v23 = vpop.eup %3338  ;;  %v2475_v0 = vadd.f32 %v2369_v63, %v1949_v56  ;;  %v1950_v49 = vadd.f32 %v1846_v15, %v4527_v18  ;;  %v3142_v14 = vpop.f32.mrb[127].mxu0 }
 0x278   : > { %v2380_v30 = vpop.f32.mrb[130].mxu1  ;;  %2602 = vst [vmem:[%s4616_s28 + $0x88] sm:$0xff] %v3339_v23 }
 0x279   : > { %v3238_v5 = vpop.f32.mrb[131].mxu1  ;;  %v2523_v6 = vadd.f32 %v4604_v54, %v2475_v0  ;;  %v2476_v21 = vadd.f32 %v2372_v26, %v1950_v49 }
 0x27b   : > { %3344 = vtanh.f32 %v2523_v6  ;;  %v2524_v38 = vadd.f32 %v4604_v54, %v2476_v21 }
 0x27c   : > { %v1851_v22 = vpop.f32.mrb[128].mxu0  ;;  %v2385_v11 = vpop.f32.mrb[132].mxu1 }
 0x27d   : > { %v3341_v46 = vpop.eup %3340  ;;  %3346 = vtanh.f32 %v2524_v38  ;;  %v1951_v33 = vadd.f32 %v1851_v22, %v4538_v32  ;;  %v3145_v48 = vpop.f32.mrb[129].mxu0 }
 0x27e   : > { %2603 = vst [vmem:[%s4616_s28 + $0x90] sm:$0xff] %v3341_v46  ;;  %v1854_v18 = vpop.f32.mrb[130].mxu0  ;;  %v3241_v28 = vpop.f32.mrb[133].mxu1 }
 0x27f   : > { %v3343_v4 = vpop.eup %3342  ;;  %v2477_v53 = vadd.f32 %v2377_v60, %v1951_v33  ;;  %v1952_v58 = vadd.f32 %v1854_v18, %v4540_v12  ;;  %v3146_v61 = vpop.f32.mrb[131].mxu0 }
 0x280   : > { %v2388_v29 = vpop.f32.mrb[134].mxu1  ;;  %2604 = vst [vmem:[%s4616_s28 + $0x98] sm:$0xff] %v3343_v4 }
 0x281   : > { %v3242_v13 = vpop.f32.mrb[135].mxu1  ;;  %v2525_v43 = vadd.f32 %v4604_v54, %v2477_v53  ;;  %v2478_v44 = vadd.f32 %v2380_v30, %v1952_v58 }
 0x283   : > { %3348 = vtanh.f32 %v2525_v43  ;;  %v2526_v32 = vadd.f32 %v4604_v54, %v2478_v44 }
 0x284   : > { %v1859_v20 = vpop.f32.mrb[132].mxu0  ;;  %v2393_v47 = vpop.f32.mrb[136].mxu1 }
 0x285   : > { %v3345_v63 = vpop.eup %3344  ;;  %3350 = vtanh.f32 %v2526_v32  ;;  %v1953_v51 = vadd.f32 %v1859_v20, %v4552_v7  ;;  %v3149_v2 = vpop.f32.mrb[133].mxu0 }
 0x286   : > { %2605 = vst [vmem:[%s4616_s28 + $0xa0] sm:$0xff] %v3345_v63  ;;  %v1862_v12 = vpop.f32.mrb[134].mxu0  ;;  %v3245_v55 = vpop.f32.mrb[137].mxu1 }
 0x287   : > { %v3347_v59 = vpop.eup %3346  ;;  %v2479_v35 = vadd.f32 %v2385_v11, %v1953_v51  ;;  %v1954_v26 = vadd.f32 %v1862_v12, %v4554_v25  ;;  %v3150_v62 = vpop.f32.mrb[135].mxu0 }
 0x288   : > { %v2396_v27 = vpop.f32.mrb[138].mxu1  ;;  %2606 = vst [vmem:[%s4616_s28 + $0xa8] sm:$0xff] %v3347_v59 }
 0x289   : > { %v3246_v36 = vpop.f32.mrb[139].mxu1  ;;  %v2527_v57 = vadd.f32 %v4604_v54, %v2479_v35  ;;  %v2480_v40 = vadd.f32 %v2388_v29, %v1954_v26 }
 0x28b   : > { %3352 = vtanh.f32 %v2527_v57  ;;  %v2528_v7 = vadd.f32 %v4604_v54, %v2480_v40 }
 0x28c   : > { %v1867_v42 = vpop.f32.mrb[136].mxu0  ;;  %v2401_v15 = vpop.f32.mrb[140].mxu1 }
 0x28d   : > { %v3349_v56 = vpop.eup %3348  ;;  %3354 = vtanh.f32 %v2528_v7  ;;  %v1955_v50 = vadd.f32 %v1867_v42, %v4564_v52  ;;  %v3153_v60 = vpop.f32.mrb[137].mxu0 }
 0x28e   : > { %2607 = vst [vmem:[%s4616_s28 + $0xb0] sm:$0xff] %v3349_v56  ;;  %v1870_v25 = vpop.f32.mrb[138].mxu0  ;;  %v3249_v9 = vpop.f32.mrb[141].mxu1 }
 0x28f   : > { %v3351_v23 = vpop.eup %3350  ;;  %v2481_v0 = vadd.f32 %v2393_v47, %v1955_v50  ;;  %v1956_v49 = vadd.f32 %v1870_v25, %v4566_v37  ;;  %v3154_v14 = vpop.f32.mrb[139].mxu0 }
 0x290   : > { %v2404_v30 = vpop.f32.mrb[142].mxu1  ;;  %2608 = vst [vmem:[%s4616_s28 + $0xb8] sm:$0xff] %v3351_v23 }
 0x291   : > { %v3250_v5 = vpop.f32.mrb[143].mxu1  ;;  %v2529_v6 = vadd.f32 %v4604_v54, %v2481_v0  ;;  %v2482_v21 = vadd.f32 %v2396_v27, %v1956_v49 }
 0x293   : > { %3356 = vtanh.f32 %v2529_v6  ;;  %v2530_v52 = vadd.f32 %v4604_v54, %v2482_v21 }
 0x294   : > { %v1875_v38 = vpop.f32.mrb[140].mxu0  ;;  %v2409_v48 = vpop.f32.mrb[144].mxu1 }
 0x295   : > { %v3353_v22 = vpop.eup %3352  ;;  %3358 = vtanh.f32 %v2530_v52  ;;  %v1957_v46 = vadd.f32 %v1875_v38, %v4573_v19  ;;  %v3157_v33 = vpop.f32.mrb[141].mxu0 }
 0x296   : > { %2609 = vst [vmem:[%s4616_s28 + $0xc0] sm:$0xff] %v3353_v22  ;;  %v1878_v37 = vpop.f32.mrb[142].mxu0  ;;  %v3253_v11 = vpop.f32.mrb[145].mxu1 }
 0x297   : > { %v3355_v18 = vpop.eup %3354  ;;  %v2483_v28 = vadd.f32 %v2401_v15, %v1957_v46  ;;  %v1958_v4 = vadd.f32 %v1878_v37, %v4575_v45  ;;  %v3158_v53 = vpop.f32.mrb[143].mxu0 }
 0x298   : > { %v2412_v58 = vpop.f32.mrb[146].mxu1  ;;  %2610 = vst [vmem:[%s4616_s28 + $0xc8] sm:$0xff] %v3355_v18 }
 0x299   : > { %v3254_v61 = vpop.f32.mrb[147].mxu1  ;;  %v2531_v29 = vadd.f32 %v4604_v54, %v2483_v28  ;;  %v2484_v13 = vadd.f32 %v2404_v30, %v1958_v4 }
 0x29b   : > { %3360 = vtanh.f32 %v2531_v29  ;;  %v2532_v19 = vadd.f32 %v4604_v54, %v2484_v13 }
 0x29c   : > { %v1883_v43 = vpop.f32.mrb[144].mxu0  ;;  %v2417_v63 = vpop.f32.mrb[148].mxu1 }
 0x29d   : > { %v3357_v44 = vpop.eup %3356  ;;  %3362 = vtanh.f32 %v2532_v19  ;;  %v1959_v32 = vadd.f32 %v1883_v43, %v4578_v1  ;;  %v3161_v20 = vpop.f32.mrb[145].mxu0 }
 0x29e   : > { %2611 = vst [vmem:[%s4616_s28 + $0xd0] sm:$0xff] %v3357_v44  ;;  %v1886_v45 = vpop.f32.mrb[146].mxu0  ;;  %v3257_v51 = vpop.f32.mrb[149].mxu1 }
 0x29f   : > { %v3359_v2 = vpop.eup %3358  ;;  %v2485_v47 = vadd.f32 %v2409_v48, %v1959_v32  ;;  %v1960_v12 = vadd.f32 %v1886_v45, %v4580_v39  ;;  %v3162_v55 = vpop.f32.mrb[147].mxu0 }
 0x2a0   : > { %v2420_v59 = vpop.f32.mrb[150].mxu1  ;;  %2612 = vst [vmem:[%s4616_s28 + $0xd8] sm:$0xff] %v3359_v2 }
 0x2a1   : > { %v3258_v35 = vpop.f32.mrb[151].mxu1  ;;  %v2533_v26 = vadd.f32 %v4604_v54, %v2485_v47  ;;  %v2486_v62 = vadd.f32 %v2412_v58, %v1960_v12 }
 0x2a3   : > { %3364 = vtanh.f32 %v2533_v26  ;;  %v2534_v1 = vadd.f32 %v4604_v54, %v2486_v62 }
 0x2a4   : > { %v1891_v27 = vpop.f32.mrb[148].mxu0  ;;  %v2425_v7 = vpop.f32.mrb[152].mxu1 }
 0x2a5   : > { %v3361_v36 = vpop.eup %3360  ;;  %3366 = vtanh.f32 %v2534_v1  ;;  %v1961_v57 = vadd.f32 %v1891_v27, %v4582_v17  ;;  %v3165_v40 = vpop.f32.mrb[149].mxu0 }
 0x2a6   : > { %2613 = vst [vmem:[%s4616_s28 + $0xe0] sm:$0xff] %v3361_v36  ;;  %v1894_v39 = vpop.f32.mrb[150].mxu0  ;;  %v3261_v42 = vpop.f32.mrb[153].mxu1 }
 0x2a7   : > { %v3363_v56 = vpop.eup %3362  ;;  %v2487_v50 = vadd.f32 %v2417_v63, %v1961_v57  ;;  %v1962_v60 = vadd.f32 %v1894_v39, %v4584_v10  ;;  %v3166_v15 = vpop.f32.mrb[151].mxu0 }
 0x2a8   : > { %v2428_v25 = vpop.f32.mrb[154].mxu1  ;;  %2614 = vst [vmem:[%s4616_s28 + $0xe8] sm:$0xff] %v3363_v56 }
 0x2a9   : > { %v3262_v9 = vpop.f32.mrb[155].mxu1  ;;  %v2535_v23 = vadd.f32 %v4604_v54, %v2487_v50  ;;  %v2488_v0 = vadd.f32 %v2420_v59, %v1962_v60 }
 0x2ab   : > { %3368 = vtanh.f32 %v2535_v23  ;;  %v2536_v17 = vadd.f32 %v4604_v54, %v2488_v0 }
 0x2ac   : > { %v1899_v49 = vpop.f32.mrb[152].mxu0  ;;  %v2433_v6 = vpop.f32.mrb[156].mxu1 }
 0x2ad   : > { %v3365_v14 = vpop.eup %3364  ;;  %3370 = vtanh.f32 %v2536_v17  ;;  %v1963_v30 = vadd.f32 %v1899_v49, %v4586_v3  ;;  %v3169_v5 = vpop.f32.mrb[153].mxu0 }
 0x2ae   : > { %2615 = vst [vmem:[%s4616_s28 + $0xf0] sm:$0xff] %v3365_v14  ;;  %v1902_v10 = vpop.f32.mrb[154].mxu0  ;;  %v3265_v21 = vpop.f32.mrb[157].mxu1 }
 0x2af   : > { %v3367_v52 = vpop.eup %3366  ;;  %v2489_v38 = vadd.f32 %v2425_v7, %v1963_v30  ;;  %v1964_v22 = vadd.f32 %v1902_v10, %v4588_v34  ;;  %v3170_v46 = vpop.f32.mrb[155].mxu0 }
 0x2b0   : > { %v2436_v33 = vpop.f32.mrb[158].mxu1  ;;  %2616 = vst [vmem:[%s4616_s28 + $0xf8] sm:$0xff] %v3367_v52 }
 0x2b1   : > { %v3266_v48 = vpop.f32.mrb[159].mxu1  ;;  %v2537_v37 = vadd.f32 %v4604_v54, %v2489_v38  ;;  %v2490_v11 = vadd.f32 %v2428_v25, %v1964_v22 }
 0x2b3   : > { %3372 = vtanh.f32 %v2537_v37  ;;  %v2538_v3 = vadd.f32 %v4604_v54, %v2490_v11 }
 0x2b4   : > { %v1907_v18 = vpop.f32.mrb[156].mxu0  ;;  %v2441_v58 = vpop.f32.mrb[160].mxu1 }
 0x2b5   : > { %v3369_v28 = vpop.eup %3368  ;;  %3374 = vtanh.f32 %v2538_v3  ;;  %v1965_v4 = vadd.f32 %v1907_v18, %v4590_v16  ;;  %v3173_v53 = vpop.f32.mrb[157].mxu0 }
 0x2b6   : > { %2617 = vst [vmem:[%s4616_s28 + $0x100] sm:$0xff] %v3369_v28  ;;  %v1910_v34 = vpop.f32.mrb[158].mxu0  ;;  %v3269_v61 = vpop.f32.mrb[161].mxu1 }
 0x2b7   : > { %v3371_v29 = vpop.eup %3370  ;;  %v2491_v13 = vadd.f32 %v2433_v6, %v1965_v4  ;;  %v1966_v19 = vadd.f32 %v1910_v34, %v4592_v8  ;;  %v3174_v43 = vpop.f32.mrb[159].mxu0 }
 0x2b8   : > { %v2444_v44 = vpop.f32.mrb[162].mxu1  ;;  %2618 = vst [vmem:[%s4616_s28 + $0x108] sm:$0xff] %v3371_v29 }
 0x2b9   : > { %v3270_v32 = vpop.f32.mrb[163].mxu1  ;;  %v2539_v20 = vadd.f32 %v4604_v54, %v2491_v13  ;;  %v2492_v63 = vadd.f32 %v2436_v33, %v1966_v19 }
 0x2bb   : > { %3376 = vtanh.f32 %v2539_v20  ;;  %v2540_v16 = vadd.f32 %v4604_v54, %v2492_v63 }
 0x2bc   : > { %v1915_v45 = vpop.f32.mrb[160].mxu0  ;;  %v2449_v12 = vpop.f32.mrb[164].mxu1 }
 0x2bd   : > { %v3373_v51 = vpop.eup %3372  ;;  %3378 = vtanh.f32 %v2540_v16  ;;  %v1967_v2 = vadd.f32 %v1915_v45, %v4594_v41  ;;  %v3177_v47 = vpop.f32.mrb[161].mxu0 }
 0x2be   : > { %2619 = vst [vmem:[%s4616_s28 + $0x110] sm:$0xff] %v3373_v51  ;;  %v1918_v8 = vpop.f32.mrb[162].mxu0  ;;  %v3273_v55 = vpop.f32.mrb[165].mxu1 }
 0x2bf   : > { %v3375_v59 = vpop.eup %3374  ;;  %v2493_v35 = vadd.f32 %v2441_v58, %v1967_v2  ;;  %v1968_v26 = vadd.f32 %v1918_v8, %v4596_v24  ;;  %v3178_v62 = vpop.f32.mrb[163].mxu0 }
 0x2c0   : > { %v2452_v1 = vpop.f32.mrb[166].mxu1  ;;  %2620 = vst [vmem:[%s4616_s28 + $0x118] sm:$0xff] %v3375_v59 }
 0x2c1   : > { %v3274_v27 = vpop.f32.mrb[167].mxu1  ;;  %v2541_v36 = vadd.f32 %v4604_v54, %v2493_v35  ;;  %v2494_v57 = vadd.f32 %v2444_v44, %v1968_v26 }
 0x2c3   : > { %3380 = vtanh.f32 %v2541_v36  ;;  %v2542_v41 = vadd.f32 %v4604_v54, %v2494_v57 }
 0x2c4   : > { %v1923_v40 = vpop.f32.mrb[164].mxu0 }
 0x2c5   : > { %v3377_v7 = vpop.eup %3376  ;;  %3382 = vtanh.f32 %v2542_v41  ;;  %v1969_v39 = vadd.f32 %v1923_v40, %v4598_v31  ;;  %v3181_v24 = vpop.f32.mrb[165].mxu0 }
 0x2c6   : > { %2621 = vst [vmem:[%s4616_s28 + $0x120] sm:$0xff] %v3377_v7  ;;  %v1926_v42 = vpop.f32.mrb[166].mxu0 }
 0x2c7   : > { %v3379_v56 = vpop.eup %3378  ;;  %v2495_v50 = vadd.f32 %v2449_v12, %v1969_v39  ;;  %v3182_v60 = vpop.f32.mrb[167].mxu0 }
 0x2c8   : > { %2622 = vst [vmem:[%s4616_s28 + $0x128] sm:$0xff] %v3379_v56 }
 0x2c9   : > { %v2543_v15 = vadd.f32 %v4604_v54, %v2495_v50 }
 0x2cb   : > { %3384 = vtanh.f32 %v2543_v15 }
 0x2cd   : > { %v3381_v25 = vpop.eup %3380 }
 0x2ce   : > { %2623 = vst [vmem:[%s4616_s28 + $0x130] sm:$0xff] %v3381_v25 }
 0x2cf   : > { %v3383_v9 = vpop.eup %3382 }
 0x2d0   : > { %2624 = vst [vmem:[%s4616_s28 + $0x138] sm:$0xff] %v3383_v9 }
 0x2d5   : > { %v3385_v23 = vpop.eup %3384 }
 0x2d6   : > { %2625 = vst [vmem:[%s4616_s28 + $0x140] sm:$0xff] %v3385_v23 }
 0x2d7 PF: > { %s16_s21 = sadd.s32 1, %s3392_s21  }
 0x2d8   : > { %p13_p4 = scmp.ge.s32.totalorder %s16_s21, 4  }
 0x2da   :  { %15 = sbr.rel (!%p13_p4) target bundleno = 1 (0x1), region = 77 }

</bundles_post_ra>
